<compile_context>
chip_gen: v7x
topology: tpu7x:2x2x1
jax: 0.10.0
libtpu: 0.0.40
codegen_flags: <defaults>
</compile_context>

<pallas_src>
import jax
import jax.numpy as jnp
from jax import lax
from jax.experimental import pallas as pl
from jax.experimental.pallas import tpu as pltpu


def _round_up(n, m):
    return (n + m - 1) // m * m


_VMEM_LIMIT = 32 * 1024 * 1024  # within the 32 MiB scoped default (v6e/v7x), fine on v5e


# ----------------------------- Pallas kernels -----------------------------

def _conv_bn_relu_kernel(x_ref, w_ref, b_ref, o_ref):
    # x_ref: (tm, K)  bf16 im2col LHS tile          (K = kh*kw*Cin, full K block)
    # w_ref: (K, tn)  bf16 scale-folded weights     (resident: constant across M tiles)
    # b_ref: (1, tn)  f32 folded BN bias
    # o_ref: (tm, tn) f32 or bf16 output tile
    acc = jnp.dot(x_ref[...], w_ref[...], preferred_element_type=jnp.float32)
    o_ref[...] = jnp.maximum(acc + b_ref[...], 0.0).astype(o_ref.dtype)


def _maxpool_vmax_kernel(a_ref, b_ref, c_ref, o_ref):
    # a/b/c_ref: (B, 1, OW, C) -- the three vertical taps (row-offset views of hmax)
    o_ref[...] = jnp.maximum(jnp.maximum(a_ref[...], b_ref[...]), c_ref[...])


# ----------------------------- wrappers (glue) -----------------------------

def conv_bn_relu(x, w, scale, bias, *, stride, pad, out_dtype=jnp.float32,
                 tm_max=256, tn_max=512):
    """Fused Conv2d + folded eval-mode BN + ReLU.

    x: (B,H,W,Cin) f32 or bf16, w: (kh,kw,Cin,Cout), scale/bias: (Cout,).
    Returns (B,OH,OW,Cout) in `out_dtype`.
    """
    kh, kw, cin, cout = w.shape
    if x.dtype != jnp.bfloat16:
        x = x.astype(jnp.bfloat16)        # bf16 feeds the MXU (f32 accumulation)
    if pad > 0:
        x = jnp.pad(x, ((0, 0), (pad, pad), (pad, pad), (0, 0)))
    B, H, W, _ = x.shape
    OH = (H - kh) // stride + 1
    OW = (W - kw) // stride + 1
    M = B * OH * OW
    T = kh * kw
    K = T * cin

    if T == 1 and stride == 1:
        # 1x1 conv: no im2col, just a reshape (no copy).
        lhs = x.reshape(M, cin)
    else:
        # im2col with the tap axis folded into K; channel order (tap-major, then
        # Cin) matches w.reshape(K, cout).
        patches = [x[:, i:i + stride * OH:stride, j:j + stride * OW:stride, :]
                   for i in range(kh) for j in range(kw)]
        lhs = jnp.concatenate(patches, axis=-1).reshape(M, K)

    # bf16-friendly M tiling (multiples of 16); pad M up to whole tiles so
    # every store is an unmasked full tile (padded rows are sliced off below).
    tm = min(tm_max, _round_up(M, 16))
    m_pad = _round_up(M, tm)
    if m_pad != M:
        lhs = jnp.pad(lhs, ((0, m_pad - M), (0, 0)))

    # Fold BN scale into the weights; kernel epilogue is bias-add + ReLU only.
    w_folded = (w * scale).reshape(K, cout).astype(jnp.bfloat16)
    bias2d = bias.reshape(1, cout).astype(jnp.float32)

    tn = min(tn_max, cout)                # full Cout (384/256) on these layers
    assert cout % tn == 0 and tn % 128 == 0, (cout, tn)

    # N axis outermost so the (K, tn) weight block index is constant across the
    # inner M loop -> Pallas keeps it resident (no re-DMA per M tile).
    grid = (cout // tn, m_pad // tm)

    out = pl.pallas_call(
        _conv_bn_relu_kernel,
        out_shape=jax.ShapeDtypeStruct((m_pad, cout), out_dtype),
        grid_spec=pltpu.PrefetchScalarGridSpec(
            num_scalar_prefetch=0,
            grid=grid,
            in_specs=[
                pl.BlockSpec((tm, K), lambda ni, mi: (mi, 0)),
                pl.BlockSpec((K, tn), lambda ni, mi: (0, ni)),
                pl.BlockSpec((1, tn), lambda ni, mi: (0, ni)),
            ],
            out_specs=pl.BlockSpec((tm, tn), lambda ni, mi: (mi, ni)),
        ),
        compiler_params=pltpu.CompilerParams(
            dimension_semantics=("parallel", "parallel"),
            vmem_limit_bytes=_VMEM_LIMIT,
        ),
    )(lhs, w_folded, bias2d)

    return out[:M].reshape(B, OH, OW, cout)


def maxpool3x3s2(x):
    """MaxPool2d(kernel=3, stride=2, padding=0) on NHWC."""
    B, H, W, C = x.shape
    OH = (H - 3) // 2 + 1
    OW = (W - 3) // 2 + 1

    # Horizontal 3-tap strided max as fused XLA elementwise ops: (B, H, OW, C).
    hmax = jnp.maximum(
        jnp.maximum(x[:, :, 0:2 * OW:2, :], x[:, :, 1:1 + 2 * OW:2, :]),
        x[:, :, 2:2 + 2 * OW:2, :])

    # Vertical 3-tap max: hmax is passed three times with row-offset index maps
    # (block of 1 row => block index == row index), so no stacked copy exists.
    in_specs = [
        pl.BlockSpec((B, 1, OW, C), (lambda r, i=i: (0, 2 * r + i, 0, 0)))
        for i in range(3)
    ]
    out = pl.pallas_call(
        _maxpool_vmax_kernel,
        out_shape=jax.ShapeDtypeStruct((B, OH, OW, C), x.dtype),
        grid_spec=pltpu.PrefetchScalarGridSpec(
            num_scalar_prefetch=0,
            grid=(OH,),
            in_specs=in_specs,
            out_specs=pl.BlockSpec((B, 1, OW, C), lambda r: (0, r, 0, 0)),
        ),
        compiler_params=pltpu.CompilerParams(
            dimension_semantics=("parallel",),
            vmem_limit_bytes=_VMEM_LIMIT,
        ),
    )(hmax, hmax, hmax)
    return out


# --------------------------- parameter construction ------------------------

def make_cba_params(key, cin, cout, ksize, eps=1e-5):
    kw_, kb, kg, km, kv = jax.random.split(key, 5)
    fan_in = ksize * ksize * cin
    w = jax.random.normal(kw_, (ksize, ksize, cin, cout), jnp.float32) / jnp.sqrt(fan_in)
    gamma = jax.random.uniform(kg, (cout,), jnp.float32, 0.5, 1.5)
    beta = 0.1 * jax.random.normal(kb, (cout,), jnp.float32)
    mean = 0.1 * jax.random.normal(km, (cout,), jnp.float32)
    var = jax.random.uniform(kv, (cout,), jnp.float32, 0.5, 1.5)
    scale = gamma / jnp.sqrt(var + eps)          # folded eval-mode BN
    bias = beta - mean * scale
    return w, scale, bias


def make_reduction_a_params(key, in_c):
    k1, k2, k3, k4 = jax.random.split(key, 4)
    return {
        "m2":   make_cba_params(k1, in_c, 384, 3),   # 3x3 stride 2, valid
        "m3_0": make_cba_params(k2, in_c, 256, 1),   # 1x1 stride 1, same(=0)
        "m3_1": make_cba_params(k3, 256, 256, 3),    # 3x3 stride 1, same(=1)
        "m3_2": make_cba_params(k4, 256, 384, 3),    # 3x3 stride 2, valid
    }


# ------------------------------- forward -----------------------------------

def reduction_a_forward(x_nchw, params):
    x = jnp.transpose(x_nchw, (0, 2, 3, 1))  # NCHW -> NHWC
    b1 = maxpool3x3s2(x)
    b2 = conv_bn_relu(x, *params["m2"], stride=2, pad=0)
    # Intermediate convs emit bf16 directly (next conv consumes bf16, no re-cast).
    t = conv_bn_relu(x, *params["m3_0"], stride=1, pad=0, out_dtype=jnp.bfloat16)
    t = conv_bn_relu(t, *params["m3_1"], stride=1, pad=1, out_dtype=jnp.bfloat16)
    b3 = conv_bn_relu(t, *params["m3_2"], stride=2, pad=0)
    out = jnp.concatenate([b1, b2, b3], axis=-1)   # channel concat (dim=1 NCHW)
    return jnp.transpose(out, (0, 3, 1, 2))        # NHWC -> NCHW


# ------------------------------ references ----------------------------------

def _ref_conv_bf16(x, w, scale, bias, *, stride, pad):
    # Mirrors kernel numerics: bf16 inputs / scale-folded bf16 weights,
    # f32 accumulation, f32 bias + ReLU.
    w_f = (w * scale).astype(jnp.bfloat16)
    y = lax.conv_general_dilated(
        x.astype(jnp.bfloat16), w_f, (stride, stride), [(pad, pad), (pad, pad)],
        dimension_numbers=("NHWC", "HWIO", "NHWC"),
        preferred_element_type=jnp.float32)
    return jnp.maximum(y + bias, 0.0)


def _ref_conv_f32(x, w, scale, bias, *, stride, pad):
    y = lax.conv_general_dilated(
        x.astype(jnp.float32), w, (stride, stride), [(pad, pad), (pad, pad)],
        dimension_numbers=("NHWC", "HWIO", "NHWC"))
    return jnp.maximum(y * scale + bias, 0.0)


def _ref_forward(x_nchw, params, conv_fn):
    x = jnp.transpose(x_nchw, (0, 2, 3, 1))
    b1 = lax.reduce_window(x, -jnp.inf, lax.max, (1, 3, 3, 1), (1, 2, 2, 1), "VALID")
    b2 = conv_fn(x, *params["m2"], stride=2, pad=0)
    t = conv_fn(x, *params["m3_0"], stride=1, pad=0)
    t = conv_fn(t, *params["m3_1"], stride=1, pad=1)
    b3 = conv_fn(t, *params["m3_2"], stride=2, pad=0)
    out = jnp.concatenate([b1, b2, b3], axis=-1)
    return jnp.transpose(out, (0, 3, 1, 2))


# --------------------------------- main -------------------------------------

if __name__ == "__main__":
    B, in_c, H, W = 2, 32, 16, 16
    key = jax.random.PRNGKey(0)
    kx, kp = jax.random.split(key)
    x = jax.random.normal(kx, (B, in_c, H, W), jnp.float32)   # NCHW like PyTorch
    params = make_reduction_a_params(kp, in_c)

    fwd = jax.jit(reduction_a_forward)
    out = jax.block_until_ready(fwd(x, params))

    expected_shape = (B, in_c + 384 + 384, (H - 3) // 2 + 1, (W - 3) // 2 + 1)
    assert out.shape == expected_shape, (out.shape, expected_shape)

    # Tight check against a reference with matching (bf16-in / f32-acc) numerics.
    ref_bf16 = jax.block_until_ready(_ref_forward(x, params, _ref_conv_bf16))
    err = float(jnp.max(jnp.abs(out - ref_bf16)))
    assert jnp.allclose(out, ref_bf16, atol=1e-2, rtol=1e-2), err

    # Loose sanity check against the pure-f32 module semantics.
    ref_f32 = jax.block_until_ready(_ref_forward(x, params, _ref_conv_f32))
    err32 = float(jnp.max(jnp.abs(out - ref_f32)))
    assert jnp.allclose(out, ref_f32, atol=1e-1, rtol=1e-1), err32

    print("KERNEL_OK")
</pallas_src>

<mosaic_0001>
module attributes {stable_mosaic.version = 11 : i64} {
  func.func @_conv_bn_relu_kernel(%arg0: i32, %arg1: i32, %arg2: memref<256x32xbf16, #tpu.memory_space<vmem>>, %arg3: memref<32x256xbf16, #tpu.memory_space<vmem>>, %arg4: memref<1x256xf32, #tpu.memory_space<vmem>>, %arg5: memref<256x256xbf16, #tpu.memory_space<vmem>>) attributes {dimension_semantics = [#tpu.dimension_semantics<parallel>, #tpu.dimension_semantics<parallel>], iteration_bounds = array<i64: 1, 2>, scalar_prefetch = 0 : i64, scratch_operands = 0 : i64, tpu.core_type = #tpu.core_type<tc>, window_params = [{transform_indices = @transform_0, window_bounds = array<i64: 256, 32>}, {transform_indices = @transform_1, window_bounds = array<i64: 32, 256>}, {transform_indices = @transform_2, window_bounds = array<i64: 1, 256>}, {transform_indices = @transform_3, window_bounds = array<i64: 256, 256>}]} {
    %c0 = arith.constant 0 : index
    %c0_0 = arith.constant 0 : index
    %0 = vector.load %arg2[%c0, %c0_0] : memref<256x32xbf16, #tpu.memory_space<vmem>>, vector<256x32xbf16>
    %c0_1 = arith.constant 0 : index
    %c0_2 = arith.constant 0 : index
    %1 = vector.load %arg3[%c0_1, %c0_2] : memref<32x256xbf16, #tpu.memory_space<vmem>>, vector<32x256xbf16>
    %cst = arith.constant dense<0.000000e+00> : vector<256x256xf32>
    %2 = tpu.matmul %0, %1, %cst {dimension_numbers = #tpu.dot_dimension_numbers<[1], [0], [0], [1], [0, 0, 1, 1], [], []>} : vector<256x32xbf16>, vector<32x256xbf16>, vector<256x256xf32> -> vector<256x256xf32>
    %c0_3 = arith.constant 0 : index
    %c0_4 = arith.constant 0 : index
    %3 = vector.load %arg4[%c0_3, %c0_4] : memref<1x256xf32, #tpu.memory_space<vmem>>, vector<1x256xf32>
    %4 = vector.broadcast %3 : vector<1x256xf32> to vector<256x256xf32>
    %5 = arith.addf %2, %4 : vector<256x256xf32>
    %cst_5 = arith.constant 0.000000e+00 : f32
    %6 = vector.broadcast %cst_5 : f32 to vector<256x256xf32>
    %7 = arith.maximumf %5, %6 : vector<256x256xf32>
    %8 = arith.truncf %7 : vector<256x256xf32> to vector<256x256xbf16>
    %c0_6 = arith.constant 0 : index
    %c0_7 = arith.constant 0 : index
    %9 = vector.load %arg5[%c0_6, %c0_7] : memref<256x256xbf16, #tpu.memory_space<vmem>>, vector<256x256xbf16>
    tpu.vector_store %arg5[%c0_6, %c0_7], %8 {strides = array<i32>} : memref<256x256xbf16, #tpu.memory_space<vmem>>, vector<256x256xbf16>,
    return
  }
  func.func @transform_0(%arg0: i32, %arg1: i32) -> (i32, i32) {
    %c0_i32 = arith.constant 0 : i32
    %c0_i32_0 = arith.constant 0 : i32
    return %arg1, %c0_i32 : i32, i32
  }
  func.func @transform_1(%arg0: i32, %arg1: i32) -> (i32, i32) {
    %c0_i32 = arith.constant 0 : i32
    %c0_i32_0 = arith.constant 0 : i32
    return %c0_i32, %arg0 : i32, i32
  }
  func.func @transform_2(%arg0: i32, %arg1: i32) -> (i32, i32) {
    %c0_i32 = arith.constant 0 : i32
    %c0_i32_0 = arith.constant 0 : i32
    return %c0_i32, %arg0 : i32, i32
  }
  func.func @transform_3(%arg0: i32, %arg1: i32) -> (i32, i32) {
    %c0_i32 = arith.constant 0 : i32
    return %arg1, %arg0 : i32, i32
  }
}

module attributes {stable_mosaic.version = 11 : i64} {
  func.func @_conv_bn_relu_kernel(%arg0: i32, %arg1: i32, %arg2: memref<256x2304xbf16, #tpu.memory_space<vmem>>, %arg3: memref<2304x256xbf16, #tpu.memory_space<vmem>>, %arg4: memref<1x256xf32, #tpu.memory_space<vmem>>, %arg5: memref<256x256xbf16, #tpu.memory_space<vmem>>) attributes {dimension_semantics = [#tpu.dimension_semantics<parallel>, #tpu.dimension_semantics<parallel>], iteration_bounds = array<i64: 1, 2>, scalar_prefetch = 0 : i64, scratch_operands = 0 : i64, tpu.core_type = #tpu.core_type<tc>, window_params = [{transform_indices = @transform_0, window_bounds = array<i64: 256, 2304>}, {transform_indices = @transform_1, window_bounds = array<i64: 2304, 256>}, {transform_indices = @transform_2, window_bounds = array<i64: 1, 256>}, {transform_indices = @transform_3, window_bounds = array<i64: 256, 256>}]} {
    %c0 = arith.constant 0 : index
    %c0_0 = arith.constant 0 : index
    %0 = vector.load %arg2[%c0, %c0_0] : memref<256x2304xbf16, #tpu.memory_space<vmem>>, vector<256x2304xbf16>
    %c0_1 = arith.constant 0 : index
    %c0_2 = arith.constant 0 : index
    %1 = vector.load %arg3[%c0_1, %c0_2] : memref<2304x256xbf16, #tpu.memory_space<vmem>>, vector<2304x256xbf16>
    %cst = arith.constant dense<0.000000e+00> : vector<256x256xf32>
    %2 = tpu.matmul %0, %1, %cst {dimension_numbers = #tpu.dot_dimension_numbers<[1], [0], [0], [1], [0, 0, 1, 1], [], []>} : vector<256x2304xbf16>, vector<2304x256xbf16>, vector<256x256xf32> -> vector<256x256xf32>
    %c0_3 = arith.constant 0 : index
    %c0_4 = arith.constant 0 : index
    %3 = vector.load %arg4[%c0_3, %c0_4] : memref<1x256xf32, #tpu.memory_space<vmem>>, vector<1x256xf32>
    %4 = vector.broadcast %3 : vector<1x256xf32> to vector<256x256xf32>
    %5 = arith.addf %2, %4 : vector<256x256xf32>
    %cst_5 = arith.constant 0.000000e+00 : f32
    %6 = vector.broadcast %cst_5 : f32 to vector<256x256xf32>
    %7 = arith.maximumf %5, %6 : vector<256x256xf32>
    %8 = arith.truncf %7 : vector<256x256xf32> to vector<256x256xbf16>
    %c0_6 = arith.constant 0 : index
    %c0_7 = arith.constant 0 : index
    %9 = vector.load %arg5[%c0_6, %c0_7] : memref<256x256xbf16, #tpu.memory_space<vmem>>, vector<256x256xbf16>
    tpu.vector_store %arg5[%c0_6, %c0_7], %8 {strides = array<i32>} : memref<256x256xbf16, #tpu.memory_space<vmem>>, vector<256x256xbf16>,
    return
  }
  func.func @transform_0(%arg0: i32, %arg1: i32) -> (i32, i32) {
    %c0_i32 = arith.constant 0 : i32
    %c0_i32_0 = arith.constant 0 : i32
    return %arg1, %c0_i32 : i32, i32
  }
  func.func @transform_1(%arg0: i32, %arg1: i32) -> (i32, i32) {
    %c0_i32 = arith.constant 0 : i32
    %c0_i32_0 = arith.constant 0 : i32
    return %c0_i32, %arg0 : i32, i32
  }
  func.func @transform_2(%arg0: i32, %arg1: i32) -> (i32, i32) {
    %c0_i32 = arith.constant 0 : i32
    %c0_i32_0 = arith.constant 0 : i32
    return %c0_i32, %arg0 : i32, i32
  }
  func.func @transform_3(%arg0: i32, %arg1: i32) -> (i32, i32) {
    %c0_i32 = arith.constant 0 : i32
    return %arg1, %arg0 : i32, i32
  }
}

module attributes {stable_mosaic.version = 11 : i64} {
  func.func @_conv_bn_relu_kernel(%arg0: i32, %arg1: i32, %arg2: memref<112x2304xbf16, #tpu.memory_space<vmem>>, %arg3: memref<2304x384xbf16, #tpu.memory_space<vmem>>, %arg4: memref<1x384xf32, #tpu.memory_space<vmem>>, %arg5: memref<112x384xf32, #tpu.memory_space<vmem>>) attributes {dimension_semantics = [#tpu.dimension_semantics<parallel>, #tpu.dimension_semantics<parallel>], iteration_bounds = array<i64: 1, 1>, scalar_prefetch = 0 : i64, scratch_operands = 0 : i64, tpu.core_type = #tpu.core_type<tc>, window_params = [{transform_indices = @transform_0, window_bounds = array<i64: 112, 2304>}, {transform_indices = @transform_1, window_bounds = array<i64: 2304, 384>}, {transform_indices = @transform_2, window_bounds = array<i64: 1, 384>}, {transform_indices = @transform_3, window_bounds = array<i64: 112, 384>}]} {
    %c0 = arith.constant 0 : index
    %c0_0 = arith.constant 0 : index
    %0 = vector.load %arg2[%c0, %c0_0] : memref<112x2304xbf16, #tpu.memory_space<vmem>>, vector<112x2304xbf16>
    %c0_1 = arith.constant 0 : index
    %c0_2 = arith.constant 0 : index
    %1 = vector.load %arg3[%c0_1, %c0_2] : memref<2304x384xbf16, #tpu.memory_space<vmem>>, vector<2304x384xbf16>
    %cst = arith.constant dense<0.000000e+00> : vector<112x384xf32>
    %2 = tpu.matmul %0, %1, %cst {dimension_numbers = #tpu.dot_dimension_numbers<[1], [0], [0], [1], [0, 0, 1, 1], [], []>} : vector<112x2304xbf16>, vector<2304x384xbf16>, vector<112x384xf32> -> vector<112x384xf32>
    %c0_3 = arith.constant 0 : index
    %c0_4 = arith.constant 0 : index
    %3 = vector.load %arg4[%c0_3, %c0_4] : memref<1x384xf32, #tpu.memory_space<vmem>>, vector<1x384xf32>
    %4 = vector.broadcast %3 : vector<1x384xf32> to vector<112x384xf32>
    %5 = arith.addf %2, %4 : vector<112x384xf32>
    %cst_5 = arith.constant 0.000000e+00 : f32
    %6 = vector.broadcast %cst_5 : f32 to vector<112x384xf32>
    %7 = arith.maximumf %5, %6 : vector<112x384xf32>
    %c0_6 = arith.constant 0 : index
    %c0_7 = arith.constant 0 : index
    %8 = vector.load %arg5[%c0_6, %c0_7] : memref<112x384xf32, #tpu.memory_space<vmem>>, vector<112x384xf32>
    tpu.vector_store %arg5[%c0_6, %c0_7], %7 {strides = array<i32>} : memref<112x384xf32, #tpu.memory_space<vmem>>, vector<112x384xf32>,
    return
  }
  func.func @transform_0(%arg0: i32, %arg1: i32) -> (i32, i32) {
    %c0_i32 = arith.constant 0 : i32
    %c0_i32_0 = arith.constant 0 : i32
    return %arg1, %c0_i32 : i32, i32
  }
  func.func @transform_1(%arg0: i32, %arg1: i32) -> (i32, i32) {
    %c0_i32 = arith.constant 0 : i32
    %c0_i32_0 = arith.constant 0 : i32
    return %c0_i32, %arg0 : i32, i32
  }
  func.func @transform_2(%arg0: i32, %arg1: i32) -> (i32, i32) {
    %c0_i32 = arith.constant 0 : i32
    %c0_i32_0 = arith.constant 0 : i32
    return %c0_i32, %arg0 : i32, i32
  }
  func.func @transform_3(%arg0: i32, %arg1: i32) -> (i32, i32) {
    %c0_i32 = arith.constant 0 : i32
    return %arg1, %arg0 : i32, i32
  }
}

module attributes {stable_mosaic.version = 11 : i64} {
  func.func @_conv_bn_relu_kernel(%arg0: i32, %arg1: i32, %arg2: memref<112x288xbf16, #tpu.memory_space<vmem>>, %arg3: memref<288x384xbf16, #tpu.memory_space<vmem>>, %arg4: memref<1x384xf32, #tpu.memory_space<vmem>>, %arg5: memref<112x384xf32, #tpu.memory_space<vmem>>) attributes {dimension_semantics = [#tpu.dimension_semantics<parallel>, #tpu.dimension_semantics<parallel>], iteration_bounds = array<i64: 1, 1>, scalar_prefetch = 0 : i64, scratch_operands = 0 : i64, tpu.core_type = #tpu.core_type<tc>, window_params = [{transform_indices = @transform_0, window_bounds = array<i64: 112, 288>}, {transform_indices = @transform_1, window_bounds = array<i64: 288, 384>}, {transform_indices = @transform_2, window_bounds = array<i64: 1, 384>}, {transform_indices = @transform_3, window_bounds = array<i64: 112, 384>}]} {
    %c0 = arith.constant 0 : index
    %c0_0 = arith.constant 0 : index
    %0 = vector.load %arg2[%c0, %c0_0] : memref<112x288xbf16, #tpu.memory_space<vmem>>, vector<112x288xbf16>
    %c0_1 = arith.constant 0 : index
    %c0_2 = arith.constant 0 : index
    %1 = vector.load %arg3[%c0_1, %c0_2] : memref<288x384xbf16, #tpu.memory_space<vmem>>, vector<288x384xbf16>
    %cst = arith.constant dense<0.000000e+00> : vector<112x384xf32>
    %2 = tpu.matmul %0, %1, %cst {dimension_numbers = #tpu.dot_dimension_numbers<[1], [0], [0], [1], [0, 0, 1, 1], [], []>} : vector<112x288xbf16>, vector<288x384xbf16>, vector<112x384xf32> -> vector<112x384xf32>
    %c0_3 = arith.constant 0 : index
    %c0_4 = arith.constant 0 : index
    %3 = vector.load %arg4[%c0_3, %c0_4] : memref<1x384xf32, #tpu.memory_space<vmem>>, vector<1x384xf32>
    %4 = vector.broadcast %3 : vector<1x384xf32> to vector<112x384xf32>
    %5 = arith.addf %2, %4 : vector<112x384xf32>
    %cst_5 = arith.constant 0.000000e+00 : f32
    %6 = vector.broadcast %cst_5 : f32 to vector<112x384xf32>
    %7 = arith.maximumf %5, %6 : vector<112x384xf32>
    %c0_6 = arith.constant 0 : index
    %c0_7 = arith.constant 0 : index
    %8 = vector.load %arg5[%c0_6, %c0_7] : memref<112x384xf32, #tpu.memory_space<vmem>>, vector<112x384xf32>
    tpu.vector_store %arg5[%c0_6, %c0_7], %7 {strides = array<i32>} : memref<112x384xf32, #tpu.memory_space<vmem>>, vector<112x384xf32>,
    return
  }
  func.func @transform_0(%arg0: i32, %arg1: i32) -> (i32, i32) {
    %c0_i32 = arith.constant 0 : i32
    %c0_i32_0 = arith.constant 0 : i32
    return %arg1, %c0_i32 : i32, i32
  }
  func.func @transform_1(%arg0: i32, %arg1: i32) -> (i32, i32) {
    %c0_i32 = arith.constant 0 : i32
    %c0_i32_0 = arith.constant 0 : i32
    return %c0_i32, %arg0 : i32, i32
  }
  func.func @transform_2(%arg0: i32, %arg1: i32) -> (i32, i32) {
    %c0_i32 = arith.constant 0 : i32
    %c0_i32_0 = arith.constant 0 : i32
    return %c0_i32, %arg0 : i32, i32
  }
  func.func @transform_3(%arg0: i32, %arg1: i32) -> (i32, i32) {
    %c0_i32 = arith.constant 0 : i32
    return %arg1, %arg0 : i32, i32
  }
}

module attributes {stable_mosaic.version = 11 : i64} {
  func.func @_maxpool_vmax_kernel(%arg0: i32, %arg1: memref<2x1x7x32xf32, #tpu.memory_space<vmem>>, %arg2: memref<2x1x7x32xf32, #tpu.memory_space<vmem>>, %arg3: memref<2x1x7x32xf32, #tpu.memory_space<vmem>>, %arg4: memref<2x1x7x32xf32, #tpu.memory_space<vmem>>) attributes {dimension_semantics = [#tpu.dimension_semantics<parallel>], iteration_bounds = array<i64: 7>, scalar_prefetch = 0 : i64, scratch_operands = 0 : i64, tpu.core_type = #tpu.core_type<tc>, window_params = [{transform_indices = @transform_0, window_bounds = array<i64: 2, 1, 7, 32>}, {transform_indices = @transform_1, window_bounds = array<i64: 2, 1, 7, 32>}, {transform_indices = @transform_2, window_bounds = array<i64: 2, 1, 7, 32>}, {transform_indices = @transform_3, window_bounds = array<i64: 2, 1, 7, 32>}]} {
    %c0 = arith.constant 0 : index
    %c0_0 = arith.constant 0 : index
    %c0_1 = arith.constant 0 : index
    %c0_2 = arith.constant 0 : index
    %0 = vector.load %arg1[%c0, %c0_0, %c0_1, %c0_2] : memref<2x1x7x32xf32, #tpu.memory_space<vmem>>, vector<2x1x7x32xf32>
    %c0_3 = arith.constant 0 : index
    %c0_4 = arith.constant 0 : index
    %c0_5 = arith.constant 0 : index
    %c0_6 = arith.constant 0 : index
    %1 = vector.load %arg2[%c0_3, %c0_4, %c0_5, %c0_6] : memref<2x1x7x32xf32, #tpu.memory_space<vmem>>, vector<2x1x7x32xf32>
    %2 = arith.maximumf %0, %1 : vector<2x1x7x32xf32>
    %c0_7 = arith.constant 0 : index
    %c0_8 = arith.constant 0 : index
    %c0_9 = arith.constant 0 : index
    %c0_10 = arith.constant 0 : index
    %3 = vector.load %arg3[%c0_7, %c0_8, %c0_9, %c0_10] : memref<2x1x7x32xf32, #tpu.memory_space<vmem>>, vector<2x1x7x32xf32>
    %4 = arith.maximumf %2, %3 : vector<2x1x7x32xf32>
    %c0_11 = arith.constant 0 : index
    %c0_12 = arith.constant 0 : index
    %c0_13 = arith.constant 0 : index
    %c0_14 = arith.constant 0 : index
    %5 = vector.load %arg4[%c0_11, %c0_12, %c0_13, %c0_14] : memref<2x1x7x32xf32, #tpu.memory_space<vmem>>, vector<2x1x7x32xf32>
    tpu.vector_store %arg4[%c0_11, %c0_12, %c0_13, %c0_14], %4 {strides = array<i32>} : memref<2x1x7x32xf32, #tpu.memory_space<vmem>>, vector<2x1x7x32xf32>,
    return
  }
  func.func @transform_0(%arg0: i32) -> (i32, i32, i32, i32) {
    %c2_i32 = arith.constant 2 : i32
    %0 = arith.muli %c2_i32, %arg0 : i32
    %c0_i32 = arith.constant 0 : i32
    %1 = arith.addi %0, %c0_i32 : i32
    %c0_i32_0 = arith.constant 0 : i32
    %c0_i32_1 = arith.constant 0 : i32
    %c0_i32_2 = arith.constant 0 : i32
    %c0_i32_3 = arith.constant 0 : i32
    return %c0_i32_0, %1, %c0_i32_1, %c0_i32_2 : i32, i32, i32, i32
  }
  func.func @transform_1(%arg0: i32) -> (i32, i32, i32, i32) {
    %c2_i32 = arith.constant 2 : i32
    %0 = arith.muli %c2_i32, %arg0 : i32
    %c1_i32 = arith.constant 1 : i32
    %1 = arith.addi %0, %c1_i32 : i32
    %c0_i32 = arith.constant 0 : i32
    %c0_i32_0 = arith.constant 0 : i32
    %c0_i32_1 = arith.constant 0 : i32
    %c0_i32_2 = arith.constant 0 : i32
    return %c0_i32, %1, %c0_i32_0, %c0_i32_1 : i32, i32, i32, i32
  }
  func.func @transform_2(%arg0: i32) -> (i32, i32, i32, i32) {
    %c2_i32 = arith.constant 2 : i32
    %0 = arith.muli %c2_i32, %arg0 : i32
    %c2_i32_0 = arith.constant 2 : i32
    %1 = arith.addi %0, %c2_i32_0 : i32
    %c0_i32 = arith.constant 0 : i32
    %c0_i32_1 = arith.constant 0 : i32
    %c0_i32_2 = arith.constant 0 : i32
    %c0_i32_3 = arith.constant 0 : i32
    return %c0_i32, %1, %c0_i32_1, %c0_i32_2 : i32, i32, i32, i32
  }
  func.func @transform_3(%arg0: i32) -> (i32, i32, i32, i32) {
    %c0_i32 = arith.constant 0 : i32
    %c0_i32_0 = arith.constant 0 : i32
    %c0_i32_1 = arith.constant 0 : i32
    %c0_i32_2 = arith.constant 0 : i32
    return %c0_i32, %arg0, %c0_i32_0, %c0_i32_1 : i32, i32, i32, i32
  }
}

</mosaic_0001>

<bundles_post_ra>
// kernel: reduction_a_forward.7
= control target key start
LH: loop header
LB: loop body
LE: loop exit
PB: predicated region body
PF: predicated region fallthrough
CT: control target
= control target key end

     0   :  { %8 = vsyncpa [#allocation3], 0  ;;  %s1291_s12 = smov 0   ;;  %s1293_s13 = smov 0   ;;  %s1518_s0 = inlined_call_operand.vmem [shape: bf16[512,32], index: 0, kind: input, shape index: {}]   ;;  %s1519_s1 = inlined_call_operand.vmem [shape: bf16[32,256], index: 1, kind: input, shape index: {}]   ;;  %s1520_s2 = inlined_call_operand.hbm [shape: f32[1,256], index: 2, kind: input, shape index: {}]   ;;  %s1521_s3 = inlined_call_operand.vmem [shape: bf16[512,256], index: 3, kind: output, shape index: {}]  }
   0x1   :  { %s1295_s14 = smov 0  }
   0x2 LB: > { %s1035_s15 = sadd.s32 4294967295, %s1267_s14   ;;  %s23_s16 = sadd.s32 1, %s1263_s13  ;;  %s1267_s14 = sphi %s1295_s14, %s14_s14   ;;  %s1263_s13 = sphi %s1293_s13, %s1531_s13   ;;  %s1259_s12 = sphi %s1291_s12, %s1530_s12  }
   0x3   : > { %p24_p0 = scmp.ge.s32.totalorder %s23_s16, 2  ;;  %p1037_p1 = scmp.ge.s32.totalorder %s1267_s14, 1 }
   0x4   : > { %p137_p2 = scmp.lt.s32.totalorder %s1267_s14, 3  ;;  %p1316_p4 = scmp.eq.s32.totalorder %s1035_s15, 0 }
   0x5   : > { %s1533_s16 = smov (%p24_p0, %s23_s16), 0  ;;  %s1269_s19 = smov [#allocation2]  }
   0x6   : > { %p1312_p3 = pnand %p1037_p1, %p137_p2  ;;  %s162_s20 = sshll.u32 %s1269_s19, 4  ;;  %s163_s20 = int_to_ptr.vmem [resolvable:$true] %s162_s20 }
   0x7   : > { %s1526_s18 = scalar_select %p1316_p4, 1, 0 }
   0x8   : > { %s1525_s17 = scalar_select %p1312_p3, 1, 0 }
   0x9   : > { %p1159_p5 = pneg %p1312_p3  ;;  %s1213_s24 = scalar_lea.hbm %s1520_s2, 32 }
   0xa   : > { %p1214_p7 = scmp.ne.s32.totalorder %s1520_s2, %s1213_s24  ;;  %p1220_p11 = scmp.lt.u32.totalorder %s1213_s24, %s1520_s2 }
   0xb   : > { %p1324_p6 = pnand %p1316_p4, %p1159_p5 }
   0xd   : > { %p1215_p8 = pneg %p1324_p6 }
   0xf   : > { %p1216_p9 = pnand %p1215_p8, %p1214_p7 }
  0x11   : > { %p1217_p10 = pneg %p1216_p9 }
  0x13   : > { %p1222_p12 = pnand %p1220_p11, %p1217_p10 }
  0x15   : > { %1225 = shalt.err (!%p1222_p12)
}
  0x16   : > { %s1226_s29 = scalar_lea.vmem %s163_s20, 32  ;;  %p1234_p2 = scmp.lt.s32.totalorder %s163_s20, %s163_s20 }
  0x17   : > { %p1227_p13 = scmp.ne.s32.totalorder %s163_s20, %s1226_s29  ;;  %p1235_p5 = scmp.lt.s32.totalorder %s1226_s29, %s1226_s29 }
  0x19   : > { %p1229_p0 = pnand %p1227_p13, %p1215_p8  ;;  %p1236_p4 = por %p1235_p5, %p1234_p2 }
  0x1b   : > { %p1230_p1 = pneg %p1229_p0 }
  0x1d   : > { %p1237_p3 = pnand %p1236_p4, %p1230_p1 }
  0x1f   : > { %1240 = shalt.err (!%p1237_p3)
}
  0x20   : > { %1162 = dma.hbm_to_vmem [thread:$0]  (!%p1324_p6), %s1520_s2, 32, %s163_s20, [#allocation3]  }
  0x21   : > { %p1528_p7 = scmp.ne.s32.totalorder %s1525_s17, 0 }
  0x22   : > { %p1529_p9 = scmp.ne.s32.totalorder (!%p1528_p7), %s1526_s18, 0 }
  0x23   : > { %184 = sbr.rel (%p1528_p7) target bundleno = 331 (0x14b), region = 32 }
  0x2a   : > { %1254 = dma.done.wait (%p1529_p9), [#allocation3], 32  }
  0x2b   : > { %1256 = vsyncadd (%p1529_p9), [#allocation3], 4294967264  ;;  %s1043_s5 = sshll.u32 %s1259_s12, 5  ;;  %v1270_v0 = vmov 0   ;;  %v1191_v1 = vld [vmem:[%s1519_s1 + $0x4] ss:$8 sps:$4 sm:$0xff]   ;;  %v282_v21 = vlaneseq }
  0x2c   : > { %473 = vmatprep.mubr.bf16.mxu0 %v1270_v0  ;;  %553 = vmatprep.mubr.bf16.mxu1 %v1270_v0  ;;  %p219_p3 = scmp.lt.s32.totalorder %s1043_s5, 63  ;;  %v1193_v2 = vld [vmem:[%s1519_s1] ss:$8 sps:$4 sm:$0xff]   ;;  %v1194_v3 = vld [vmem:[%s1519_s1 + $0x14] ss:$8 sps:$4 sm:$0xff]   ;;  %vm392_vm0 = vcmask 261120  }
  0x2d   : > { %441 = vmatprep.subr.bf16.mxu0 %v1191_v1  ;;  %1151 = vmatprep.subr.bf16.mxu1 %v1191_v1  ;;  %v1196_v4 = vld [vmem:[%s1519_s1 + $0x10] ss:$8 sps:$4 sm:$0xff]   ;;  %v283_v22 = vshrl.u32 %v282_v21, 7  ;;  %v280_v24 = vld [vmem:[#allocation2] sm:$0x3] }
  0x2e   : > { %s1535_s5 = smov (!%p219_p3, %s1043_s5), 63  ;;  %442 = vmatpush1.bf16.msra.mxu0 %v1193_v2  ;;  %1153 = vmatpush1.bf16.msra.mxu1 %v1193_v2 }
  0x2f   : > { %s1044_s6 = sshll.u32 %s1535_s5, 2  ;;  %443 = vmatprep.subr.bf16.mxu0 %v1194_v3  ;;  %1152 = vmatprep.subr.bf16.mxu1 %v1194_v3  ;;  %v284_v23 = vsub.s32 0, %v283_v22  ;;  %v288_v25 = vsub.s32 1, %v283_v22  ;;  %s1118_s21 = sshll.u32 %s1535_s5, 3 }
  0x30   : > { %s1363_s12 = scalar_lea.vmem %s1518_s0, %s1044_s6  ;;  %s1419_s24 = scalar_lea.vmem %s1521_s3, %s1118_s21 }
  0x31   : > { %v1197_v5 = vld [vmem:[%s1363_s12] sm:$0xff]   ;;  %v1199_v7 = vld [vmem:[%s1363_s12 + $0x8] sm:$0xff]   ;;  %v1201_v9 = vld [vmem:[%s1363_s12 + $0x10] sm:$0xff]   ;;  %v1403_v26 = vrot.slane %v280_v24, %v284_v23  ;;  %v1405_v27 = vrot.slane %v280_v24, %v288_v25 }
  0x32   : > { %v1198_v6 = vld [vmem:[%s1363_s12 + $0x40] sm:$0xff]   ;;  %444 = vmatpush1.bf16.msra.mxu0 %v1196_v4  ;;  %1154 = vmatpush1.bf16.msra.mxu1 %v1196_v4  ;;  %v1200_v8 = vld [vmem:[%s1363_s12 + $0x48] sm:$0xff]   ;;  %v1202_v10 = vld [vmem:[%s1363_s12 + $0x50] sm:$0xff]  }
  0x33   : > { %v1203_v11 = vld [vmem:[%s1363_s12 + $0x18] sm:$0xff]   ;;  %v1205_v13 = vld [vmem:[%s1363_s12 + $0x20] sm:$0xff]   ;;  %v1207_v15 = vld [vmem:[%s1363_s12 + $0x28] sm:$0xff]  }
  0x34   : > { %v1204_v12 = vld [vmem:[%s1363_s12 + $0x58] sm:$0xff]   ;;  %v1206_v14 = vld [vmem:[%s1363_s12 + $0x60] sm:$0xff]   ;;  %v1208_v16 = vld [vmem:[%s1363_s12 + $0x68] sm:$0xff]  }
  0x35   : > { %1068 = vmatmul.mubr.msk.bf16.vlgmr.msra.gmra.mrb[0].mxu0 %vm392_vm0, %v1197_v5  ;;  %1076 = vmatmul.mubr.msk.bf16.vlgmr.msra.gmra.mrb[0].mxu1 %vm392_vm0, %v1198_v6  ;;  %v1209_v17 = vld [vmem:[%s1363_s12 + $0x30] sm:$0xff]   ;;  %v1211_v19 = vld [vmem:[%s1363_s12 + $0x38] sm:$0xff]  }
  0x36   : > { %483 = vmatprep.mubr.bf16.mxu0 %v1270_v0  ;;  %563 = vmatprep.mubr.bf16.mxu1 %v1270_v0  ;;  %v1210_v18 = vld [vmem:[%s1363_s12 + $0x70] sm:$0xff]   ;;  %v1212_v20 = vld [vmem:[%s1363_s12 + $0x78] sm:$0xff]  }
  0x3d   : > { %1069 = vmatmul.mubr.msk.bf16.gmra.mrb[4].mxu0 %vm392_vm0, %v1199_v7  ;;  %1077 = vmatmul.mubr.msk.bf16.gmra.mrb[4].mxu1 %vm392_vm0, %v1200_v8 }
  0x3e   : > { %493 = vmatprep.mubr.bf16.mxu0 %v1270_v0  ;;  %573 = vmatprep.mubr.bf16.mxu1 %v1270_v0 }
  0x45   : > { %1070 = vmatmul.mubr.msk.bf16.gmra.mrb[8].mxu0 %vm392_vm0, %v1201_v9  ;;  %1078 = vmatmul.mubr.msk.bf16.gmra.mrb[8].mxu1 %vm392_vm0, %v1202_v10 }
  0x46   : > { %503 = vmatprep.mubr.bf16.mxu0 %v1270_v0  ;;  %583 = vmatprep.mubr.bf16.mxu1 %v1270_v0 }
  0x4d   : > { %1071 = vmatmul.mubr.msk.bf16.gmra.mrb[12].mxu0 %vm392_vm0, %v1203_v11  ;;  %1079 = vmatmul.mubr.msk.bf16.gmra.mrb[12].mxu1 %vm392_vm0, %v1204_v12 }
  0x4e   : > { %513 = vmatprep.mubr.bf16.mxu0 %v1270_v0  ;;  %593 = vmatprep.mubr.bf16.mxu1 %v1270_v0 }
  0x55   : > { %1072 = vmatmul.mubr.msk.bf16.gmra.mrb[16].mxu0 %vm392_vm0, %v1205_v13  ;;  %1080 = vmatmul.mubr.msk.bf16.gmra.mrb[16].mxu1 %vm392_vm0, %v1206_v14 }
  0x56   : > { %523 = vmatprep.mubr.bf16.mxu0 %v1270_v0  ;;  %603 = vmatprep.mubr.bf16.mxu1 %v1270_v0 }
  0x5d   : > { %1073 = vmatmul.mubr.msk.bf16.gmra.mrb[20].mxu0 %vm392_vm0, %v1207_v15  ;;  %1081 = vmatmul.mubr.msk.bf16.gmra.mrb[20].mxu1 %vm392_vm0, %v1208_v16 }
  0x5e   : > { %533 = vmatprep.mubr.bf16.mxu0 %v1270_v0  ;;  %613 = vmatprep.mubr.bf16.mxu1 %v1270_v0 }
  0x65   : > { %1074 = vmatmul.mubr.msk.bf16.gmra.mrb[24].mxu0 %vm392_vm0, %v1209_v17  ;;  %1082 = vmatmul.mubr.msk.bf16.gmra.mrb[24].mxu1 %vm392_vm0, %v1210_v18 }
  0x66   : > { %543 = vmatprep.mubr.bf16.mxu0 %v1270_v0  ;;  %623 = vmatprep.mubr.bf16.mxu1 %v1270_v0 }
  0x6d   : > { %1075 = vmatmul.mubr.msk.bf16.gmra.mrb[28].mxu0 %vm392_vm0, %v1211_v19  ;;  %1083 = vmatmul.mubr.msk.bf16.gmra.mrb[28].mxu1 %vm392_vm0, %v1212_v20 }
 0x108   : > { %v475_v28 = vpop.f32.mrb[0].mxu0  ;;  %v555_v29 = vpop.f32.mrb[0].mxu1 }
 0x109   : > { %v476_v30 = vadd.f32 %v475_v28, %v1403_v26  ;;  %v556_v31 = vadd.f32 %v555_v29, %v1403_v26  ;;  %v477_v32 = vpop.f32.mrb[1].mxu0  ;;  %v557_v33 = vpop.f32.mrb[1].mxu1 }
 0x10a   : > { %v478_v34 = vadd.f32 %v477_v32, %v1405_v27  ;;  %v558_v35 = vadd.f32 %v557_v33, %v1405_v27  ;;  %v479_v36 = vpop.f32.mrb[2].mxu0  ;;  %v559_v37 = vpop.f32.mrb[2].mxu1 }
 0x10b   : > { %v634_v38 = vmax.f32 %v476_v30, 0.0  ;;  %v666_v39 = vmax.f32 %v556_v31, 0.0  ;;  %v480_v40 = vadd.f32 %v479_v36, %v1403_v26  ;;  %v560_v41 = vadd.f32 %v559_v37, %v1403_v26  ;;  %v481_v42 = vpop.f32.mrb[3].mxu0  ;;  %v561_v43 = vpop.f32.mrb[3].mxu1 }
 0x10c   : > { %v635_v44 = vmax.f32 %v478_v34, 0.0  ;;  %v667_v45 = vmax.f32 %v558_v35, 0.0  ;;  %v482_v46 = vadd.f32 %v481_v42, %v1405_v27  ;;  %v562_v47 = vadd.f32 %v561_v43, %v1405_v27 }
 0x10d   : > { %v636_v48 = vmax.f32 %v480_v40, 0.0  ;;  %v668_v49 = vmax.f32 %v560_v41, 0.0 }
 0x10e   : > { %v1119_v50 = vpack.c.bf16 %v635_v44, %v634_v38  ;;  %v1135_v51 = vpack.c.bf16 %v667_v45, %v666_v39  ;;  %v637_v52 = vmax.f32 %v482_v46, 0.0  ;;  %v669_v53 = vmax.f32 %v562_v47, 0.0 }
 0x110   : > { %890 = vst [vmem:[%s1419_s24] sm:$0xff] %v1119_v50  ;;  %906 = vst [vmem:[%s1419_s24 + $0x80] sm:$0xff] %v1135_v51  ;;  %v1120_v54 = vpack.c.bf16 %v637_v52, %v636_v48  ;;  %v1136_v55 = vpack.c.bf16 %v669_v53, %v668_v49  ;;  %v485_v56 = vpop.f32.mrb[4].mxu0  ;;  %v565_v57 = vpop.f32.mrb[4].mxu1 }
 0x111   : > { %v486_v58 = vadd.f32 %v485_v56, %v1403_v26  ;;  %v566_v59 = vadd.f32 %v565_v57, %v1403_v26  ;;  %v487_v60 = vpop.f32.mrb[5].mxu0  ;;  %v567_v61 = vpop.f32.mrb[5].mxu1 }
 0x112   : > { %891 = vst [vmem:[%s1419_s24 + $0x8] sm:$0xff] %v1120_v54  ;;  %907 = vst [vmem:[%s1419_s24 + $0x88] sm:$0xff] %v1136_v55  ;;  %v488_v62 = vadd.f32 %v487_v60, %v1405_v27  ;;  %v568_v63 = vadd.f32 %v567_v61, %v1405_v27  ;;  %v489_v0 = vpop.f32.mrb[6].mxu0  ;;  %v569_v1 = vpop.f32.mrb[6].mxu1 }
 0x113   : > { %v638_v2 = vmax.f32 %v486_v58, 0.0  ;;  %v670_v3 = vmax.f32 %v566_v59, 0.0  ;;  %v490_v4 = vadd.f32 %v489_v0, %v1403_v26  ;;  %v570_v5 = vadd.f32 %v569_v1, %v1403_v26  ;;  %v491_v6 = vpop.f32.mrb[7].mxu0  ;;  %v571_v7 = vpop.f32.mrb[7].mxu1 }
 0x114   : > { %v639_v8 = vmax.f32 %v488_v62, 0.0  ;;  %v671_v9 = vmax.f32 %v568_v63, 0.0  ;;  %v492_v10 = vadd.f32 %v491_v6, %v1405_v27  ;;  %v572_v11 = vadd.f32 %v571_v7, %v1405_v27 }
 0x115   : > { %v640_v12 = vmax.f32 %v490_v4, 0.0  ;;  %v672_v13 = vmax.f32 %v570_v5, 0.0 }
 0x116   : > { %v1121_v14 = vpack.c.bf16 %v639_v8, %v638_v2  ;;  %v1137_v15 = vpack.c.bf16 %v671_v9, %v670_v3  ;;  %v641_v16 = vmax.f32 %v492_v10, 0.0  ;;  %v673_v17 = vmax.f32 %v572_v11, 0.0 }
 0x118   : > { %892 = vst [vmem:[%s1419_s24 + $0x10] sm:$0xff] %v1121_v14  ;;  %908 = vst [vmem:[%s1419_s24 + $0x90] sm:$0xff] %v1137_v15  ;;  %v1122_v18 = vpack.c.bf16 %v641_v16, %v640_v12  ;;  %v1138_v19 = vpack.c.bf16 %v673_v17, %v672_v13  ;;  %v495_v20 = vpop.f32.mrb[8].mxu0  ;;  %v575_v21 = vpop.f32.mrb[8].mxu1 }
 0x119   : > { %v496_v22 = vadd.f32 %v495_v20, %v1403_v26  ;;  %v576_v23 = vadd.f32 %v575_v21, %v1403_v26  ;;  %v497_v24 = vpop.f32.mrb[9].mxu0  ;;  %v577_v25 = vpop.f32.mrb[9].mxu1 }
 0x11a   : > { %893 = vst [vmem:[%s1419_s24 + $0x18] sm:$0xff] %v1122_v18  ;;  %909 = vst [vmem:[%s1419_s24 + $0x98] sm:$0xff] %v1138_v19  ;;  %v498_v28 = vadd.f32 %v497_v24, %v1405_v27  ;;  %v578_v29 = vadd.f32 %v577_v25, %v1405_v27  ;;  %v499_v30 = vpop.f32.mrb[10].mxu0  ;;  %v579_v31 = vpop.f32.mrb[10].mxu1 }
 0x11b   : > { %v642_v32 = vmax.f32 %v496_v22, 0.0  ;;  %v674_v33 = vmax.f32 %v576_v23, 0.0  ;;  %v500_v34 = vadd.f32 %v499_v30, %v1403_v26  ;;  %v580_v35 = vadd.f32 %v579_v31, %v1403_v26  ;;  %v501_v36 = vpop.f32.mrb[11].mxu0  ;;  %v581_v37 = vpop.f32.mrb[11].mxu1 }
 0x11c   : > { %v643_v38 = vmax.f32 %v498_v28, 0.0  ;;  %v675_v39 = vmax.f32 %v578_v29, 0.0  ;;  %v502_v40 = vadd.f32 %v501_v36, %v1405_v27  ;;  %v582_v41 = vadd.f32 %v581_v37, %v1405_v27 }
 0x11d   : > { %v644_v42 = vmax.f32 %v500_v34, 0.0  ;;  %v676_v43 = vmax.f32 %v580_v35, 0.0 }
 0x11e   : > { %v1123_v44 = vpack.c.bf16 %v643_v38, %v642_v32  ;;  %v1139_v45 = vpack.c.bf16 %v675_v39, %v674_v33  ;;  %v645_v46 = vmax.f32 %v502_v40, 0.0  ;;  %v677_v47 = vmax.f32 %v582_v41, 0.0 }
 0x120   : > { %894 = vst [vmem:[%s1419_s24 + $0x20] sm:$0xff] %v1123_v44  ;;  %910 = vst [vmem:[%s1419_s24 + $0xa0] sm:$0xff] %v1139_v45  ;;  %v1124_v48 = vpack.c.bf16 %v645_v46, %v644_v42  ;;  %v1140_v49 = vpack.c.bf16 %v677_v47, %v676_v43  ;;  %v505_v50 = vpop.f32.mrb[12].mxu0  ;;  %v585_v51 = vpop.f32.mrb[12].mxu1 }
 0x121   : > { %v506_v52 = vadd.f32 %v505_v50, %v1403_v26  ;;  %v586_v53 = vadd.f32 %v585_v51, %v1403_v26  ;;  %v507_v54 = vpop.f32.mrb[13].mxu0  ;;  %v587_v55 = vpop.f32.mrb[13].mxu1 }
 0x122   : > { %895 = vst [vmem:[%s1419_s24 + $0x28] sm:$0xff] %v1124_v48  ;;  %911 = vst [vmem:[%s1419_s24 + $0xa8] sm:$0xff] %v1140_v49  ;;  %v508_v56 = vadd.f32 %v507_v54, %v1405_v27  ;;  %v588_v57 = vadd.f32 %v587_v55, %v1405_v27  ;;  %v509_v58 = vpop.f32.mrb[14].mxu0  ;;  %v589_v59 = vpop.f32.mrb[14].mxu1 }
 0x123   : > { %v646_v60 = vmax.f32 %v506_v52, 0.0  ;;  %v678_v61 = vmax.f32 %v586_v53, 0.0  ;;  %v510_v62 = vadd.f32 %v509_v58, %v1403_v26  ;;  %v590_v63 = vadd.f32 %v589_v59, %v1403_v26  ;;  %v511_v0 = vpop.f32.mrb[15].mxu0  ;;  %v591_v1 = vpop.f32.mrb[15].mxu1 }
 0x124   : > { %v647_v2 = vmax.f32 %v508_v56, 0.0  ;;  %v679_v3 = vmax.f32 %v588_v57, 0.0  ;;  %v512_v4 = vadd.f32 %v511_v0, %v1405_v27  ;;  %v592_v5 = vadd.f32 %v591_v1, %v1405_v27 }
 0x125   : > { %v648_v6 = vmax.f32 %v510_v62, 0.0  ;;  %v680_v7 = vmax.f32 %v590_v63, 0.0 }
 0x126   : > { %v1125_v8 = vpack.c.bf16 %v647_v2, %v646_v60  ;;  %v1141_v9 = vpack.c.bf16 %v679_v3, %v678_v61  ;;  %v649_v10 = vmax.f32 %v512_v4, 0.0  ;;  %v681_v11 = vmax.f32 %v592_v5, 0.0 }
 0x128   : > { %896 = vst [vmem:[%s1419_s24 + $0x30] sm:$0xff] %v1125_v8  ;;  %912 = vst [vmem:[%s1419_s24 + $0xb0] sm:$0xff] %v1141_v9  ;;  %v1126_v12 = vpack.c.bf16 %v649_v10, %v648_v6  ;;  %v1142_v13 = vpack.c.bf16 %v681_v11, %v680_v7  ;;  %v515_v14 = vpop.f32.mrb[16].mxu0  ;;  %v595_v15 = vpop.f32.mrb[16].mxu1 }
 0x129   : > { %v516_v16 = vadd.f32 %v515_v14, %v1403_v26  ;;  %v596_v17 = vadd.f32 %v595_v15, %v1403_v26  ;;  %v517_v18 = vpop.f32.mrb[17].mxu0  ;;  %v597_v19 = vpop.f32.mrb[17].mxu1 }
 0x12a   : > { %897 = vst [vmem:[%s1419_s24 + $0x38] sm:$0xff] %v1126_v12  ;;  %913 = vst [vmem:[%s1419_s24 + $0xb8] sm:$0xff] %v1142_v13  ;;  %v518_v20 = vadd.f32 %v517_v18, %v1405_v27  ;;  %v598_v21 = vadd.f32 %v597_v19, %v1405_v27  ;;  %v519_v22 = vpop.f32.mrb[18].mxu0  ;;  %v599_v23 = vpop.f32.mrb[18].mxu1 }
 0x12b   : > { %v650_v24 = vmax.f32 %v516_v16, 0.0  ;;  %v682_v25 = vmax.f32 %v596_v17, 0.0  ;;  %v520_v28 = vadd.f32 %v519_v22, %v1403_v26  ;;  %v600_v29 = vadd.f32 %v599_v23, %v1403_v26  ;;  %v521_v30 = vpop.f32.mrb[19].mxu0  ;;  %v601_v31 = vpop.f32.mrb[19].mxu1 }
 0x12c   : > { %v651_v32 = vmax.f32 %v518_v20, 0.0  ;;  %v683_v33 = vmax.f32 %v598_v21, 0.0  ;;  %v522_v34 = vadd.f32 %v521_v30, %v1405_v27  ;;  %v602_v35 = vadd.f32 %v601_v31, %v1405_v27 }
 0x12d   : > { %v652_v36 = vmax.f32 %v520_v28, 0.0  ;;  %v684_v37 = vmax.f32 %v600_v29, 0.0 }
 0x12e   : > { %v1127_v38 = vpack.c.bf16 %v651_v32, %v650_v24  ;;  %v1143_v39 = vpack.c.bf16 %v683_v33, %v682_v25  ;;  %v653_v40 = vmax.f32 %v522_v34, 0.0  ;;  %v685_v41 = vmax.f32 %v602_v35, 0.0 }
 0x130   : > { %898 = vst [vmem:[%s1419_s24 + $0x40] sm:$0xff] %v1127_v38  ;;  %914 = vst [vmem:[%s1419_s24 + $0xc0] sm:$0xff] %v1143_v39  ;;  %v1128_v42 = vpack.c.bf16 %v653_v40, %v652_v36  ;;  %v1144_v43 = vpack.c.bf16 %v685_v41, %v684_v37  ;;  %v525_v44 = vpop.f32.mrb[20].mxu0  ;;  %v605_v45 = vpop.f32.mrb[20].mxu1 }
 0x131   : > { %v526_v46 = vadd.f32 %v525_v44, %v1403_v26  ;;  %v606_v47 = vadd.f32 %v605_v45, %v1403_v26  ;;  %v527_v48 = vpop.f32.mrb[21].mxu0  ;;  %v607_v49 = vpop.f32.mrb[21].mxu1 }
 0x132   : > { %899 = vst [vmem:[%s1419_s24 + $0x48] sm:$0xff] %v1128_v42  ;;  %915 = vst [vmem:[%s1419_s24 + $0xc8] sm:$0xff] %v1144_v43  ;;  %v528_v50 = vadd.f32 %v527_v48, %v1405_v27  ;;  %v608_v51 = vadd.f32 %v607_v49, %v1405_v27  ;;  %v529_v52 = vpop.f32.mrb[22].mxu0  ;;  %v609_v53 = vpop.f32.mrb[22].mxu1 }
 0x133   : > { %v654_v54 = vmax.f32 %v526_v46, 0.0  ;;  %v686_v55 = vmax.f32 %v606_v47, 0.0  ;;  %v530_v56 = vadd.f32 %v529_v52, %v1403_v26  ;;  %v610_v57 = vadd.f32 %v609_v53, %v1403_v26  ;;  %v531_v58 = vpop.f32.mrb[23].mxu0  ;;  %v611_v59 = vpop.f32.mrb[23].mxu1 }
 0x134   : > { %v655_v60 = vmax.f32 %v528_v50, 0.0  ;;  %v687_v61 = vmax.f32 %v608_v51, 0.0  ;;  %v532_v62 = vadd.f32 %v531_v58, %v1405_v27  ;;  %v612_v63 = vadd.f32 %v611_v59, %v1405_v27 }
 0x135   : > { %v656_v0 = vmax.f32 %v530_v56, 0.0  ;;  %v688_v1 = vmax.f32 %v610_v57, 0.0 }
 0x136   : > { %v1129_v2 = vpack.c.bf16 %v655_v60, %v654_v54  ;;  %v1145_v3 = vpack.c.bf16 %v687_v61, %v686_v55  ;;  %v657_v4 = vmax.f32 %v532_v62, 0.0  ;;  %v689_v5 = vmax.f32 %v612_v63, 0.0 }
 0x138   : > { %900 = vst [vmem:[%s1419_s24 + $0x50] sm:$0xff] %v1129_v2  ;;  %916 = vst [vmem:[%s1419_s24 + $0xd0] sm:$0xff] %v1145_v3  ;;  %v1130_v6 = vpack.c.bf16 %v657_v4, %v656_v0  ;;  %v1146_v7 = vpack.c.bf16 %v689_v5, %v688_v1  ;;  %v535_v8 = vpop.f32.mrb[24].mxu0  ;;  %v615_v9 = vpop.f32.mrb[24].mxu1 }
 0x139   : > { %v536_v10 = vadd.f32 %v535_v8, %v1403_v26  ;;  %v616_v11 = vadd.f32 %v615_v9, %v1403_v26  ;;  %v537_v12 = vpop.f32.mrb[25].mxu0  ;;  %v617_v13 = vpop.f32.mrb[25].mxu1 }
 0x13a   : > { %901 = vst [vmem:[%s1419_s24 + $0x58] sm:$0xff] %v1130_v6  ;;  %917 = vst [vmem:[%s1419_s24 + $0xd8] sm:$0xff] %v1146_v7  ;;  %v538_v14 = vadd.f32 %v537_v12, %v1405_v27  ;;  %v618_v15 = vadd.f32 %v617_v13, %v1405_v27  ;;  %v539_v16 = vpop.f32.mrb[26].mxu0  ;;  %v619_v17 = vpop.f32.mrb[26].mxu1 }
 0x13b   : > { %v658_v18 = vmax.f32 %v536_v10, 0.0  ;;  %v690_v19 = vmax.f32 %v616_v11, 0.0  ;;  %v540_v20 = vadd.f32 %v539_v16, %v1403_v26  ;;  %v620_v21 = vadd.f32 %v619_v17, %v1403_v26  ;;  %v541_v22 = vpop.f32.mrb[27].mxu0  ;;  %v621_v23 = vpop.f32.mrb[27].mxu1 }
 0x13c   : > { %v659_v24 = vmax.f32 %v538_v14, 0.0  ;;  %v691_v25 = vmax.f32 %v618_v15, 0.0  ;;  %v542_v28 = vadd.f32 %v541_v22, %v1405_v27  ;;  %v622_v29 = vadd.f32 %v621_v23, %v1405_v27 }
 0x13d   : > { %v660_v30 = vmax.f32 %v540_v20, 0.0  ;;  %v692_v31 = vmax.f32 %v620_v21, 0.0 }
 0x13e   : > { %v1131_v32 = vpack.c.bf16 %v659_v24, %v658_v18  ;;  %v1147_v33 = vpack.c.bf16 %v691_v25, %v690_v19  ;;  %v661_v34 = vmax.f32 %v542_v28, 0.0  ;;  %v693_v35 = vmax.f32 %v622_v29, 0.0 }
 0x140   : > { %902 = vst [vmem:[%s1419_s24 + $0x60] sm:$0xff] %v1131_v32  ;;  %918 = vst [vmem:[%s1419_s24 + $0xe0] sm:$0xff] %v1147_v33  ;;  %v1132_v36 = vpack.c.bf16 %v661_v34, %v660_v30  ;;  %v1148_v37 = vpack.c.bf16 %v693_v35, %v692_v31  ;;  %v545_v38 = vpop.f32.mrb[28].mxu0  ;;  %v625_v39 = vpop.f32.mrb[28].mxu1 }
 0x141   : > { %v546_v40 = vadd.f32 %v545_v38, %v1403_v26  ;;  %v626_v41 = vadd.f32 %v625_v39, %v1403_v26  ;;  %v547_v42 = vpop.f32.mrb[29].mxu0  ;;  %v627_v43 = vpop.f32.mrb[29].mxu1 }
 0x142   : > { %903 = vst [vmem:[%s1419_s24 + $0x68] sm:$0xff] %v1132_v36  ;;  %919 = vst [vmem:[%s1419_s24 + $0xe8] sm:$0xff] %v1148_v37  ;;  %v548_v44 = vadd.f32 %v547_v42, %v1405_v27  ;;  %v628_v45 = vadd.f32 %v627_v43, %v1405_v27  ;;  %v549_v46 = vpop.f32.mrb[30].mxu0  ;;  %v629_v47 = vpop.f32.mrb[30].mxu1 }
 0x143   : > { %v662_v48 = vmax.f32 %v546_v40, 0.0  ;;  %v694_v49 = vmax.f32 %v626_v41, 0.0  ;;  %v550_v50 = vadd.f32 %v549_v46, %v1403_v26  ;;  %v630_v51 = vadd.f32 %v629_v47, %v1403_v26  ;;  %v551_v52 = vpop.f32.mrb[31].mxu0  ;;  %v631_v53 = vpop.f32.mrb[31].mxu1 }
 0x144   : > { %v663_v54 = vmax.f32 %v548_v44, 0.0  ;;  %v695_v55 = vmax.f32 %v628_v45, 0.0  ;;  %v552_v56 = vadd.f32 %v551_v52, %v1405_v27  ;;  %v632_v57 = vadd.f32 %v631_v53, %v1405_v27 }
 0x145   : > { %v664_v58 = vmax.f32 %v550_v50, 0.0  ;;  %v696_v59 = vmax.f32 %v630_v51, 0.0 }
 0x146   : > { %v1133_v60 = vpack.c.bf16 %v663_v54, %v662_v48  ;;  %v1149_v61 = vpack.c.bf16 %v695_v55, %v694_v49  ;;  %v665_v62 = vmax.f32 %v552_v56, 0.0  ;;  %v697_v63 = vmax.f32 %v632_v57, 0.0 }
 0x148   : > { %904 = vst [vmem:[%s1419_s24 + $0x70] sm:$0xff] %v1133_v60  ;;  %920 = vst [vmem:[%s1419_s24 + $0xf0] sm:$0xff] %v1149_v61  ;;  %v1134_v0 = vpack.c.bf16 %v665_v62, %v664_v58  ;;  %v1150_v26 = vpack.c.bf16 %v697_v63, %v696_v59 }
 0x14a   : > { %905 = vst [vmem:[%s1419_s24 + $0x78] sm:$0xff] %v1134_v0  ;;  %921 = vst [vmem:[%s1419_s24 + $0xf8] sm:$0xff] %v1150_v26 }
 0x14b PF: > { %s14_s14 = sadd.s32 1, %s1267_s14   ;;  %s1530_s12 = smov %s1263_s13 }
 0x14c   : > { %p11_p4 = scmp.ge.s32.totalorder %s14_s14, 4   ;;  %s1531_s13 = smov %s1533_s16 }
 0x14e   :  { %13 = sbr.rel (!%p11_p4) target bundleno = 2 (0x2), region = 71 }
 0x155   :  { %955 = vsyncpa [#allocation3], 1 }
 0x156   :  { %957 = vsyncpa [#allocation3 + $0x1], 1 }

// kernel: reduction_a_forward.8
= control target key start
LH: loop header
LB: loop body
LE: loop exit
PB: predicated region body
PF: predicated region fallthrough
CT: control target
= control target key end

     0   :  { %s8075_s12 = smov 0   ;;  %s8077_s13 = smov 0   ;;  %s9542_s0 = inlined_call_operand.vmem [shape: bf16[512,2304], index: 0, kind: input, shape index: {}]   ;;  %s9543_s1 = inlined_call_operand.vmem [shape: bf16[2304,256], index: 1, kind: input, shape index: {}]   ;;  %s9544_s2 = inlined_call_operand.vmem [shape: f32[1,256], index: 2, kind: input, shape index: {}]   ;;  %s9545_s3 = inlined_call_operand.vmem [shape: bf16[512,256], index: 3, kind: output, shape index: {}]  }
   0x1   :  { %s8079_s14 = smov 0  }
   0x2 LB: > { %s22_s15 = sadd.s32 1, %s8049_s13  ;;  %p5853_p0 = scmp.ge.s32.totalorder %s8053_s14, 1  ;;  %s8053_s14 = sphi %s8079_s14, %s13_s14   ;;  %s8049_s13 = sphi %s8077_s13, %s9547_s13   ;;  %s8045_s12 = sphi %s8075_s12, %s9546_s12  }
   0x3   : > { %p23_p1 = scmp.ge.s32.totalorder %s22_s15, 2  ;;  %p174_p2 = scmp.lt.s32.totalorder %s8053_s14, 3 }
   0x5   : > { %s9549_s15 = smov (%p23_p1, %s22_s15), 0  ;;  %p175_p3 = pnand %p5853_p0, %p174_p2 }
   0x6   : > { %v7135_v0 = vld [vmem:[%s9543_s1 + $0x4] ss:$8 sps:$4 sm:$0xff] (!%p175_p3)   ;;  %v7139_v2 = vld [vmem:[%s9543_s1] ss:$8 sps:$4 sm:$0xff] (!%p175_p3)   ;;  %v7141_v4 = vld [vmem:[%s9543_s1 + $0x14] ss:$8 sps:$4 sm:$0xff] (!%p175_p3)  }
   0x7   : > { %178 = sbr.rel (%p175_p3) target bundleno = 863 (0x35f), region = 32  ;;  %v7137_v1 = vld [vmem:[%s9543_s1 + $0x404] ss:$8 sps:$4 sm:$0xff] (!%p175_p3)   ;;  %3711 = vmatprep.subr.bf16.mxu1 (!%p175_p3), %v7135_v0  ;;  %v7140_v3 = vld [vmem:[%s9543_s1 + $0x400] ss:$8 sps:$4 sm:$0xff] (!%p175_p3)   ;;  %s5854_s30 = sshll.u32 (!%p175_p3), %s8045_s12, 5 }
   0x8   : > { %4483 = vmatprep.subr.bf16.mxu0 (!%p175_p3), %v7137_v1  ;;  %3712 = vmatpush1.bf16.msra.mxu1 (!%p175_p3), %v7139_v2  ;;  %v7143_v5 = vld [vmem:[%s9543_s1 + $0x414] ss:$8 sps:$4 sm:$0xff] (!%p175_p3)   ;;  %v7145_v6 = vld [vmem:[%s9543_s1 + $0x10] ss:$8 sps:$4 sm:$0xff] (!%p175_p3)   ;;  %v7147_v8 = vld [vmem:[%s9543_s1 + $0x24] ss:$8 sps:$4 sm:$0xff] (!%p175_p3)  }
   0x9   : > { %4484 = vmatpush1.bf16.msra.mxu0 (!%p175_p3), %v7140_v3  ;;  %3713 = vmatprep.subr.bf16.mxu1 (!%p175_p3), %v7141_v4  ;;  %v7146_v7 = vld [vmem:[%s9543_s1 + $0x410] ss:$8 sps:$4 sm:$0xff] (!%p175_p3)   ;;  %v7149_v9 = vld [vmem:[%s9543_s1 + $0x424] ss:$8 sps:$4 sm:$0xff] (!%p175_p3)   ;;  %v7151_v10 = vld [vmem:[%s9543_s1 + $0x20] ss:$8 sps:$4 sm:$0xff] (!%p175_p3)  }
   0xa   : > { %4485 = vmatprep.subr.bf16.mxu0 (!%p175_p3), %v7143_v5  ;;  %v7152_v11 = vld [vmem:[%s9543_s1 + $0x420] ss:$8 sps:$4 sm:$0xff] (!%p175_p3)   ;;  %v7153_v12 = vld [vmem:[%s9543_s1 + $0x34] ss:$8 sps:$4 sm:$0xff] (!%p175_p3)   ;;  %v7157_v14 = vld [vmem:[%s9543_s1 + $0x30] ss:$8 sps:$4 sm:$0xff] (!%p175_p3)  }
   0xb   : > { %v7155_v13 = vld [vmem:[%s9543_s1 + $0x434] ss:$8 sps:$4 sm:$0xff] (!%p175_p3)   ;;  %v7158_v15 = vld [vmem:[%s9543_s1 + $0x430] ss:$8 sps:$4 sm:$0xff] (!%p175_p3)   ;;  %v7159_v16 = vld [vmem:[%s9543_s1 + $0x44] ss:$8 sps:$4 sm:$0xff] (!%p175_p3)  }
   0xc   : > { %3714 = vmatpush1.bf16.msra.mxu1 (!%p175_p3), %v7145_v6  ;;  %v7161_v17 = vld [vmem:[%s9543_s1 + $0x444] ss:$8 sps:$4 sm:$0xff] (!%p175_p3)   ;;  %v7163_v18 = vld [vmem:[%s9543_s1 + $0x40] ss:$8 sps:$4 sm:$0xff] (!%p175_p3)   ;;  %v7165_v20 = vld [vmem:[%s9543_s1 + $0x54] ss:$8 sps:$4 sm:$0xff] (!%p175_p3)  }
   0xd   : > { %4486 = vmatpush1.bf16.msra.mxu0 (!%p175_p3), %v7146_v7  ;;  %3715 = vmatprep.subr.bf16.mxu1 (!%p175_p3), %v7147_v8  ;;  %v7164_v19 = vld [vmem:[%s9543_s1 + $0x440] ss:$8 sps:$4 sm:$0xff] (!%p175_p3)   ;;  %v7167_v21 = vld [vmem:[%s9543_s1 + $0x454] ss:$8 sps:$4 sm:$0xff] (!%p175_p3)   ;;  %v7169_v22 = vld [vmem:[%s9543_s1 + $0x50] ss:$8 sps:$4 sm:$0xff] (!%p175_p3)  }
   0xe   : > { %4487 = vmatprep.subr.bf16.mxu0 %v7149_v9  ;;  %v7170_v23 = vld [vmem:[%s9543_s1 + $0x450] ss:$8 sps:$4 sm:$0xff]   ;;  %v7171_v24 = vld [vmem:[%s9543_s1 + $0x64] ss:$8 sps:$4 sm:$0xff]   ;;  %v7175_v26 = vld [vmem:[%s9543_s1 + $0x60] ss:$8 sps:$4 sm:$0xff]  }
   0xf   : > { %v7173_v25 = vld [vmem:[%s9543_s1 + $0x464] ss:$8 sps:$4 sm:$0xff]   ;;  %v7176_v27 = vld [vmem:[%s9543_s1 + $0x460] ss:$8 sps:$4 sm:$0xff]   ;;  %v7177_v28 = vld [vmem:[%s9543_s1 + $0x74] ss:$8 sps:$4 sm:$0xff]  }
  0x10   : > { %3716 = vmatpush1.bf16.msra.mxu1 %v7151_v10  ;;  %v7179_v29 = vld [vmem:[%s9543_s1 + $0x474] ss:$8 sps:$4 sm:$0xff]   ;;  %v7181_v30 = vld [vmem:[%s9543_s1 + $0x70] ss:$8 sps:$4 sm:$0xff]   ;;  %v7183_v32 = vld [vmem:[%s9543_s1 + $0x84] ss:$8 sps:$4 sm:$0xff]  }
  0x11   : > { %4488 = vmatpush1.bf16.msra.mxu0 %v7152_v11  ;;  %3717 = vmatprep.subr.bf16.mxu1 %v7153_v12  ;;  %v7182_v31 = vld [vmem:[%s9543_s1 + $0x470] ss:$8 sps:$4 sm:$0xff]   ;;  %p214_p4 = scmp.lt.s32.totalorder %s5854_s30, 63  ;;  %v7185_v33 = vld [vmem:[%s9543_s1 + $0x484] ss:$8 sps:$4 sm:$0xff]  }
  0x12   : > { %4489 = vmatprep.subr.bf16.mxu0 %v7155_v13  ;;  %v7187_v34 = vld [vmem:[%s9543_s1 + $0x80] ss:$8 sps:$4 sm:$0xff]   ;;  %v7189_v36 = vld [vmem:[%s9543_s1 + $0x94] ss:$8 sps:$4 sm:$0xff]   ;;  %v7193_v38 = vld [vmem:[%s9543_s1 + $0x90] ss:$8 sps:$4 sm:$0xff]  }
  0x13   : > { %v7188_v35 = vld [vmem:[%s9543_s1 + $0x480] ss:$8 sps:$4 sm:$0xff]   ;;  %s9551_s30 = smov (!%p214_p4, %s5854_s30), 63  ;;  %v7191_v37 = vld [vmem:[%s9543_s1 + $0x494] ss:$8 sps:$4 sm:$0xff]  }
  0x14   : > { %3718 = vmatpush1.bf16.msra.mxu1 %v7157_v14  ;;  %v7194_v39 = vld [vmem:[%s9543_s1 + $0x490] ss:$8 sps:$4 sm:$0xff]   ;;  %v7195_v40 = vld [vmem:[%s9543_s1 + $0xa4] ss:$8 sps:$4 sm:$0xff]   ;;  %s7110_s29 = smul.u32 72, %s9551_s30  ;;  %s6469_s19 = sshll.u32 %s9551_s30, 3 }
  0x15   : > { %4490 = vmatpush1.bf16.msra.mxu0 %v7158_v15  ;;  %3719 = vmatprep.subr.bf16.mxu1 %v7159_v16  ;;  %v7197_v41 = vld [vmem:[%s9543_s1 + $0x4a4] ss:$8 sps:$4 sm:$0xff]   ;;  %v7199_v42 = vld [vmem:[%s9543_s1 + $0xa0] ss:$8 sps:$4 sm:$0xff]   ;;  %v7201_v44 = vld [vmem:[%s9543_s1 + $0xb4] ss:$8 sps:$4 sm:$0xff]   ;;  %s9415_s22 = scalar_lea.vmem %s9545_s3, %s6469_s19 }
  0x16   : > { %4491 = vmatprep.subr.bf16.mxu0 %v7161_v17  ;;  %v7200_v43 = vld [vmem:[%s9543_s1 + $0x4a0] ss:$8 sps:$4 sm:$0xff]   ;;  %s8237_s17 = scalar_lea.vmem %s9542_s0, %s7110_s29  ;;  %v7203_v45 = vld [vmem:[%s9543_s1 + $0x4b4] ss:$8 sps:$4 sm:$0xff]   ;;  %v7205_v46 = vld [vmem:[%s9543_s1 + $0xb0] ss:$8 sps:$4 sm:$0xff]  }
  0x17   : > { %v7206_v47 = vld [vmem:[%s9543_s1 + $0x4b0] ss:$8 sps:$4 sm:$0xff]   ;;  %v7207_v48 = vld [vmem:[%s9543_s1 + $0xc4] ss:$8 sps:$4 sm:$0xff]   ;;  %v7211_v52 = vld [vmem:[%s9543_s1 + $0xc0] ss:$8 sps:$4 sm:$0xff]  }
  0x18   : > { %3720 = vmatpush1.bf16.msra.mxu1 %v7163_v18  ;;  %v7233_v49 = vld [vmem:[%s8237_s17 + $0x4] ss:$72 sps:$4 sm:$0xff]   ;;  %v7212_v53 = vld [vmem:[%s9543_s1 + $0x4c0] ss:$8 sps:$4 sm:$0xff]   ;;  %v7213_v54 = vld [vmem:[%s9543_s1 + $0xd4] ss:$8 sps:$4 sm:$0xff]  }
  0x19   : > { %4492 = vmatpush1.bf16.msra.mxu0 %v7164_v19  ;;  %3721 = vmatprep.subr.bf16.mxu1 %v7165_v20  ;;  %v7209_v50 = vld [vmem:[%s9543_s1 + $0x4c4] ss:$8 sps:$4 sm:$0xff]   ;;  %v7215_v55 = vld [vmem:[%s9543_s1 + $0x4d4] ss:$8 sps:$4 sm:$0xff]   ;;  %v7217_v56 = vld [vmem:[%s9543_s1 + $0xd0] ss:$8 sps:$4 sm:$0xff]  }
  0x1a   : > { %4493 = vmatprep.subr.bf16.mxu0 %v7167_v21  ;;  %v7236_v51 = vld [vmem:[%s8237_s17 + $0x24] ss:$72 sps:$4 sm:$0xff]   ;;  %3743 = vmatprep.mubr.bf16.mxu1 %v7233_v49  ;;  %v7218_v57 = vld [vmem:[%s9543_s1 + $0x4d0] ss:$8 sps:$4 sm:$0xff]   ;;  %v7223_v60 = vld [vmem:[%s9543_s1 + $0xe0] ss:$8 sps:$4 sm:$0xff]  }
  0x1b   : > { %4515 = vmatprep.mubr.bf16.mxu0 %v7236_v51  ;;  %v7219_v58 = vld [vmem:[%s9543_s1 + $0xe4] ss:$8 sps:$4 sm:$0xff]   ;;  %v7224_v61 = vld [vmem:[%s9543_s1 + $0x4e0] ss:$8 sps:$4 sm:$0xff]   ;;  %v7225_v62 = vld [vmem:[%s9543_s1 + $0xf4] ss:$8 sps:$4 sm:$0xff]  }
  0x1c   : > { %3722 = vmatpush1.bf16.msra.mxu1 %v7169_v22  ;;  %v7221_v59 = vld [vmem:[%s9543_s1 + $0x4e4] ss:$8 sps:$4 sm:$0xff]   ;;  %v7227_v63 = vld [vmem:[%s9543_s1 + $0x4f4] ss:$8 sps:$4 sm:$0xff]   ;;  %v7229_v0 = vld [vmem:[%s9543_s1 + $0xf0] ss:$8 sps:$4 sm:$0xff]  }
  0x1d   : > { %4494 = vmatpush1.bf16.msra.mxu0 %v7170_v23  ;;  %3723 = vmatprep.subr.bf16.mxu1 %v7171_v24  ;;  %v7230_v1 = vld [vmem:[%s9543_s1 + $0x4f0] ss:$8 sps:$4 sm:$0xff]   ;;  %v7239_v2 = vld [vmem:[%s9543_s1 + $0x104] ss:$8 sps:$4 sm:$0xff]   ;;  %v7231_v4 = vld [vmem:[%s8237_s17] ss:$72 sps:$4 sm:$0xff]  }
  0x1e   : > { %4495 = vmatprep.subr.bf16.mxu0 %v7173_v25  ;;  %v7242_v3 = vld [vmem:[%s9543_s1 + $0x504] ss:$8 sps:$4 sm:$0xff]   ;;  %v7234_v5 = vld [vmem:[%s8237_s17 + $0x20] ss:$72 sps:$4 sm:$0xff]   ;;  %v7245_v8 = vld [vmem:[%s9543_s1 + $0x514] ss:$8 sps:$4 sm:$0xff]  }
  0x1f   : > { %v7237_v6 = vld [vmem:[%s9543_s1 + $0x100] ss:$8 sps:$4 sm:$0xff]   ;;  %v7246_v9 = vld [vmem:[%s8237_s17 + $0x94] ss:$72 sps:$4 sm:$0xff]   ;;  %v7243_v12 = vld [vmem:[%s9543_s1 + $0x510] ss:$8 sps:$4 sm:$0xff]  }
  0x20   : > { %3724 = vmatpush1.bf16.msra.mxu1 %v7175_v26  ;;  %v7240_v7 = vld [vmem:[%s9543_s1 + $0x500] ss:$8 sps:$4 sm:$0xff]   ;;  %v7248_v10 = vld [vmem:[%s8237_s17 + $0xb4] ss:$72 sps:$4 sm:$0xff]   ;;  %v7251_v13 = vld [vmem:[%s9543_s1 + $0x110] ss:$8 sps:$4 sm:$0xff]  }
  0x21   : > { %4496 = vmatpush1.bf16.msra.mxu0 %v7176_v27  ;;  %3725 = vmatprep.subr.bf16.mxu1 %v7177_v28  ;;  %v7253_v11 = vld [vmem:[%s9543_s1 + $0x114] ss:$8 sps:$4 sm:$0xff]   ;;  %v7257_v14 = vld [vmem:[%s9543_s1 + $0x524] ss:$8 sps:$4 sm:$0xff]   ;;  %v7250_v16 = vld [vmem:[%s8237_s17 + $0x90] ss:$72 sps:$4 sm:$0xff]  }
  0x22   : > { %4497 = vmatprep.subr.bf16.mxu0 %v7179_v29  ;;  %v7268_v15 = vld [vmem:[%s9543_s1 + $0x124] ss:$8 sps:$4 sm:$0xff]   ;;  %v7254_v17 = vld [vmem:[%s8237_s17 + $0xb0] ss:$72 sps:$4 sm:$0xff]   ;;  %v7255_v18 = vld [vmem:[%s9543_s1 + $0x520] ss:$8 sps:$4 sm:$0xff]  }
  0x23   : > { %v7260_v19 = vld [vmem:[%s9543_s1 + $0x534] ss:$8 sps:$4 sm:$0xff]   ;;  %v7261_v20 = vld [vmem:[%s8237_s17 + $0x124] ss:$72 sps:$4 sm:$0xff]   ;;  %v7266_v22 = vld [vmem:[%s9543_s1 + $0x120] ss:$8 sps:$4 sm:$0xff]  }
  0x24   : > { %3726 = vmatpush1.bf16.msra.mxu1 %v7181_v30  ;;  %v7263_v21 = vld [vmem:[%s8237_s17 + $0x144] ss:$72 sps:$4 sm:$0xff]   ;;  %v7283_v23 = vld [vmem:[%s9543_s1 + $0x134] ss:$8 sps:$4 sm:$0xff]   ;;  %v7258_v24 = vld [vmem:[%s9543_s1 + $0x530] ss:$8 sps:$4 sm:$0xff]  }
  0x25   : > { %4498 = vmatpush1.bf16.msra.mxu0 %v7182_v31  ;;  %3727 = vmatprep.subr.bf16.mxu1 %v7183_v32  ;;  %v7265_v25 = vld [vmem:[%s8237_s17 + $0x120] ss:$72 sps:$4 sm:$0xff]   ;;  %v7272_v26 = vld [vmem:[%s9543_s1 + $0x544] ss:$8 sps:$4 sm:$0xff]   ;;  %v7281_v27 = vld [vmem:[%s9543_s1 + $0x130] ss:$8 sps:$4 sm:$0xff]  }
  0x26   : > { %4499 = vmatprep.subr.bf16.mxu0 %v7185_v33  ;;  %v7269_v28 = vld [vmem:[%s8237_s17 + $0x140] ss:$72 sps:$4 sm:$0xff]   ;;  %v7275_v30 = vld [vmem:[%s9543_s1 + $0x554] ss:$8 sps:$4 sm:$0xff]   ;;  %v7298_v33 = vld [vmem:[%s9543_s1 + $0x144] ss:$8 sps:$4 sm:$0xff]  }
  0x27   : > { %v7270_v29 = vld [vmem:[%s9543_s1 + $0x540] ss:$8 sps:$4 sm:$0xff]   ;;  %v7276_v31 = vld [vmem:[%s8237_s17 + $0x1b4] ss:$72 sps:$4 sm:$0xff]  }
  0x28   : > { %3728 = vmatpush1.bf16.msra.mxu1 %v7187_v34  ;;  %v7278_v32 = vld [vmem:[%s8237_s17 + $0x1d4] ss:$72 sps:$4 sm:$0xff]   ;;  %v7296_v34 = vld [vmem:[%s9543_s1 + $0x140] ss:$8 sps:$4 sm:$0xff]  }
  0x29   : > { %4500 = vmatpush1.bf16.msra.mxu0 %v7188_v35  ;;  %3729 = vmatprep.subr.bf16.mxu1 %v7189_v36  ;;  %v7273_v35 = vld [vmem:[%s9543_s1 + $0x550] ss:$8 sps:$4 sm:$0xff]   ;;  %v7313_v36 = vld [vmem:[%s9543_s1 + $0x154] ss:$8 sps:$4 sm:$0xff]   ;;  %v7299_v49 = vld [vmem:[%s8237_s17 + $0x260] ss:$72 sps:$4 sm:$0xff]  }
  0x2a   : > { %4501 = vmatprep.subr.bf16.mxu0 %v7191_v37  ;;  %v7287_v37 = vld [vmem:[%s9543_s1 + $0x564] ss:$8 sps:$4 sm:$0xff]   ;;  %v7300_v51 = vld [vmem:[%s9543_s1 + $0x580] ss:$8 sps:$4 sm:$0xff]  }
  0x2c   : > { %3730 = vmatpush1.bf16.msra.mxu1 %v7193_v38  ;;  %v7280_v38 = vld [vmem:[%s8237_s17 + $0x1b0] ss:$72 sps:$4 sm:$0xff]  }
  0x2d   : > { %4502 = vmatpush1.bf16.msra.mxu0 %v7194_v39  ;;  %3731 = vmatprep.subr.bf16.mxu1 %v7195_v40  ;;  %v7284_v39 = vld [vmem:[%s8237_s17 + $0x1d0] ss:$72 sps:$4 sm:$0xff]   ;;  %v7285_v40 = vld [vmem:[%s9543_s1 + $0x560] ss:$8 sps:$4 sm:$0xff]  }
  0x2e   : > { %4503 = vmatprep.subr.bf16.mxu0 %v7197_v41  ;;  %v7290_v41 = vld [vmem:[%s9543_s1 + $0x574] ss:$8 sps:$4 sm:$0xff]  }
  0x30   : > { %3732 = vmatpush1.bf16.msra.mxu1 %v7199_v42  ;;  %v7291_v42 = vld [vmem:[%s8237_s17 + $0x244] ss:$72 sps:$4 sm:$0xff]  }
  0x31   : > { %4504 = vmatpush1.bf16.msra.mxu0 %v7200_v43  ;;  %3733 = vmatprep.subr.bf16.mxu1 %v7201_v44  ;;  %v7293_v43 = vld [vmem:[%s8237_s17 + $0x264] ss:$72 sps:$4 sm:$0xff]   ;;  %v7311_v44 = vld [vmem:[%s9543_s1 + $0x150] ss:$8 sps:$4 sm:$0xff]  }
  0x32   : > { %4505 = vmatprep.subr.bf16.mxu0 %v7203_v45  ;;  %v7328_v45 = vld [vmem:[%s9543_s1 + $0x164] ss:$8 sps:$4 sm:$0xff]  }
  0x34   : > { %3734 = vmatpush1.bf16.msra.mxu1 %v7205_v46  ;;  %v7288_v46 = vld [vmem:[%s9543_s1 + $0x570] ss:$8 sps:$4 sm:$0xff]  }
  0x35   : > { %4506 = vmatpush1.bf16.msra.mxu0 %v7206_v47  ;;  %3735 = vmatprep.subr.bf16.mxu1 %v7207_v48  ;;  %v7295_v47 = vld [vmem:[%s8237_s17 + $0x240] ss:$72 sps:$4 sm:$0xff]   ;;  %v7302_v48 = vld [vmem:[%s9543_s1 + $0x584] ss:$8 sps:$4 sm:$0xff]  }
  0x36   : > { %4507 = vmatprep.subr.bf16.mxu0 %v7209_v50  ;;  %v7326_v50 = vld [vmem:[%s9543_s1 + $0x160] ss:$8 sps:$4 sm:$0xff]  }
  0x38   : > { %3736 = vmatpush1.bf16.msra.mxu1 %v7211_v52  ;;  %v7305_v52 = vld [vmem:[%s9543_s1 + $0x594] ss:$8 sps:$4 sm:$0xff]  }
  0x39   : > { %4508 = vmatpush1.bf16.msra.mxu0 %v7212_v53  ;;  %3737 = vmatprep.subr.bf16.mxu1 %v7213_v54  ;;  %v7306_v53 = vld [vmem:[%s8237_s17 + $0x2d4] ss:$72 sps:$4 sm:$0xff]  }
  0x3a   : > { %4509 = vmatprep.subr.bf16.mxu0 %v7215_v55  ;;  %v7308_v54 = vld [vmem:[%s8237_s17 + $0x2f4] ss:$72 sps:$4 sm:$0xff]  }
  0x3b   : > { %v7343_v55 = vld [vmem:[%s9543_s1 + $0x174] ss:$8 sps:$4 sm:$0xff]  }
  0x3c   : > { %3738 = vmatpush1.bf16.msra.mxu1 %v7217_v56  ;;  %v7303_v56 = vld [vmem:[%s9543_s1 + $0x590] ss:$8 sps:$4 sm:$0xff]  }
  0x3d   : > { %4510 = vmatpush1.bf16.msra.mxu0 %v7218_v57  ;;  %3739 = vmatprep.subr.bf16.mxu1 %v7219_v58  ;;  %v7341_v57 = vld [vmem:[%s9543_s1 + $0x170] ss:$8 sps:$4 sm:$0xff]   ;;  %v7359_v58 = vld [vmem:[%s9543_s1 + $0x184] ss:$8 sps:$4 sm:$0xff]  }
  0x3e   : > { %4511 = vmatprep.subr.bf16.mxu0 %v7221_v59  ;;  %v7317_v59 = vld [vmem:[%s9543_s1 + $0x5a4] ss:$8 sps:$4 sm:$0xff]  }
  0x40   : > { %3740 = vmatpush1.bf16.msra.mxu1 %v7223_v60  ;;  %v7310_v60 = vld [vmem:[%s8237_s17 + $0x2d0] ss:$72 sps:$4 sm:$0xff]  }
  0x41   : > { %4512 = vmatpush1.bf16.msra.mxu0 %v7224_v61  ;;  %3741 = vmatprep.subr.bf16.mxu1 %v7225_v62  ;;  %v7314_v61 = vld [vmem:[%s8237_s17 + $0x2f0] ss:$72 sps:$4 sm:$0xff]   ;;  %v7315_v62 = vld [vmem:[%s9543_s1 + $0x5a0] ss:$8 sps:$4 sm:$0xff]  }
  0x42   : > { %4513 = vmatprep.subr.bf16.mxu0 %v7227_v63  ;;  %v7320_v63 = vld [vmem:[%s9543_s1 + $0x5b4] ss:$8 sps:$4 sm:$0xff]  }
  0x44   : > { %3742 = vmatpush1.bf16.msra.mxu1 %v7229_v0  ;;  %v7321_v0 = vld [vmem:[%s8237_s17 + $0x364] ss:$72 sps:$4 sm:$0xff]  }
  0x45   : > { %4514 = vmatpush1.bf16.msra.mxu0 %v7230_v1  ;;  %3904 = vmatprep.subr.bf16.mxu1 %v7239_v2  ;;  %v7323_v1 = vld [vmem:[%s8237_s17 + $0x384] ss:$72 sps:$4 sm:$0xff]   ;;  %v7357_v2 = vld [vmem:[%s9543_s1 + $0x180] ss:$8 sps:$4 sm:$0xff]  }
  0x46   : > { %4676 = vmatprep.subr.bf16.mxu0 %v7242_v3  ;;  %v7370_v3 = vld [vmem:[%s9543_s1 + $0x194] ss:$8 sps:$4 sm:$0xff]  }
  0x47   : > { %3744 = vmatmul.mubr.bf16.vlgmr.msra.gmra.mrb[0].mxu1 %v7231_v4  ;;  %v7318_v4 = vld [vmem:[%s9543_s1 + $0x5b0] ss:$8 sps:$4 sm:$0xff]  }
  0x48   : > { %4516 = vmatmul.mubr.bf16.vlgmr.msra.gmra.mrb[0].mxu0 %v7234_v5  ;;  %3905 = vmatpush1.bf16.msra.mxu1 %v7237_v6  ;;  %v7325_v5 = vld [vmem:[%s8237_s17 + $0x360] ss:$72 sps:$4 sm:$0xff]   ;;  %v7332_v6 = vld [vmem:[%s9543_s1 + $0x5c4] ss:$8 sps:$4 sm:$0xff]  }
  0x49   : > { %4677 = vmatpush1.bf16.msra.mxu0 %v7240_v7  ;;  %3753 = vmatprep.mubr.bf16.mxu1 %v7246_v9  ;;  %v7329_v7 = vld [vmem:[%s8237_s17 + $0x380] ss:$72 sps:$4 sm:$0xff]  }
  0x4a   : > { %4678 = vmatprep.subr.bf16.mxu0 %v7245_v8  ;;  %4525 = vmatprep.mubr.bf16.mxu0 %v7248_v10  ;;  %v7368_v8 = vld [vmem:[%s9543_s1 + $0x190] ss:$8 sps:$4 sm:$0xff]   ;;  %v7330_v9 = vld [vmem:[%s9543_s1 + $0x5c0] ss:$8 sps:$4 sm:$0xff]   ;;  %v7335_v10 = vld [vmem:[%s9543_s1 + $0x5d4] ss:$8 sps:$4 sm:$0xff]  }
  0x4b   : > { %3906 = vmatprep.subr.bf16.mxu1 %v7253_v11  ;;  %v7336_v11 = vld [vmem:[%s8237_s17 + $0x3f4] ss:$72 sps:$4 sm:$0xff]  }
  0x4c   : > { %3907 = vmatpush1.bf16.msra.mxu1 %v7251_v13  ;;  %v7382_v13 = vld [vmem:[%s9543_s1 + $0x1a4] ss:$8 sps:$4 sm:$0xff]  }
  0x4d   : > { %4679 = vmatpush1.bf16.msra.mxu0 %v7243_v12  ;;  %3908 = vmatprep.subr.bf16.mxu1 %v7268_v15  ;;  %v7338_v12 = vld [vmem:[%s8237_s17 + $0x414] ss:$72 sps:$4 sm:$0xff]   ;;  %v7380_v15 = vld [vmem:[%s9543_s1 + $0x1a0] ss:$8 sps:$4 sm:$0xff]  }
  0x4e   : > { %4680 = vmatprep.subr.bf16.mxu0 %v7257_v14  ;;  %v7333_v14 = vld [vmem:[%s9543_s1 + $0x5d0] ss:$8 sps:$4 sm:$0xff]  }
  0x4f   : > { %3754 = vmatmul.mubr.bf16.gmra.mrb[4].mxu1 %v7250_v16  ;;  %v7394_v16 = vld [vmem:[%s9543_s1 + $0x1b4] ss:$8 sps:$4 sm:$0xff]  }
  0x50   : > { %4526 = vmatmul.mubr.bf16.gmra.mrb[4].mxu0 %v7254_v17  ;;  %3763 = vmatprep.mubr.bf16.mxu1 %v7261_v20  ;;  %v7347_v17 = vld [vmem:[%s9543_s1 + $0x5e4] ss:$8 sps:$4 sm:$0xff]   ;;  %v7345_v20 = vld [vmem:[%s9543_s1 + $0x5e0] ss:$8 sps:$4 sm:$0xff]  }
  0x51   : > { %4681 = vmatpush1.bf16.msra.mxu0 %v7255_v18  ;;  %4535 = vmatprep.mubr.bf16.mxu0 %v7263_v21  ;;  %v7340_v18 = vld [vmem:[%s8237_s17 + $0x3f0] ss:$72 sps:$4 sm:$0xff]   ;;  %v7350_v21 = vld [vmem:[%s9543_s1 + $0x5f4] ss:$8 sps:$4 sm:$0xff]  }
  0x52   : > { %4682 = vmatprep.subr.bf16.mxu0 %v7260_v19  ;;  %3909 = vmatpush1.bf16.msra.mxu1 %v7266_v22  ;;  %v7344_v19 = vld [vmem:[%s8237_s17 + $0x410] ss:$72 sps:$4 sm:$0xff]   ;;  %v7351_v22 = vld [vmem:[%s8237_s17 + $0x484] ss:$72 sps:$4 sm:$0xff]  }
  0x53   : > { %3910 = vmatprep.subr.bf16.mxu1 %v7283_v23  ;;  %v7355_v23 = vld [vmem:[%s8237_s17 + $0x2c] ss:$72 sps:$4 sm:$0xff]  }
  0x55   : > { %4683 = vmatpush1.bf16.msra.mxu0 %v7258_v24  ;;  %v7392_v24 = vld [vmem:[%s9543_s1 + $0x1b0] ss:$8 sps:$4 sm:$0xff]  }
  0x56   : > { %4684 = vmatprep.subr.bf16.mxu0 %v7272_v26  ;;  %3911 = vmatpush1.bf16.msra.mxu1 %v7281_v27  ;;  %v7348_v26 = vld [vmem:[%s9543_s1 + $0x5f0] ss:$8 sps:$4 sm:$0xff]  }
  0x57   : > { %3764 = vmatmul.mubr.bf16.gmra.mrb[8].mxu1 %v7265_v25  ;;  %3912 = vmatprep.subr.bf16.mxu1 %v7298_v33  ;;  %v7406_v25 = vld [vmem:[%s9543_s1 + $0x1c4] ss:$8 sps:$4 sm:$0xff]   ;;  %v7353_v27 = vld [vmem:[%s8237_s17 + $0x28] ss:$72 sps:$4 sm:$0xff]  }
  0x58   : > { %4536 = vmatmul.mubr.bf16.gmra.mrb[8].mxu0 %v7269_v28  ;;  %3773 = vmatprep.mubr.bf16.mxu1 %v7276_v31  ;;  %v7362_v28 = vld [vmem:[%s9543_s1 + $0x604] ss:$8 sps:$4 sm:$0xff]   ;;  %v7360_v31 = vld [vmem:[%s9543_s1 + $0x600] ss:$8 sps:$4 sm:$0xff]  }
  0x59   : > { %4685 = vmatpush1.bf16.msra.mxu0 %v7270_v29  ;;  %4545 = vmatprep.mubr.bf16.mxu0 %v7278_v32  ;;  %v7356_v29 = vld [vmem:[%s8237_s17 + $0x480] ss:$72 sps:$4 sm:$0xff]   ;;  %v7363_v32 = vld [vmem:[%s8237_s17 + $0x514] ss:$72 sps:$4 sm:$0xff]  }
  0x5a   : > { %4686 = vmatprep.subr.bf16.mxu0 %v7275_v30  ;;  %3913 = vmatpush1.bf16.msra.mxu1 %v7296_v34  ;;  %v7404_v30 = vld [vmem:[%s9543_s1 + $0x1c0] ss:$8 sps:$4 sm:$0xff]   ;;  %v7365_v33 = vld [vmem:[%s8237_s17 + $0xbc] ss:$72 sps:$4 sm:$0xff]  }
  0x5b   : > { %3914 = vmatprep.subr.bf16.mxu1 %v7313_v36  ;;  %v7374_v34 = vld [vmem:[%s9543_s1 + $0x614] ss:$8 sps:$4 sm:$0xff]   ;;  %v7372_v36 = vld [vmem:[%s9543_s1 + $0x610] ss:$8 sps:$4 sm:$0xff]  }
  0x5d   : > { %4687 = vmatpush1.bf16.msra.mxu0 %v7273_v35  ;;  %v7418_v35 = vld [vmem:[%s9543_s1 + $0x1d4] ss:$8 sps:$4 sm:$0xff]  }
  0x5e   : > { %4688 = vmatprep.subr.bf16.mxu0 %v7287_v37  ;;  %3915 = vmatpush1.bf16.msra.mxu1 %v7311_v44  ;;  %v7416_v37 = vld [vmem:[%s9543_s1 + $0x1d0] ss:$8 sps:$4 sm:$0xff]   ;;  %v7384_v44 = vld [vmem:[%s9543_s1 + $0x620] ss:$8 sps:$4 sm:$0xff]  }
  0x5f   : > { %3774 = vmatmul.mubr.bf16.gmra.mrb[12].mxu1 %v7280_v38  ;;  %3916 = vmatprep.subr.bf16.mxu1 %v7328_v45  ;;  %v7430_v38 = vld [vmem:[%s9543_s1 + $0x1e4] ss:$8 sps:$4 sm:$0xff]   ;;  %v7428_v45 = vld [vmem:[%s9543_s1 + $0x1e0] ss:$8 sps:$4 sm:$0xff]  }
  0x60   : > { %4546 = vmatmul.mubr.bf16.gmra.mrb[12].mxu0 %v7284_v39  ;;  %3783 = vmatprep.mubr.bf16.mxu1 %v7291_v42  ;;  %v7386_v39 = vld [vmem:[%s9543_s1 + $0x624] ss:$8 sps:$4 sm:$0xff]  }
  0x61   : > { %4689 = vmatpush1.bf16.msra.mxu0 %v7285_v40  ;;  %4555 = vmatprep.mubr.bf16.mxu0 %v7293_v43  ;;  %v7367_v40 = vld [vmem:[%s8237_s17 + $0x510] ss:$72 sps:$4 sm:$0xff]   ;;  %v7375_v42 = vld [vmem:[%s8237_s17 + $0x5a4] ss:$72 sps:$4 sm:$0xff]  }
  0x62   : > { %4690 = vmatprep.subr.bf16.mxu0 %v7290_v41  ;;  %3917 = vmatpush1.bf16.msra.mxu1 %v7326_v50  ;;  %v7371_v41 = vld [vmem:[%s8237_s17 + $0xb8] ss:$72 sps:$4 sm:$0xff]   ;;  %v7377_v43 = vld [vmem:[%s8237_s17 + $0x14c] ss:$72 sps:$4 sm:$0xff]  }
  0x63   : > { %3918 = vmatprep.subr.bf16.mxu1 %v7343_v55  ;;  %v7440_v50 = vld [vmem:[%s9543_s1 + $0x1f0] ss:$8 sps:$4 sm:$0xff]   ;;  %v7389_v55 = vld [vmem:[%s8237_s17 + $0x1dc] ss:$72 sps:$4 sm:$0xff]  }
  0x65   : > { %4691 = vmatpush1.bf16.msra.mxu0 %v7288_v46  ;;  %v7398_v46 = vld [vmem:[%s9543_s1 + $0x634] ss:$8 sps:$4 sm:$0xff]  }
  0x66   : > { %4692 = vmatprep.subr.bf16.mxu0 %v7302_v48  ;;  %3919 = vmatpush1.bf16.msra.mxu1 %v7341_v57  ;;  %v7396_v48 = vld [vmem:[%s9543_s1 + $0x630] ss:$8 sps:$4 sm:$0xff]   ;;  %v7422_v57 = vld [vmem:[%s9543_s1 + $0x654] ss:$8 sps:$4 sm:$0xff]  }
  0x67   : > { %3784 = vmatmul.mubr.bf16.gmra.mrb[16].mxu1 %v7295_v47  ;;  %3920 = vmatprep.subr.bf16.mxu1 %v7359_v58  ;;  %v7442_v47 = vld [vmem:[%s9543_s1 + $0x1f4] ss:$8 sps:$4 sm:$0xff]   ;;  %v7420_v58 = vld [vmem:[%s9543_s1 + $0x650] ss:$8 sps:$4 sm:$0xff]  }
  0x68   : > { %4556 = vmatmul.mubr.bf16.gmra.mrb[16].mxu0 %v7299_v49  ;;  %3793 = vmatprep.mubr.bf16.mxu1 %v7306_v53  ;;  %v7379_v49 = vld [vmem:[%s8237_s17 + $0x5a0] ss:$72 sps:$4 sm:$0xff]  }
  0x69   : > { %4693 = vmatpush1.bf16.msra.mxu0 %v7300_v51  ;;  %4565 = vmatprep.mubr.bf16.mxu0 %v7308_v54  ;;  %v7410_v51 = vld [vmem:[%s9543_s1 + $0x644] ss:$8 sps:$4 sm:$0xff]   ;;  %v7383_v53 = vld [vmem:[%s8237_s17 + $0x148] ss:$72 sps:$4 sm:$0xff]   ;;  %v7387_v54 = vld [vmem:[%s8237_s17 + $0x634] ss:$72 sps:$4 sm:$0xff]  }
  0x6a   : > { %4694 = vmatprep.subr.bf16.mxu0 %v7305_v52  ;;  %3921 = vmatpush1.bf16.msra.mxu1 %v7357_v2  ;;  %v7454_v52 = vld [vmem:[%s9543_s1 + $0x204] ss:$8 sps:$4 sm:$0xff]   ;;  %v7444_v2 = vld [vmem:[%s9543_s1 + $0x670] ss:$8 sps:$4 sm:$0xff]  }
  0x6b   : > { %3922 = vmatprep.subr.bf16.mxu1 %v7370_v3  ;;  %v7403_v3 = vld [vmem:[%s8237_s17 + $0x6c0] ss:$72 sps:$4 sm:$0xff]  }
  0x6d   : > { %4695 = vmatpush1.bf16.msra.mxu0 %v7303_v56  ;;  %v7408_v56 = vld [vmem:[%s9543_s1 + $0x640] ss:$8 sps:$4 sm:$0xff]  }
  0x6e   : > { %4696 = vmatprep.subr.bf16.mxu0 %v7317_v59  ;;  %3923 = vmatpush1.bf16.msra.mxu1 %v7368_v8  ;;  %v7434_v59 = vld [vmem:[%s9543_s1 + $0x664] ss:$8 sps:$4 sm:$0xff]   ;;  %v7456_v8 = vld [vmem:[%s9543_s1 + $0x680] ss:$8 sps:$4 sm:$0xff]  }
  0x6f   : > { %3794 = vmatmul.mubr.bf16.gmra.mrb[20].mxu1 %v7310_v60  ;;  %3924 = vmatprep.subr.bf16.mxu1 %v7382_v13  ;;  %v7391_v60 = vld [vmem:[%s8237_s17 + $0x630] ss:$72 sps:$4 sm:$0xff]  }
  0x70   : > { %4566 = vmatmul.mubr.bf16.gmra.mrb[20].mxu0 %v7314_v61  ;;  %3803 = vmatprep.mubr.bf16.mxu1 %v7321_v0  ;;  %v7395_v61 = vld [vmem:[%s8237_s17 + $0x1d8] ss:$72 sps:$4 sm:$0xff]  }
  0x71   : > { %4697 = vmatpush1.bf16.msra.mxu0 %v7315_v62  ;;  %4575 = vmatprep.mubr.bf16.mxu0 %v7323_v1  ;;  %v7399_v62 = vld [vmem:[%s8237_s17 + $0x6c4] ss:$72 sps:$4 sm:$0xff]   ;;  %v7432_v0 = vld [vmem:[%s9543_s1 + $0x660] ss:$8 sps:$4 sm:$0xff]   ;;  %v7446_v1 = vld [vmem:[%s9543_s1 + $0x674] ss:$8 sps:$4 sm:$0xff]  }
  0x72   : > { %4698 = vmatprep.subr.bf16.mxu0 %v7320_v63  ;;  %3925 = vmatpush1.bf16.msra.mxu1 %v7380_v15  ;;  %v7401_v63 = vld [vmem:[%s8237_s17 + $0x26c] ss:$72 sps:$4 sm:$0xff]   ;;  %v7419_v13 = vld [vmem:[%s8237_s17 + $0x2f8] ss:$72 sps:$4 sm:$0xff]  }
  0x73   : > { %3926 = vmatprep.subr.bf16.mxu1 %v7394_v16  ;;  %v7425_v15 = vld [vmem:[%s8237_s17 + $0x38c] ss:$72 sps:$4 sm:$0xff]   ;;  %v7480_v16 = vld [vmem:[%s9543_s1 + $0x6a0] ss:$8 sps:$4 sm:$0xff]  }
  0x75   : > { %4699 = vmatpush1.bf16.msra.mxu0 %v7318_v4  ;;  %v7458_v4 = vld [vmem:[%s9543_s1 + $0x684] ss:$8 sps:$4 sm:$0xff]  }
  0x76   : > { %4700 = vmatprep.subr.bf16.mxu0 %v7332_v6  ;;  %3927 = vmatpush1.bf16.msra.mxu1 %v7392_v24  ;;  %v7411_v6 = vld [vmem:[%s8237_s17 + $0x754] ss:$72 sps:$4 sm:$0xff]   ;;  %v7504_v24 = vld [vmem:[%s9543_s1 + $0x6c0] ss:$8 sps:$4 sm:$0xff]  }
  0x77   : > { %3804 = vmatmul.mubr.bf16.gmra.mrb[24].mxu1 %v7325_v5  ;;  %3928 = vmatprep.subr.bf16.mxu1 %v7406_v25  ;;  %v7407_v5 = vld [vmem:[%s8237_s17 + $0x268] ss:$72 sps:$4 sm:$0xff]   ;;  %v7518_v25 = vld [vmem:[%s9543_s1 + $0x6d4] ss:$8 sps:$4 sm:$0xff]  }
  0x78   : > { %4576 = vmatmul.mubr.bf16.gmra.mrb[24].mxu0 %v7329_v7  ;;  %3813 = vmatprep.mubr.bf16.mxu1 %v7336_v11  ;;  %v7413_v7 = vld [vmem:[%s8237_s17 + $0x2fc] ss:$72 sps:$4 sm:$0xff]  }
  0x79   : > { %4701 = vmatpush1.bf16.msra.mxu0 %v7330_v9  ;;  %4585 = vmatprep.mubr.bf16.mxu0 %v7338_v12  ;;  %v7470_v9 = vld [vmem:[%s9543_s1 + $0x694] ss:$8 sps:$4 sm:$0xff]   ;;  %v7482_v11 = vld [vmem:[%s9543_s1 + $0x6a4] ss:$8 sps:$4 sm:$0xff]   ;;  %v7415_v12 = vld [vmem:[%s8237_s17 + $0x750] ss:$72 sps:$4 sm:$0xff]  }
  0x7a   : > { %4702 = vmatprep.subr.bf16.mxu0 %v7335_v10  ;;  %3929 = vmatpush1.bf16.msra.mxu1 %v7404_v30  ;;  %v7468_v10 = vld [vmem:[%s9543_s1 + $0x690] ss:$8 sps:$4 sm:$0xff]   ;;  %v7449_v30 = vld [vmem:[%s8237_s17 + $0xc] ss:$72 sps:$4 sm:$0xff]  }
  0x7b   : > { %3930 = vmatprep.subr.bf16.mxu1 %v7418_v35  ;;  %v7540_v35 = vld [vmem:[%s9543_s1 + $0x6f0] ss:$8 sps:$4 sm:$0xff]  }
  0x7d   : > { %4703 = vmatpush1.bf16.msra.mxu0 %v7333_v14  ;;  %v7423_v14 = vld [vmem:[%s8237_s17 + $0x7e4] ss:$72 sps:$4 sm:$0xff]  }
  0x7e   : > { %4704 = vmatprep.subr.bf16.mxu0 %v7347_v17  ;;  %3931 = vmatpush1.bf16.msra.mxu1 %v7416_v37  ;;  %v7494_v17 = vld [vmem:[%s9543_s1 + $0x6b4] ss:$8 sps:$4 sm:$0xff]   ;;  %v7554_v37 = vld [vmem:[%s9543_s1 + $0x704] ss:$8 sps:$4 sm:$0xff]  }
  0x7f   : > { %3814 = vmatmul.mubr.bf16.gmra.mrb[28].mxu1 %v7340_v18  ;;  %3932 = vmatprep.subr.bf16.mxu1 %v7430_v38  ;;  %v7492_v18 = vld [vmem:[%s9543_s1 + $0x6b0] ss:$8 sps:$4 sm:$0xff]  }
  0x80   : > { %4586 = vmatmul.mubr.bf16.gmra.mrb[28].mxu0 %v7344_v19  ;;  %3823 = vmatprep.mubr.bf16.mxu1 %v7351_v22  ;;  %v7427_v19 = vld [vmem:[%s8237_s17 + $0x7e0] ss:$72 sps:$4 sm:$0xff]   ;;  %v7435_v22 = vld [vmem:[%s8237_s17 + $0x874] ss:$72 sps:$4 sm:$0xff]  }
  0x81   : > { %4705 = vmatpush1.bf16.msra.mxu0 %v7345_v20  ;;  %4708 = vmatprep.mubr.bf16.mxu0 %v7355_v23  ;;  %v7506_v20 = vld [vmem:[%s9543_s1 + $0x6c4] ss:$8 sps:$4 sm:$0xff]   ;;  %v7455_v38 = vld [vmem:[%s8237_s17 + $0x4a8] ss:$72 sps:$4 sm:$0xff]  }
  0x82   : > { %4706 = vmatprep.subr.bf16.mxu0 %v7350_v21  ;;  %3933 = vmatpush1.bf16.msra.mxu1 %v7428_v45  ;;  %v7431_v21 = vld [vmem:[%s8237_s17 + $0x388] ss:$72 sps:$4 sm:$0xff]   ;;  %v7437_v23 = vld [vmem:[%s8237_s17 + $0x41c] ss:$72 sps:$4 sm:$0xff]   ;;  %v7467_v45 = vld [vmem:[%s8237_s17 + $0x538] ss:$72 sps:$4 sm:$0xff]  }
  0x83   : > { %3934 = vmatprep.subr.bf16.mxu1 %v7442_v47  ;;  %v7473_v47 = vld [vmem:[%s8237_s17 + $0x5cc] ss:$72 sps:$4 sm:$0xff]  }
  0x85   : > { %4707 = vmatpush1.bf16.msra.mxu0 %v7348_v26  ;;  %v7516_v26 = vld [vmem:[%s9543_s1 + $0x6d0] ss:$8 sps:$4 sm:$0xff]  }
  0x86   : > { %4869 = vmatprep.subr.bf16.mxu0 %v7362_v28  ;;  %3935 = vmatpush1.bf16.msra.mxu1 %v7440_v50  ;;  %v7439_v28 = vld [vmem:[%s8237_s17 + $0x870] ss:$72 sps:$4 sm:$0xff]  }
  0x87   : > { %3824 = vmatmul.mubr.bf16.gmra.mrb[32].mxu1 %v7356_v29  ;;  %4097 = vmatprep.subr.bf16.mxu1 %v7454_v52  ;;  %v7443_v29 = vld [vmem:[%s8237_s17 + $0x418] ss:$72 sps:$4 sm:$0xff]   ;;  %v7502_v52 = vld [vmem:[%s9543_s1 + $0x244] ss:$8 sps:$4 sm:$0xff]  }
  0x88   : > { %4709 = vmatmul.mubr.bf16.vlgmr.msra.gmra.mrb[0].mxu0 %v7353_v27  ;;  %3833 = vmatprep.mubr.bf16.mxu1 %v7363_v32  ;;  %v7530_v27 = vld [vmem:[%s9543_s1 + $0x6e4] ss:$8 sps:$4 sm:$0xff]   ;;  %v7528_v32 = vld [vmem:[%s9543_s1 + $0x6e0] ss:$8 sps:$4 sm:$0xff]   ;;  %v7488_v50 = vld [vmem:[%s9543_s1 + $0x230] ss:$8 sps:$4 sm:$0xff]  }
  0x89   : > { %4870 = vmatpush1.bf16.msra.mxu0 %v7360_v31  ;;  %4718 = vmatprep.mubr.bf16.mxu0 %v7365_v33  ;;  %v7450_v31 = vld [vmem:[%s8237_s17 + $0x4ac] ss:$72 sps:$4 sm:$0xff]  }
  0x8a   : > { %4871 = vmatprep.subr.bf16.mxu0 %v7374_v34  ;;  %v7542_v33 = vld [vmem:[%s9543_s1 + $0x6f4] ss:$8 sps:$4 sm:$0xff]   ;;  %v7447_v34 = vld [vmem:[%s8237_s17 + $0x8] ss:$72 sps:$4 sm:$0xff]  }
  0x8d   : > { %4872 = vmatpush1.bf16.msra.mxu0 %v7372_v36  ;;  %v7452_v36 = vld [vmem:[%s9543_s1 + $0x200] ss:$8 sps:$4 sm:$0xff]  }
  0x8e   : > { %4873 = vmatprep.subr.bf16.mxu0 %v7386_v39  ;;  %v7459_v39 = vld [vmem:[%s8237_s17 + $0x9c] ss:$72 sps:$4 sm:$0xff]  }
  0x8f   : > { %3834 = vmatmul.mubr.bf16.gmra.mrb[36].mxu1 %v7367_v40  ;;  %v7461_v40 = vld [vmem:[%s8237_s17 + $0x53c] ss:$72 sps:$4 sm:$0xff]  }
  0x90   : > { %4719 = vmatmul.mubr.bf16.gmra.mrb[4].mxu0 %v7371_v41  ;;  %3843 = vmatprep.mubr.bf16.mxu1 %v7375_v42  ;;  %v7466_v41 = vld [vmem:[%s9543_s1 + $0x214] ss:$8 sps:$4 sm:$0xff]   ;;  %v7464_v42 = vld [vmem:[%s9543_s1 + $0x210] ss:$8 sps:$4 sm:$0xff]  }
  0x91   : > { %4728 = vmatprep.mubr.bf16.mxu0 %v7377_v43  ;;  %4874 = vmatpush1.bf16.msra.mxu0 %v7384_v44  ;;  %v7478_v43 = vld [vmem:[%s9543_s1 + $0x224] ss:$8 sps:$4 sm:$0xff]   ;;  %v7463_v44 = vld [vmem:[%s8237_s17 + $0x98] ss:$72 sps:$4 sm:$0xff]  }
  0x92   : > { %4875 = vmatprep.subr.bf16.mxu0 %v7398_v46  ;;  %v7471_v46 = vld [vmem:[%s8237_s17 + $0x12c] ss:$72 sps:$4 sm:$0xff]  }
  0x95   : > { %4876 = vmatpush1.bf16.msra.mxu0 %v7396_v48  ;;  %v7476_v48 = vld [vmem:[%s9543_s1 + $0x220] ss:$8 sps:$4 sm:$0xff]  }
  0x96   : > { %4877 = vmatprep.subr.bf16.mxu0 %v7410_v51  ;;  %v7475_v51 = vld [vmem:[%s8237_s17 + $0x128] ss:$72 sps:$4 sm:$0xff]  }
  0x97   : > { %3844 = vmatmul.mubr.bf16.gmra.mrb[40].mxu1 %v7379_v49  ;;  %v7490_v49 = vld [vmem:[%s9543_s1 + $0x234] ss:$8 sps:$4 sm:$0xff]  }
  0x98   : > { %4729 = vmatmul.mubr.bf16.gmra.mrb[8].mxu0 %v7383_v53  ;;  %3853 = vmatprep.mubr.bf16.mxu1 %v7387_v54  ;;  %v7479_v53 = vld [vmem:[%s8237_s17 + $0x5c8] ss:$72 sps:$4 sm:$0xff]   ;;  %v7483_v54 = vld [vmem:[%s8237_s17 + $0x1bc] ss:$72 sps:$4 sm:$0xff]  }
  0x99   : > { %4738 = vmatprep.mubr.bf16.mxu0 %v7389_v55  ;;  %4878 = vmatpush1.bf16.msra.mxu0 %v7408_v56  ;;  %v7485_v55 = vld [vmem:[%s8237_s17 + $0x65c] ss:$72 sps:$4 sm:$0xff]   ;;  %v7500_v56 = vld [vmem:[%s9543_s1 + $0x240] ss:$8 sps:$4 sm:$0xff]  }
  0x9a   : > { %4879 = vmatprep.subr.bf16.mxu0 %v7422_v57  ;;  %v7514_v57 = vld [vmem:[%s9543_s1 + $0x254] ss:$8 sps:$4 sm:$0xff]  }
  0x9d   : > { %4880 = vmatpush1.bf16.msra.mxu0 %v7420_v58  ;;  %v7512_v58 = vld [vmem:[%s9543_s1 + $0x250] ss:$8 sps:$4 sm:$0xff]  }
  0x9e   : > { %4881 = vmatprep.subr.bf16.mxu0 %v7434_v59  ;;  %v7526_v59 = vld [vmem:[%s9543_s1 + $0x264] ss:$8 sps:$4 sm:$0xff]  }
  0x9f   : > { %3854 = vmatmul.mubr.bf16.gmra.mrb[44].mxu1 %v7391_v60  ;;  %v7487_v60 = vld [vmem:[%s8237_s17 + $0x1b8] ss:$72 sps:$4 sm:$0xff]  }
  0xa0   : > { %4739 = vmatmul.mubr.bf16.gmra.mrb[12].mxu0 %v7395_v61  ;;  %3863 = vmatprep.mubr.bf16.mxu1 %v7399_v62  ;;  %v7491_v61 = vld [vmem:[%s8237_s17 + $0x658] ss:$72 sps:$4 sm:$0xff]   ;;  %v7495_v62 = vld [vmem:[%s8237_s17 + $0x24c] ss:$72 sps:$4 sm:$0xff]  }
  0xa1   : > { %4748 = vmatprep.mubr.bf16.mxu0 %v7401_v63  ;;  %4882 = vmatpush1.bf16.msra.mxu0 %v7432_v0  ;;  %v7497_v63 = vld [vmem:[%s8237_s17 + $0x6ec] ss:$72 sps:$4 sm:$0xff]   ;;  %v7524_v0 = vld [vmem:[%s9543_s1 + $0x260] ss:$8 sps:$4 sm:$0xff]  }
  0xa2   : > { %4883 = vmatprep.subr.bf16.mxu0 %v7446_v1  ;;  %v7538_v1 = vld [vmem:[%s9543_s1 + $0x274] ss:$8 sps:$4 sm:$0xff]  }
  0xa5   : > { %4884 = vmatpush1.bf16.msra.mxu0 %v7444_v2  ;;  %v7536_v2 = vld [vmem:[%s9543_s1 + $0x270] ss:$8 sps:$4 sm:$0xff]  }
  0xa6   : > { %4885 = vmatprep.subr.bf16.mxu0 %v7458_v4  ;;  %v7551_v4 = vld [vmem:[%s9543_s1 + $0x284] ss:$8 sps:$4 sm:$0xff]  }
  0xa7   : > { %3864 = vmatmul.mubr.bf16.gmra.mrb[48].mxu1 %v7403_v3  ;;  %v7499_v3 = vld [vmem:[%s8237_s17 + $0x248] ss:$72 sps:$4 sm:$0xff]  }
  0xa8   : > { %4749 = vmatmul.mubr.bf16.gmra.mrb[16].mxu0 %v7407_v5  ;;  %3873 = vmatprep.mubr.bf16.mxu1 %v7411_v6  ;;  %v7503_v5 = vld [vmem:[%s8237_s17 + $0x6e8] ss:$72 sps:$4 sm:$0xff]   ;;  %v7507_v6 = vld [vmem:[%s8237_s17 + $0x2dc] ss:$72 sps:$4 sm:$0xff]  }
  0xa9   : > { %4758 = vmatprep.mubr.bf16.mxu0 %v7413_v7  ;;  %4886 = vmatpush1.bf16.msra.mxu0 %v7456_v8  ;;  %v7509_v7 = vld [vmem:[%s8237_s17 + $0x77c] ss:$72 sps:$4 sm:$0xff]   ;;  %v7549_v8 = vld [vmem:[%s9543_s1 + $0x280] ss:$8 sps:$4 sm:$0xff]  }
  0xaa   : > { %4887 = vmatprep.subr.bf16.mxu0 %v7470_v9  ;;  %v7562_v9 = vld [vmem:[%s9543_s1 + $0x294] ss:$8 sps:$4 sm:$0xff]  }
  0xad   : > { %4888 = vmatpush1.bf16.msra.mxu0 %v7468_v10  ;;  %v7560_v10 = vld [vmem:[%s9543_s1 + $0x290] ss:$8 sps:$4 sm:$0xff]  }
  0xae   : > { %4889 = vmatprep.subr.bf16.mxu0 %v7482_v11  ;;  %v7574_v11 = vld [vmem:[%s9543_s1 + $0x2a4] ss:$8 sps:$4 sm:$0xff]  }
  0xaf   : > { %3874 = vmatmul.mubr.bf16.gmra.mrb[52].mxu1 %v7415_v12  ;;  %v7511_v12 = vld [vmem:[%s8237_s17 + $0x2d8] ss:$72 sps:$4 sm:$0xff]  }
  0xb0   : > { %4759 = vmatmul.mubr.bf16.gmra.mrb[20].mxu0 %v7419_v13  ;;  %3883 = vmatprep.mubr.bf16.mxu1 %v7423_v14  ;;  %v7515_v13 = vld [vmem:[%s8237_s17 + $0x778] ss:$72 sps:$4 sm:$0xff]   ;;  %v7519_v14 = vld [vmem:[%s8237_s17 + $0x36c] ss:$72 sps:$4 sm:$0xff]  }
  0xb1   : > { %4768 = vmatprep.mubr.bf16.mxu0 %v7425_v15  ;;  %4890 = vmatpush1.bf16.msra.mxu0 %v7480_v16  ;;  %v7521_v15 = vld [vmem:[%s8237_s17 + $0x80c] ss:$72 sps:$4 sm:$0xff]   ;;  %v7572_v16 = vld [vmem:[%s9543_s1 + $0x2a0] ss:$8 sps:$4 sm:$0xff]  }
  0xb2   : > { %4891 = vmatprep.subr.bf16.mxu0 %v7494_v17  ;;  %v7586_v17 = vld [vmem:[%s9543_s1 + $0x2b4] ss:$8 sps:$4 sm:$0xff]  }
  0xb5   : > { %4892 = vmatpush1.bf16.msra.mxu0 %v7492_v18  ;;  %v7584_v18 = vld [vmem:[%s9543_s1 + $0x2b0] ss:$8 sps:$4 sm:$0xff]  }
  0xb6   : > { %4893 = vmatprep.subr.bf16.mxu0 %v7506_v20  ;;  %v7598_v20 = vld [vmem:[%s9543_s1 + $0x2c4] ss:$8 sps:$4 sm:$0xff]  }
  0xb7   : > { %3884 = vmatmul.mubr.bf16.gmra.mrb[56].mxu1 %v7427_v19  ;;  %v7523_v19 = vld [vmem:[%s8237_s17 + $0x368] ss:$72 sps:$4 sm:$0xff]  }
  0xb8   : > { %4769 = vmatmul.mubr.bf16.gmra.mrb[24].mxu0 %v7431_v21  ;;  %3893 = vmatprep.mubr.bf16.mxu1 %v7435_v22  ;;  %v7527_v21 = vld [vmem:[%s8237_s17 + $0x808] ss:$72 sps:$4 sm:$0xff]   ;;  %v7531_v22 = vld [vmem:[%s8237_s17 + $0x3fc] ss:$72 sps:$4 sm:$0xff]  }
  0xb9   : > { %4778 = vmatprep.mubr.bf16.mxu0 %v7437_v23  ;;  %4894 = vmatpush1.bf16.msra.mxu0 %v7504_v24  ;;  %v7533_v23 = vld [vmem:[%s8237_s17 + $0x89c] ss:$72 sps:$4 sm:$0xff]   ;;  %v7596_v24 = vld [vmem:[%s9543_s1 + $0x2c0] ss:$8 sps:$4 sm:$0xff]  }
  0xba   : > { %4895 = vmatprep.subr.bf16.mxu0 %v7518_v25  ;;  %v7610_v25 = vld [vmem:[%s9543_s1 + $0x2d4] ss:$8 sps:$4 sm:$0xff]  }
  0xbd   : > { %4896 = vmatpush1.bf16.msra.mxu0 %v7516_v26  ;;  %v7608_v26 = vld [vmem:[%s9543_s1 + $0x2d0] ss:$8 sps:$4 sm:$0xff]  }
  0xbe   : > { %4897 = vmatprep.subr.bf16.mxu0 %v7530_v27  ;;  %v7622_v27 = vld [vmem:[%s9543_s1 + $0x2e4] ss:$8 sps:$4 sm:$0xff]  }
  0xbf   : > { %3894 = vmatmul.mubr.bf16.gmra.mrb[60].mxu1 %v7439_v28  ;;  %v7535_v28 = vld [vmem:[%s8237_s17 + $0x3f8] ss:$72 sps:$4 sm:$0xff]  }
  0xc0   : > { %4779 = vmatmul.mubr.bf16.gmra.mrb[28].mxu0 %v7443_v29  ;;  %3936 = vmatprep.mubr.bf16.mxu1 %v7449_v30  ;;  %v7539_v29 = vld [vmem:[%s8237_s17 + $0x898] ss:$72 sps:$4 sm:$0xff]   ;;  %v7543_v30 = vld [vmem:[%s8237_s17 + $0x48c] ss:$72 sps:$4 sm:$0xff]  }
  0xc1   : > { %4788 = vmatprep.mubr.bf16.mxu0 %v7450_v31  ;;  %4898 = vmatpush1.bf16.msra.mxu0 %v7528_v32  ;;  %v7547_v31 = vld [vmem:[%s8237_s17 + $0x34] ss:$72 sps:$4 sm:$0xff]   ;;  %v7620_v32 = vld [vmem:[%s9543_s1 + $0x2e0] ss:$8 sps:$4 sm:$0xff]  }
  0xc2   : > { %4899 = vmatprep.subr.bf16.mxu0 %v7542_v33  ;;  %v7634_v33 = vld [vmem:[%s9543_s1 + $0x2f4] ss:$8 sps:$4 sm:$0xff]  }
  0xc5   : > { %4900 = vmatpush1.bf16.msra.mxu0 %v7540_v35  ;;  %v7632_v35 = vld [vmem:[%s9543_s1 + $0x2f0] ss:$8 sps:$4 sm:$0xff]  }
  0xc6   : > { %5062 = vmatprep.subr.bf16.mxu0 %v7554_v37  ;;  %v7646_v37 = vld [vmem:[%s9543_s1 + $0x304] ss:$8 sps:$4 sm:$0xff]  }
  0xc7   : > { %3937 = vmatmul.mubr.bf16.vlgmr.msra.gmra.mrb[0].mxu1 %v7447_v34  ;;  %v7545_v34 = vld [vmem:[%s8237_s17 + $0x30] ss:$72 sps:$4 sm:$0xff]  }
  0xc8   : > { %4789 = vmatmul.mubr.bf16.gmra.mrb[32].mxu0 %v7455_v38  ;;  %4098 = vmatpush1.bf16.msra.mxu1 %v7452_v36  ;;  %v7548_v36 = vld [vmem:[%s8237_s17 + $0x488] ss:$72 sps:$4 sm:$0xff]  }
  0xc9   : > { %3946 = vmatprep.mubr.bf16.mxu1 %v7459_v39  ;;  %4798 = vmatprep.mubr.bf16.mxu0 %v7461_v40  ;;  %v7552_v38 = vld [vmem:[%s9543_s1 + $0x700] ss:$8 sps:$4 sm:$0xff]   ;;  %v7555_v39 = vld [vmem:[%s8237_s17 + $0x51c] ss:$72 sps:$4 sm:$0xff]  }
  0xca   : > { %4099 = vmatprep.subr.bf16.mxu1 %v7466_v41  ;;  %v7557_v40 = vld [vmem:[%s8237_s17 + $0xc4] ss:$72 sps:$4 sm:$0xff]   ;;  %v7566_v41 = vld [vmem:[%s9543_s1 + $0x714] ss:$8 sps:$4 sm:$0xff]  }
  0xcc   : > { %4100 = vmatpush1.bf16.msra.mxu1 %v7464_v42  ;;  %v7564_v42 = vld [vmem:[%s9543_s1 + $0x710] ss:$8 sps:$4 sm:$0xff]  }
  0xcd   : > { %4101 = vmatprep.subr.bf16.mxu1 %v7478_v43  ;;  %v7578_v43 = vld [vmem:[%s9543_s1 + $0x724] ss:$8 sps:$4 sm:$0xff]  }
  0xcf   : > { %3947 = vmatmul.mubr.bf16.gmra.mrb[4].mxu1 %v7463_v44  ;;  %v7559_v44 = vld [vmem:[%s8237_s17 + $0x518] ss:$72 sps:$4 sm:$0xff]  }
  0xd0   : > { %4799 = vmatmul.mubr.bf16.gmra.mrb[36].mxu0 %v7467_v45  ;;  %3956 = vmatprep.mubr.bf16.mxu1 %v7471_v46  ;;  %v7563_v45 = vld [vmem:[%s8237_s17 + $0xc0] ss:$72 sps:$4 sm:$0xff]   ;;  %v7567_v46 = vld [vmem:[%s8237_s17 + $0x5ac] ss:$72 sps:$4 sm:$0xff]  }
  0xd1   : > { %4808 = vmatprep.mubr.bf16.mxu0 %v7473_v47  ;;  %4102 = vmatpush1.bf16.msra.mxu1 %v7476_v48  ;;  %v7569_v47 = vld [vmem:[%s8237_s17 + $0x154] ss:$72 sps:$4 sm:$0xff]   ;;  %v7576_v48 = vld [vmem:[%s9543_s1 + $0x720] ss:$8 sps:$4 sm:$0xff]  }
  0xd2   : > { %4103 = vmatprep.subr.bf16.mxu1 %v7490_v49  ;;  %v7590_v49 = vld [vmem:[%s9543_s1 + $0x734] ss:$8 sps:$4 sm:$0xff]  }
  0xd5   : > { %4104 = vmatpush1.bf16.msra.mxu1 %v7488_v50  ;;  %v7588_v50 = vld [vmem:[%s9543_s1 + $0x730] ss:$8 sps:$4 sm:$0xff]  }
  0xd6   : > { %4105 = vmatprep.subr.bf16.mxu1 %v7502_v52  ;;  %v7602_v52 = vld [vmem:[%s9543_s1 + $0x744] ss:$8 sps:$4 sm:$0xff]  }
  0xd7   : > { %3957 = vmatmul.mubr.bf16.gmra.mrb[8].mxu1 %v7475_v51  ;;  %v7571_v51 = vld [vmem:[%s8237_s17 + $0x5a8] ss:$72 sps:$4 sm:$0xff]  }
  0xd8   : > { %4809 = vmatmul.mubr.bf16.gmra.mrb[40].mxu0 %v7479_v53  ;;  %3966 = vmatprep.mubr.bf16.mxu1 %v7483_v54  ;;  %v7575_v53 = vld [vmem:[%s8237_s17 + $0x150] ss:$72 sps:$4 sm:$0xff]   ;;  %v7579_v54 = vld [vmem:[%s8237_s17 + $0x63c] ss:$72 sps:$4 sm:$0xff]  }
  0xd9   : > { %4818 = vmatprep.mubr.bf16.mxu0 %v7485_v55  ;;  %4106 = vmatpush1.bf16.msra.mxu1 %v7500_v56  ;;  %v7581_v55 = vld [vmem:[%s8237_s17 + $0x1e4] ss:$72 sps:$4 sm:$0xff]   ;;  %v7600_v56 = vld [vmem:[%s9543_s1 + $0x740] ss:$8 sps:$4 sm:$0xff]  }
  0xda   : > { %4107 = vmatprep.subr.bf16.mxu1 %v7514_v57  ;;  %v7614_v57 = vld [vmem:[%s9543_s1 + $0x754] ss:$8 sps:$4 sm:$0xff]  }
  0xdd   : > { %4108 = vmatpush1.bf16.msra.mxu1 %v7512_v58  ;;  %v7612_v58 = vld [vmem:[%s9543_s1 + $0x750] ss:$8 sps:$4 sm:$0xff]  }
  0xde   : > { %4109 = vmatprep.subr.bf16.mxu1 %v7526_v59  ;;  %v7626_v59 = vld [vmem:[%s9543_s1 + $0x764] ss:$8 sps:$4 sm:$0xff]  }
  0xdf   : > { %3967 = vmatmul.mubr.bf16.gmra.mrb[12].mxu1 %v7487_v60  ;;  %v7583_v60 = vld [vmem:[%s8237_s17 + $0x638] ss:$72 sps:$4 sm:$0xff]  }
  0xe0   : > { %4819 = vmatmul.mubr.bf16.gmra.mrb[44].mxu0 %v7491_v61  ;;  %3976 = vmatprep.mubr.bf16.mxu1 %v7495_v62  ;;  %v7587_v61 = vld [vmem:[%s8237_s17 + $0x1e0] ss:$72 sps:$4 sm:$0xff]   ;;  %v7591_v62 = vld [vmem:[%s8237_s17 + $0x6cc] ss:$72 sps:$4 sm:$0xff]  }
  0xe1   : > { %4828 = vmatprep.mubr.bf16.mxu0 %v7497_v63  ;;  %4110 = vmatpush1.bf16.msra.mxu1 %v7524_v0  ;;  %v7593_v63 = vld [vmem:[%s8237_s17 + $0x274] ss:$72 sps:$4 sm:$0xff]   ;;  %v7624_v0 = vld [vmem:[%s9543_s1 + $0x760] ss:$8 sps:$4 sm:$0xff]  }
  0xe2   : > { %4111 = vmatprep.subr.bf16.mxu1 %v7538_v1  ;;  %v7638_v1 = vld [vmem:[%s9543_s1 + $0x774] ss:$8 sps:$4 sm:$0xff]  }
  0xe5   : > { %4112 = vmatpush1.bf16.msra.mxu1 %v7536_v2  ;;  %v7636_v2 = vld [vmem:[%s9543_s1 + $0x770] ss:$8 sps:$4 sm:$0xff]  }
  0xe6   : > { %4113 = vmatprep.subr.bf16.mxu1 %v7551_v4  ;;  %v7650_v4 = vld [vmem:[%s9543_s1 + $0x784] ss:$8 sps:$4 sm:$0xff]  }
  0xe7   : > { %3977 = vmatmul.mubr.bf16.gmra.mrb[16].mxu1 %v7499_v3  ;;  %v7595_v3 = vld [vmem:[%s8237_s17 + $0x6c8] ss:$72 sps:$4 sm:$0xff]  }
  0xe8   : > { %4829 = vmatmul.mubr.bf16.gmra.mrb[48].mxu0 %v7503_v5  ;;  %3986 = vmatprep.mubr.bf16.mxu1 %v7507_v6  ;;  %v7599_v5 = vld [vmem:[%s8237_s17 + $0x270] ss:$72 sps:$4 sm:$0xff]   ;;  %v7603_v6 = vld [vmem:[%s8237_s17 + $0x75c] ss:$72 sps:$4 sm:$0xff]  }
  0xe9   : > { %4838 = vmatprep.mubr.bf16.mxu0 %v7509_v7  ;;  %4114 = vmatpush1.bf16.msra.mxu1 %v7549_v8  ;;  %v7605_v7 = vld [vmem:[%s8237_s17 + $0x304] ss:$72 sps:$4 sm:$0xff]   ;;  %v7648_v8 = vld [vmem:[%s9543_s1 + $0x780] ss:$8 sps:$4 sm:$0xff]  }
  0xea   : > { %4115 = vmatprep.subr.bf16.mxu1 %v7562_v9  ;;  %v7662_v9 = vld [vmem:[%s9543_s1 + $0x794] ss:$8 sps:$4 sm:$0xff]  }
  0xed   : > { %4116 = vmatpush1.bf16.msra.mxu1 %v7560_v10  ;;  %v7607_v10 = vld [vmem:[%s8237_s17 + $0x758] ss:$72 sps:$4 sm:$0xff]  }
  0xee   : > { %4117 = vmatprep.subr.bf16.mxu1 %v7574_v11  ;;  %v7611_v11 = vld [vmem:[%s8237_s17 + $0x300] ss:$72 sps:$4 sm:$0xff]  }
  0xef   : > { %3987 = vmatmul.mubr.bf16.gmra.mrb[20].mxu1 %v7511_v12  ;;  %v7660_v12 = vld [vmem:[%s9543_s1 + $0x790] ss:$8 sps:$4 sm:$0xff]  }
  0xf0   : > { %4839 = vmatmul.mubr.bf16.gmra.mrb[52].mxu0 %v7515_v13  ;;  %3996 = vmatprep.mubr.bf16.mxu1 %v7519_v14  ;;  %v7615_v13 = vld [vmem:[%s8237_s17 + $0x7ec] ss:$72 sps:$4 sm:$0xff]  }
  0xf1   : > { %4848 = vmatprep.mubr.bf16.mxu0 %v7521_v15  ;;  %4118 = vmatpush1.bf16.msra.mxu1 %v7572_v16  ;;  %v7674_v14 = vld [vmem:[%s9543_s1 + $0x7a4] ss:$8 sps:$4 sm:$0xff]   ;;  %v7617_v15 = vld [vmem:[%s8237_s17 + $0x394] ss:$72 sps:$4 sm:$0xff]   ;;  %v7672_v16 = vld [vmem:[%s9543_s1 + $0x7a0] ss:$8 sps:$4 sm:$0xff]  }
  0xf2   : > { %4119 = vmatprep.subr.bf16.mxu1 %v7586_v17  ;;  %v7686_v17 = vld [vmem:[%s9543_s1 + $0x7b4] ss:$8 sps:$4 sm:$0xff]  }
  0xf5   : > { %4120 = vmatpush1.bf16.msra.mxu1 %v7584_v18  ;;  %v7684_v18 = vld [vmem:[%s9543_s1 + $0x7b0] ss:$8 sps:$4 sm:$0xff]  }
  0xf6   : > { %4121 = vmatprep.subr.bf16.mxu1 %v7598_v20  ;;  %v7623_v20 = vld [vmem:[%s8237_s17 + $0x390] ss:$72 sps:$4 sm:$0xff]  }
  0xf7   : > { %3997 = vmatmul.mubr.bf16.gmra.mrb[24].mxu1 %v7523_v19  ;;  %v7619_v19 = vld [vmem:[%s8237_s17 + $0x7e8] ss:$72 sps:$4 sm:$0xff]  }
  0xf8   : > { %4849 = vmatmul.mubr.bf16.gmra.mrb[56].mxu0 %v7527_v21  ;;  %4006 = vmatprep.mubr.bf16.mxu1 %v7531_v22  ;;  %v7698_v21 = vld [vmem:[%s9543_s1 + $0x7c4] ss:$8 sps:$4 sm:$0xff]  }
  0xf9   : > { %4858 = vmatprep.mubr.bf16.mxu0 %v7533_v23  ;;  %4122 = vmatpush1.bf16.msra.mxu1 %v7596_v24  ;;  %v7627_v22 = vld [vmem:[%s8237_s17 + $0x87c] ss:$72 sps:$4 sm:$0xff]   ;;  %v7696_v24 = vld [vmem:[%s9543_s1 + $0x7c0] ss:$8 sps:$4 sm:$0xff]  }
  0xfa   : > { %4123 = vmatprep.subr.bf16.mxu1 %v7610_v25  ;;  %v7629_v23 = vld [vmem:[%s8237_s17 + $0x424] ss:$72 sps:$4 sm:$0xff]   ;;  %v7710_v25 = vld [vmem:[%s9543_s1 + $0x7d4] ss:$8 sps:$4 sm:$0xff]  }
  0xfd   : > { %4124 = vmatpush1.bf16.msra.mxu1 %v7608_v26  ;;  %v7708_v26 = vld [vmem:[%s9543_s1 + $0x7d0] ss:$8 sps:$4 sm:$0xff]  }
  0xfe   : > { %4125 = vmatprep.subr.bf16.mxu1 %v7622_v27  ;;  %v7631_v27 = vld [vmem:[%s8237_s17 + $0x878] ss:$72 sps:$4 sm:$0xff]  }
  0xff   : > { %4007 = vmatmul.mubr.bf16.gmra.mrb[28].mxu1 %v7535_v28  ;;  %v7635_v28 = vld [vmem:[%s8237_s17 + $0x420] ss:$72 sps:$4 sm:$0xff]  }
 0x100   : > { %4859 = vmatmul.mubr.bf16.gmra.mrb[60].mxu0 %v7539_v29  ;;  %4016 = vmatprep.mubr.bf16.mxu1 %v7543_v30  ;;  %v7722_v29 = vld [vmem:[%s9543_s1 + $0x7e4] ss:$8 sps:$4 sm:$0xff]   ;;  %v7641_v30 = vld [vmem:[%s8237_s17 + $0x14] ss:$72 sps:$4 sm:$0xff]  }
 0x101   : > { %4901 = vmatprep.mubr.bf16.mxu0 %v7547_v31  ;;  %4126 = vmatpush1.bf16.msra.mxu1 %v7620_v32  ;;  %v7642_v31 = vld [vmem:[%s8237_s17 + $0x4b4] ss:$72 sps:$4 sm:$0xff]   ;;  %v7720_v32 = vld [vmem:[%s9543_s1 + $0x7e0] ss:$8 sps:$4 sm:$0xff]  }
 0x102   : > { %4127 = vmatprep.subr.bf16.mxu1 %v7634_v33  ;;  %v7734_v33 = vld [vmem:[%s9543_s1 + $0x7f4] ss:$8 sps:$4 sm:$0xff]  }
 0x105   : > { %4128 = vmatpush1.bf16.msra.mxu1 %v7632_v35  ;;  %v7639_v35 = vld [vmem:[%s8237_s17 + $0x10] ss:$72 sps:$4 sm:$0xff]  }
 0x106   : > { %4290 = vmatprep.subr.bf16.mxu1 %v7646_v37  ;;  %v7746_v37 = vld [vmem:[%s9543_s1 + $0x804] ss:$8 sps:$4 sm:$0xff]  }
 0x107   : > { %4017 = vmatmul.mubr.bf16.gmra.mrb[32].mxu1 %v7548_v36  ;;  %v7647_v36 = vld [vmem:[%s8237_s17 + $0x4b0] ss:$72 sps:$4 sm:$0xff]  }
 0x108   : > { %4902 = vmatmul.mubr.bf16.vlgmr.msra.gmra.mrb[0].mxu0 %v7545_v34  ;;  %4026 = vmatprep.mubr.bf16.mxu1 %v7555_v39  ;;  %v7732_v34 = vld [vmem:[%s9543_s1 + $0x7f0] ss:$8 sps:$4 sm:$0xff]   ;;  %v7651_v39 = vld [vmem:[%s8237_s17 + $0xa4] ss:$72 sps:$4 sm:$0xff]  }
 0x109   : > { %5063 = vmatpush1.bf16.msra.mxu0 %v7552_v38  ;;  %4911 = vmatprep.mubr.bf16.mxu0 %v7557_v40  ;;  %v7644_v38 = vld [vmem:[%s9543_s1 + $0x300] ss:$8 sps:$4 sm:$0xff]   ;;  %v7653_v40 = vld [vmem:[%s8237_s17 + $0x544] ss:$72 sps:$4 sm:$0xff]  }
 0x10a   : > { %5064 = vmatprep.subr.bf16.mxu0 %v7566_v41  ;;  %v7658_v41 = vld [vmem:[%s9543_s1 + $0x314] ss:$8 sps:$4 sm:$0xff]  }
 0x10d   : > { %5065 = vmatpush1.bf16.msra.mxu0 %v7564_v42  ;;  %v7656_v42 = vld [vmem:[%s9543_s1 + $0x310] ss:$8 sps:$4 sm:$0xff]  }
 0x10e   : > { %5066 = vmatprep.subr.bf16.mxu0 %v7578_v43  ;;  %v7655_v43 = vld [vmem:[%s8237_s17 + $0xa0] ss:$72 sps:$4 sm:$0xff]  }
 0x10f   : > { %4027 = vmatmul.mubr.bf16.gmra.mrb[36].mxu1 %v7559_v44  ;;  %v7659_v44 = vld [vmem:[%s8237_s17 + $0x540] ss:$72 sps:$4 sm:$0xff]  }
 0x110   : > { %4912 = vmatmul.mubr.bf16.gmra.mrb[4].mxu0 %v7563_v45  ;;  %4036 = vmatprep.mubr.bf16.mxu1 %v7567_v46  ;;  %v7670_v45 = vld [vmem:[%s9543_s1 + $0x324] ss:$8 sps:$4 sm:$0xff]   ;;  %v7663_v46 = vld [vmem:[%s8237_s17 + $0x134] ss:$72 sps:$4 sm:$0xff]  }
 0x111   : > { %4921 = vmatprep.mubr.bf16.mxu0 %v7569_v47  ;;  %5067 = vmatpush1.bf16.msra.mxu0 %v7576_v48  ;;  %v7665_v47 = vld [vmem:[%s8237_s17 + $0x5d4] ss:$72 sps:$4 sm:$0xff]   ;;  %v7668_v48 = vld [vmem:[%s9543_s1 + $0x320] ss:$8 sps:$4 sm:$0xff]  }
 0x112   : > { %5068 = vmatprep.subr.bf16.mxu0 %v7590_v49  ;;  %v7682_v49 = vld [vmem:[%s9543_s1 + $0x334] ss:$8 sps:$4 sm:$0xff]  }
 0x115   : > { %5069 = vmatpush1.bf16.msra.mxu0 %v7588_v50  ;;  %v7680_v50 = vld [vmem:[%s9543_s1 + $0x330] ss:$8 sps:$4 sm:$0xff]  }
 0x116   : > { %5070 = vmatprep.subr.bf16.mxu0 %v7602_v52  ;;  %v7667_v52 = vld [vmem:[%s8237_s17 + $0x130] ss:$72 sps:$4 sm:$0xff]  }
 0x117   : > { %4037 = vmatmul.mubr.bf16.gmra.mrb[40].mxu1 %v7571_v51  ;;  %v7694_v51 = vld [vmem:[%s9543_s1 + $0x344] ss:$8 sps:$4 sm:$0xff]  }
 0x118   : > { %4922 = vmatmul.mubr.bf16.gmra.mrb[8].mxu0 %v7575_v53  ;;  %4046 = vmatprep.mubr.bf16.mxu1 %v7579_v54  ;;  %v7671_v53 = vld [vmem:[%s8237_s17 + $0x5d0] ss:$72 sps:$4 sm:$0xff]   ;;  %v7675_v54 = vld [vmem:[%s8237_s17 + $0x1c4] ss:$72 sps:$4 sm:$0xff]  }
 0x119   : > { %4931 = vmatprep.mubr.bf16.mxu0 %v7581_v55  ;;  %5071 = vmatpush1.bf16.msra.mxu0 %v7600_v56  ;;  %v7677_v55 = vld [vmem:[%s8237_s17 + $0x664] ss:$72 sps:$4 sm:$0xff]   ;;  %v7692_v56 = vld [vmem:[%s9543_s1 + $0x340] ss:$8 sps:$4 sm:$0xff]  }
 0x11a   : > { %5072 = vmatprep.subr.bf16.mxu0 %v7614_v57  ;;  %v7706_v57 = vld [vmem:[%s9543_s1 + $0x354] ss:$8 sps:$4 sm:$0xff]  }
 0x11d   : > { %5073 = vmatpush1.bf16.msra.mxu0 %v7612_v58  ;;  %v7704_v58 = vld [vmem:[%s9543_s1 + $0x350] ss:$8 sps:$4 sm:$0xff]  }
 0x11e   : > { %5074 = vmatprep.subr.bf16.mxu0 %v7626_v59  ;;  %v7718_v59 = vld [vmem:[%s9543_s1 + $0x364] ss:$8 sps:$4 sm:$0xff]  }
 0x11f   : > { %4047 = vmatmul.mubr.bf16.gmra.mrb[44].mxu1 %v7583_v60  ;;  %v7679_v60 = vld [vmem:[%s8237_s17 + $0x1c0] ss:$72 sps:$4 sm:$0xff]  }
 0x120   : > { %4932 = vmatmul.mubr.bf16.gmra.mrb[12].mxu0 %v7587_v61  ;;  %4056 = vmatprep.mubr.bf16.mxu1 %v7591_v62  ;;  %v7683_v61 = vld [vmem:[%s8237_s17 + $0x660] ss:$72 sps:$4 sm:$0xff]   ;;  %v7687_v62 = vld [vmem:[%s8237_s17 + $0x254] ss:$72 sps:$4 sm:$0xff]  }
 0x121   : > { %4941 = vmatprep.mubr.bf16.mxu0 %v7593_v63  ;;  %5075 = vmatpush1.bf16.msra.mxu0 %v7624_v0  ;;  %v7689_v63 = vld [vmem:[%s8237_s17 + $0x6f4] ss:$72 sps:$4 sm:$0xff]   ;;  %v7716_v0 = vld [vmem:[%s9543_s1 + $0x360] ss:$8 sps:$4 sm:$0xff]  }
 0x122   : > { %5076 = vmatprep.subr.bf16.mxu0 %v7638_v1  ;;  %v7730_v1 = vld [vmem:[%s9543_s1 + $0x374] ss:$8 sps:$4 sm:$0xff]  }
 0x125   : > { %5077 = vmatpush1.bf16.msra.mxu0 %v7636_v2  ;;  %v7728_v2 = vld [vmem:[%s9543_s1 + $0x370] ss:$8 sps:$4 sm:$0xff]  }
 0x126   : > { %5078 = vmatprep.subr.bf16.mxu0 %v7650_v4  ;;  %v7691_v4 = vld [vmem:[%s8237_s17 + $0x250] ss:$72 sps:$4 sm:$0xff]  }
 0x127   : > { %4057 = vmatmul.mubr.bf16.gmra.mrb[48].mxu1 %v7595_v3  ;;  %v7743_v3 = vld [vmem:[%s9543_s1 + $0x384] ss:$8 sps:$4 sm:$0xff]  }
 0x128   : > { %4942 = vmatmul.mubr.bf16.gmra.mrb[16].mxu0 %v7599_v5  ;;  %4066 = vmatprep.mubr.bf16.mxu1 %v7603_v6  ;;  %v7695_v5 = vld [vmem:[%s8237_s17 + $0x6f0] ss:$72 sps:$4 sm:$0xff]   ;;  %v7699_v6 = vld [vmem:[%s8237_s17 + $0x2e4] ss:$72 sps:$4 sm:$0xff]  }
 0x129   : > { %4951 = vmatprep.mubr.bf16.mxu0 %v7605_v7  ;;  %5079 = vmatpush1.bf16.msra.mxu0 %v7648_v8  ;;  %v7701_v7 = vld [vmem:[%s8237_s17 + $0x784] ss:$72 sps:$4 sm:$0xff]   ;;  %v7741_v8 = vld [vmem:[%s9543_s1 + $0x380] ss:$8 sps:$4 sm:$0xff]  }
 0x12a   : > { %5080 = vmatprep.subr.bf16.mxu0 %v7662_v9  ;;  %v7754_v9 = vld [vmem:[%s9543_s1 + $0x394] ss:$8 sps:$4 sm:$0xff]  }
 0x12d   : > { %5081 = vmatpush1.bf16.msra.mxu0 %v7660_v12  ;;  %v7703_v12 = vld [vmem:[%s8237_s17 + $0x2e0] ss:$72 sps:$4 sm:$0xff]  }
 0x12e   : > { %5082 = vmatprep.subr.bf16.mxu0 %v7674_v14  ;;  %v7711_v14 = vld [vmem:[%s8237_s17 + $0x374] ss:$72 sps:$4 sm:$0xff]  }
 0x12f   : > { %4067 = vmatmul.mubr.bf16.gmra.mrb[52].mxu1 %v7607_v10  ;;  %v7752_v10 = vld [vmem:[%s9543_s1 + $0x390] ss:$8 sps:$4 sm:$0xff]  }
 0x130   : > { %4952 = vmatmul.mubr.bf16.gmra.mrb[20].mxu0 %v7611_v11  ;;  %4076 = vmatprep.mubr.bf16.mxu1 %v7615_v13  ;;  %v7766_v11 = vld [vmem:[%s9543_s1 + $0x3a4] ss:$8 sps:$4 sm:$0xff]   ;;  %v7707_v13 = vld [vmem:[%s8237_s17 + $0x780] ss:$72 sps:$4 sm:$0xff]  }
 0x131   : > { %4961 = vmatprep.mubr.bf16.mxu0 %v7617_v15  ;;  %5083 = vmatpush1.bf16.msra.mxu0 %v7672_v16  ;;  %v7713_v15 = vld [vmem:[%s8237_s17 + $0x814] ss:$72 sps:$4 sm:$0xff]   ;;  %v7764_v16 = vld [vmem:[%s9543_s1 + $0x3a0] ss:$8 sps:$4 sm:$0xff]  }
 0x132   : > { %5084 = vmatprep.subr.bf16.mxu0 %v7686_v17  ;;  %v7778_v17 = vld [vmem:[%s9543_s1 + $0x3b4] ss:$8 sps:$4 sm:$0xff]  }
 0x135   : > { %5085 = vmatpush1.bf16.msra.mxu0 %v7684_v18  ;;  %v7776_v18 = vld [vmem:[%s9543_s1 + $0x3b0] ss:$8 sps:$4 sm:$0xff]  }
 0x136   : > { %5086 = vmatprep.subr.bf16.mxu0 %v7698_v21  ;;  %v7719_v21 = vld [vmem:[%s8237_s17 + $0x810] ss:$72 sps:$4 sm:$0xff]  }
 0x137   : > { %4077 = vmatmul.mubr.bf16.gmra.mrb[56].mxu1 %v7619_v19  ;;  %v7790_v19 = vld [vmem:[%s9543_s1 + $0x3c4] ss:$8 sps:$4 sm:$0xff]  }
 0x138   : > { %4962 = vmatmul.mubr.bf16.gmra.mrb[24].mxu0 %v7623_v20  ;;  %4086 = vmatprep.mubr.bf16.mxu1 %v7627_v22  ;;  %v7715_v20 = vld [vmem:[%s8237_s17 + $0x370] ss:$72 sps:$4 sm:$0xff]   ;;  %v7723_v22 = vld [vmem:[%s8237_s17 + $0x404] ss:$72 sps:$4 sm:$0xff]  }
 0x139   : > { %4971 = vmatprep.mubr.bf16.mxu0 %v7629_v23  ;;  %5087 = vmatpush1.bf16.msra.mxu0 %v7696_v24  ;;  %v7725_v23 = vld [vmem:[%s8237_s17 + $0x8a4] ss:$72 sps:$4 sm:$0xff]   ;;  %v7788_v24 = vld [vmem:[%s9543_s1 + $0x3c0] ss:$8 sps:$4 sm:$0xff]  }
 0x13a   : > { %5088 = vmatprep.subr.bf16.mxu0 %v7710_v25  ;;  %v7802_v25 = vld [vmem:[%s9543_s1 + $0x3d4] ss:$8 sps:$4 sm:$0xff]  }
 0x13d   : > { %5089 = vmatpush1.bf16.msra.mxu0 %v7708_v26  ;;  %v7800_v26 = vld [vmem:[%s9543_s1 + $0x3d0] ss:$8 sps:$4 sm:$0xff]  }
 0x13e   : > { %5090 = vmatprep.subr.bf16.mxu0 %v7722_v29  ;;  %v7731_v29 = vld [vmem:[%s8237_s17 + $0x8a0] ss:$72 sps:$4 sm:$0xff]  }
 0x13f   : > { %4087 = vmatmul.mubr.bf16.gmra.mrb[60].mxu1 %v7631_v27  ;;  %v7814_v27 = vld [vmem:[%s9543_s1 + $0x3e4] ss:$8 sps:$4 sm:$0xff]  }
 0x140   : > { %4972 = vmatmul.mubr.bf16.gmra.mrb[28].mxu0 %v7635_v28  ;;  %4129 = vmatprep.mubr.bf16.mxu1 %v7641_v30  ;;  %v7727_v28 = vld [vmem:[%s8237_s17 + $0x400] ss:$72 sps:$4 sm:$0xff]   ;;  %v7735_v30 = vld [vmem:[%s8237_s17 + $0x494] ss:$72 sps:$4 sm:$0xff]  }
 0x141   : > { %4981 = vmatprep.mubr.bf16.mxu0 %v7642_v31  ;;  %5091 = vmatpush1.bf16.msra.mxu0 %v7720_v32  ;;  %v7739_v31 = vld [vmem:[%s8237_s17 + $0x3c] ss:$72 sps:$4 sm:$0xff]   ;;  %v7812_v32 = vld [vmem:[%s9543_s1 + $0x3e0] ss:$8 sps:$4 sm:$0xff]  }
 0x142   : > { %5092 = vmatprep.subr.bf16.mxu0 %v7734_v33  ;;  %v7826_v33 = vld [vmem:[%s9543_s1 + $0x3f4] ss:$8 sps:$4 sm:$0xff]  }
 0x145   : > { %5093 = vmatpush1.bf16.msra.mxu0 %v7732_v34  ;;  %v7824_v34 = vld [vmem:[%s9543_s1 + $0x3f0] ss:$8 sps:$4 sm:$0xff]  }
 0x146   : > { %5255 = vmatprep.subr.bf16.mxu0 %v7746_v37  ;;  %v7744_v37 = vld [vmem:[%s9543_s1 + $0x800] ss:$8 sps:$4 sm:$0xff]  }
 0x147   : > { %4130 = vmatmul.mubr.bf16.vlgmr.msra.gmra.mrb[0].mxu1 %v7639_v35  ;;  %v7737_v35 = vld [vmem:[%s8237_s17 + $0x38] ss:$72 sps:$4 sm:$0xff]  }
 0x148   : > { %4982 = vmatmul.mubr.bf16.gmra.mrb[32].mxu0 %v7647_v36  ;;  %4291 = vmatpush1.bf16.msra.mxu1 %v7644_v38  ;;  %v7740_v36 = vld [vmem:[%s8237_s17 + $0x490] ss:$72 sps:$4 sm:$0xff]   ;;  %v7747_v38 = vld [vmem:[%s8237_s17 + $0x524] ss:$72 sps:$4 sm:$0xff]  }
 0x149   : > { %4139 = vmatprep.mubr.bf16.mxu1 %v7651_v39  ;;  %4991 = vmatprep.mubr.bf16.mxu0 %v7653_v40  ;;  %v7749_v39 = vld [vmem:[%s8237_s17 + $0xcc] ss:$72 sps:$4 sm:$0xff]  }
 0x14a   : > { %4292 = vmatprep.subr.bf16.mxu1 %v7658_v41  ;;  %v7758_v40 = vld [vmem:[%s9543_s1 + $0x814] ss:$8 sps:$4 sm:$0xff]   ;;  %v7999_v41 = vld [vmem:[%s9543_s1 + $0x404] ss:$8 sps:$4 sm:$0xff]  }
 0x14c   : > { %4293 = vmatpush1.bf16.msra.mxu1 %v7656_v42  ;;  %v7756_v42 = vld [vmem:[%s9543_s1 + $0x810] ss:$8 sps:$4 sm:$0xff]  }
 0x14d   : > { %4294 = vmatprep.subr.bf16.mxu1 %v7670_v45  ;;  %v7755_v45 = vld [vmem:[%s8237_s17 + $0xc8] ss:$72 sps:$4 sm:$0xff]  }
 0x14f   : > { %4140 = vmatmul.mubr.bf16.gmra.mrb[4].mxu1 %v7655_v43  ;;  %v7770_v43 = vld [vmem:[%s9543_s1 + $0x824] ss:$8 sps:$4 sm:$0xff]  }
 0x150   : > { %4992 = vmatmul.mubr.bf16.gmra.mrb[36].mxu0 %v7659_v44  ;;  %4149 = vmatprep.mubr.bf16.mxu1 %v7663_v46  ;;  %v7751_v44 = vld [vmem:[%s8237_s17 + $0x520] ss:$72 sps:$4 sm:$0xff]   ;;  %v7759_v46 = vld [vmem:[%s8237_s17 + $0x5b4] ss:$72 sps:$4 sm:$0xff]  }
 0x151   : > { %5001 = vmatprep.mubr.bf16.mxu0 %v7665_v47  ;;  %4295 = vmatpush1.bf16.msra.mxu1 %v7668_v48  ;;  %v7761_v47 = vld [vmem:[%s8237_s17 + $0x15c] ss:$72 sps:$4 sm:$0xff]   ;;  %v7768_v48 = vld [vmem:[%s9543_s1 + $0x820] ss:$8 sps:$4 sm:$0xff]  }
 0x152   : > { %4296 = vmatprep.subr.bf16.mxu1 %v7682_v49  ;;  %v7782_v49 = vld [vmem:[%s9543_s1 + $0x834] ss:$8 sps:$4 sm:$0xff]  }
 0x155   : > { %4297 = vmatpush1.bf16.msra.mxu1 %v7680_v50  ;;  %v7780_v50 = vld [vmem:[%s9543_s1 + $0x830] ss:$8 sps:$4 sm:$0xff]  }
 0x156   : > { %4298 = vmatprep.subr.bf16.mxu1 %v7694_v51  ;;  %v7794_v51 = vld [vmem:[%s9543_s1 + $0x844] ss:$8 sps:$4 sm:$0xff]  }
 0x157   : > { %4150 = vmatmul.mubr.bf16.gmra.mrb[8].mxu1 %v7667_v52  ;;  %v7763_v52 = vld [vmem:[%s8237_s17 + $0x5b0] ss:$72 sps:$4 sm:$0xff]  }
 0x158   : > { %5002 = vmatmul.mubr.bf16.gmra.mrb[40].mxu0 %v7671_v53  ;;  %4159 = vmatprep.mubr.bf16.mxu1 %v7675_v54  ;;  %v7767_v53 = vld [vmem:[%s8237_s17 + $0x158] ss:$72 sps:$4 sm:$0xff]   ;;  %v7771_v54 = vld [vmem:[%s8237_s17 + $0x644] ss:$72 sps:$4 sm:$0xff]  }
 0x159   : > { %5011 = vmatprep.mubr.bf16.mxu0 %v7677_v55  ;;  %4299 = vmatpush1.bf16.msra.mxu1 %v7692_v56  ;;  %v7773_v55 = vld [vmem:[%s8237_s17 + $0x1ec] ss:$72 sps:$4 sm:$0xff]   ;;  %v7792_v56 = vld [vmem:[%s9543_s1 + $0x840] ss:$8 sps:$4 sm:$0xff]  }
 0x15a   : > { %4300 = vmatprep.subr.bf16.mxu1 %v7706_v57  ;;  %v7806_v57 = vld [vmem:[%s9543_s1 + $0x854] ss:$8 sps:$4 sm:$0xff]  }
 0x15d   : > { %4301 = vmatpush1.bf16.msra.mxu1 %v7704_v58  ;;  %v7804_v58 = vld [vmem:[%s9543_s1 + $0x850] ss:$8 sps:$4 sm:$0xff]  }
 0x15e   : > { %4302 = vmatprep.subr.bf16.mxu1 %v7718_v59  ;;  %v7818_v59 = vld [vmem:[%s9543_s1 + $0x864] ss:$8 sps:$4 sm:$0xff]  }
 0x15f   : > { %4160 = vmatmul.mubr.bf16.gmra.mrb[12].mxu1 %v7679_v60  ;;  %v7775_v60 = vld [vmem:[%s8237_s17 + $0x640] ss:$72 sps:$4 sm:$0xff]  }
 0x160   : > { %5012 = vmatmul.mubr.bf16.gmra.mrb[44].mxu0 %v7683_v61  ;;  %4169 = vmatprep.mubr.bf16.mxu1 %v7687_v62  ;;  %v7779_v61 = vld [vmem:[%s8237_s17 + $0x1e8] ss:$72 sps:$4 sm:$0xff]   ;;  %v7783_v62 = vld [vmem:[%s8237_s17 + $0x6d4] ss:$72 sps:$4 sm:$0xff]  }
 0x161   : > { %5021 = vmatprep.mubr.bf16.mxu0 %v7689_v63  ;;  %4303 = vmatpush1.bf16.msra.mxu1 %v7716_v0  ;;  %v7785_v63 = vld [vmem:[%s8237_s17 + $0x27c] ss:$72 sps:$4 sm:$0xff]   ;;  %v7816_v0 = vld [vmem:[%s9543_s1 + $0x860] ss:$8 sps:$4 sm:$0xff]  }
 0x162   : > { %4304 = vmatprep.subr.bf16.mxu1 %v7730_v1  ;;  %v7830_v1 = vld [vmem:[%s9543_s1 + $0x874] ss:$8 sps:$4 sm:$0xff]  }
 0x165   : > { %4305 = vmatpush1.bf16.msra.mxu1 %v7728_v2  ;;  %v7828_v2 = vld [vmem:[%s9543_s1 + $0x870] ss:$8 sps:$4 sm:$0xff]  }
 0x166   : > { %4306 = vmatprep.subr.bf16.mxu1 %v7743_v3  ;;  %v7839_v3 = vld [vmem:[%s9543_s1 + $0x884] ss:$8 sps:$4 sm:$0xff]  }
 0x167   : > { %4170 = vmatmul.mubr.bf16.gmra.mrb[16].mxu1 %v7691_v4  ;;  %v7787_v4 = vld [vmem:[%s8237_s17 + $0x6d0] ss:$72 sps:$4 sm:$0xff]  }
 0x168   : > { %5022 = vmatmul.mubr.bf16.gmra.mrb[48].mxu0 %v7695_v5  ;;  %4179 = vmatprep.mubr.bf16.mxu1 %v7699_v6  ;;  %v7791_v5 = vld [vmem:[%s8237_s17 + $0x278] ss:$72 sps:$4 sm:$0xff]   ;;  %v7795_v6 = vld [vmem:[%s8237_s17 + $0x764] ss:$72 sps:$4 sm:$0xff]  }
 0x169   : > { %5031 = vmatprep.mubr.bf16.mxu0 %v7701_v7  ;;  %4307 = vmatpush1.bf16.msra.mxu1 %v7741_v8  ;;  %v7797_v7 = vld [vmem:[%s8237_s17 + $0x30c] ss:$72 sps:$4 sm:$0xff]   ;;  %v7837_v8 = vld [vmem:[%s9543_s1 + $0x880] ss:$8 sps:$4 sm:$0xff]  }
 0x16a   : > { %4308 = vmatprep.subr.bf16.mxu1 %v7754_v9  ;;  %v7848_v9 = vld [vmem:[%s9543_s1 + $0x894] ss:$8 sps:$4 sm:$0xff]  }
 0x16d   : > { %4309 = vmatpush1.bf16.msra.mxu1 %v7752_v10  ;;  %v7846_v10 = vld [vmem:[%s9543_s1 + $0x890] ss:$8 sps:$4 sm:$0xff]  }
 0x16e   : > { %4310 = vmatprep.subr.bf16.mxu1 %v7766_v11  ;;  %v7857_v11 = vld [vmem:[%s9543_s1 + $0x8a4] ss:$8 sps:$4 sm:$0xff]  }
 0x16f   : > { %4180 = vmatmul.mubr.bf16.gmra.mrb[20].mxu1 %v7703_v12  ;;  %v7799_v12 = vld [vmem:[%s8237_s17 + $0x760] ss:$72 sps:$4 sm:$0xff]  }
 0x170   : > { %5032 = vmatmul.mubr.bf16.gmra.mrb[52].mxu0 %v7707_v13  ;;  %4189 = vmatprep.mubr.bf16.mxu1 %v7711_v14  ;;  %v7803_v13 = vld [vmem:[%s8237_s17 + $0x308] ss:$72 sps:$4 sm:$0xff]   ;;  %v7807_v14 = vld [vmem:[%s8237_s17 + $0x7f4] ss:$72 sps:$4 sm:$0xff]  }
 0x171   : > { %5041 = vmatprep.mubr.bf16.mxu0 %v7713_v15  ;;  %4311 = vmatpush1.bf16.msra.mxu1 %v7764_v16  ;;  %v7809_v15 = vld [vmem:[%s8237_s17 + $0x39c] ss:$72 sps:$4 sm:$0xff]   ;;  %v7855_v16 = vld [vmem:[%s9543_s1 + $0x8a0] ss:$8 sps:$4 sm:$0xff]  }
 0x172   : > { %4312 = vmatprep.subr.bf16.mxu1 %v7778_v17  ;;  %v7866_v17 = vld [vmem:[%s9543_s1 + $0x8b4] ss:$8 sps:$4 sm:$0xff]  }
 0x175   : > { %4313 = vmatpush1.bf16.msra.mxu1 %v7776_v18  ;;  %v7864_v18 = vld [vmem:[%s9543_s1 + $0x8b0] ss:$8 sps:$4 sm:$0xff]  }
 0x176   : > { %4314 = vmatprep.subr.bf16.mxu1 %v7790_v19  ;;  %v7875_v19 = vld [vmem:[%s9543_s1 + $0x8c4] ss:$8 sps:$4 sm:$0xff]  }
 0x177   : > { %4190 = vmatmul.mubr.bf16.gmra.mrb[24].mxu1 %v7715_v20  ;;  %v7811_v20 = vld [vmem:[%s8237_s17 + $0x7f0] ss:$72 sps:$4 sm:$0xff]  }
 0x178   : > { %5042 = vmatmul.mubr.bf16.gmra.mrb[56].mxu0 %v7719_v21  ;;  %4199 = vmatprep.mubr.bf16.mxu1 %v7723_v22  ;;  %v7815_v21 = vld [vmem:[%s8237_s17 + $0x398] ss:$72 sps:$4 sm:$0xff]   ;;  %v7819_v22 = vld [vmem:[%s8237_s17 + $0x884] ss:$72 sps:$4 sm:$0xff]  }
 0x179   : > { %5051 = vmatprep.mubr.bf16.mxu0 %v7725_v23  ;;  %4315 = vmatpush1.bf16.msra.mxu1 %v7788_v24  ;;  %v7821_v23 = vld [vmem:[%s8237_s17 + $0x42c] ss:$72 sps:$4 sm:$0xff]   ;;  %v7873_v24 = vld [vmem:[%s9543_s1 + $0x8c0] ss:$8 sps:$4 sm:$0xff]  }
 0x17a   : > { %4316 = vmatprep.subr.bf16.mxu1 %v7802_v25  ;;  %v7884_v25 = vld [vmem:[%s9543_s1 + $0x8d4] ss:$8 sps:$4 sm:$0xff]  }
 0x17d   : > { %4317 = vmatpush1.bf16.msra.mxu1 %v7800_v26  ;;  %v7882_v26 = vld [vmem:[%s9543_s1 + $0x8d0] ss:$8 sps:$4 sm:$0xff]  }
 0x17e   : > { %4318 = vmatprep.subr.bf16.mxu1 %v7814_v27  ;;  %v7893_v27 = vld [vmem:[%s9543_s1 + $0x8e4] ss:$8 sps:$4 sm:$0xff]  }
 0x17f   : > { %4200 = vmatmul.mubr.bf16.gmra.mrb[28].mxu1 %v7727_v28  ;;  %v7823_v28 = vld [vmem:[%s8237_s17 + $0x880] ss:$72 sps:$4 sm:$0xff]  }
 0x180   : > { %5052 = vmatmul.mubr.bf16.gmra.mrb[60].mxu0 %v7731_v29  ;;  %4209 = vmatprep.mubr.bf16.mxu1 %v7735_v30  ;;  %v7827_v29 = vld [vmem:[%s8237_s17 + $0x428] ss:$72 sps:$4 sm:$0xff]   ;;  %v7833_v30 = vld [vmem:[%s8237_s17 + $0x1c] ss:$72 sps:$4 sm:$0xff]  }
 0x181   : > { %5094 = vmatprep.mubr.bf16.mxu0 %v7739_v31  ;;  %4319 = vmatpush1.bf16.msra.mxu1 %v7812_v32  ;;  %v7834_v31 = vld [vmem:[%s8237_s17 + $0x4bc] ss:$72 sps:$4 sm:$0xff]   ;;  %v7891_v32 = vld [vmem:[%s9543_s1 + $0x8e0] ss:$8 sps:$4 sm:$0xff]  }
 0x182   : > { %4320 = vmatprep.subr.bf16.mxu1 %v7826_v33  ;;  %v7902_v33 = vld [vmem:[%s9543_s1 + $0x8f4] ss:$8 sps:$4 sm:$0xff]  }
 0x185   : > { %4321 = vmatpush1.bf16.msra.mxu1 %v7824_v34  ;;  %v7900_v34 = vld [vmem:[%s9543_s1 + $0x8f0] ss:$8 sps:$4 sm:$0xff]  }
 0x186   : > { %6502 = vmatprep.subr.bf16.mxu1 %v7999_v41  ;;  %v7844_v41 = vld [vmem:[%s8237_s17 + $0xa8] ss:$72 sps:$4 sm:$0xff]  }
 0x187   : > { %4210 = vmatmul.mubr.bf16.gmra.mrb[32].mxu1 %v7740_v36  ;;  %v7836_v36 = vld [vmem:[%s8237_s17 + $0x4b8] ss:$72 sps:$4 sm:$0xff]  }
 0x188   : > { %5095 = vmatmul.mubr.bf16.vlgmr.msra.gmra.mrb[0].mxu0 %v7737_v35  ;;  %4219 = vmatprep.mubr.bf16.mxu1 %v7747_v38  ;;  %v7831_v35 = vld [vmem:[%s8237_s17 + $0x18] ss:$72 sps:$4 sm:$0xff]   ;;  %v7842_v38 = vld [vmem:[%s8237_s17 + $0x54c] ss:$72 sps:$4 sm:$0xff]  }
 0x189   : > { %5256 = vmatpush1.bf16.msra.mxu0 %v7744_v37  ;;  %5104 = vmatprep.mubr.bf16.mxu0 %v7749_v39  ;;  %v7840_v37 = vld [vmem:[%s8237_s17 + $0xac] ss:$72 sps:$4 sm:$0xff]   ;;  %v8000_v39 = vld [vmem:[%s9543_s1 + $0x400] ss:$8 sps:$4 sm:$0xff]  }
 0x18a   : > { %5257 = vmatprep.subr.bf16.mxu0 %v7758_v40  ;;  %v8001_v40 = vld [vmem:[%s9543_s1 + $0x414] ss:$8 sps:$4 sm:$0xff]  }
 0x18d   : > { %5258 = vmatpush1.bf16.msra.mxu0 %v7756_v42  ;;  %v7845_v42 = vld [vmem:[%s8237_s17 + $0x548] ss:$72 sps:$4 sm:$0xff]  }
 0x18e   : > { %5259 = vmatprep.subr.bf16.mxu0 %v7770_v43  ;;  %v8002_v43 = vld [vmem:[%s9543_s1 + $0x410] ss:$8 sps:$4 sm:$0xff]  }
 0x18f   : > { %4220 = vmatmul.mubr.bf16.gmra.mrb[36].mxu1 %v7751_v44  ;;  %v7849_v44 = vld [vmem:[%s8237_s17 + $0x13c] ss:$72 sps:$4 sm:$0xff]  }
 0x190   : > { %5105 = vmatmul.mubr.bf16.gmra.mrb[4].mxu0 %v7755_v45  ;;  %4229 = vmatprep.mubr.bf16.mxu1 %v7759_v46  ;;  %v7851_v45 = vld [vmem:[%s8237_s17 + $0x5dc] ss:$72 sps:$4 sm:$0xff]  }
 0x191   : > { %5114 = vmatprep.mubr.bf16.mxu0 %v7761_v47  ;;  %5260 = vmatpush1.bf16.msra.mxu0 %v7768_v48  ;;  %v8003_v46 = vld [vmem:[%s9543_s1 + $0x424] ss:$8 sps:$4 sm:$0xff]   ;;  %v8004_v47 = vld [vmem:[%s9543_s1 + $0x420] ss:$8 sps:$4 sm:$0xff]   ;;  %v8005_v48 = vld [vmem:[%s9543_s1 + $0x434] ss:$8 sps:$4 sm:$0xff]  }
 0x192   : > { %5261 = vmatprep.subr.bf16.mxu0 %v7782_v49  ;;  %v7853_v49 = vld [vmem:[%s8237_s17 + $0x138] ss:$72 sps:$4 sm:$0xff]  }
 0x195   : > { %5262 = vmatpush1.bf16.msra.mxu0 %v7780_v50  ;;  %v7854_v50 = vld [vmem:[%s8237_s17 + $0x5d8] ss:$72 sps:$4 sm:$0xff]  }
 0x196   : > { %5263 = vmatprep.subr.bf16.mxu0 %v7794_v51  ;;  %v7858_v51 = vld [vmem:[%s8237_s17 + $0x1cc] ss:$72 sps:$4 sm:$0xff]  }
 0x197   : > { %4230 = vmatmul.mubr.bf16.gmra.mrb[40].mxu1 %v7763_v52  ;;  %v7860_v52 = vld [vmem:[%s8237_s17 + $0x66c] ss:$72 sps:$4 sm:$0xff]  }
 0x198   : > { %5115 = vmatmul.mubr.bf16.gmra.mrb[8].mxu0 %v7767_v53  ;;  %4239 = vmatprep.mubr.bf16.mxu1 %v7771_v54  ;;  %v8006_v53 = vld [vmem:[%s9543_s1 + $0x430] ss:$8 sps:$4 sm:$0xff]   ;;  %v8007_v54 = vld [vmem:[%s9543_s1 + $0x444] ss:$8 sps:$4 sm:$0xff]  }
 0x199   : > { %5124 = vmatprep.mubr.bf16.mxu0 %v7773_v55  ;;  %5264 = vmatpush1.bf16.msra.mxu0 %v7792_v56  ;;  %v8008_v55 = vld [vmem:[%s9543_s1 + $0x440] ss:$8 sps:$4 sm:$0xff]   ;;  %v8009_v56 = vld [vmem:[%s9543_s1 + $0x454] ss:$8 sps:$4 sm:$0xff]  }
 0x19a   : > { %5265 = vmatprep.subr.bf16.mxu0 %v7806_v57  ;;  %v7862_v57 = vld [vmem:[%s8237_s17 + $0x1c8] ss:$72 sps:$4 sm:$0xff]  }
 0x19d   : > { %5266 = vmatpush1.bf16.msra.mxu0 %v7804_v58  ;;  %v7863_v58 = vld [vmem:[%s8237_s17 + $0x668] ss:$72 sps:$4 sm:$0xff]  }
 0x19e   : > { %5267 = vmatprep.subr.bf16.mxu0 %v7818_v59  ;;  %v7867_v59 = vld [vmem:[%s8237_s17 + $0x25c] ss:$72 sps:$4 sm:$0xff]  }
 0x19f   : > { %4240 = vmatmul.mubr.bf16.gmra.mrb[44].mxu1 %v7775_v60  ;;  %v7869_v60 = vld [vmem:[%s8237_s17 + $0x6fc] ss:$72 sps:$4 sm:$0xff]  }
 0x1a0   : > { %5125 = vmatmul.mubr.bf16.gmra.mrb[12].mxu0 %v7779_v61  ;;  %4249 = vmatprep.mubr.bf16.mxu1 %v7783_v62  ;;  %v8010_v61 = vld [vmem:[%s9543_s1 + $0x450] ss:$8 sps:$4 sm:$0xff]   ;;  %v8011_v62 = vld [vmem:[%s9543_s1 + $0x464] ss:$8 sps:$4 sm:$0xff]  }
 0x1a1   : > { %5134 = vmatprep.mubr.bf16.mxu0 %v7785_v63  ;;  %5268 = vmatpush1.bf16.msra.mxu0 %v7816_v0  ;;  %v8012_v63 = vld [vmem:[%s9543_s1 + $0x460] ss:$8 sps:$4 sm:$0xff]   ;;  %v8013_v0 = vld [vmem:[%s9543_s1 + $0x474] ss:$8 sps:$4 sm:$0xff]  }
 0x1a2   : > { %5269 = vmatprep.subr.bf16.mxu0 %v7830_v1  ;;  %v7871_v1 = vld [vmem:[%s8237_s17 + $0x258] ss:$72 sps:$4 sm:$0xff]  }
 0x1a5   : > { %5270 = vmatpush1.bf16.msra.mxu0 %v7828_v2  ;;  %v7872_v2 = vld [vmem:[%s8237_s17 + $0x6f8] ss:$72 sps:$4 sm:$0xff]  }
 0x1a6   : > { %5271 = vmatprep.subr.bf16.mxu0 %v7839_v3  ;;  %v7876_v3 = vld [vmem:[%s8237_s17 + $0x2ec] ss:$72 sps:$4 sm:$0xff]  }
 0x1a7   : > { %4250 = vmatmul.mubr.bf16.gmra.mrb[48].mxu1 %v7787_v4  ;;  %v7878_v4 = vld [vmem:[%s8237_s17 + $0x78c] ss:$72 sps:$4 sm:$0xff]  }
 0x1a8   : > { %5135 = vmatmul.mubr.bf16.gmra.mrb[16].mxu0 %v7791_v5  ;;  %4259 = vmatprep.mubr.bf16.mxu1 %v7795_v6  ;;  %v8014_v5 = vld [vmem:[%s9543_s1 + $0x470] ss:$8 sps:$4 sm:$0xff]   ;;  %v8015_v6 = vld [vmem:[%s9543_s1 + $0x484] ss:$8 sps:$4 sm:$0xff]  }
 0x1a9   : > { %5144 = vmatprep.mubr.bf16.mxu0 %v7797_v7  ;;  %5272 = vmatpush1.bf16.msra.mxu0 %v7837_v8  ;;  %v8016_v7 = vld [vmem:[%s9543_s1 + $0x480] ss:$8 sps:$4 sm:$0xff]   ;;  %v8017_v8 = vld [vmem:[%s9543_s1 + $0x494] ss:$8 sps:$4 sm:$0xff]  }
 0x1aa   : > { %5273 = vmatprep.subr.bf16.mxu0 %v7848_v9  ;;  %v7880_v9 = vld [vmem:[%s8237_s17 + $0x2e8] ss:$72 sps:$4 sm:$0xff]  }
 0x1ad   : > { %5274 = vmatpush1.bf16.msra.mxu0 %v7846_v10  ;;  %v7881_v10 = vld [vmem:[%s8237_s17 + $0x788] ss:$72 sps:$4 sm:$0xff]  }
 0x1ae   : > { %5275 = vmatprep.subr.bf16.mxu0 %v7857_v11  ;;  %v7885_v11 = vld [vmem:[%s8237_s17 + $0x37c] ss:$72 sps:$4 sm:$0xff]  }
 0x1af   : > { %4260 = vmatmul.mubr.bf16.gmra.mrb[52].mxu1 %v7799_v12  ;;  %v7887_v12 = vld [vmem:[%s8237_s17 + $0x81c] ss:$72 sps:$4 sm:$0xff]  }
 0x1b0   : > { %5145 = vmatmul.mubr.bf16.gmra.mrb[20].mxu0 %v7803_v13  ;;  %4269 = vmatprep.mubr.bf16.mxu1 %v7807_v14  ;;  %v8018_v13 = vld [vmem:[%s9543_s1 + $0x490] ss:$8 sps:$4 sm:$0xff]   ;;  %v8019_v14 = vld [vmem:[%s9543_s1 + $0x4a4] ss:$8 sps:$4 sm:$0xff]  }
 0x1b1   : > { %5154 = vmatprep.mubr.bf16.mxu0 %v7809_v15  ;;  %5276 = vmatpush1.bf16.msra.mxu0 %v7855_v16  ;;  %v8020_v15 = vld [vmem:[%s9543_s1 + $0x4a0] ss:$8 sps:$4 sm:$0xff]   ;;  %v8021_v16 = vld [vmem:[%s9543_s1 + $0x4b4] ss:$8 sps:$4 sm:$0xff]  }
 0x1b2   : > { %5277 = vmatprep.subr.bf16.mxu0 %v7866_v17  ;;  %v7889_v17 = vld [vmem:[%s8237_s17 + $0x378] ss:$72 sps:$4 sm:$0xff]  }
 0x1b5   : > { %5278 = vmatpush1.bf16.msra.mxu0 %v7864_v18  ;;  %v7890_v18 = vld [vmem:[%s8237_s17 + $0x818] ss:$72 sps:$4 sm:$0xff]  }
 0x1b6   : > { %5279 = vmatprep.subr.bf16.mxu0 %v7875_v19  ;;  %v7894_v19 = vld [vmem:[%s8237_s17 + $0x40c] ss:$72 sps:$4 sm:$0xff]  }
 0x1b7   : > { %4270 = vmatmul.mubr.bf16.gmra.mrb[56].mxu1 %v7811_v20  ;;  %v7896_v20 = vld [vmem:[%s8237_s17 + $0x8ac] ss:$72 sps:$4 sm:$0xff]  }
 0x1b8   : > { %5155 = vmatmul.mubr.bf16.gmra.mrb[24].mxu0 %v7815_v21  ;;  %4279 = vmatprep.mubr.bf16.mxu1 %v7819_v22  ;;  %v8022_v21 = vld [vmem:[%s9543_s1 + $0x4b0] ss:$8 sps:$4 sm:$0xff]   ;;  %v8023_v22 = vld [vmem:[%s9543_s1 + $0x4c4] ss:$8 sps:$4 sm:$0xff]  }
 0x1b9   : > { %5164 = vmatprep.mubr.bf16.mxu0 %v7821_v23  ;;  %5280 = vmatpush1.bf16.msra.mxu0 %v7873_v24  ;;  %v8024_v23 = vld [vmem:[%s9543_s1 + $0x4c0] ss:$8 sps:$4 sm:$0xff]   ;;  %v8025_v24 = vld [vmem:[%s9543_s1 + $0x4d4] ss:$8 sps:$4 sm:$0xff]  }
 0x1ba   : > { %5281 = vmatprep.subr.bf16.mxu0 %v7884_v25  ;;  %v7898_v25 = vld [vmem:[%s8237_s17 + $0x408] ss:$72 sps:$4 sm:$0xff]  }
 0x1bd   : > { %5282 = vmatpush1.bf16.msra.mxu0 %v7882_v26  ;;  %v7899_v26 = vld [vmem:[%s8237_s17 + $0x8a8] ss:$72 sps:$4 sm:$0xff]  }
 0x1be   : > { %5283 = vmatprep.subr.bf16.mxu0 %v7893_v27  ;;  %v7903_v27 = vld [vmem:[%s8237_s17 + $0x49c] ss:$72 sps:$4 sm:$0xff]  }
 0x1bf   : > { %4280 = vmatmul.mubr.bf16.gmra.mrb[60].mxu1 %v7823_v28  ;;  %v7907_v28 = vld [vmem:[%s8237_s17 + $0x44] ss:$72 sps:$4 sm:$0xff]  }
 0x1c0   : > { %5165 = vmatmul.mubr.bf16.gmra.mrb[28].mxu0 %v7827_v29  ;;  %4322 = vmatprep.mubr.bf16.mxu1 %v7833_v30  ;;  %v8026_v29 = vld [vmem:[%s9543_s1 + $0x4d0] ss:$8 sps:$4 sm:$0xff]   ;;  %v8027_v30 = vld [vmem:[%s9543_s1 + $0x4e4] ss:$8 sps:$4 sm:$0xff]  }
 0x1c1   : > { %5174 = vmatprep.mubr.bf16.mxu0 %v7834_v31  ;;  %5284 = vmatpush1.bf16.msra.mxu0 %v7891_v32  ;;  %v8028_v31 = vld [vmem:[%s9543_s1 + $0x4e0] ss:$8 sps:$4 sm:$0xff]   ;;  %v8029_v32 = vld [vmem:[%s9543_s1 + $0x4f4] ss:$8 sps:$4 sm:$0xff]  }
 0x1c2   : > { %5285 = vmatprep.subr.bf16.mxu0 %v7902_v33  ;;  %v7905_v33 = vld [vmem:[%s8237_s17 + $0x40] ss:$72 sps:$4 sm:$0xff]  }
 0x1c5   : > { %5286 = vmatpush1.bf16.msra.mxu0 %v7900_v34  ;;  %v7908_v34 = vld [vmem:[%s8237_s17 + $0x498] ss:$72 sps:$4 sm:$0xff]  }
 0x1c7   : > { %4323 = vmatmul.mubr.bf16.vlgmr.msra.gmra.mrb[0].mxu1 %v7831_v35  ;;  %v7909_v35 = vld [vmem:[%s8237_s17 + $0x52c] ss:$72 sps:$4 sm:$0xff]  }
 0x1c8   : > { %5175 = vmatmul.mubr.bf16.gmra.mrb[32].mxu0 %v7836_v36  ;;  %6518 = vmatpush1.bf16.msra.mxu1 %v8000_v39  ;;  %v7911_v36 = vld [vmem:[%s8237_s17 + $0xd4] ss:$72 sps:$4 sm:$0xff]   ;;  %v7914_v39 = vld [vmem:[%s8237_s17 + $0xd0] ss:$72 sps:$4 sm:$0xff]  }
 0x1c9   : > { %4332 = vmatprep.mubr.bf16.mxu1 %v7840_v37  ;;  %5184 = vmatprep.mubr.bf16.mxu0 %v7842_v38  ;;  %v8030_v37 = vld [vmem:[%s9543_s1 + $0x4f0] ss:$8 sps:$4 sm:$0xff]  }
 0x1ca   : > { %6503 = vmatprep.subr.bf16.mxu1 %v8001_v40  ;;  %v7913_v38 = vld [vmem:[%s8237_s17 + $0x528] ss:$72 sps:$4 sm:$0xff]   ;;  %v7915_v40 = vld [vmem:[%s8237_s17 + $0x5bc] ss:$72 sps:$4 sm:$0xff]  }
 0x1cc   : > { %6519 = vmatpush1.bf16.msra.mxu1 %v8002_v43  ;;  %v7920_v43 = vld [vmem:[%s8237_s17 + $0x160] ss:$72 sps:$4 sm:$0xff]  }
 0x1cd   : > { %6504 = vmatprep.subr.bf16.mxu1 %v8003_v46  ;;  %v7925_v46 = vld [vmem:[%s8237_s17 + $0x648] ss:$72 sps:$4 sm:$0xff]  }
 0x1cf   : > { %4333 = vmatmul.mubr.bf16.gmra.mrb[4].mxu1 %v7844_v41  ;;  %v7917_v41 = vld [vmem:[%s8237_s17 + $0x164] ss:$72 sps:$4 sm:$0xff]  }
 0x1d0   : > { %5185 = vmatmul.mubr.bf16.gmra.mrb[36].mxu0 %v7845_v42  ;;  %4342 = vmatprep.mubr.bf16.mxu1 %v7849_v44  ;;  %v7919_v42 = vld [vmem:[%s8237_s17 + $0x5b8] ss:$72 sps:$4 sm:$0xff]   ;;  %v7921_v44 = vld [vmem:[%s8237_s17 + $0x64c] ss:$72 sps:$4 sm:$0xff]  }
 0x1d1   : > { %5194 = vmatprep.mubr.bf16.mxu0 %v7851_v45  ;;  %6520 = vmatpush1.bf16.msra.mxu1 %v8004_v47  ;;  %v7923_v45 = vld [vmem:[%s8237_s17 + $0x1f4] ss:$72 sps:$4 sm:$0xff]   ;;  %v7926_v47 = vld [vmem:[%s8237_s17 + $0x1f0] ss:$72 sps:$4 sm:$0xff]  }
 0x1d2   : > { %6505 = vmatprep.subr.bf16.mxu1 %v8005_v48  ;;  %v7927_v48 = vld [vmem:[%s8237_s17 + $0x6dc] ss:$72 sps:$4 sm:$0xff]  }
 0x1d5   : > { %6521 = vmatpush1.bf16.msra.mxu1 %v8006_v53  ;;  %v7935_v53 = vld [vmem:[%s8237_s17 + $0x314] ss:$72 sps:$4 sm:$0xff]  }
 0x1d6   : > { %6506 = vmatprep.subr.bf16.mxu1 %v8007_v54  ;;  %v7937_v54 = vld [vmem:[%s8237_s17 + $0x768] ss:$72 sps:$4 sm:$0xff]  }
 0x1d7   : > { %4343 = vmatmul.mubr.bf16.gmra.mrb[8].mxu1 %v7853_v49  ;;  %v7929_v49 = vld [vmem:[%s8237_s17 + $0x284] ss:$72 sps:$4 sm:$0xff]  }
 0x1d8   : > { %5195 = vmatmul.mubr.bf16.gmra.mrb[40].mxu0 %v7854_v50  ;;  %4352 = vmatprep.mubr.bf16.mxu1 %v7858_v51  ;;  %v7931_v50 = vld [vmem:[%s8237_s17 + $0x6d8] ss:$72 sps:$4 sm:$0xff]  }
 0x1d9   : > { %5204 = vmatprep.mubr.bf16.mxu0 %v7860_v52  ;;  %6522 = vmatpush1.bf16.msra.mxu1 %v8008_v55  ;;  %v7932_v51 = vld [vmem:[%s8237_s17 + $0x280] ss:$72 sps:$4 sm:$0xff]   ;;  %v7933_v52 = vld [vmem:[%s8237_s17 + $0x76c] ss:$72 sps:$4 sm:$0xff]   ;;  %v7938_v55 = vld [vmem:[%s8237_s17 + $0x310] ss:$72 sps:$4 sm:$0xff]  }
 0x1da   : > { %6507 = vmatprep.subr.bf16.mxu1 %v8009_v56  ;;  %v7939_v56 = vld [vmem:[%s8237_s17 + $0x7fc] ss:$72 sps:$4 sm:$0xff]  }
 0x1dd   : > { %6523 = vmatpush1.bf16.msra.mxu1 %v8010_v61  ;;  %v7947_v61 = vld [vmem:[%s8237_s17 + $0x434] ss:$72 sps:$4 sm:$0xff]  }
 0x1de   : > { %6508 = vmatprep.subr.bf16.mxu1 %v8011_v62  ;;  %v7949_v62 = vld [vmem:[%s8237_s17 + $0x888] ss:$72 sps:$4 sm:$0xff]  }
 0x1df   : > { %4353 = vmatmul.mubr.bf16.gmra.mrb[12].mxu1 %v7862_v57  ;;  %v7941_v57 = vld [vmem:[%s8237_s17 + $0x3a4] ss:$72 sps:$4 sm:$0xff]  }
 0x1e0   : > { %5205 = vmatmul.mubr.bf16.gmra.mrb[44].mxu0 %v7863_v58  ;;  %4362 = vmatprep.mubr.bf16.mxu1 %v7867_v59  ;;  %v7943_v58 = vld [vmem:[%s8237_s17 + $0x7f8] ss:$72 sps:$4 sm:$0xff]  }
 0x1e1   : > { %5214 = vmatprep.mubr.bf16.mxu0 %v7869_v60  ;;  %6524 = vmatpush1.bf16.msra.mxu1 %v8012_v63  ;;  %v7944_v59 = vld [vmem:[%s8237_s17 + $0x3a0] ss:$72 sps:$4 sm:$0xff]   ;;  %v7945_v60 = vld [vmem:[%s8237_s17 + $0x88c] ss:$72 sps:$4 sm:$0xff]   ;;  %v7950_v63 = vld [vmem:[%s8237_s17 + $0x430] ss:$72 sps:$4 sm:$0xff]  }
 0x1e2   : > { %6509 = vmatprep.subr.bf16.mxu1 %v8013_v0  ;;  %v7953_v0 = vld [vmem:[%s8237_s17 + $0x4a4] ss:$72 sps:$4 sm:$0xff]  }
 0x1e5   : > { %6525 = vmatpush1.bf16.msra.mxu1 %v8014_v5  ;;  %v7959_v5 = vld [vmem:[%s8237_s17 + $0x554] ss:$72 sps:$4 sm:$0xff]  }
 0x1e6   : > { %6510 = vmatprep.subr.bf16.mxu1 %v8015_v6  ;;  %v7961_v6 = vld [vmem:[%s8237_s17 + $0x530] ss:$72 sps:$4 sm:$0xff]  }
 0x1e7   : > { %4363 = vmatmul.mubr.bf16.gmra.mrb[16].mxu1 %v7871_v1  ;;  %v7954_v1 = vld [vmem:[%s8237_s17 + $0x4c4] ss:$72 sps:$4 sm:$0xff]  }
 0x1e8   : > { %5215 = vmatmul.mubr.bf16.gmra.mrb[48].mxu0 %v7872_v2  ;;  %4372 = vmatprep.mubr.bf16.mxu1 %v7876_v3  ;;  %v7951_v2 = vld [vmem:[%s8237_s17 + $0x4a0] ss:$72 sps:$4 sm:$0xff]  }
 0x1e9   : > { %5224 = vmatprep.mubr.bf16.mxu0 %v7878_v4  ;;  %6526 = vmatpush1.bf16.msra.mxu1 %v8016_v7  ;;  %v7956_v3 = vld [vmem:[%s8237_s17 + $0x4c0] ss:$72 sps:$4 sm:$0xff]   ;;  %v7957_v4 = vld [vmem:[%s8237_s17 + $0x534] ss:$72 sps:$4 sm:$0xff]   ;;  %v7962_v7 = vld [vmem:[%s8237_s17 + $0x550] ss:$72 sps:$4 sm:$0xff]  }
 0x1ea   : > { %6511 = vmatprep.subr.bf16.mxu1 %v8017_v8  ;;  %v7963_v8 = vld [vmem:[%s8237_s17 + $0x5c4] ss:$72 sps:$4 sm:$0xff]  }
 0x1ed   : > { %6527 = vmatpush1.bf16.msra.mxu1 %v8018_v13  ;;  %v7971_v13 = vld [vmem:[%s8237_s17 + $0x674] ss:$72 sps:$4 sm:$0xff]  }
 0x1ee   : > { %6512 = vmatprep.subr.bf16.mxu1 %v8019_v14  ;;  %v7973_v14 = vld [vmem:[%s8237_s17 + $0x650] ss:$72 sps:$4 sm:$0xff]  }
 0x1ef   : > { %4373 = vmatmul.mubr.bf16.gmra.mrb[20].mxu1 %v7880_v9  ;;  %v7965_v9 = vld [vmem:[%s8237_s17 + $0x5e4] ss:$72 sps:$4 sm:$0xff]  }
 0x1f0   : > { %5225 = vmatmul.mubr.bf16.gmra.mrb[52].mxu0 %v7881_v10  ;;  %4382 = vmatprep.mubr.bf16.mxu1 %v7885_v11  ;;  %v7967_v10 = vld [vmem:[%s8237_s17 + $0x5c0] ss:$72 sps:$4 sm:$0xff]  }
 0x1f1   : > { %5234 = vmatprep.mubr.bf16.mxu0 %v7887_v12  ;;  %6528 = vmatpush1.bf16.msra.mxu1 %v8020_v15  ;;  %v7968_v11 = vld [vmem:[%s8237_s17 + $0x5e0] ss:$72 sps:$4 sm:$0xff]   ;;  %v7969_v12 = vld [vmem:[%s8237_s17 + $0x654] ss:$72 sps:$4 sm:$0xff]   ;;  %v7974_v15 = vld [vmem:[%s8237_s17 + $0x670] ss:$72 sps:$4 sm:$0xff]  }
 0x1f2   : > { %6513 = vmatprep.subr.bf16.mxu1 %v8021_v16  ;;  %v7975_v16 = vld [vmem:[%s8237_s17 + $0x6e4] ss:$72 sps:$4 sm:$0xff]  }
 0x1f5   : > { %6529 = vmatpush1.bf16.msra.mxu1 %v8022_v21  ;;  %v7983_v21 = vld [vmem:[%s8237_s17 + $0x794] ss:$72 sps:$4 sm:$0xff]  }
 0x1f6   : > { %6514 = vmatprep.subr.bf16.mxu1 %v8023_v22  ;;  %v7985_v22 = vld [vmem:[%s8237_s17 + $0x770] ss:$72 sps:$4 sm:$0xff]  }
 0x1f7   : > { %4383 = vmatmul.mubr.bf16.gmra.mrb[24].mxu1 %v7889_v17  ;;  %v7977_v17 = vld [vmem:[%s8237_s17 + $0x704] ss:$72 sps:$4 sm:$0xff]  }
 0x1f8   : > { %5235 = vmatmul.mubr.bf16.gmra.mrb[56].mxu0 %v7890_v18  ;;  %4392 = vmatprep.mubr.bf16.mxu1 %v7894_v19  ;;  %v7979_v18 = vld [vmem:[%s8237_s17 + $0x6e0] ss:$72 sps:$4 sm:$0xff]  }
 0x1f9   : > { %5244 = vmatprep.mubr.bf16.mxu0 %v7896_v20  ;;  %6530 = vmatpush1.bf16.msra.mxu1 %v8024_v23  ;;  %v7980_v19 = vld [vmem:[%s8237_s17 + $0x700] ss:$72 sps:$4 sm:$0xff]   ;;  %v7981_v20 = vld [vmem:[%s8237_s17 + $0x774] ss:$72 sps:$4 sm:$0xff]   ;;  %v7986_v23 = vld [vmem:[%s8237_s17 + $0x790] ss:$72 sps:$4 sm:$0xff]  }
 0x1fa   : > { %6515 = vmatprep.subr.bf16.mxu1 %v8025_v24  ;;  %v7987_v24 = vld [vmem:[%s8237_s17 + $0x804] ss:$72 sps:$4 sm:$0xff]  }
 0x1fd   : > { %6531 = vmatpush1.bf16.msra.mxu1 %v8026_v29  ;;  %v7995_v29 = vld [vmem:[%s8237_s17 + $0x8b4] ss:$72 sps:$4 sm:$0xff]  }
 0x1fe   : > { %6516 = vmatprep.subr.bf16.mxu1 %v8027_v30  ;;  %v7997_v30 = vld [vmem:[%s8237_s17 + $0x890] ss:$72 sps:$4 sm:$0xff]  }
 0x1ff   : > { %4393 = vmatmul.mubr.bf16.gmra.mrb[28].mxu1 %v7898_v25  ;;  %v7989_v25 = vld [vmem:[%s8237_s17 + $0x824] ss:$72 sps:$4 sm:$0xff]  }
 0x200   : > { %5245 = vmatmul.mubr.bf16.gmra.mrb[60].mxu0 %v7899_v26  ;;  %4402 = vmatprep.mubr.bf16.mxu1 %v7903_v27  ;;  %v7991_v26 = vld [vmem:[%s8237_s17 + $0x800] ss:$72 sps:$4 sm:$0xff]  }
 0x201   : > { %5287 = vmatprep.mubr.bf16.mxu0 %v7907_v28  ;;  %6532 = vmatpush1.bf16.msra.mxu1 %v8028_v31  ;;  %v7992_v27 = vld [vmem:[%s8237_s17 + $0x820] ss:$72 sps:$4 sm:$0xff]   ;;  %v7993_v28 = vld [vmem:[%s8237_s17 + $0x894] ss:$72 sps:$4 sm:$0xff]   ;;  %v7998_v31 = vld [vmem:[%s8237_s17 + $0x8b0] ss:$72 sps:$4 sm:$0xff]  }
 0x202   : > { %6517 = vmatprep.subr.bf16.mxu1 %v8029_v32 }
 0x205   : > { %6533 = vmatpush1.bf16.msra.mxu1 %v8030_v37 }
 0x207   : > { %4403 = vmatmul.mubr.bf16.gmra.mrb[32].mxu1 %v7908_v34 }
 0x208   : > { %5288 = vmatmul.mubr.bf16.vlgmr.msra.gmra.mrb[0].mxu0 %v7905_v33  ;;  %4412 = vmatprep.mubr.bf16.mxu1 %v7909_v35 }
 0x209   : > { %5297 = vmatprep.mubr.bf16.mxu0 %v7911_v36 }
 0x20f   : > { %4413 = vmatmul.mubr.bf16.gmra.mrb[36].mxu1 %v7913_v38 }
 0x210   : > { %5298 = vmatmul.mubr.bf16.gmra.mrb[4].mxu0 %v7914_v39  ;;  %4422 = vmatprep.mubr.bf16.mxu1 %v7915_v40 }
 0x211   : > { %5307 = vmatprep.mubr.bf16.mxu0 %v7917_v41 }
 0x217   : > { %4423 = vmatmul.mubr.bf16.gmra.mrb[40].mxu1 %v7919_v42 }
 0x218   : > { %5308 = vmatmul.mubr.bf16.gmra.mrb[8].mxu0 %v7920_v43  ;;  %4432 = vmatprep.mubr.bf16.mxu1 %v7921_v44 }
 0x219   : > { %5317 = vmatprep.mubr.bf16.mxu0 %v7923_v45 }
 0x21f   : > { %4433 = vmatmul.mubr.bf16.gmra.mrb[44].mxu1 %v7925_v46 }
 0x220   : > { %5318 = vmatmul.mubr.bf16.gmra.mrb[12].mxu0 %v7926_v47  ;;  %4442 = vmatprep.mubr.bf16.mxu1 %v7927_v48 }
 0x221   : > { %5327 = vmatprep.mubr.bf16.mxu0 %v7929_v49 }
 0x227   : > { %4443 = vmatmul.mubr.bf16.gmra.mrb[48].mxu1 %v7931_v50 }
 0x228   : > { %5328 = vmatmul.mubr.bf16.gmra.mrb[16].mxu0 %v7932_v51  ;;  %4452 = vmatprep.mubr.bf16.mxu1 %v7933_v52 }
 0x229   : > { %5337 = vmatprep.mubr.bf16.mxu0 %v7935_v53 }
 0x22f   : > { %4453 = vmatmul.mubr.bf16.gmra.mrb[52].mxu1 %v7937_v54 }
 0x230   : > { %5338 = vmatmul.mubr.bf16.gmra.mrb[20].mxu0 %v7938_v55  ;;  %4462 = vmatprep.mubr.bf16.mxu1 %v7939_v56  ;;  %v821_v56 = vlaneseq }
 0x231   : > { %5347 = vmatprep.mubr.bf16.mxu0 %v7941_v57 }
 0x237   : > { %4463 = vmatmul.mubr.bf16.gmra.mrb[56].mxu1 %v7943_v58 }
 0x238   : > { %5348 = vmatmul.mubr.bf16.gmra.mrb[24].mxu0 %v7944_v59  ;;  %4472 = vmatprep.mubr.bf16.mxu1 %v7945_v60  ;;  %v822_v60 = vshrl.u32 %v821_v56, 7 }
 0x239   : > { %5357 = vmatprep.mubr.bf16.mxu0 %v7947_v61 }
 0x23f   : > { %4473 = vmatmul.mubr.bf16.gmra.mrb[60].mxu1 %v7949_v62  ;;  %v823_v62 = vsub.s32 0, %v822_v60 }
 0x240   : > { %5358 = vmatmul.mubr.bf16.gmra.mrb[28].mxu0 %v7950_v63  ;;  %4595 = vmatprep.mubr.bf16.mxu1 %v7953_v0  ;;  %v819_v63 = vld [vmem:[%s9544_s2] sm:$0x3]  ;;  %v827_v0 = vsub.s32 1, %v822_v60 }
 0x241   : > { %5367 = vmatprep.mubr.bf16.mxu0 %v7954_v1 }
 0x247   : > { %4596 = vmatmul.mubr.bf16.vlgmr.msra.gmra.mrb[32].mxu1 %v7951_v2 }
 0x248   : > { %5368 = vmatmul.mubr.bf16.gmra.mrb[32].mxu0 %v7956_v3  ;;  %4605 = vmatprep.mubr.bf16.mxu1 %v7957_v4  ;;  %v9401_v4 = vrot.slane %v819_v63, %v823_v62 }
 0x249   : > { %5377 = vmatprep.mubr.bf16.mxu0 %v7959_v5 }
 0x24f   : > { %4606 = vmatmul.mubr.bf16.gmra.mrb[36].mxu1 %v7961_v6  ;;  %v9405_v6 = vrot.slane %v819_v63, %v827_v0 }
 0x250   : > { %5378 = vmatmul.mubr.bf16.gmra.mrb[36].mxu0 %v7962_v7  ;;  %4615 = vmatprep.mubr.bf16.mxu1 %v7963_v8 }
 0x251   : > { %5387 = vmatprep.mubr.bf16.mxu0 %v7965_v9 }
 0x257   : > { %4616 = vmatmul.mubr.bf16.gmra.mrb[40].mxu1 %v7967_v10 }
 0x258   : > { %5388 = vmatmul.mubr.bf16.gmra.mrb[40].mxu0 %v7968_v11  ;;  %4625 = vmatprep.mubr.bf16.mxu1 %v7969_v12 }
 0x259   : > { %5397 = vmatprep.mubr.bf16.mxu0 %v7971_v13 }
 0x25f   : > { %4626 = vmatmul.mubr.bf16.gmra.mrb[44].mxu1 %v7973_v14 }
 0x260   : > { %5398 = vmatmul.mubr.bf16.gmra.mrb[44].mxu0 %v7974_v15  ;;  %4635 = vmatprep.mubr.bf16.mxu1 %v7975_v16 }
 0x261   : > { %5407 = vmatprep.mubr.bf16.mxu0 %v7977_v17 }
 0x267   : > { %4636 = vmatmul.mubr.bf16.gmra.mrb[48].mxu1 %v7979_v18 }
 0x268   : > { %5408 = vmatmul.mubr.bf16.gmra.mrb[48].mxu0 %v7980_v19  ;;  %4645 = vmatprep.mubr.bf16.mxu1 %v7981_v20 }
 0x269   : > { %5417 = vmatprep.mubr.bf16.mxu0 %v7983_v21 }
 0x26f   : > { %4646 = vmatmul.mubr.bf16.gmra.mrb[52].mxu1 %v7985_v22 }
 0x270   : > { %5418 = vmatmul.mubr.bf16.gmra.mrb[52].mxu0 %v7986_v23  ;;  %4655 = vmatprep.mubr.bf16.mxu1 %v7987_v24 }
 0x271   : > { %5427 = vmatprep.mubr.bf16.mxu0 %v7989_v25 }
 0x277   : > { %4656 = vmatmul.mubr.bf16.gmra.mrb[56].mxu1 %v7991_v26 }
 0x278   : > { %5428 = vmatmul.mubr.bf16.gmra.mrb[56].mxu0 %v7992_v27  ;;  %4665 = vmatprep.mubr.bf16.mxu1 %v7993_v28 }
 0x279   : > { %5437 = vmatprep.mubr.bf16.mxu0 %v7995_v29 }
 0x27f   : > { %4666 = vmatmul.mubr.bf16.gmra.mrb[60].mxu1 %v7997_v30 }
 0x280   : > { %5438 = vmatmul.mubr.bf16.gmra.mrb[60].mxu0 %v7998_v31 }
 0x29a   : > { %v4324_v32 = vpop.f32.mrb[0].mxu1 }
 0x29b   : > { %v4326_v33 = vpop.f32.mrb[1].mxu1  ;;  %v6534_v7 = vadd.f32 %v4324_v32, %v9401_v4 }
 0x29c   : > { %v4328_v34 = vpop.f32.mrb[2].mxu1  ;;  %v6536_v8 = vadd.f32 %v4326_v33, %v9405_v6 }
 0x29d   : > { %v4330_v35 = vpop.f32.mrb[3].mxu1  ;;  %v6538_v10 = vadd.f32 %v4328_v34, %v9401_v4 }
 0x29e   : > { %v6540_v13 = vadd.f32 %v4330_v35, %v9405_v6 }
 0x2a2   : > { %v4334_v36 = vpop.f32.mrb[4].mxu1 }
 0x2a3   : > { %v4336_v37 = vpop.f32.mrb[5].mxu1  ;;  %v6542_v24 = vadd.f32 %v4334_v36, %v9401_v4 }
 0x2a4   : > { %v4338_v38 = vpop.f32.mrb[6].mxu1  ;;  %v6544_v25 = vadd.f32 %v4336_v37, %v9405_v6 }
 0x2a5   : > { %v4340_v39 = vpop.f32.mrb[7].mxu1  ;;  %v6546_v28 = vadd.f32 %v4338_v38, %v9401_v4 }
 0x2a6   : > { %v6548_v31 = vadd.f32 %v4340_v39, %v9405_v6 }
 0x2aa   : > { %v9352_v40 = vpop.f32.mrb[8].mxu1 }
 0x2ab   : > { %v9354_v41 = vpop.f32.mrb[9].mxu1  ;;  %v6550_v38 = vadd.f32 %v9352_v40, %v9401_v4 }
 0x2ac   : > { %v9356_v42 = vpop.f32.mrb[10].mxu1  ;;  %v6552_v0 = vadd.f32 %v9354_v41, %v9405_v6 }
 0x2ad   : > { %v9358_v43 = vpop.f32.mrb[11].mxu1 }
 0x2b2   : > { %v9360_v44 = vpop.f32.mrb[12].mxu1 }
 0x2b3   : > { %v9362_v45 = vpop.f32.mrb[13].mxu1 }
 0x2b4   : > { %v9364_v46 = vpop.f32.mrb[14].mxu1 }
 0x2b5   : > { %v9366_v47 = vpop.f32.mrb[15].mxu1 }
 0x2ba   : > { %v9368_v48 = vpop.f32.mrb[16].mxu1 }
 0x2bb   : > { %v9370_v49 = vpop.f32.mrb[17].mxu1 }
 0x2bc   : > { %v9372_v50 = vpop.f32.mrb[18].mxu1 }
 0x2bd   : > { %v9374_v51 = vpop.f32.mrb[19].mxu1 }
 0x2c2   : > { %v9376_v52 = vpop.f32.mrb[20].mxu1 }
 0x2c3   : > { %v9378_v53 = vpop.f32.mrb[21].mxu1 }
 0x2c4   : > { %v9380_v54 = vpop.f32.mrb[22].mxu1 }
 0x2c5   : > { %v9382_v55 = vpop.f32.mrb[23].mxu1 }
 0x2ca   : > { %v9384_v57 = vpop.f32.mrb[24].mxu1 }
 0x2cb   : > { %v9386_v58 = vpop.f32.mrb[25].mxu1 }
 0x2cc   : > { %v9388_v59 = vpop.f32.mrb[26].mxu1 }
 0x2cd   : > { %v9390_v61 = vpop.f32.mrb[27].mxu1 }
 0x2d2   : > { %v9395_v1 = vpop.f32.mrb[28].mxu1 }
 0x2d3   : > { %v9397_v2 = vpop.f32.mrb[29].mxu1 }
 0x2d4   : > { %v9399_v3 = vpop.f32.mrb[30].mxu1 }
 0x2d5   : > { %v9403_v5 = vpop.f32.mrb[31].mxu1 }
 0x2db   : > { %v5289_v9 = vpop.f32.mrb[0].mxu0 }
 0x2dc   : > { %v6535_v11 = vadd.f32 %v6534_v7, %v5289_v9  ;;  %v5291_v12 = vpop.f32.mrb[1].mxu0 }
 0x2dd   : > { %v6537_v14 = vadd.f32 %v6536_v8, %v5291_v12  ;;  %v5293_v15 = vpop.f32.mrb[2].mxu0  ;;  %v6554_v8 = vadd.f32 %v9356_v42, %v9401_v4  ;;  %v6558_v42 = vadd.f32 %v9360_v44, %v9401_v4 }
 0x2de   : > { %v5448_v16 = vmax.f32 %v6535_v11, 0.0  ;;  %v6539_v17 = vadd.f32 %v6538_v10, %v5293_v15  ;;  %v5295_v18 = vpop.f32.mrb[3].mxu0  ;;  %v6556_v11 = vadd.f32 %v9358_v43, %v9405_v6 }
 0x2df   : > { %v5449_v19 = vmax.f32 %v6537_v14, 0.0  ;;  %v6541_v20 = vadd.f32 %v6540_v13, %v5295_v18 }
 0x2e0   : > { %v5450_v21 = vmax.f32 %v6539_v17, 0.0 }
 0x2e1   : > { %v6470_v22 = vpack.c.bf16 %v5449_v19, %v5448_v16  ;;  %v5451_v23 = vmax.f32 %v6541_v20, 0.0  ;;  %v6560_v20 = vadd.f32 %v9362_v45, %v9405_v6 }
 0x2e3   : > { %5704 = vst [vmem:[%s9415_s22] sm:$0xff] %v6470_v22  ;;  %v6471_v26 = vpack.c.bf16 %v5451_v23, %v5450_v21  ;;  %v5299_v27 = vpop.f32.mrb[4].mxu0  ;;  %v6562_v22 = vadd.f32 %v9364_v46, %v9401_v4  ;;  %v6566_v46 = vadd.f32 %v9368_v48, %v9401_v4 }
 0x2e4   : > { %v6543_v29 = vadd.f32 %v6542_v24, %v5299_v27  ;;  %v5301_v30 = vpop.f32.mrb[5].mxu0 }
 0x2e5   : > { %5705 = vst [vmem:[%s9415_s22 + $0x8] sm:$0xff] %v6471_v26  ;;  %v6545_v32 = vadd.f32 %v6544_v25, %v5301_v30  ;;  %v5303_v33 = vpop.f32.mrb[6].mxu0  ;;  %v6564_v25 = vadd.f32 %v9366_v47, %v9405_v6 }
 0x2e6   : > { %v5452_v34 = vmax.f32 %v6543_v29, 0.0  ;;  %v6547_v35 = vadd.f32 %v6546_v28, %v5303_v33  ;;  %v5305_v56 = vpop.f32.mrb[7].mxu0 }
 0x2e7   : > { %v5453_v36 = vmax.f32 %v6545_v32, 0.0  ;;  %v6549_v60 = vadd.f32 %v6548_v31, %v5305_v56  ;;  %v6570_v56 = vadd.f32 %v9372_v50, %v9401_v4  ;;  %v6574_v50 = vadd.f32 %v9376_v52, %v9401_v4 }
 0x2e8   : > { %v5454_v37 = vmax.f32 %v6547_v35, 0.0 }
 0x2e9   : > { %v6472_v62 = vpack.c.bf16 %v5453_v36, %v5452_v34  ;;  %v5455_v63 = vmax.f32 %v6549_v60, 0.0  ;;  %v6568_v34 = vadd.f32 %v9370_v49, %v9405_v6 }
 0x2eb   : > { %5706 = vst [vmem:[%s9415_s22 + $0x10] sm:$0xff] %v6472_v62  ;;  %v6473_v39 = vpack.c.bf16 %v5455_v63, %v5454_v37  ;;  %v5309_v7 = vpop.f32.mrb[8].mxu0  ;;  %v6572_v37 = vadd.f32 %v9374_v51, %v9405_v6 }
 0x2ec   : > { %v6551_v9 = vadd.f32 %v6550_v38, %v5309_v7  ;;  %v5311_v10 = vpop.f32.mrb[9].mxu0 }
 0x2ed   : > { %5707 = vst [vmem:[%s9415_s22 + $0x18] sm:$0xff] %v6473_v39  ;;  %v6553_v12 = vadd.f32 %v6552_v0, %v5311_v10  ;;  %v5313_v13 = vpop.f32.mrb[10].mxu0  ;;  %v6576_v10 = vadd.f32 %v9378_v53, %v9405_v6 }
 0x2ee   : > { %v5456_v14 = vmax.f32 %v6551_v9, 0.0  ;;  %v6555_v40 = vadd.f32 %v6554_v8, %v5313_v13  ;;  %v5315_v15 = vpop.f32.mrb[11].mxu0 }
 0x2ef   : > { %v5457_v41 = vmax.f32 %v6553_v12, 0.0  ;;  %v6557_v16 = vadd.f32 %v6556_v11, %v5315_v15  ;;  %v6578_v12 = vadd.f32 %v9380_v54, %v9401_v4  ;;  %v6582_v54 = vadd.f32 %v9384_v57, %v9401_v4 }
 0x2f0   : > { %v5458_v17 = vmax.f32 %v6555_v40, 0.0  ;;  %v6580_v40 = vadd.f32 %v9382_v55, %v9405_v6 }
 0x2f1   : > { %v6474_v18 = vpack.c.bf16 %v5457_v41, %v5456_v14  ;;  %v5459_v19 = vmax.f32 %v6557_v16, 0.0 }
 0x2f3   : > { %5708 = vst [vmem:[%s9415_s22 + $0x20] sm:$0xff] %v6474_v18  ;;  %v6475_v43 = vpack.c.bf16 %v5459_v19, %v5458_v17  ;;  %v5319_v21 = vpop.f32.mrb[12].mxu0 }
 0x2f4   : > { %v6559_v23 = vadd.f32 %v6558_v42, %v5319_v21  ;;  %v5321_v24 = vpop.f32.mrb[13].mxu0 }
 0x2f5   : > { %5709 = vst [vmem:[%s9415_s22 + $0x28] sm:$0xff] %v6475_v43  ;;  %v6561_v26 = vadd.f32 %v6560_v20, %v5321_v24  ;;  %v5323_v27 = vpop.f32.mrb[14].mxu0  ;;  %v6584_v43 = vadd.f32 %v9386_v58, %v9405_v6 }
 0x2f6   : > { %v5460_v28 = vmax.f32 %v6559_v23, 0.0  ;;  %v6563_v44 = vadd.f32 %v6562_v22, %v5323_v27  ;;  %v5325_v29 = vpop.f32.mrb[15].mxu0  ;;  %v6586_v22 = vadd.f32 %v9388_v59, %v9401_v4  ;;  %v6590_v59 = vadd.f32 %v9395_v1, %v9401_v4 }
 0x2f7   : > { %v5461_v45 = vmax.f32 %v6561_v26, 0.0  ;;  %v6565_v30 = vadd.f32 %v6564_v25, %v5325_v29  ;;  %v6588_v25 = vadd.f32 %v9390_v61, %v9405_v6 }
 0x2f8   : > { %v5462_v31 = vmax.f32 %v6563_v44, 0.0 }
 0x2f9   : > { %v6476_v32 = vpack.c.bf16 %v5461_v45, %v5460_v28  ;;  %v5463_v33 = vmax.f32 %v6565_v30, 0.0 }
 0x2fb   : > { %5710 = vst [vmem:[%s9415_s22 + $0x30] sm:$0xff] %v6476_v32  ;;  %v6477_v47 = vpack.c.bf16 %v5463_v33, %v5462_v31  ;;  %v5329_v35 = vpop.f32.mrb[16].mxu0  ;;  %v6592_v32 = vadd.f32 %v9397_v2, %v9405_v6 }
 0x2fc   : > { %v6567_v36 = vadd.f32 %v6566_v46, %v5329_v35  ;;  %v5331_v60 = vpop.f32.mrb[17].mxu0  ;;  %v6594_v46 = vadd.f32 %v9399_v3, %v9401_v4  ;;  %v6596_v35 = vadd.f32 %v9403_v5, %v9405_v6 }
 0x2fd   : > { %5711 = vst [vmem:[%s9415_s22 + $0x38] sm:$0xff] %v6477_v47  ;;  %v6569_v62 = vadd.f32 %v6568_v34, %v5331_v60  ;;  %v5333_v63 = vpop.f32.mrb[18].mxu0 }
 0x2fe   : > { %v5464_v38 = vmax.f32 %v6567_v36, 0.0  ;;  %v6571_v48 = vadd.f32 %v6570_v56, %v5333_v63  ;;  %v5335_v0 = vpop.f32.mrb[19].mxu0 }
 0x2ff   : > { %v5465_v49 = vmax.f32 %v6569_v62, 0.0  ;;  %v6573_v39 = vadd.f32 %v6572_v37, %v5335_v0 }
 0x300   : > { %v5466_v7 = vmax.f32 %v6571_v48, 0.0 }
 0x301   : > { %v6478_v8 = vpack.c.bf16 %v5465_v49, %v5464_v38  ;;  %v5467_v9 = vmax.f32 %v6573_v39, 0.0 }
 0x303   : > { %5712 = vst [vmem:[%s9415_s22 + $0x40] sm:$0xff] %v6478_v8  ;;  %v6479_v51 = vpack.c.bf16 %v5467_v9, %v5466_v7  ;;  %v5339_v11 = vpop.f32.mrb[20].mxu0 }
 0x304   : > { %v6575_v13 = vadd.f32 %v6574_v50, %v5339_v11  ;;  %v5341_v14 = vpop.f32.mrb[21].mxu0 }
 0x305   : > { %5713 = vst [vmem:[%s9415_s22 + $0x48] sm:$0xff] %v6479_v51  ;;  %v6577_v15 = vadd.f32 %v6576_v10, %v5341_v14  ;;  %v5343_v41 = vpop.f32.mrb[22].mxu0 }
 0x306   : > { %v5468_v16 = vmax.f32 %v6575_v13, 0.0  ;;  %v6579_v52 = vadd.f32 %v6578_v12, %v5343_v41  ;;  %v5345_v17 = vpop.f32.mrb[23].mxu0 }
 0x307   : > { %v5469_v53 = vmax.f32 %v6577_v15, 0.0  ;;  %v6581_v18 = vadd.f32 %v6580_v40, %v5345_v17 }
 0x308   : > { %v5470_v19 = vmax.f32 %v6579_v52, 0.0 }
 0x309   : > { %v6480_v42 = vpack.c.bf16 %v5469_v53, %v5468_v16  ;;  %v5471_v20 = vmax.f32 %v6581_v18, 0.0 }
 0x30b   : > { %5714 = vst [vmem:[%s9415_s22 + $0x50] sm:$0xff] %v6480_v42  ;;  %v6481_v55 = vpack.c.bf16 %v5471_v20, %v5470_v19  ;;  %v5349_v21 = vpop.f32.mrb[24].mxu0 }
 0x30c   : > { %v6583_v23 = vadd.f32 %v6582_v54, %v5349_v21  ;;  %v5351_v24 = vpop.f32.mrb[25].mxu0 }
 0x30d   : > { %5715 = vst [vmem:[%s9415_s22 + $0x58] sm:$0xff] %v6481_v55  ;;  %v6585_v26 = vadd.f32 %v6584_v43, %v5351_v24  ;;  %v5353_v27 = vpop.f32.mrb[26].mxu0 }
 0x30e   : > { %v5472_v28 = vmax.f32 %v6583_v23, 0.0  ;;  %v6587_v57 = vadd.f32 %v6586_v22, %v5353_v27  ;;  %v5355_v44 = vpop.f32.mrb[27].mxu0 }
 0x30f   : > { %v5473_v58 = vmax.f32 %v6585_v26, 0.0  ;;  %v6589_v29 = vadd.f32 %v6588_v25, %v5355_v44 }
 0x310   : > { %v5474_v45 = vmax.f32 %v6587_v57, 0.0 }
 0x311   : > { %v6482_v30 = vpack.c.bf16 %v5473_v58, %v5472_v28  ;;  %v5475_v31 = vmax.f32 %v6589_v29, 0.0 }
 0x313   : > { %5716 = vst [vmem:[%s9415_s22 + $0x60] sm:$0xff] %v6482_v30  ;;  %v6483_v61 = vpack.c.bf16 %v5475_v31, %v5474_v45  ;;  %v5359_v33 = vpop.f32.mrb[28].mxu0 }
 0x314   : > { %v6591_v34 = vadd.f32 %v6590_v59, %v5359_v33  ;;  %v5361_v47 = vpop.f32.mrb[29].mxu0 }
 0x315   : > { %5717 = vst [vmem:[%s9415_s22 + $0x68] sm:$0xff] %v6483_v61  ;;  %v6593_v56 = vadd.f32 %v6592_v32, %v5361_v47  ;;  %v5363_v36 = vpop.f32.mrb[30].mxu0 }
 0x316   : > { %v5476_v1 = vmax.f32 %v6591_v34, 0.0  ;;  %v6595_v60 = vadd.f32 %v6594_v46, %v5363_v36  ;;  %v5365_v37 = vpop.f32.mrb[31].mxu0 }
 0x317   : > { %v5477_v2 = vmax.f32 %v6593_v56, 0.0  ;;  %v6597_v62 = vadd.f32 %v6596_v35, %v5365_v37 }
 0x318   : > { %v5478_v63 = vmax.f32 %v6595_v60, 0.0 }
 0x319   : > { %v6484_v38 = vpack.c.bf16 %v5477_v2, %v5476_v1  ;;  %v5479_v48 = vmax.f32 %v6597_v62, 0.0 }
 0x31a   : > { %v4597_v3 = vpop.f32.mrb[32].mxu1 }
 0x31b   : > { %5718 = vst [vmem:[%s9415_s22 + $0x70] sm:$0xff] %v6484_v38  ;;  %v6485_v0 = vpack.c.bf16 %v5479_v48, %v5478_v63  ;;  %v5369_v49 = vpop.f32.mrb[32].mxu0  ;;  %v6598_v39 = vadd.f32 %v4597_v3, %v9401_v4  ;;  %v4599_v7 = vpop.f32.mrb[33].mxu1 }
 0x31c   : > { %v5371_v5 = vpop.f32.mrb[33].mxu0  ;;  %v6600_v8 = vadd.f32 %v4599_v7, %v9405_v6  ;;  %v4601_v9 = vpop.f32.mrb[34].mxu1 }
 0x31d   : > { %5719 = vst [vmem:[%s9415_s22 + $0x78] sm:$0xff] %v6485_v0  ;;  %v5373_v50 = vpop.f32.mrb[34].mxu0  ;;  %v6599_v10 = vadd.f32 %v6598_v39, %v5369_v49  ;;  %v6602_v51 = vadd.f32 %v4601_v9, %v9401_v4  ;;  %v4603_v11 = vpop.f32.mrb[35].mxu1 }
 0x31e   : > { %v5375_v12 = vpop.f32.mrb[35].mxu0  ;;  %v6601_v13 = vadd.f32 %v6600_v8, %v5371_v5  ;;  %v6604_v14 = vadd.f32 %v4603_v11, %v9405_v6 }
 0x31f   : > { %v5480_v40 = vmax.f32 %v6599_v10, 0.0  ;;  %v6603_v15 = vadd.f32 %v6602_v51, %v5373_v50 }
 0x320   : > { %v5481_v41 = vmax.f32 %v6601_v13, 0.0  ;;  %v6605_v16 = vadd.f32 %v6604_v14, %v5375_v12 }
 0x321   : > { %v5482_v52 = vmax.f32 %v6603_v15, 0.0 }
 0x322   : > { %v6486_v17 = vpack.c.bf16 %v5481_v41, %v5480_v40  ;;  %v5483_v53 = vmax.f32 %v6605_v16, 0.0  ;;  %v4607_v18 = vpop.f32.mrb[36].mxu1 }
 0x323   : > { %v5379_v19 = vpop.f32.mrb[36].mxu0  ;;  %v6606_v42 = vadd.f32 %v4607_v18, %v9401_v4  ;;  %v4609_v20 = vpop.f32.mrb[37].mxu1 }
 0x324   : > { %v5381_v54 = vpop.f32.mrb[37].mxu0  ;;  %5720 = vst [vmem:[%s9415_s22 + $0x80] sm:$0xff] %v6486_v17  ;;  %v6487_v43 = vpack.c.bf16 %v5483_v53, %v5482_v52  ;;  %v6608_v55 = vadd.f32 %v4609_v20, %v9405_v6  ;;  %v4611_v21 = vpop.f32.mrb[38].mxu1 }
 0x325   : > { %v5383_v22 = vpop.f32.mrb[38].mxu0  ;;  %v6607_v23 = vadd.f32 %v6606_v42, %v5379_v19  ;;  %v6610_v24 = vadd.f32 %v4611_v21, %v9401_v4  ;;  %v4613_v25 = vpop.f32.mrb[39].mxu1 }
 0x326   : > { %v5385_v26 = vpop.f32.mrb[39].mxu0  ;;  %5721 = vst [vmem:[%s9415_s22 + $0x88] sm:$0xff] %v6487_v43  ;;  %v6609_v27 = vadd.f32 %v6608_v55, %v5381_v54  ;;  %v6612_v28 = vadd.f32 %v4613_v25, %v9405_v6 }
 0x327   : > { %v5484_v57 = vmax.f32 %v6607_v23, 0.0  ;;  %v6611_v44 = vadd.f32 %v6610_v24, %v5383_v22 }
 0x328   : > { %v5485_v58 = vmax.f32 %v6609_v27, 0.0  ;;  %v6613_v29 = vadd.f32 %v6612_v28, %v5385_v26 }
 0x329   : > { %v5486_v45 = vmax.f32 %v6611_v44, 0.0 }
 0x32a   : > { %v6488_v30 = vpack.c.bf16 %v5485_v58, %v5484_v57  ;;  %v5487_v31 = vmax.f32 %v6613_v29, 0.0  ;;  %v4617_v59 = vpop.f32.mrb[40].mxu1 }
 0x32b   : > { %v5389_v32 = vpop.f32.mrb[40].mxu0  ;;  %v6614_v61 = vadd.f32 %v4617_v59, %v9401_v4  ;;  %v4619_v33 = vpop.f32.mrb[41].mxu1 }
 0x32c   : > { %v5391_v46 = vpop.f32.mrb[41].mxu0  ;;  %5722 = vst [vmem:[%s9415_s22 + $0x90] sm:$0xff] %v6488_v30  ;;  %v6489_v34 = vpack.c.bf16 %v5487_v31, %v5486_v45  ;;  %v6616_v47 = vadd.f32 %v4619_v33, %v9405_v6  ;;  %v4621_v35 = vpop.f32.mrb[42].mxu1 }
 0x32d   : > { %v5393_v56 = vpop.f32.mrb[42].mxu0  ;;  %v6615_v36 = vadd.f32 %v6614_v61, %v5389_v32  ;;  %v6618_v1 = vadd.f32 %v4621_v35, %v9401_v4  ;;  %v4623_v60 = vpop.f32.mrb[43].mxu1 }
 0x32e   : > { %v5395_v37 = vpop.f32.mrb[43].mxu0  ;;  %5723 = vst [vmem:[%s9415_s22 + $0x98] sm:$0xff] %v6489_v34  ;;  %v6617_v2 = vadd.f32 %v6616_v47, %v5391_v46  ;;  %v6620_v62 = vadd.f32 %v4623_v60, %v9405_v6 }
 0x32f   : > { %v5488_v63 = vmax.f32 %v6615_v36, 0.0  ;;  %v6619_v38 = vadd.f32 %v6618_v1, %v5393_v56 }
 0x330   : > { %v5489_v48 = vmax.f32 %v6617_v2, 0.0  ;;  %v6621_v0 = vadd.f32 %v6620_v62, %v5395_v37 }
 0x331   : > { %v5490_v3 = vmax.f32 %v6619_v38, 0.0 }
 0x332   : > { %v6490_v49 = vpack.c.bf16 %v5489_v48, %v5488_v63  ;;  %v5491_v39 = vmax.f32 %v6621_v0, 0.0  ;;  %v4627_v7 = vpop.f32.mrb[44].mxu1 }
 0x333   : > { %v5399_v5 = vpop.f32.mrb[44].mxu0  ;;  %v6622_v8 = vadd.f32 %v4627_v7, %v9401_v4  ;;  %v4629_v9 = vpop.f32.mrb[45].mxu1 }
 0x334   : > { %v5401_v50 = vpop.f32.mrb[45].mxu0  ;;  %5724 = vst [vmem:[%s9415_s22 + $0xa0] sm:$0xff] %v6490_v49  ;;  %v6491_v10 = vpack.c.bf16 %v5491_v39, %v5490_v3  ;;  %v6624_v51 = vadd.f32 %v4629_v9, %v9405_v6  ;;  %v4631_v11 = vpop.f32.mrb[46].mxu1 }
 0x335   : > { %v5403_v12 = vpop.f32.mrb[46].mxu0  ;;  %v6623_v13 = vadd.f32 %v6622_v8, %v5399_v5  ;;  %v6626_v14 = vadd.f32 %v4631_v11, %v9401_v4  ;;  %v4633_v40 = vpop.f32.mrb[47].mxu1 }
 0x336   : > { %v5405_v15 = vpop.f32.mrb[47].mxu0  ;;  %5725 = vst [vmem:[%s9415_s22 + $0xa8] sm:$0xff] %v6491_v10  ;;  %v6625_v41 = vadd.f32 %v6624_v51, %v5401_v50  ;;  %v6628_v16 = vadd.f32 %v4633_v40, %v9405_v6 }
 0x337   : > { %v5492_v52 = vmax.f32 %v6623_v13, 0.0  ;;  %v6627_v17 = vadd.f32 %v6626_v14, %v5403_v12 }
 0x338   : > { %v5493_v53 = vmax.f32 %v6625_v41, 0.0  ;;  %v6629_v18 = vadd.f32 %v6628_v16, %v5405_v15 }
 0x339   : > { %v5494_v19 = vmax.f32 %v6627_v17, 0.0 }
 0x33a   : > { %v6492_v42 = vpack.c.bf16 %v5493_v53, %v5492_v52  ;;  %v5495_v20 = vmax.f32 %v6629_v18, 0.0  ;;  %v4637_v54 = vpop.f32.mrb[48].mxu1 }
 0x33b   : > { %v5409_v43 = vpop.f32.mrb[48].mxu0  ;;  %v6630_v55 = vadd.f32 %v4637_v54, %v9401_v4  ;;  %v4639_v21 = vpop.f32.mrb[49].mxu1 }
 0x33c   : > { %v5411_v22 = vpop.f32.mrb[49].mxu0  ;;  %5726 = vst [vmem:[%s9415_s22 + $0xb0] sm:$0xff] %v6492_v42  ;;  %v6493_v23 = vpack.c.bf16 %v5495_v20, %v5494_v19  ;;  %v6632_v24 = vadd.f32 %v4639_v21, %v9405_v6  ;;  %v4641_v25 = vpop.f32.mrb[50].mxu1 }
 0x33d   : > { %v5413_v26 = vpop.f32.mrb[50].mxu0  ;;  %v6631_v27 = vadd.f32 %v6630_v55, %v5409_v43  ;;  %v6634_v28 = vadd.f32 %v4641_v25, %v9401_v4  ;;  %v4643_v57 = vpop.f32.mrb[51].mxu1 }
 0x33e   : > { %v5415_v44 = vpop.f32.mrb[51].mxu0  ;;  %5727 = vst [vmem:[%s9415_s22 + $0xb8] sm:$0xff] %v6493_v23  ;;  %v6633_v58 = vadd.f32 %v6632_v24, %v5411_v22  ;;  %v6636_v29 = vadd.f32 %v4643_v57, %v9405_v6 }
 0x33f   : > { %v5496_v45 = vmax.f32 %v6631_v27, 0.0  ;;  %v6635_v30 = vadd.f32 %v6634_v28, %v5413_v26 }
 0x340   : > { %v5497_v31 = vmax.f32 %v6633_v58, 0.0  ;;  %v6637_v59 = vadd.f32 %v6636_v29, %v5415_v44 }
 0x341   : > { %v5498_v32 = vmax.f32 %v6635_v30, 0.0 }
 0x342   : > { %v6494_v61 = vpack.c.bf16 %v5497_v31, %v5496_v45  ;;  %v5499_v33 = vmax.f32 %v6637_v59, 0.0  ;;  %v4647_v46 = vpop.f32.mrb[52].mxu1 }
 0x343   : > { %v5419_v34 = vpop.f32.mrb[52].mxu0  ;;  %v6638_v47 = vadd.f32 %v4647_v46, %v9401_v4  ;;  %v4649_v35 = vpop.f32.mrb[53].mxu1 }
 0x344   : > { %v5421_v56 = vpop.f32.mrb[53].mxu0  ;;  %5728 = vst [vmem:[%s9415_s22 + $0xc0] sm:$0xff] %v6494_v61  ;;  %v6495_v36 = vpack.c.bf16 %v5499_v33, %v5498_v32  ;;  %v6640_v1 = vadd.f32 %v4649_v35, %v9405_v6  ;;  %v4651_v60 = vpop.f32.mrb[54].mxu1 }
 0x345   : > { %v5423_v37 = vpop.f32.mrb[54].mxu0  ;;  %v6639_v2 = vadd.f32 %v6638_v47, %v5419_v34  ;;  %v6642_v62 = vadd.f32 %v4651_v60, %v9401_v4  ;;  %v4653_v63 = vpop.f32.mrb[55].mxu1 }
 0x346   : > { %v5425_v38 = vpop.f32.mrb[55].mxu0  ;;  %5729 = vst [vmem:[%s9415_s22 + $0xc8] sm:$0xff] %v6495_v36  ;;  %v6641_v48 = vadd.f32 %v6640_v1, %v5421_v56  ;;  %v6644_v0 = vadd.f32 %v4653_v63, %v9405_v6 }
 0x347   : > { %v5500_v3 = vmax.f32 %v6639_v2, 0.0  ;;  %v6643_v49 = vadd.f32 %v6642_v62, %v5423_v37 }
 0x348   : > { %v5501_v39 = vmax.f32 %v6641_v48, 0.0  ;;  %v6645_v7 = vadd.f32 %v6644_v0, %v5425_v38 }
 0x349   : > { %v5502_v5 = vmax.f32 %v6643_v49, 0.0 }
 0x34a   : > { %v6496_v8 = vpack.c.bf16 %v5501_v39, %v5500_v3  ;;  %v5503_v9 = vmax.f32 %v6645_v7, 0.0  ;;  %v4657_v50 = vpop.f32.mrb[56].mxu1 }
 0x34b   : > { %v5429_v10 = vpop.f32.mrb[56].mxu0  ;;  %v6646_v51 = vadd.f32 %v4657_v50, %v9401_v4  ;;  %v4659_v11 = vpop.f32.mrb[57].mxu1 }
 0x34c   : > { %v5431_v12 = vpop.f32.mrb[57].mxu0  ;;  %5730 = vst [vmem:[%s9415_s22 + $0xd0] sm:$0xff] %v6496_v8  ;;  %v6497_v13 = vpack.c.bf16 %v5503_v9, %v5502_v5  ;;  %v6648_v14 = vadd.f32 %v4659_v11, %v9405_v6  ;;  %v4661_v40 = vpop.f32.mrb[58].mxu1 }
 0x34d   : > { %v5433_v15 = vpop.f32.mrb[58].mxu0  ;;  %v6647_v41 = vadd.f32 %v6646_v51, %v5429_v10  ;;  %v6650_v16 = vadd.f32 %v4661_v40, %v9401_v4  ;;  %v4663_v52 = vpop.f32.mrb[59].mxu1 }
 0x34e   : > { %v5435_v17 = vpop.f32.mrb[59].mxu0  ;;  %5731 = vst [vmem:[%s9415_s22 + $0xd8] sm:$0xff] %v6497_v13  ;;  %v6649_v53 = vadd.f32 %v6648_v14, %v5431_v12  ;;  %v6652_v18 = vadd.f32 %v4663_v52, %v9405_v6 }
 0x34f   : > { %v5504_v19 = vmax.f32 %v6647_v41, 0.0  ;;  %v6651_v42 = vadd.f32 %v6650_v16, %v5433_v15 }
 0x350   : > { %v5505_v20 = vmax.f32 %v6649_v53, 0.0  ;;  %v6653_v54 = vadd.f32 %v6652_v18, %v5435_v17 }
 0x351   : > { %v5506_v43 = vmax.f32 %v6651_v42, 0.0 }
 0x352   : > { %v6498_v55 = vpack.c.bf16 %v5505_v20, %v5504_v19  ;;  %v5507_v21 = vmax.f32 %v6653_v54, 0.0  ;;  %v4667_v22 = vpop.f32.mrb[60].mxu1 }
 0x353   : > { %v5439_v23 = vpop.f32.mrb[60].mxu0  ;;  %v6654_v24 = vadd.f32 %v4667_v22, %v9401_v4  ;;  %v4669_v25 = vpop.f32.mrb[61].mxu1 }
 0x354   : > { %v5441_v26 = vpop.f32.mrb[61].mxu0  ;;  %5732 = vst [vmem:[%s9415_s22 + $0xe0] sm:$0xff] %v6498_v55  ;;  %v6499_v27 = vpack.c.bf16 %v5507_v21, %v5506_v43  ;;  %v6656_v28 = vadd.f32 %v4669_v25, %v9405_v6  ;;  %v4671_v57 = vpop.f32.mrb[62].mxu1 }
 0x355   : > { %v5443_v44 = vpop.f32.mrb[62].mxu0  ;;  %v6655_v58 = vadd.f32 %v6654_v24, %v5439_v23  ;;  %v6658_v29 = vadd.f32 %v4671_v57, %v9401_v4  ;;  %v4673_v45 = vpop.f32.mrb[63].mxu1 }
 0x356   : > { %v5445_v30 = vpop.f32.mrb[63].mxu0  ;;  %5733 = vst [vmem:[%s9415_s22 + $0xe8] sm:$0xff] %v6499_v27  ;;  %v6657_v31 = vadd.f32 %v6656_v28, %v5441_v26  ;;  %v6660_v59 = vadd.f32 %v4673_v45, %v9405_v6 }
 0x357   : > { %v5508_v32 = vmax.f32 %v6655_v58, 0.0  ;;  %v6659_v61 = vadd.f32 %v6658_v29, %v5443_v44 }
 0x358   : > { %v5509_v33 = vmax.f32 %v6657_v31, 0.0  ;;  %v6661_v46 = vadd.f32 %v6660_v59, %v5445_v30 }
 0x359   : > { %v5510_v34 = vmax.f32 %v6659_v61, 0.0 }
 0x35a   : > { %v6500_v47 = vpack.c.bf16 %v5509_v33, %v5508_v32  ;;  %v5511_v35 = vmax.f32 %v6661_v46, 0.0 }
 0x35c   : > { %5734 = vst [vmem:[%s9415_s22 + $0xf0] sm:$0xff] %v6500_v47  ;;  %v6501_v56 = vpack.c.bf16 %v5511_v35, %v5510_v34 }
 0x35e   : > { %5735 = vst [vmem:[%s9415_s22 + $0xf8] sm:$0xff] %v6501_v56 }
 0x35f PF: > { %s13_s14 = sadd.s32 1, %s8053_s14   ;;  %s9546_s12 = smov %s8049_s13 }
 0x360   : > { %p10_p5 = scmp.ge.s32.totalorder %s13_s14, 4   ;;  %s9547_s13 = smov %s9549_s15 }
 0x362   :  { %12 = sbr.rel (!%p10_p5) target bundleno = 2 (0x2), region = 68 }

// kernel: reduction_a_forward.6
= control target key start
LH: loop header
LB: loop body
LE: loop exit
PB: predicated region body
PF: predicated region fallthrough
CT: control target
= control target key end

     0   :  { %v1370_v1 = vmov 0   ;;  %vm525_vm0 = vcmask 261120   ;;  %v1371_v51 = vmov 0.0   ;;  %vm1372_vm1 = vmmov 0   ;;  %s1954_s1 = inlined_call_operand.vmem [shape: bf16[288,384], index: 1, kind: input, shape index: {}]   ;;  %s1955_s0 = inlined_call_operand.vmem [shape: bf16[112,288], index: 0, kind: input, shape index: {}]   ;;  %s1956_s2 = inlined_call_operand.vmem [shape: f32[1,384], index: 2, kind: input, shape index: {}]   ;;  %s1957_s3 = inlined_call_operand.vmem [shape: f32[112,384], index: 3, kind: output, shape index: {}]  }
   0x1   :  { %v1270_v0 = vld [vmem:[%s1954_s1 + $0x4] ss:$12 sps:$4 sm:$0xff]   ;;  %712 = vmatprep.mubr.bf16.mxu1 %v1370_v1  ;;  %v1274_v3 = vld [vmem:[%s1954_s1] ss:$12 sps:$4 sm:$0xff]   ;;  %v1276_v5 = vld [vmem:[%s1954_s1 + $0x1c] ss:$12 sps:$4 sm:$0xff]  }
   0x2   :  { %v1400_v2 = vld [vmem:[%s1954_s1 + $0x184] ss:$12 sps:$4 sm:$0xff]   ;;  %547 = vmatprep.subr.bf16.mxu0 %v1270_v0  ;;  %v1408_v4 = vld [vmem:[%s1954_s1 + $0x180] ss:$12 sps:$4 sm:$0xff]   ;;  %v1418_v6 = vld [vmem:[%s1954_s1 + $0x19c] ss:$12 sps:$4 sm:$0xff]  }
   0x3   :  { %1207 = vmatprep.subr.bf16.mxu1 %v1400_v2  ;;  %548 = vmatpush1.bf16.msra.mxu0 %v1274_v3  ;;  %v1280_v7 = vld [vmem:[%s1954_s1 + $0x18] ss:$12 sps:$4 sm:$0xff]   ;;  %v1282_v9 = vld [vmem:[%s1954_s1 + $0x34] ss:$12 sps:$4 sm:$0xff]   ;;  %v1435_v10 = vld [vmem:[%s1955_s0 + $0x50] ss:$12 sps:$4 sm:$0xff]  }
   0x4   :  { %1209 = vmatpush1.bf16.msra.mxu1 %v1408_v4  ;;  %549 = vmatprep.subr.bf16.mxu0 %v1276_v5  ;;  %v1426_v8 = vld [vmem:[%s1954_s1 + $0x198] ss:$12 sps:$4 sm:$0xff]   ;;  %v1285_v11 = vld [vmem:[%s1954_s1 + $0xc8] ss:$12 sps:$4 sm:$0xff]   ;;  %v1286_v12 = vld [vmem:[%s1954_s1 + $0x30] ss:$12 sps:$4 sm:$0xff]  }
   0x5   :  { %1208 = vmatprep.subr.bf16.mxu1 %v1418_v6  ;;  %v1287_v13 = vld [vmem:[%s1954_s1 + $0x8] ss:$12 sps:$4 sm:$0xff]   ;;  %v1288_v14 = vld [vmem:[%s1954_s1 + $0x4c] ss:$12 sps:$4 sm:$0xff]   ;;  %v1293_v18 = vld [vmem:[%s1954_s1 + $0x64] ss:$12 sps:$4 sm:$0xff]  }
   0x6   :  { %v1290_v15 = vld [vmem:[%s1954_s1 + $0xe0] ss:$12 sps:$4 sm:$0xff]   ;;  %v1291_v16 = vld [vmem:[%s1954_s1 + $0x48] ss:$12 sps:$4 sm:$0xff]   ;;  %v1296_v20 = vld [vmem:[%s1954_s1 + $0xf8] ss:$12 sps:$4 sm:$0xff]  }
   0x7   :  { %550 = vmatpush1.bf16.msra.mxu0 %v1280_v7  ;;  %v1292_v17 = vld [vmem:[%s1954_s1 + $0x20] ss:$12 sps:$4 sm:$0xff]   ;;  %v1468_v19 = vld [vmem:[%s1955_s0 + $0x68] ss:$12 sps:$4 sm:$0xff]   ;;  %v1298_v22 = vld [vmem:[%s1954_s1 + $0x38] ss:$12 sps:$4 sm:$0xff]  }
   0x8   :  { %1210 = vmatpush1.bf16.msra.mxu1 %v1426_v8  ;;  %551 = vmatprep.subr.bf16.mxu0 %v1282_v9  ;;  %v1297_v21 = vld [vmem:[%s1954_s1 + $0x60] ss:$12 sps:$4 sm:$0xff]   ;;  %v1299_v23 = vld [vmem:[%s1954_s1 + $0x7c] ss:$12 sps:$4 sm:$0xff]   ;;  %v1302_v25 = vld [vmem:[%s1954_s1 + $0x78] ss:$12 sps:$4 sm:$0xff]  }
   0x9   :  { %1108 = vmatprep.subr.bf16.mxu1 %v1285_v11  ;;  %v1301_v24 = vld [vmem:[%s1954_s1 + $0x110] ss:$12 sps:$4 sm:$0xff]   ;;  %v1304_v27 = vld [vmem:[%s1954_s1 + $0x94] ss:$12 sps:$4 sm:$0xff]   ;;  %v1310_v32 = vld [vmem:[%s1954_s1 + $0xac] ss:$12 sps:$4 sm:$0xff]  }
   0xa   :  { %v1303_v26 = vld [vmem:[%s1954_s1 + $0x50] ss:$12 sps:$4 sm:$0xff]   ;;  %v1500_v28 = vld [vmem:[%s1955_s0 + $0x80] ss:$12 sps:$4 sm:$0xff]   ;;  %v1307_v29 = vld [vmem:[%s1954_s1 + $0x128] ss:$12 sps:$4 sm:$0xff]  }
   0xb   :  { %1097 = vmatmul.mubr.msk.bf16.vlgmr.msra.gmra.mrb[0].mxu1 %vm525_vm0, %v1435_v10  ;;  %552 = vmatpush1.bf16.msra.mxu0 %v1286_v12  ;;  %v1308_v30 = vld [vmem:[%s1954_s1 + $0x90] ss:$12 sps:$4 sm:$0xff]   ;;  %v1309_v31 = vld [vmem:[%s1954_s1 + $0x68] ss:$12 sps:$4 sm:$0xff]   ;;  %v1312_v33 = vld [vmem:[%s1954_s1 + $0x140] ss:$12 sps:$4 sm:$0xff]  }
   0xc   :  { %1109 = vmatpush3.bf16.msra.mxu1 %v1287_v13  ;;  %553 = vmatprep.subr.bf16.mxu0 %v1288_v14  ;;  %v1313_v34 = vld [vmem:[%s1954_s1 + $0xa8] ss:$12 sps:$4 sm:$0xff]   ;;  %v1314_v35 = vld [vmem:[%s1954_s1 + $0x80] ss:$12 sps:$4 sm:$0xff]   ;;  %v1315_v36 = vld [vmem:[%s1954_s1 + $0xc4] ss:$12 sps:$4 sm:$0xff]  }
   0xd   :  { %1110 = vmatprep.subr.bf16.mxu1 %v1290_v15  ;;  %722 = vmatprep.mubr.bf16.mxu1 %v1370_v1  ;;  %v1532_v37 = vld [vmem:[%s1955_s0 + $0x98] ss:$12 sps:$4 sm:$0xff]   ;;  %v1319_v39 = vld [vmem:[%s1954_s1 + $0xc0] ss:$12 sps:$4 sm:$0xff]   ;;  %v1321_v41 = vld [vmem:[%s1954_s1 + $0xdc] ss:$12 sps:$4 sm:$0xff]  }
   0xe   :  { %v1318_v38 = vld [vmem:[%s1954_s1 + $0x158] ss:$12 sps:$4 sm:$0xff]   ;;  %v1323_v42 = vld [vmem:[%s1954_s1 + $0x170] ss:$12 sps:$4 sm:$0xff]   ;;  %v1326_v46 = vld [vmem:[%s1955_s0] ss:$12 sps:$4 sm:$0xff]  }
   0xf   :  { %554 = vmatpush1.bf16.msra.mxu0 %v1291_v16  ;;  %v1320_v40 = vld [vmem:[%s1954_s1 + $0x98] ss:$12 sps:$4 sm:$0xff]   ;;  %v1325_v44 = vld [vmem:[%s1954_s1 + $0xb0] ss:$12 sps:$4 sm:$0xff]   ;;  %v1329_v47 = vld [vmem:[%s1954_s1 + $0xf4] ss:$12 sps:$4 sm:$0xff]  }
  0x10   :  { %1111 = vmatpush3.bf16.msra.mxu1 %v1292_v17  ;;  %555 = vmatprep.subr.bf16.mxu0 %v1293_v18  ;;  %v1324_v43 = vld [vmem:[%s1954_s1 + $0xd8] ss:$12 sps:$4 sm:$0xff]   ;;  %v1331_v48 = vld [vmem:[%s1954_s1 + $0xf0] ss:$12 sps:$4 sm:$0xff]   ;;  %v1332_v49 = vld [vmem:[%s1954_s1 + $0x188] ss:$12 sps:$4 sm:$0xff]  }
  0x11   :  { %1112 = vmatprep.subr.bf16.mxu1 %v1296_v20  ;;  %v1328_v45 = vld [vmem:[%s1955_s0 + $0x4] ss:$12 sps:$4 sm:$0xff]   ;;  %v1333_v50 = vld [vmem:[%s1954_s1 + $0x10c] ss:$12 sps:$4 sm:$0xff]   ;;  %v1336_v52 = vld [vmem:[%s1955_s0 + $0x1c] ss:$12 sps:$4 sm:$0xff]  }
  0x12   :  { %579 = vmatprep.mubr.bf16.mxu0 %v1328_v45  ;;  %v1335_v53 = vld [vmem:[%s1954_s1 + $0x108] ss:$12 sps:$4 sm:$0xff]   ;;  %v1338_v54 = vld [vmem:[%s1954_s1 + $0x124] ss:$12 sps:$4 sm:$0xff]   ;;  %v1341_v56 = vld [vmem:[%s1954_s1 + $0x120] ss:$12 sps:$4 sm:$0xff]  }
  0x13   :  { %1098 = vmatmul.mubr.msk.bf16.gmra.mrb[4].mxu1 %vm525_vm0, %v1468_v19  ;;  %556 = vmatpush1.bf16.msra.mxu0 %v1297_v21  ;;  %v1340_v55 = vld [vmem:[%s1955_s0 + $0x18] ss:$12 sps:$4 sm:$0xff]   ;;  %v1345_v57 = vld [vmem:[%s1955_s0 + $0x34] ss:$12 sps:$4 sm:$0xff]   ;;  %v1342_v58 = vld [vmem:[%s1954_s1 + $0x13c] ss:$12 sps:$4 sm:$0xff]  }
  0x14   :  { %1113 = vmatpush3.bf16.msra.mxu1 %v1298_v22  ;;  %557 = vmatprep.subr.bf16.mxu0 %v1299_v23  ;;  %v1357_v59 = vld [vmem:[%s1954_s1 + $0x1a0] ss:$12 sps:$4 sm:$0xff]   ;;  %v1344_v60 = vld [vmem:[%s1954_s1 + $0x138] ss:$12 sps:$4 sm:$0xff]   ;;  %v1349_v62 = vld [vmem:[%s1955_s0 + $0x30] ss:$12 sps:$4 sm:$0xff]  }
  0x15   :  { %1114 = vmatprep.subr.bf16.mxu1 %v1301_v24  ;;  %732 = vmatprep.mubr.bf16.mxu1 %v1370_v1  ;;  %v1347_v61 = vld [vmem:[%s1954_s1 + $0x154] ss:$12 sps:$4 sm:$0xff]   ;;  %v1350_v63 = vld [vmem:[%s1954_s1 + $0x150] ss:$12 sps:$4 sm:$0xff]   ;;  %v1354_v0 = vld [vmem:[%s1955_s0 + $0x4c] ss:$12 sps:$4 sm:$0xff]  }
  0x16   :  { %v1351_v3 = vld [vmem:[%s1954_s1 + $0x16c] ss:$12 sps:$4 sm:$0xff]   ;;  %v1353_v5 = vld [vmem:[%s1954_s1 + $0x168] ss:$12 sps:$4 sm:$0xff]   ;;  %v1358_v9 = vld [vmem:[%s1955_s0 + $0x64] ss:$12 sps:$4 sm:$0xff]  }
  0x17   :  { %558 = vmatpush1.bf16.msra.mxu0 %v1302_v25  ;;  %v1356_v7 = vld [vmem:[%s1955_s0 + $0x48] ss:$12 sps:$4 sm:$0xff]   ;;  %v1360_v11 = vld [vmem:[%s1955_s0 + $0x60] ss:$12 sps:$4 sm:$0xff]   ;;  %v1369_v14 = vld [vmem:[%s1955_s0 + $0x38] ss:$12 sps:$4 sm:$0xff]  }
  0x18   :  { %1115 = vmatpush3.bf16.msra.mxu1 %v1303_v26  ;;  %559 = vmatprep.subr.bf16.mxu0 %v1304_v27  ;;  %v1361_v12 = vld [vmem:[%s1955_s0 + $0x7c] ss:$12 sps:$4 sm:$0xff]   ;;  %v1368_v13 = vld [vmem:[%s1955_s0 + $0x20] ss:$12 sps:$4 sm:$0xff]  }
  0x19   :  { %1116 = vmatprep.subr.bf16.mxu1 %v1307_v29 }
  0x1b   :  { %1099 = vmatmul.mubr.msk.bf16.gmra.mrb[8].mxu1 %vm525_vm0, %v1500_v28  ;;  %560 = vmatpush1.bf16.msra.mxu0 %v1308_v30 }
  0x1c   :  { %1117 = vmatpush3.bf16.msra.mxu1 %v1309_v31  ;;  %561 = vmatprep.subr.bf16.mxu0 %v1310_v32 }
  0x1d   :  { %1118 = vmatprep.subr.bf16.mxu1 %v1312_v33  ;;  %742 = vmatprep.mubr.bf16.mxu1 %v1370_v1 }
  0x1f   :  { %562 = vmatpush1.bf16.msra.mxu0 %v1313_v34 }
  0x20   :  { %1119 = vmatpush3.bf16.msra.mxu1 %v1314_v35  ;;  %563 = vmatprep.subr.bf16.mxu0 %v1315_v36 }
  0x21   :  { %1120 = vmatprep.subr.bf16.mxu1 %v1318_v38 }
  0x23   :  { %1100 = vmatmul.mubr.msk.bf16.gmra.mrb[12].mxu1 %vm525_vm0, %v1532_v37  ;;  %564 = vmatpush1.bf16.msra.mxu0 %v1319_v39 }
  0x24   :  { %1121 = vmatpush3.bf16.msra.mxu1 %v1320_v40  ;;  %565 = vmatprep.subr.bf16.mxu0 %v1321_v41 }
  0x25   :  { %1122 = vmatprep.subr.bf16.mxu1 %v1323_v42  ;;  %785 = vmatprep.mubr.bf16.mxu1 %v1328_v45 }
  0x27   :  { %566 = vmatpush1.bf16.msra.mxu0 %v1324_v43 }
  0x28   :  { %1123 = vmatpush3.bf16.msra.mxu1 %v1325_v44  ;;  %567 = vmatprep.subr.bf16.mxu0 %v1329_v47 }
  0x29   :  { %1175 = vmatprep.subr.bf16.mxu1 %v1371_v51 }
  0x2b   :  { %786 = vmatmul.mubr.bf16.vlgmr.msra.gmra.mrb[16].mxu1 %v1326_v46  ;;  %568 = vmatpush1.bf16.msra.mxu0 %v1331_v48 }
  0x2c   :  { %1176 = vmatpush3.bf16.msra.mxu1 %v1332_v49  ;;  %569 = vmatprep.subr.bf16.mxu0 %v1333_v50 }
  0x2d   :  { %793 = vmatprep.mubr.bf16.mxu1 %v1336_v52  ;;  %1177 = vmatprep.subr.bf16.mxu1 %v1371_v51 }
  0x2f   :  { %570 = vmatpush1.bf16.msra.mxu0 %v1335_v53 }
  0x30   :  { %571 = vmatprep.subr.bf16.mxu0 %v1338_v54  ;;  %1178 = vmatpush3.bf16.msra.mxu1 %v1357_v59 }
  0x33   :  { %794 = vmatmul.mubr.bf16.gmra.mrb[20].mxu1 %v1340_v55  ;;  %572 = vmatpush1.bf16.msra.mxu0 %v1341_v56 }
  0x34   :  { %801 = vmatprep.mubr.bf16.mxu1 %v1345_v57  ;;  %573 = vmatprep.subr.bf16.mxu0 %v1342_v58  ;;  %v117_v58 = vlaneseq }
  0x37   :  { %574 = vmatpush1.bf16.msra.mxu0 %v1344_v60  ;;  %v118_v60 = vshrl.u32 %v117_v58, 7 }
  0x38   :  { %575 = vmatprep.subr.bf16.mxu0 %v1347_v61 }
  0x3b   :  { %802 = vmatmul.mubr.bf16.gmra.mrb[24].mxu1 %v1349_v62  ;;  %576 = vmatpush1.bf16.msra.mxu0 %v1350_v63  ;;  %v119_v63 = vsub.s32 0, %v118_v60 }
  0x3c   :  { %809 = vmatprep.mubr.bf16.mxu1 %v1354_v0  ;;  %577 = vmatprep.subr.bf16.mxu0 %v1351_v3 }
  0x3f   :  { %578 = vmatpush1.bf16.msra.mxu0 %v1353_v5  ;;  %v123_v5 = vsub.s32 1, %v118_v60 }
  0x40   :  { %650 = vmatprep.subr.bf16.mxu0 %v1400_v2  ;;  %v1363_v2 = vld [vmem:[%s1955_s0 + $0x78] ss:$12 sps:$4 sm:$0xff]  }
  0x42   :  { %580 = vmatmul.mubr.bf16.vlgmr.msra.gmra.mrb[0].mxu0 %v1326_v46 }
  0x43   :  { %810 = vmatmul.mubr.bf16.gmra.mrb[28].mxu1 %v1356_v7  ;;  %589 = vmatprep.mubr.bf16.mxu0 %v1336_v52 }
  0x44   :  { %817 = vmatprep.mubr.bf16.mxu1 %v1358_v9  ;;  %651 = vmatpush1.bf16.msra.mxu0 %v1408_v4  ;;  %v1364_v4 = vld [vmem:[%s1955_s0 + $0x94] ss:$12 sps:$4 sm:$0xff]  }
  0x45   :  { %652 = vmatprep.subr.bf16.mxu0 %v1418_v6  ;;  %v1366_v6 = vld [vmem:[%s1955_s0 + $0x90] ss:$12 sps:$4 sm:$0xff]  }
  0x48   :  { %653 = vmatpush1.bf16.msra.mxu0 %v1426_v8  ;;  %v1367_v8 = vld [vmem:[%s1955_s0 + $0x8] ss:$12 sps:$4 sm:$0xff]  }
  0x4a   :  { %590 = vmatmul.mubr.bf16.gmra.mrb[4].mxu0 %v1340_v55 }
  0x4b   :  { %818 = vmatmul.mubr.bf16.gmra.mrb[32].mxu1 %v1360_v11  ;;  %599 = vmatprep.mubr.bf16.mxu0 %v1345_v57 }
  0x4c   :  { %825 = vmatprep.mubr.bf16.mxu1 %v1361_v12 }
  0x52   :  { %600 = vmatmul.mubr.bf16.gmra.mrb[8].mxu0 %v1349_v62 }
  0x53   :  { %826 = vmatmul.mubr.bf16.gmra.mrb[36].mxu1 %v1363_v2  ;;  %609 = vmatprep.mubr.bf16.mxu0 %v1354_v0 }
  0x54   :  { %833 = vmatprep.mubr.bf16.mxu1 %v1364_v4 }
  0x5a   :  { %610 = vmatmul.mubr.bf16.gmra.mrb[12].mxu0 %v1356_v7 }
  0x5b   :  { %834 = vmatmul.mubr.bf16.gmra.mrb[40].mxu1 %v1366_v6  ;;  %619 = vmatprep.mubr.bf16.mxu0 %v1358_v9 }
  0x5c   :  { %1179 = vmatprep.mubr.msk.bf16.mxu1 %vm1372_vm1, %v1371_v51 }
  0x62   :  { %620 = vmatmul.mubr.bf16.gmra.mrb[16].mxu0 %v1360_v11  ;;  %v115_v11 = vld [vmem:[%s1956_s2] sm:$0x7] }
  0x63   :  { %1180 = vmatmul.mubr.msk.bf16.vlgmr.msra.gmra.mrb[44].mxu1 %vm525_vm0, %v1367_v8  ;;  %629 = vmatprep.mubr.bf16.mxu0 %v1361_v12  ;;  %v1746_v12 = vrot.slane %v115_v11, %v119_v63 }
  0x64   :  { %1183 = vmatprep.mubr.msk.bf16.mxu1 %vm1372_vm1, %v1371_v51 }
  0x6a   :  { %630 = vmatmul.mubr.bf16.gmra.mrb[20].mxu0 %v1363_v2  ;;  %v1748_v2 = vrot.slane %v115_v11, %v123_v5 }
  0x6b   :  { %1184 = vmatmul.mubr.msk.bf16.gmra.mrb[48].mxu1 %vm525_vm0, %v1368_v13  ;;  %639 = vmatprep.mubr.bf16.mxu0 %v1364_v4  ;;  %v127_v4 = vsub.s32 2, %v118_v60 }
  0x6c   :  { %1187 = vmatprep.mubr.msk.bf16.mxu1 %vm1372_vm1, %v1371_v51 }
  0x72   :  { %640 = vmatmul.mubr.bf16.gmra.mrb[24].mxu0 %v1366_v6 }
  0x73   :  { %1188 = vmatmul.mubr.msk.bf16.gmra.mrb[52].mxu1 %vm525_vm0, %v1369_v14  ;;  %682 = vmatprep.mubr.bf16.mxu0 %v1370_v1 }
  0x74   :  { %1191 = vmatprep.mubr.msk.bf16.mxu1 %vm1372_vm1, %v1371_v51 }
  0x7a   :  { %1094 = vmatmul.mubr.msk.bf16.vlgmr.msra.gmra.mrb[0].mxu0 %vm525_vm0, %v1367_v8 }
  0x7b   :  { %1192 = vmatmul.mubr.msk.bf16.gmra.mrb[56].mxu1 %vm525_vm0, %v1435_v10  ;;  %692 = vmatprep.mubr.bf16.mxu0 %v1370_v1 }
  0x7c   :  { %1195 = vmatprep.mubr.msk.bf16.mxu1 %vm1372_vm1, %v1371_v51 }
  0x82   :  { %1095 = vmatmul.mubr.msk.bf16.gmra.mrb[4].mxu0 %vm525_vm0, %v1368_v13 }
  0x83   :  { %1196 = vmatmul.mubr.msk.bf16.gmra.mrb[60].mxu1 %vm525_vm0, %v1468_v19  ;;  %702 = vmatprep.mubr.bf16.mxu0 %v1370_v1 }
  0x84   :  { %1199 = vmatprep.mubr.msk.bf16.mxu1 %vm1372_vm1, %v1371_v51 }
  0x8a   :  { %1096 = vmatmul.mubr.msk.bf16.gmra.mrb[8].mxu0 %vm525_vm0, %v1369_v14 }
  0x8b   :  { %1200 = vmatmul.mubr.msk.bf16.gmra.mrb[64].mxu1 %vm525_vm0, %v1500_v28 }
  0x8c   :  { %1203 = vmatprep.mubr.msk.bf16.mxu1 %vm1372_vm1, %v1371_v51 }
  0x93   :  { %1204 = vmatmul.mubr.msk.bf16.gmra.mrb[68].mxu1 %vm525_vm0, %v1532_v37 }
  0xde   :  { %v1687_v10 = vpop.f32.mrb[0].mxu1 }
  0xdf   :  { %v1689_v15 = vpop.f32.mrb[1].mxu1 }
  0xe0   :  { %v1691_v16 = vpop.f32.mrb[2].mxu1 }
  0xe1   :  { %v1693_v1 = vpop.f32.mrb[3].mxu1 }
  0xe6   :  { %v1695_v17 = vpop.f32.mrb[4].mxu1 }
  0xe7   :  { %v1697_v18 = vpop.f32.mrb[5].mxu1 }
  0xe8   :  { %v1699_v19 = vpop.f32.mrb[6].mxu1 }
  0xe9   :  { %v1701_v20 = vpop.f32.mrb[7].mxu1 }
  0xee   :  { %v1703_v21 = vpop.f32.mrb[8].mxu1 }
  0xef   :  { %v1705_v22 = vpop.f32.mrb[9].mxu1 }
  0xf0   :  { %v1707_v23 = vpop.f32.mrb[10].mxu1 }
  0xf1   :  { %v1709_v24 = vpop.f32.mrb[11].mxu1 }
  0xf6   :  { %v1711_v25 = vpop.f32.mrb[12].mxu1 }
  0xf7   :  { %v1713_v26 = vpop.f32.mrb[13].mxu1 }
  0xf8   :  { %v1715_v27 = vpop.f32.mrb[14].mxu1 }
  0xf9   :  { %v1717_v28 = vpop.f32.mrb[15].mxu1 }
  0xfe   :  { %v1124_v29 = vpop.f32.mrb[16].mxu1 }
  0xff   :  { %v1125_v30 = vpop.f32.mrb[17].mxu1 }
 0x100   :  { %v1719_v31 = vadd.f32 %v1125_v30, %v1124_v29  ;;  %v1127_v32 = vpop.f32.mrb[18].mxu1 }
 0x101   :  { %v1128_v33 = vpop.f32.mrb[19].mxu1 }
 0x102   :  { %v1721_v34 = vadd.f32 %v1128_v33, %v1127_v32 }
 0x106   :  { %v1130_v35 = vpop.f32.mrb[20].mxu1 }
 0x107   :  { %v1131_v36 = vpop.f32.mrb[21].mxu1 }
 0x108   :  { %v1723_v37 = vadd.f32 %v1131_v36, %v1130_v35  ;;  %v1133_v38 = vpop.f32.mrb[22].mxu1 }
 0x109   :  { %v1134_v39 = vpop.f32.mrb[23].mxu1 }
 0x10a   :  { %v1725_v40 = vadd.f32 %v1134_v39, %v1133_v38 }
 0x10e   :  { %v1136_v41 = vpop.f32.mrb[24].mxu1 }
 0x10f   :  { %v1137_v42 = vpop.f32.mrb[25].mxu1 }
 0x110   :  { %v1727_v43 = vadd.f32 %v1137_v42, %v1136_v41  ;;  %v1139_v44 = vpop.f32.mrb[26].mxu1  ;;  %v1756_v42 = vrot.slane %v115_v11, %v127_v4 }
 0x111   :  { %v1140_v45 = vpop.f32.mrb[27].mxu1 }
 0x112   :  { %v1729_v46 = vadd.f32 %v1140_v45, %v1139_v44 }
 0x116   :  { %v1142_v47 = vpop.f32.mrb[28].mxu1 }
 0x117   :  { %v1143_v48 = vpop.f32.mrb[29].mxu1 }
 0x118   :  { %v1731_v49 = vadd.f32 %v1143_v48, %v1142_v47  ;;  %v1145_v50 = vpop.f32.mrb[30].mxu1 }
 0x119   :  { %v1146_v51 = vpop.f32.mrb[31].mxu1 }
 0x11a   :  { %v1733_v52 = vadd.f32 %v1146_v51, %v1145_v50 }
 0x11e   :  { %v1148_v53 = vpop.f32.mrb[32].mxu1 }
 0x11f   :  { %v1149_v54 = vpop.f32.mrb[33].mxu1 }
 0x120   :  { %v1735_v55 = vadd.f32 %v1149_v54, %v1148_v53  ;;  %v1151_v56 = vpop.f32.mrb[34].mxu1  ;;  %v788_v54 = vadd.f32 %v1719_v31, %v1756_v42 }
 0x121   :  { %v1152_v57 = vpop.f32.mrb[35].mxu1 }
 0x122   :  { %v1737_v59 = vadd.f32 %v1152_v57, %v1151_v56 }
 0x126   :  { %v1154_v61 = vpop.f32.mrb[36].mxu1 }
 0x127   :  { %v1155_v62 = vpop.f32.mrb[37].mxu1 }
 0x128   :  { %v1739_v0 = vadd.f32 %v1155_v62, %v1154_v61  ;;  %v1157_v3 = vpop.f32.mrb[38].mxu1  ;;  %v791_v61 = vadd.f32 %v1721_v34, %v1756_v42 }
 0x129   :  { %v1158_v7 = vpop.f32.mrb[39].mxu1 }
 0x12a   :  { %v1741_v9 = vadd.f32 %v1158_v7, %v1157_v3 }
 0x12d   :  { %v611_v6 = vpop.f32.mrb[12].mxu0 }
 0x12e   :  { %v1160_v8 = vpop.f32.mrb[40].mxu1  ;;  %v612_v13 = vadd.f32 %v611_v6, %v1746_v12  ;;  %v613_v14 = vpop.f32.mrb[13].mxu0 }
 0x12f   :  { %v1161_v29 = vpop.f32.mrb[41].mxu1  ;;  %v614_v30 = vadd.f32 %v613_v14, %v1748_v2  ;;  %v615_v33 = vpop.f32.mrb[14].mxu0 }
 0x130   :  { %v1752_v32 = vadd.f32 %v1161_v29, %v1160_v8  ;;  %v1163_v35 = vpop.f32.mrb[42].mxu1  ;;  %v715_v36 = vadd.f32 %v1687_v10, %v612_v13  ;;  %v616_v38 = vadd.f32 %v615_v33, %v1746_v12  ;;  %v617_v39 = vpop.f32.mrb[15].mxu0 }
 0x131   :  { %v1164_v41 = vpop.f32.mrb[43].mxu1  ;;  %v717_v44 = vadd.f32 %v1689_v15, %v614_v30  ;;  %v618_v45 = vadd.f32 %v617_v39, %v1748_v2 }
 0x132   :  { %v1760_v47 = vadd.f32 %v1164_v41, %v1163_v35  ;;  %v949_v48 = vmax.f32 %v715_v36, 0.0  ;;  %v719_v50 = vadd.f32 %v1691_v16, %v616_v38 }
 0x133   :  { %v950_v51 = vmax.f32 %v717_v44, 0.0  ;;  %v721_v53 = vadd.f32 %v1693_v1, %v618_v45  ;;  %v799_v44 = vadd.f32 %v1725_v40, %v1756_v42 }
 0x134   :  { %991 = vst [vmem:[%s1957_s3 + $0x90] sm:$0xff] %v949_v48  ;;  %v952_v10 = vmax.f32 %v719_v50, 0.0 }
 0x135   :  { %992 = vst [vmem:[%s1957_s3 + $0x98] sm:$0xff] %v950_v51  ;;  %v953_v15 = vmax.f32 %v721_v53, 0.0  ;;  %v621_v56 = vpop.f32.mrb[16].mxu0 }
 0x136   :  { %v876_v57 = vpop.f32.mrb[44].mxu1  ;;  %994 = vst [vmem:[%s1957_s3 + $0xa8] sm:$0xff] %v952_v10  ;;  %v622_v16 = vadd.f32 %v621_v56, %v1746_v12  ;;  %v623_v58 = vpop.f32.mrb[17].mxu0 }
 0x137   :  { %v877_v1 = vadd.f32 %v876_v57, %v788_v54  ;;  %v1181_v60 = vpop.f32.mrb[45].mxu1  ;;  %995 = vst [vmem:[%s1957_s3 + $0xb0] sm:$0xff] %v953_v15  ;;  %v624_v31 = vadd.f32 %v623_v58, %v1748_v2  ;;  %v625_v62 = vpop.f32.mrb[18].mxu0 }
 0x138   :  { %v879_v63 = vpop.f32.mrb[46].mxu1  ;;  %v725_v3 = vadd.f32 %v1695_v17, %v622_v16  ;;  %v626_v7 = vadd.f32 %v625_v62, %v1746_v12  ;;  %v627_v4 = vpop.f32.mrb[19].mxu0 }
 0x139   :  { %v933_v5 = vmax.f32 %v877_v1, 0.0  ;;  %v880_v11 = vadd.f32 %v879_v63, %v791_v61  ;;  %v1182_v6 = vpop.f32.mrb[47].mxu1  ;;  %v727_v8 = vadd.f32 %v1697_v18, %v624_v31  ;;  %v628_v34 = vadd.f32 %v627_v4, %v1748_v2 }
 0x13a   :  { %v955_v13 = vmax.f32 %v725_v3, 0.0  ;;  %v729_v14 = vadd.f32 %v1699_v19, %v626_v7  ;;  %v796_v18 = vadd.f32 %v1723_v37, %v1756_v42 }
 0x13b   :  { %975 = vst [vmem:[%s1957_s3 + $0x10] sm:$0xff] %v933_v5  ;;  %v936_v29 = vmax.f32 %v880_v11, 0.0  ;;  %v956_v30 = vmax.f32 %v727_v8, 0.0  ;;  %v731_v17 = vadd.f32 %v1701_v20, %v628_v34  ;;  %v807_v5 = vadd.f32 %v1729_v46, %v1756_v42 }
 0x13c   :  { %997 = vst [vmem:[%s1957_s3 + $0xc0] sm:$0xff] %v955_v13  ;;  %v958_v33 = vmax.f32 %v729_v14, 0.0 }
 0x13d   :  { %978 = vst [vmem:[%s1957_s3 + $0x28] sm:$0xff] %v936_v29  ;;  %998 = vst [vmem:[%s1957_s3 + $0xc8] sm:$0xff] %v956_v30  ;;  %v959_v19 = vmax.f32 %v731_v17, 0.0  ;;  %v631_v35 = vpop.f32.mrb[20].mxu0 }
 0x13e   :  { %v884_v36 = vpop.f32.mrb[48].mxu1  ;;  %1000 = vst [vmem:[%s1957_s3 + $0xd8] sm:$0xff] %v958_v33  ;;  %v632_v20 = vadd.f32 %v631_v35, %v1746_v12  ;;  %v633_v39 = vpop.f32.mrb[21].mxu0 }
 0x13f   :  { %v885_v38 = vadd.f32 %v884_v36, %v796_v18  ;;  %v1185_v41 = vpop.f32.mrb[49].mxu1  ;;  %1001 = vst [vmem:[%s1957_s3 + $0xe0] sm:$0xff] %v959_v19  ;;  %v634_v37 = vadd.f32 %v633_v39, %v1748_v2  ;;  %v635_v45 = vpop.f32.mrb[22].mxu0 }
 0x140   :  { %v887_v48 = vpop.f32.mrb[50].mxu1  ;;  %v735_v50 = vadd.f32 %v1703_v21, %v632_v20  ;;  %v636_v53 = vadd.f32 %v635_v45, %v1746_v12  ;;  %v637_v54 = vpop.f32.mrb[23].mxu0  ;;  %v815_v41 = vadd.f32 %v1733_v52, %v1756_v42 }
 0x141   :  { %v939_v51 = vmax.f32 %v885_v38, 0.0  ;;  %v888_v10 = vadd.f32 %v887_v48, %v799_v44  ;;  %v1186_v15 = vpop.f32.mrb[51].mxu1  ;;  %v737_v56 = vadd.f32 %v1705_v22, %v634_v37  ;;  %v638_v40 = vadd.f32 %v637_v54, %v1748_v2 }
 0x142   :  { %v961_v57 = vmax.f32 %v735_v50, 0.0  ;;  %v739_v16 = vadd.f32 %v1707_v23, %v636_v53  ;;  %v804_v22 = vadd.f32 %v1727_v43, %v1756_v42 }
 0x143   :  { %981 = vst [vmem:[%s1957_s3 + $0x40] sm:$0xff] %v939_v51  ;;  %v942_v1 = vmax.f32 %v888_v10, 0.0  ;;  %v962_v58 = vmax.f32 %v737_v56, 0.0  ;;  %v741_v21 = vadd.f32 %v1709_v24, %v638_v40 }
 0x144   :  { %1003 = vst [vmem:[%s1957_s3 + $0xf0] sm:$0xff] %v961_v57  ;;  %v964_v60 = vmax.f32 %v739_v16, 0.0  ;;  %v820_v57 = vadd.f32 %v1735_v55, %v1756_v42 }
 0x145   :  { %984 = vst [vmem:[%s1957_s3 + $0x58] sm:$0xff] %v942_v1  ;;  %1004 = vst [vmem:[%s1957_s3 + $0xf8] sm:$0xff] %v962_v58  ;;  %v965_v23 = vmax.f32 %v741_v21, 0.0  ;;  %v641_v61 = vpop.f32.mrb[24].mxu0 }
 0x146   :  { %v892_v31 = vpop.f32.mrb[52].mxu1  ;;  %1006 = vst [vmem:[%s1957_s3 + $0x108] sm:$0xff] %v964_v60  ;;  %v642_v24 = vadd.f32 %v641_v61, %v1746_v12  ;;  %v643_v63 = vpop.f32.mrb[25].mxu0 }
 0x147   :  { %v893_v62 = vadd.f32 %v892_v31, %v804_v22  ;;  %v1189_v3 = vpop.f32.mrb[53].mxu1  ;;  %1007 = vst [vmem:[%s1957_s3 + $0x110] sm:$0xff] %v965_v23  ;;  %v644_v43 = vadd.f32 %v643_v63, %v1748_v2  ;;  %v645_v7 = vpop.f32.mrb[26].mxu0  ;;  %v823_v23 = vadd.f32 %v1737_v59, %v1756_v42 }
 0x148   :  { %v895_v11 = vpop.f32.mrb[54].mxu1  ;;  %v745_v4 = vadd.f32 %v1711_v25, %v642_v24  ;;  %v646_v8 = vadd.f32 %v645_v7, %v1746_v12  ;;  %v647_v13 = vpop.f32.mrb[27].mxu0 }
 0x149   :  { %v945_v6 = vmax.f32 %v893_v62, 0.0  ;;  %v896_v34 = vadd.f32 %v895_v11, %v807_v5  ;;  %v1190_v14 = vpop.f32.mrb[55].mxu1  ;;  %v747_v29 = vadd.f32 %v1713_v26, %v644_v43  ;;  %v648_v46 = vadd.f32 %v647_v13, %v1748_v2 }
 0x14a   :  { %v967_v30 = vmax.f32 %v745_v4, 0.0  ;;  %v749_v17 = vadd.f32 %v1715_v27, %v646_v8  ;;  %v812_v26 = vadd.f32 %v1731_v49, %v1756_v42  ;;  %v828_v8 = vadd.f32 %v1739_v0, %v1756_v42 }
 0x14b   :  { %987 = vst [vmem:[%s1957_s3 + $0x70] sm:$0xff] %v945_v6  ;;  %v948_v33 = vmax.f32 %v896_v34, 0.0  ;;  %v968_v18 = vmax.f32 %v747_v29, 0.0  ;;  %v751_v25 = vadd.f32 %v1717_v28, %v648_v46 }
 0x14c   :  { %1009 = vst [vmem:[%s1957_s3 + $0x120] sm:$0xff] %v967_v30  ;;  %v970_v19 = vmax.f32 %v749_v17, 0.0  ;;  %v831_v17 = vadd.f32 %v1741_v9, %v1756_v42 }
 0x14d   :  { %990 = vst [vmem:[%s1957_s3 + $0x88] sm:$0xff] %v948_v33  ;;  %1010 = vst [vmem:[%s1957_s3 + $0x128] sm:$0xff] %v968_v18  ;;  %v971_v27 = vmax.f32 %v751_v25, 0.0  ;;  %v684_v35 = vpop.f32.mrb[0].mxu0 }
 0x14e   :  { %v900_v36 = vpop.f32.mrb[56].mxu1  ;;  %1012 = vst [vmem:[%s1957_s3 + $0x138] sm:$0xff] %v970_v19  ;;  %v1211_v28 = vadd.f32 %v684_v35, %v1746_v12  ;;  %v686_v38 = vpop.f32.mrb[1].mxu0 }
 0x14f   :  { %v901_v20 = vadd.f32 %v900_v36, %v812_v26  ;;  %v1193_v39 = vpop.f32.mrb[57].mxu1  ;;  %1013 = vst [vmem:[%s1957_s3 + $0x140] sm:$0xff] %v971_v27  ;;  %v1212_v49 = vadd.f32 %v686_v38, %v1748_v2  ;;  %v688_v44 = vpop.f32.mrb[2].mxu0 }
 0x150   :  { %v903_v37 = vpop.f32.mrb[58].mxu1  ;;  %v931_v45 = vmax.f32 %v1211_v28, 0.0  ;;  %v1213_v50 = vadd.f32 %v688_v44, %v1746_v12  ;;  %v690_v53 = vpop.f32.mrb[3].mxu0  ;;  %v839_v44 = vadd.f32 %v1760_v47, %v1756_v42 }
 0x151   :  { %v951_v48 = vmax.f32 %v901_v20, 0.0  ;;  %v904_v51 = vadd.f32 %v903_v37, %v815_v41  ;;  %v1194_v10 = vpop.f32.mrb[59].mxu1  ;;  %v932_v54 = vmax.f32 %v1212_v49, 0.0  ;;  %v1214_v15 = vadd.f32 %v690_v53, %v1748_v2 }
 0x152   :  { %973 = vst [vmem:[%s1957_s3] sm:$0xff] %v931_v45  ;;  %v934_v52 = vmax.f32 %v1213_v50, 0.0 }
 0x153   :  { %993 = vst [vmem:[%s1957_s3 + $0xa0] sm:$0xff] %v951_v48  ;;  %v954_v56 = vmax.f32 %v904_v51, 0.0  ;;  %974 = vst [vmem:[%s1957_s3 + $0x8] sm:$0xff] %v932_v54  ;;  %v935_v40 = vmax.f32 %v1214_v15, 0.0 }
 0x154   :  { %976 = vst [vmem:[%s1957_s3 + $0x18] sm:$0xff] %v934_v52 }
 0x155   :  { %996 = vst [vmem:[%s1957_s3 + $0xb8] sm:$0xff] %v954_v56  ;;  %977 = vst [vmem:[%s1957_s3 + $0x20] sm:$0xff] %v935_v40  ;;  %v694_v16 = vpop.f32.mrb[4].mxu0 }
 0x156   :  { %v908_v1 = vpop.f32.mrb[60].mxu1  ;;  %v1215_v58 = vadd.f32 %v694_v16, %v1746_v12  ;;  %v696_v60 = vpop.f32.mrb[5].mxu0 }
 0x157   :  { %v909_v21 = vadd.f32 %v908_v1, %v820_v57  ;;  %v1197_v22 = vpop.f32.mrb[61].mxu1  ;;  %v1216_v61 = vadd.f32 %v696_v60, %v1748_v2  ;;  %v698_v31 = vpop.f32.mrb[6].mxu0 }
 0x158   :  { %v911_v24 = vpop.f32.mrb[62].mxu1  ;;  %v937_v62 = vmax.f32 %v1215_v58, 0.0  ;;  %v1217_v63 = vadd.f32 %v698_v31, %v1746_v12  ;;  %v700_v5 = vpop.f32.mrb[7].mxu0 }
 0x159   :  { %v957_v55 = vmax.f32 %v909_v21, 0.0  ;;  %v912_v3 = vadd.f32 %v911_v24, %v823_v23  ;;  %v1198_v43 = vpop.f32.mrb[63].mxu1  ;;  %v938_v7 = vmax.f32 %v1216_v61, 0.0  ;;  %v1218_v11 = vadd.f32 %v700_v5, %v1748_v2 }
 0x15a   :  { %979 = vst [vmem:[%s1957_s3 + $0x30] sm:$0xff] %v937_v62  ;;  %v940_v59 = vmax.f32 %v1217_v63, 0.0 }
 0x15b   :  { %999 = vst [vmem:[%s1957_s3 + $0xd0] sm:$0xff] %v957_v55  ;;  %v960_v4 = vmax.f32 %v912_v3, 0.0  ;;  %980 = vst [vmem:[%s1957_s3 + $0x38] sm:$0xff] %v938_v7  ;;  %v941_v6 = vmax.f32 %v1218_v11, 0.0 }
 0x15c   :  { %982 = vst [vmem:[%s1957_s3 + $0x48] sm:$0xff] %v940_v59 }
 0x15d   :  { %1002 = vst [vmem:[%s1957_s3 + $0xe8] sm:$0xff] %v960_v4  ;;  %983 = vst [vmem:[%s1957_s3 + $0x50] sm:$0xff] %v941_v6  ;;  %v704_v34 = vpop.f32.mrb[8].mxu0 }
 0x15e   :  { %v916_v13 = vpop.f32.mrb[64].mxu1  ;;  %v1219_v14 = vadd.f32 %v704_v34, %v1746_v12  ;;  %v706_v46 = vpop.f32.mrb[9].mxu0 }
 0x15f   :  { %v917_v29 = vadd.f32 %v916_v13, %v828_v8  ;;  %v1201_v30 = vpop.f32.mrb[65].mxu1  ;;  %v1220_v33 = vadd.f32 %v706_v46, %v1748_v2  ;;  %v708_v18 = vpop.f32.mrb[10].mxu0 }
 0x160   :  { %v919_v25 = vpop.f32.mrb[66].mxu1  ;;  %v943_v19 = vmax.f32 %v1219_v14, 0.0  ;;  %v1221_v26 = vadd.f32 %v708_v18, %v1746_v12  ;;  %v710_v35 = vpop.f32.mrb[11].mxu0 }
 0x161   :  { %v963_v0 = vmax.f32 %v917_v29, 0.0  ;;  %v920_v27 = vadd.f32 %v919_v25, %v831_v17  ;;  %v1202_v36 = vpop.f32.mrb[67].mxu1  ;;  %v944_v28 = vmax.f32 %v1220_v33, 0.0  ;;  %v1222_v20 = vadd.f32 %v710_v35, %v1748_v2 }
 0x162   :  { %985 = vst [vmem:[%s1957_s3 + $0x60] sm:$0xff] %v943_v19  ;;  %v946_v9 = vmax.f32 %v1221_v26, 0.0  ;;  %v836_v2 = vadd.f32 %v1752_v32, %v1756_v42 }
 0x163   :  { %1005 = vst [vmem:[%s1957_s3 + $0x100] sm:$0xff] %v963_v0  ;;  %v966_v38 = vmax.f32 %v920_v27, 0.0  ;;  %986 = vst [vmem:[%s1957_s3 + $0x68] sm:$0xff] %v944_v28  ;;  %v947_v12 = vmax.f32 %v1222_v20, 0.0 }
 0x164   :  { %988 = vst [vmem:[%s1957_s3 + $0x78] sm:$0xff] %v946_v9 }
 0x165   :  { %1008 = vst [vmem:[%s1957_s3 + $0x118] sm:$0xff] %v966_v38  ;;  %989 = vst [vmem:[%s1957_s3 + $0x80] sm:$0xff] %v947_v12 }
 0x166   :  { %v924_v39 = vpop.f32.mrb[68].mxu1 }
 0x167   :  { %v925_v41 = vadd.f32 %v924_v39, %v836_v2  ;;  %v1205_v49 = vpop.f32.mrb[69].mxu1 }
 0x168   :  { %v927_v37 = vpop.f32.mrb[70].mxu1 }
 0x169   :  { %v969_v45 = vmax.f32 %v925_v41, 0.0  ;;  %v928_v48 = vadd.f32 %v927_v37, %v839_v44  ;;  %v1206_v50 = vpop.f32.mrb[71].mxu1 }
 0x16b   :  { %1011 = vst [vmem:[%s1957_s3 + $0x130] sm:$0xff] %v969_v45  ;;  %v972_v51 = vmax.f32 %v928_v48, 0.0 }
 0x16d   :  { %1014 = vst [vmem:[%s1957_s3 + $0x148] sm:$0xff] %v972_v51 }

// kernel: reduction_a_forward.5
= control target key start
LH: loop header
LB: loop body
LE: loop exit
PB: predicated region body
PF: predicated region fallthrough
CT: control target
= control target key end

     0   :  { %s698_s12 = smov 0   ;;  %s700_s13 = smov 0   ;;  %s862_s0 = inlined_call_operand.vmem [shape: f32[2,16,7,32], index: 0, kind: input, shape index: {}, may-alias: {0,1,2}]   ;;  %s863_s1 = inlined_call_operand.vmem [shape: f32[2,16,7,32], index: 1, kind: input, shape index: {}, may-alias: {0,1,2}]   ;;  %s864_s2 = inlined_call_operand.vmem [shape: f32[2,16,7,32], index: 2, kind: input, shape index: {}, may-alias: {0,1,2}]   ;;  %s865_s3 = inlined_call_operand.vmem [shape: f32[2,7,7,32], index: 3, kind: output, shape index: {}]  }
   0x1   :  { %s702_s14 = smov 0   ;;  %s704_s15 = smov 0  }
   0x2   :  { %s706_s16 = smov 0   ;;  %s708_s17 = smov 0  }
   0x3   :  { %s710_s18 = smov 0   ;;  %s712_s19 = smov 0  }
   0x4   :  { %s714_s20 = smov 0  }
   0x5 LB: > { %868 = sst [smem:[#allocation6_spill]] %s672_s19  ;;  %s866_s21 = sadd.s32 4294967295, %s676_s20   ;;  %s676_s20 = sphi %s714_s20, %s883_s20   ;;  %s672_s19 = sphi %s712_s19, %s876_s19   ;;  %s668_s18 = sphi %s710_s18, %s875_s18   ;;  %s664_s17 = sphi %s708_s17, %s882_s17   ;;  %s660_s16 = sphi %s706_s16, %s881_s16   ;;  %s656_s15 = sphi %s704_s15, %s880_s15   ;;  %s652_s14 = sphi %s702_s14, %s879_s14   ;;  %s648_s13 = sphi %s700_s13, %s878_s13   ;;  %s644_s12 = sphi %s698_s12, %s877_s12  }
   0x6   : > { %s745_s22 = sadd.s32 1, %s676_s20   ;;  %s495_s23 = sshll.u32 %s676_s20, 1 }
   0x7   : > { %s22_s24 = sadd.s32 1, %s672_s19  ;;  %s526_s25 = sadd.s32 2, %s495_s23 }
   0x8   : > { %p29_p0 = scmp.ne.s32.totalorder %s672_s19, %s668_s18  ;;  %s19_s26 = ssub.s32 %s495_s23, %s526_s25 }
   0x9   : > { %p30_p1 = scmp.eq.s32.totalorder %s676_s20, 0  ;;  %p20_p2 = scmp.eq.s32.totalorder %s19_s26, 0 }
   0xa   : > { %s46_s27 = sadd.s32 1, %s495_s23  ;;  %s48_s29 = sadd.s32 1, %s526_s25 }
   0xb   : > { %p754_p3 = por %p30_p1, %p29_p0  ;;  %s49_s4 = ssub.s32 %s46_s27, %s48_s29 }
   0xc   : > { %s759_s30 = scalar_select %p20_p2, %s672_s19, %s22_s24  }
   0xd   : > { %s52_s5 = sadd.s32 1, %s664_s17  ;;  %p50_p4 = scmp.eq.s32.totalorder %s49_s4, 0 }
   0xe   : > { %870 = sst [smem:[#allocation7_spill]] %s759_s30  ;;  %p59_p5 = scmp.ne.s32.totalorder %s664_s17, %s660_s16 }
   0xf   : > { %s78_s6 = sadd.s32 2, %s526_s25  ;;  %s82_s7 = sadd.s32 1, %s656_s15 }
  0x10   : > { %s766_s8 = scalar_select %p50_p4, %s664_s17, %s52_s5  }
  0x11   : > { %p770_p6 = por %p59_p5, %p30_p1  ;;  %s79_s10 = ssub.s32 %s526_s25, %s78_s6 }
  0x12   : > { %p80_p7 = scmp.eq.s32.totalorder %s79_s10, 0  ;;  %p89_p8 = scmp.ne.s32.totalorder %s656_s15, %s652_s14 }
  0x13   : > { %s105_s11 = ssub.s32 %s676_s20, %s745_s22  ;;  %s108_s23 = sadd.s32 1, %s648_s13 }
  0x14   : > { %s780_s24 = scalar_select %p80_p7, %s656_s15, %s82_s7  }
  0x15   : > { %p784_p9 = por %p89_p8, %p30_p1  ;;  %p106_p10 = scmp.eq.s32.totalorder %s105_s11, 0 }
  0x16   : > { %p118_p11 = scmp.ne.s32.totalorder %s648_s13, %s644_s12  ;;  %p119_p12 = scmp.eq.s32.totalorder %s866_s21, 6 }
  0x17   : > { %s793_s27 = scalar_select %p106_p10, %s648_s13, %s108_s23  }
  0x18   : > { %p795_p13 = por %p119_p12, %p118_p11  ;;  %p502_p0 = scmp.ge.s32.totalorder %s676_s20, 7 }
  0x1a   : > { %141 = sbr.rel (%p502_p0) target bundleno = 54 (0x36), region = 16 }
  0x21   : > { %144 = sbr.rel (!%p754_p3) target bundleno = 40 (0x28), region = 20  ;;  %s146_s25 = sand.u32 (%p754_p3), 1, %s672_s19  }
  0x22   : > { %s531_s4 = sshll.u32 (%p754_p3), %s676_s20, 4  ;;  %s503_s5 = sshll.u32 (%p754_p3), %s146_s25, 4 }
  0x23   : > { %s151_s10 = scalar_lea.vmem (%p754_p3), %s862_s0, %s531_s4  ;;  %s148_s11 = scalar_lea.vmem (%p754_p3), [#allocation2], %s503_s5 }
  0x24   : > { %v181_v0 = vld [vmem:[%s151_s10] sm:$0xff] (%p754_p3) }
  0x25   : > { %v183_v1 = vld [vmem:[%s151_s10 + $0x80] sm:$0xff] (%p754_p3)  ;;  %182 = vst [vmem:[%s148_s11] sm:$0xff] (%p754_p3), %v181_v0 }
  0x26   : > { %184 = vst [vmem:[%s148_s11 + $0x8] sm:$0xff] (%p754_p3), %v183_v1 }
  0x28 PF: > { %190 = sbr.rel (!%p770_p6) target bundleno = 47 (0x2f), region = 58  ;;  %s192_s28 = sand.u32 (%p770_p6), 1, %s664_s17  }
  0x29   : > { %s532_s23 = sshll.u32 (%p770_p6), %s676_s20, 4  ;;  %s506_s21 = sshll.u32 (%p770_p6), %s192_s28, 4 }
  0x2a   : > { %s417_s19 = scalar_lea.vmem (%p770_p6), %s863_s1, %s532_s23  ;;  %s194_s4 = scalar_lea.vmem (%p770_p6), [#allocation3], %s506_s21 }
  0x2b   : > { %v509_v2 = vld [vmem:[%s417_s19 + $0x8] sm:$0xff] (%p770_p6) }
  0x2c   : > { %v510_v3 = vld [vmem:[%s417_s19 + $0x88] sm:$0xff] (%p770_p6)  ;;  %229 = vst [vmem:[%s194_s4] sm:$0xff] (%p770_p6), %v509_v2 }
  0x2d   : > { %231 = vst [vmem:[%s194_s4 + $0x8] sm:$0xff] (%p770_p6), %v510_v3 }
  0x2f PF: > { %237 = sbr.rel (!%p784_p9) target bundleno = 54 (0x36), region = 96  ;;  %s239_s9 = sand.u32 (%p784_p9), 1, %s656_s15  }
  0x30   : > { %s533_s5 = sshll.u32 (%p784_p9), %s676_s20, 4  ;;  %s511_s6 = sshll.u32 (%p784_p9), %s239_s9, 4 }
  0x31   : > { %s423_s11 = scalar_lea.vmem (%p784_p9), %s864_s2, %s533_s5  ;;  %s241_s30 = scalar_lea.vmem (%p784_p9), [#allocation4], %s511_s6 }
  0x32   : > { %v514_v4 = vld [vmem:[%s423_s11 + $0x10] sm:$0xff] (%p784_p9) }
  0x33   : > { %v515_v5 = vld [vmem:[%s423_s11 + $0x90] sm:$0xff] (%p784_p9)  ;;  %276 = vst [vmem:[%s241_s30] sm:$0xff] (%p784_p9), %v514_v4 }
  0x34   : > { %278 = vst [vmem:[%s241_s30 + $0x8] sm:$0xff] (%p784_p9), %v515_v5 }
  0x36 PF: > { %p516_p1 = scmp.ge.s32.totalorder %s676_s20, 1  ;;  %p283_p2 = scmp.lt.s32.totalorder %s676_s20, 8 }
  0x38   : > { %p284_p3 = pnand %p516_p1, %p283_p2 }
  0x39   : > { %s290_s19 = sand.u32 (!%p284_p3), 1, %s668_s18   ;;  %s297_s21 = sand.u32 (!%p284_p3), 1, %s660_s16   ;;  %vm349_vm0 = vcmask (!%p284_p3), 260096  }
  0x3a   : > { %287 = sbr.rel (%p284_p3) target bundleno = 76 (0x4c), region = 134  ;;  %s517_s26 = sshll.u32 (!%p284_p3), %s290_s19, 4 }
  0x3b   : > { %s518_s28 = sshll.u32 (!%p284_p3), %s297_s21, 4  ;;  %s304_s23 = sand.u32 (!%p284_p3), 1, %s652_s14  }
  0x3c   : > { %s331_s25 = sand.u32 (!%p284_p3), 1, %s644_s12   ;;  %s292_s4 = scalar_lea.vmem (!%p284_p3), [#allocation2], %s517_s26 }
  0x3d   : > { %v339_v6 = vld [vmem:[%s292_s4] sm:$0x7f] (!%p284_p3)  ;;  %s299_s9 = scalar_lea.vmem (!%p284_p3), [#allocation3], %s518_s28  ;;  %s519_s5 = sshll.u32 (!%p284_p3), %s304_s23, 4  ;;  %v340_v9 = vld [vmem:[%s292_s4 + $0x8] sm:$0x7f] (!%p284_p3) }
  0x3e   : > { %v341_v7 = vld [vmem:[%s299_s9] sm:$0x7f] (!%p284_p3)  ;;  %s520_s6 = sshll.u32 (!%p284_p3), %s331_s25, 4  ;;  %v342_v10 = vld [vmem:[%s299_s9 + $0x8] sm:$0x7f] (!%p284_p3)  ;;  %s306_s7 = scalar_lea.vmem (!%p284_p3), [#allocation4], %s519_s5 }
  0x3f   : > { %v343_v8 = vmax.f32 (!%p284_p3), %v339_v6, %v341_v7  ;;  %v344_v11 = vmax.f32 (!%p284_p3), %v340_v9, %v342_v10  ;;  %v345_v12 = vld [vmem:[%s306_s7] sm:$0x7f] (!%p284_p3)  ;;  %v346_v13 = vld [vmem:[%s306_s7 + $0x8] sm:$0x7f] (!%p284_p3)  ;;  %s333_s16 = scalar_lea.vmem (!%p284_p3), [#allocation5], %s520_s6 }
  0x41   : > { %v347_v14 = vmax.f32 %v343_v8, %v345_v12  ;;  %v348_v15 = vmax.f32 %v344_v11, %v346_v13  ;;  %358 = sbr.rel (!%p795_p13) target bundleno = 76 (0x4c), region = 150  ;;  %s874_s12 = sadd.s32 (%p795_p13), 4294967295, %s676_s20  }
  0x42   : > { %s522_s14 = sshll.u32 (%p795_p13), %s874_s12, 3 }
  0x43   : > { %350 = vst.msk [vmem:[%s333_s16] sm:$0x7f] %vm349_vm0, %v347_v14  ;;  %351 = vst.msk [vmem:[%s333_s16 + $0x8] sm:$0x7f] %vm349_vm0, %v348_v15  ;;  %s360_s11 = scalar_lea.vmem (%p795_p13), %s865_s3, %s522_s14 }
  0x4a   : > { %v390_v16 = vld [vmem:[%s333_s16] sm:$0xff]  ;;  %v392_v17 = vld [vmem:[%s333_s16 + $0x8] sm:$0xff] }
  0x4b   : > { %391 = vst [vmem:[%s360_s11] sm:$0xff] %v390_v16  ;;  %393 = vst [vmem:[%s360_s11 + $0x38] sm:$0xff] %v392_v17 }
  0x4c PF: > { %s875_s18 = sld [smem:[#allocation6_spill]]  ;;  %s876_s19 = sld [smem:[#allocation7_spill]] }
  0x4d   : > { %p10_p4 = scmp.ge.s32.totalorder %s745_s22, 9   ;;  %s877_s12 = smov %s648_s13 }
  0x4e   : > { %s878_s13 = smov %s793_s27  ;;  %s879_s14 = smov %s656_s15 }
  0x4f   : > { %s880_s15 = smov %s780_s24  ;;  %s881_s16 = smov %s664_s17 }
  0x50   : > { %s882_s17 = smov %s766_s8  ;;  %s883_s20 = smov %s745_s22 }
  0x51   :  { %12 = sbr.rel (!%p10_p4) target bundleno = 5 (0x5), region = 235 }

// kernel: reduction_a_forward.9
= control target key start
LH: loop header
LB: loop body
LE: loop exit
PB: predicated region body
PF: predicated region fallthrough
CT: control target
= control target key end

     0   :  { %s10160_s1 = inlined_call_operand.vmem [shape: bf16[2304,384], index: 1, kind: input, shape index: {}]   ;;  %s10161_s0 = inlined_call_operand.vmem [shape: bf16[112,2304], index: 0, kind: input, shape index: {}]   ;;  %s10162_s2 = inlined_call_operand.vmem [shape: f32[1,384], index: 2, kind: input, shape index: {}]   ;;  %s10163_s3 = inlined_call_operand.vmem [shape: f32[112,384], index: 3, kind: output, shape index: {}]  }
   0x1   :  { %v6848_v0 = vld [vmem:[%s10160_s1 + $0x4] ss:$12 sps:$4 sm:$0xff]   ;;  %v6852_v2 = vld [vmem:[%s10160_s1] ss:$12 sps:$4 sm:$0xff]   ;;  %v6854_v4 = vld [vmem:[%s10160_s1 + $0x1c] ss:$12 sps:$4 sm:$0xff]  }
   0x2   :  { %v6850_v1 = vld [vmem:[%s10160_s1 + $0xc04] ss:$12 sps:$4 sm:$0xff]   ;;  %3668 = vmatprep.subr.bf16.mxu0 %v6848_v0  ;;  %v6853_v3 = vld [vmem:[%s10160_s1 + $0xc00] ss:$12 sps:$4 sm:$0xff]   ;;  %v6856_v5 = vld [vmem:[%s10160_s1 + $0xc1c] ss:$12 sps:$4 sm:$0xff]  }
   0x3   :  { %6564 = vmatprep.subr.bf16.mxu1 %v6850_v1  ;;  %3669 = vmatpush1.bf16.msra.mxu0 %v6852_v2  ;;  %v6858_v6 = vld [vmem:[%s10160_s1 + $0x18] ss:$12 sps:$4 sm:$0xff]   ;;  %v6860_v8 = vld [vmem:[%s10160_s1 + $0x34] ss:$12 sps:$4 sm:$0xff]   ;;  %v6864_v10 = vld [vmem:[%s10160_s1 + $0x30] ss:$12 sps:$4 sm:$0xff]  }
   0x4   :  { %6580 = vmatpush1.bf16.msra.mxu1 %v6853_v3  ;;  %3670 = vmatprep.subr.bf16.mxu0 %v6854_v4  ;;  %v6859_v7 = vld [vmem:[%s10160_s1 + $0xc18] ss:$12 sps:$4 sm:$0xff]   ;;  %v6862_v9 = vld [vmem:[%s10160_s1 + $0xc34] ss:$12 sps:$4 sm:$0xff]   ;;  %v6865_v11 = vld [vmem:[%s10160_s1 + $0xc30] ss:$12 sps:$4 sm:$0xff]  }
   0x5   :  { %6565 = vmatprep.subr.bf16.mxu1 %v6856_v5  ;;  %v6866_v12 = vld [vmem:[%s10160_s1 + $0x4c] ss:$12 sps:$4 sm:$0xff]   ;;  %v6870_v14 = vld [vmem:[%s10160_s1 + $0x48] ss:$12 sps:$4 sm:$0xff]   ;;  %v6872_v16 = vld [vmem:[%s10160_s1 + $0x64] ss:$12 sps:$4 sm:$0xff]  }
   0x6   :  { %v6868_v13 = vld [vmem:[%s10160_s1 + $0xc4c] ss:$12 sps:$4 sm:$0xff]   ;;  %v6871_v15 = vld [vmem:[%s10160_s1 + $0xc48] ss:$12 sps:$4 sm:$0xff]   ;;  %v6874_v17 = vld [vmem:[%s10160_s1 + $0xc64] ss:$12 sps:$4 sm:$0xff]  }
   0x7   :  { %3671 = vmatpush1.bf16.msra.mxu0 %v6858_v6  ;;  %v6876_v18 = vld [vmem:[%s10160_s1 + $0x60] ss:$12 sps:$4 sm:$0xff]   ;;  %v6878_v20 = vld [vmem:[%s10160_s1 + $0x7c] ss:$12 sps:$4 sm:$0xff]   ;;  %v6882_v22 = vld [vmem:[%s10160_s1 + $0x78] ss:$12 sps:$4 sm:$0xff]  }
   0x8   :  { %6581 = vmatpush1.bf16.msra.mxu1 %v6859_v7  ;;  %3672 = vmatprep.subr.bf16.mxu0 %v6860_v8  ;;  %v6877_v19 = vld [vmem:[%s10160_s1 + $0xc60] ss:$12 sps:$4 sm:$0xff]   ;;  %v6880_v21 = vld [vmem:[%s10160_s1 + $0xc7c] ss:$12 sps:$4 sm:$0xff]   ;;  %v6883_v23 = vld [vmem:[%s10160_s1 + $0xc78] ss:$12 sps:$4 sm:$0xff]  }
   0x9   :  { %6566 = vmatprep.subr.bf16.mxu1 %v6862_v9  ;;  %v6884_v24 = vld [vmem:[%s10160_s1 + $0x94] ss:$12 sps:$4 sm:$0xff]   ;;  %v6888_v26 = vld [vmem:[%s10160_s1 + $0x90] ss:$12 sps:$4 sm:$0xff]   ;;  %v6890_v28 = vld [vmem:[%s10160_s1 + $0xac] ss:$12 sps:$4 sm:$0xff]  }
   0xa   :  { %v6886_v25 = vld [vmem:[%s10160_s1 + $0xc94] ss:$12 sps:$4 sm:$0xff]   ;;  %v6889_v27 = vld [vmem:[%s10160_s1 + $0xc90] ss:$12 sps:$4 sm:$0xff]   ;;  %v6892_v29 = vld [vmem:[%s10160_s1 + $0xcac] ss:$12 sps:$4 sm:$0xff]  }
   0xb   :  { %3673 = vmatpush1.bf16.msra.mxu0 %v6864_v10  ;;  %v6894_v30 = vld [vmem:[%s10160_s1 + $0xa8] ss:$12 sps:$4 sm:$0xff]   ;;  %v6896_v32 = vld [vmem:[%s10160_s1 + $0xc4] ss:$12 sps:$4 sm:$0xff]   ;;  %v6900_v34 = vld [vmem:[%s10160_s1 + $0xc0] ss:$12 sps:$4 sm:$0xff]  }
   0xc   :  { %6582 = vmatpush1.bf16.msra.mxu1 %v6865_v11  ;;  %3674 = vmatprep.subr.bf16.mxu0 %v6866_v12  ;;  %v6895_v31 = vld [vmem:[%s10160_s1 + $0xca8] ss:$12 sps:$4 sm:$0xff]   ;;  %v6898_v33 = vld [vmem:[%s10160_s1 + $0xcc4] ss:$12 sps:$4 sm:$0xff]   ;;  %v6901_v35 = vld [vmem:[%s10160_s1 + $0xcc0] ss:$12 sps:$4 sm:$0xff]  }
   0xd   :  { %6567 = vmatprep.subr.bf16.mxu1 %v6868_v13  ;;  %v6902_v36 = vld [vmem:[%s10160_s1 + $0xdc] ss:$12 sps:$4 sm:$0xff]   ;;  %v6906_v38 = vld [vmem:[%s10160_s1 + $0xd8] ss:$12 sps:$4 sm:$0xff]   ;;  %v6908_v40 = vld [vmem:[%s10160_s1 + $0xf4] ss:$12 sps:$4 sm:$0xff]  }
   0xe   :  { %v6904_v37 = vld [vmem:[%s10160_s1 + $0xcdc] ss:$12 sps:$4 sm:$0xff]   ;;  %v6907_v39 = vld [vmem:[%s10160_s1 + $0xcd8] ss:$12 sps:$4 sm:$0xff]   ;;  %v6910_v41 = vld [vmem:[%s10160_s1 + $0xcf4] ss:$12 sps:$4 sm:$0xff]  }
   0xf   :  { %3675 = vmatpush1.bf16.msra.mxu0 %v6870_v14  ;;  %v6912_v42 = vld [vmem:[%s10160_s1 + $0xf0] ss:$12 sps:$4 sm:$0xff]   ;;  %v6914_v44 = vld [vmem:[%s10160_s1 + $0x10c] ss:$12 sps:$4 sm:$0xff]   ;;  %v6918_v46 = vld [vmem:[%s10160_s1 + $0x108] ss:$12 sps:$4 sm:$0xff]  }
  0x10   :  { %6583 = vmatpush1.bf16.msra.mxu1 %v6871_v15  ;;  %3676 = vmatprep.subr.bf16.mxu0 %v6872_v16  ;;  %v6913_v43 = vld [vmem:[%s10160_s1 + $0xcf0] ss:$12 sps:$4 sm:$0xff]   ;;  %v6916_v45 = vld [vmem:[%s10160_s1 + $0xd0c] ss:$12 sps:$4 sm:$0xff]   ;;  %v6919_v47 = vld [vmem:[%s10160_s1 + $0xd08] ss:$12 sps:$4 sm:$0xff]  }
  0x11   :  { %6568 = vmatprep.subr.bf16.mxu1 %v6874_v17  ;;  %v6920_v48 = vld [vmem:[%s10160_s1 + $0x124] ss:$12 sps:$4 sm:$0xff]   ;;  %v6946_v49 = vld [vmem:[%s10161_s0 + $0x1f4] ss:$72 sps:$4 sm:$0xff]   ;;  %v6924_v52 = vld [vmem:[%s10160_s1 + $0x120] ss:$12 sps:$4 sm:$0xff]  }
  0x12   :  { %v6922_v50 = vld [vmem:[%s10160_s1 + $0xd24] ss:$12 sps:$4 sm:$0xff]   ;;  %4554 = vmatprep.mubr.bf16.mxu1 %v6946_v49  ;;  %v6925_v53 = vld [vmem:[%s10160_s1 + $0xd20] ss:$12 sps:$4 sm:$0xff]   ;;  %v6926_v54 = vld [vmem:[%s10160_s1 + $0x13c] ss:$12 sps:$4 sm:$0xff]  }
  0x13   :  { %3677 = vmatpush1.bf16.msra.mxu0 %v6876_v18  ;;  %v7830_v51 = vld [vmem:[%s10161_s0 + $0x4] ss:$72 sps:$4 sm:$0xff]   ;;  %v6928_v55 = vld [vmem:[%s10160_s1 + $0xd3c] ss:$12 sps:$4 sm:$0xff]   ;;  %v6932_v58 = vld [vmem:[%s10160_s1 + $0x154] ss:$12 sps:$4 sm:$0xff]  }
  0x14   :  { %6584 = vmatpush1.bf16.msra.mxu1 %v6877_v19  ;;  %3678 = vmatprep.subr.bf16.mxu0 %v6878_v20  ;;  %v6930_v56 = vld [vmem:[%s10160_s1 + $0x138] ss:$12 sps:$4 sm:$0xff]   ;;  %v6934_v59 = vld [vmem:[%s10160_s1 + $0xd54] ss:$12 sps:$4 sm:$0xff]   ;;  %v6936_v60 = vld [vmem:[%s10160_s1 + $0x150] ss:$12 sps:$4 sm:$0xff]  }
  0x15   :  { %6569 = vmatprep.subr.bf16.mxu1 %v6880_v21  ;;  %3700 = vmatprep.mubr.bf16.mxu0 %v7830_v51  ;;  %v6931_v57 = vld [vmem:[%s10160_s1 + $0xd38] ss:$12 sps:$4 sm:$0xff]   ;;  %v6937_v61 = vld [vmem:[%s10160_s1 + $0xd50] ss:$12 sps:$4 sm:$0xff]   ;;  %v6942_v0 = vld [vmem:[%s10160_s1 + $0x168] ss:$12 sps:$4 sm:$0xff]  }
  0x16   :  { %v6938_v62 = vld [vmem:[%s10160_s1 + $0x16c] ss:$12 sps:$4 sm:$0xff]   ;;  %v6943_v1 = vld [vmem:[%s10160_s1 + $0xd68] ss:$12 sps:$4 sm:$0xff]   ;;  %v6952_v2 = vld [vmem:[%s10160_s1 + $0x184] ss:$12 sps:$4 sm:$0xff]  }
  0x17   :  { %3679 = vmatpush1.bf16.msra.mxu0 %v6882_v22  ;;  %v6940_v63 = vld [vmem:[%s10160_s1 + $0xd6c] ss:$12 sps:$4 sm:$0xff]   ;;  %v6953_v4 = vld [vmem:[%s10160_s1 + $0xc8] ss:$12 sps:$4 sm:$0xff]   ;;  %v6962_v16 = vld [vmem:[%s10160_s1 + $0x1b0] ss:$12 sps:$4 sm:$0xff]  }
  0x18   :  { %6585 = vmatpush1.bf16.msra.mxu1 %v6883_v23  ;;  %3680 = vmatprep.subr.bf16.mxu0 %v6884_v24  ;;  %v6944_v3 = vld [vmem:[%s10161_s0 + $0x1f0] ss:$72 sps:$4 sm:$0xff]   ;;  %v7887_v5 = vld [vmem:[%s10161_s0] ss:$72 sps:$4 sm:$0xff]   ;;  %v6960_v10 = vld [vmem:[%s10161_s0 + $0x284] ss:$72 sps:$4 sm:$0xff]  }
  0x19   :  { %6570 = vmatprep.subr.bf16.mxu1 %v6886_v25  ;;  %v6950_v6 = vld [vmem:[%s10160_s1 + $0x180] ss:$12 sps:$4 sm:$0xff]   ;;  %v6954_v7 = vld [vmem:[%s10160_s1 + $0x8] ss:$12 sps:$4 sm:$0xff]   ;;  %v6955_v11 = vld [vmem:[%s10160_s1 + $0x198] ss:$12 sps:$4 sm:$0xff]  }
  0x1a   :  { %v6957_v8 = vld [vmem:[%s10160_s1 + $0x19c] ss:$12 sps:$4 sm:$0xff]   ;;  %v6958_v9 = vld [vmem:[%s10160_s1 + $0xe0] ss:$12 sps:$4 sm:$0xff]   ;;  %v6966_v15 = vld [vmem:[%s10160_s1 + $0xf8] ss:$12 sps:$4 sm:$0xff]  }
  0x1b   :  { %3681 = vmatpush1.bf16.msra.mxu0 %v6888_v26  ;;  %v7910_v12 = vld [vmem:[%s10161_s0 + $0x94] ss:$72 sps:$4 sm:$0xff]   ;;  %v6959_v13 = vld [vmem:[%s10160_s1 + $0x20] ss:$12 sps:$4 sm:$0xff]   ;;  %v7932_v18 = vld [vmem:[%s10161_s0 + $0x90] ss:$72 sps:$4 sm:$0xff]  }
  0x1c   :  { %6586 = vmatpush1.bf16.msra.mxu1 %v6889_v27  ;;  %3682 = vmatprep.subr.bf16.mxu0 %v6890_v28  ;;  %v6964_v14 = vld [vmem:[%s10160_s1 + $0x1b4] ss:$12 sps:$4 sm:$0xff]   ;;  %v6967_v19 = vld [vmem:[%s10160_s1 + $0x38] ss:$12 sps:$4 sm:$0xff]   ;;  %v6971_v21 = vld [vmem:[%s10160_s1 + $0x110] ss:$12 sps:$4 sm:$0xff]  }
  0x1d   :  { %6571 = vmatprep.subr.bf16.mxu1 %v6892_v29  ;;  %v6965_v17 = vld [vmem:[%s10161_s0 + $0x280] ss:$72 sps:$4 sm:$0xff]   ;;  %v6970_v20 = vld [vmem:[%s10160_s1 + $0x1cc] ss:$12 sps:$4 sm:$0xff]   ;;  %v6973_v22 = vld [vmem:[%s10161_s0 + $0x314] ss:$72 sps:$4 sm:$0xff]  }
  0x1e   :  { %v7949_v23 = vld [vmem:[%s10161_s0 + $0x124] ss:$72 sps:$4 sm:$0xff]   ;;  %v6968_v24 = vld [vmem:[%s10160_s1 + $0x1c8] ss:$12 sps:$4 sm:$0xff]   ;;  %v6972_v25 = vld [vmem:[%s10160_s1 + $0x50] ss:$12 sps:$4 sm:$0xff]  }
  0x1f   :  { %3683 = vmatpush1.bf16.msra.mxu0 %v6894_v30  ;;  %v6979_v26 = vld [vmem:[%s10160_s1 + $0x1e4] ss:$12 sps:$4 sm:$0xff]   ;;  %v6981_v28 = vld [vmem:[%s10160_s1 + $0x128] ss:$12 sps:$4 sm:$0xff]   ;;  %v6977_v29 = vld [vmem:[%s10160_s1 + $0x1e0] ss:$12 sps:$4 sm:$0xff]  }
  0x20   :  { %6587 = vmatpush1.bf16.msra.mxu1 %v6895_v31  ;;  %3684 = vmatprep.subr.bf16.mxu0 %v6896_v32  ;;  %v6980_v27 = vld [vmem:[%s10161_s0 + $0x310] ss:$72 sps:$4 sm:$0xff]   ;;  %v6983_v30 = vld [vmem:[%s10160_s1 + $0x68] ss:$12 sps:$4 sm:$0xff]  }
  0x21   :  { %6572 = vmatprep.subr.bf16.mxu1 %v6898_v33  ;;  %v7977_v31 = vld [vmem:[%s10161_s0 + $0x120] ss:$72 sps:$4 sm:$0xff]   ;;  %v7009_v49 = vld [vmem:[%s10160_s1 + $0x244] ss:$12 sps:$4 sm:$0xff]  }
  0x22   :  { %v6986_v32 = vld [vmem:[%s10160_s1 + $0x1fc] ss:$12 sps:$4 sm:$0xff]   ;;  %v6987_v33 = vld [vmem:[%s10160_s1 + $0x140] ss:$12 sps:$4 sm:$0xff]  }
  0x23   :  { %3685 = vmatpush1.bf16.msra.mxu0 %v6900_v34  ;;  %v6989_v34 = vld [vmem:[%s10161_s0 + $0x3a4] ss:$72 sps:$4 sm:$0xff]  }
  0x24   :  { %6588 = vmatpush1.bf16.msra.mxu1 %v6901_v35  ;;  %3686 = vmatprep.subr.bf16.mxu0 %v6902_v36  ;;  %v7991_v35 = vld [vmem:[%s10161_s0 + $0x1b4] ss:$72 sps:$4 sm:$0xff]   ;;  %v6984_v36 = vld [vmem:[%s10160_s1 + $0x1f8] ss:$12 sps:$4 sm:$0xff]  }
  0x25   :  { %6573 = vmatprep.subr.bf16.mxu1 %v6904_v37  ;;  %v6988_v37 = vld [vmem:[%s10160_s1 + $0x80] ss:$12 sps:$4 sm:$0xff]  }
  0x27   :  { %3687 = vmatpush1.bf16.msra.mxu0 %v6906_v38  ;;  %v6995_v38 = vld [vmem:[%s10160_s1 + $0x214] ss:$12 sps:$4 sm:$0xff]  }
  0x28   :  { %6589 = vmatpush1.bf16.msra.mxu1 %v6907_v39  ;;  %3688 = vmatprep.subr.bf16.mxu0 %v6908_v40  ;;  %v6997_v39 = vld [vmem:[%s10160_s1 + $0x158] ss:$12 sps:$4 sm:$0xff]   ;;  %v6993_v40 = vld [vmem:[%s10160_s1 + $0x210] ss:$12 sps:$4 sm:$0xff]  }
  0x29   :  { %6574 = vmatprep.subr.bf16.mxu1 %v6910_v41  ;;  %v6996_v41 = vld [vmem:[%s10161_s0 + $0x3a0] ss:$72 sps:$4 sm:$0xff]  }
  0x2b   :  { %3689 = vmatpush1.bf16.msra.mxu0 %v6912_v42  ;;  %v6999_v42 = vld [vmem:[%s10160_s1 + $0x98] ss:$12 sps:$4 sm:$0xff]  }
  0x2c   :  { %6590 = vmatpush1.bf16.msra.mxu1 %v6913_v43  ;;  %3690 = vmatprep.subr.bf16.mxu0 %v6914_v44  ;;  %v8019_v43 = vld [vmem:[%s10161_s0 + $0x1b0] ss:$72 sps:$4 sm:$0xff]  }
  0x2d   :  { %6575 = vmatprep.subr.bf16.mxu1 %v6916_v45  ;;  %v7002_v44 = vld [vmem:[%s10160_s1 + $0x22c] ss:$12 sps:$4 sm:$0xff]   ;;  %v7003_v45 = vld [vmem:[%s10160_s1 + $0x170] ss:$12 sps:$4 sm:$0xff]  }
  0x2f   :  { %3691 = vmatpush1.bf16.msra.mxu0 %v6918_v46  ;;  %v7000_v46 = vld [vmem:[%s10160_s1 + $0x228] ss:$12 sps:$4 sm:$0xff]  }
  0x30   :  { %6591 = vmatpush1.bf16.msra.mxu1 %v6919_v47  ;;  %3692 = vmatprep.subr.bf16.mxu0 %v6920_v48  ;;  %v8033_v47 = vld [vmem:[%s10161_s0 + $0x244] ss:$72 sps:$4 sm:$0xff]   ;;  %v7004_v48 = vld [vmem:[%s10160_s1 + $0xb0] ss:$12 sps:$4 sm:$0xff]  }
  0x31   :  { %6576 = vmatprep.subr.bf16.mxu1 %v6922_v50  ;;  %v7010_v50 = vld [vmem:[%s10160_s1 + $0x248] ss:$12 sps:$4 sm:$0xff]  }
  0x33   :  { %3693 = vmatpush1.bf16.msra.mxu0 %v6924_v52  ;;  %v7007_v52 = vld [vmem:[%s10160_s1 + $0x240] ss:$12 sps:$4 sm:$0xff]  }
  0x34   :  { %6592 = vmatpush1.bf16.msra.mxu1 %v6925_v53  ;;  %3694 = vmatprep.subr.bf16.mxu0 %v6926_v54  ;;  %v8053_v53 = vld [vmem:[%s10161_s0 + $0x240] ss:$72 sps:$4 sm:$0xff]  }
  0x35   :  { %6577 = vmatprep.subr.bf16.mxu1 %v6928_v55  ;;  %v7012_v54 = vld [vmem:[%s10160_s1 + $0x188] ss:$12 sps:$4 sm:$0xff]   ;;  %v7016_v55 = vld [vmem:[%s10160_s1 + $0x260] ss:$12 sps:$4 sm:$0xff]  }
  0x37   :  { %3695 = vmatpush1.bf16.msra.mxu0 %v6930_v56  ;;  %v8067_v56 = vld [vmem:[%s10161_s0 + $0x2d4] ss:$72 sps:$4 sm:$0xff]  }
  0x38   :  { %6593 = vmatpush1.bf16.msra.mxu1 %v6931_v57  ;;  %3696 = vmatprep.subr.bf16.mxu0 %v6932_v58  ;;  %v7013_v57 = vld [vmem:[%s10160_s1 + $0x258] ss:$12 sps:$4 sm:$0xff]   ;;  %v7021_v58 = vld [vmem:[%s10160_s1 + $0x274] ss:$12 sps:$4 sm:$0xff]  }
  0x39   :  { %6578 = vmatprep.subr.bf16.mxu1 %v6934_v59  ;;  %v7022_v59 = vld [vmem:[%s10160_s1 + $0x1a0] ss:$12 sps:$4 sm:$0xff]  }
  0x3b   :  { %3697 = vmatpush1.bf16.msra.mxu0 %v6936_v60  ;;  %v7027_v60 = vld [vmem:[%s10160_s1 + $0x278] ss:$12 sps:$4 sm:$0xff]  }
  0x3c   :  { %6594 = vmatpush1.bf16.msra.mxu1 %v6937_v61  ;;  %3698 = vmatprep.subr.bf16.mxu0 %v6938_v62  ;;  %v7019_v61 = vld [vmem:[%s10160_s1 + $0x270] ss:$12 sps:$4 sm:$0xff]  }
  0x3d   :  { %6579 = vmatprep.subr.bf16.mxu1 %v6940_v63  ;;  %v8091_v62 = vld [vmem:[%s10161_s0 + $0x2d0] ss:$72 sps:$4 sm:$0xff]  }
  0x3e   :  { %v7026_v63 = vld [vmem:[%s10160_s1 + $0x28c] ss:$12 sps:$4 sm:$0xff]  }
  0x3f   :  { %3699 = vmatpush1.bf16.msra.mxu0 %v6942_v0  ;;  %v7028_v0 = vld [vmem:[%s10160_s1 + $0x1b8] ss:$12 sps:$4 sm:$0xff]  }
  0x40   :  { %6595 = vmatpush1.bf16.msra.mxu1 %v6943_v1  ;;  %3771 = vmatprep.subr.bf16.mxu0 %v6952_v2  ;;  %v7038_v1 = vld [vmem:[%s10160_s1 + $0x290] ss:$12 sps:$4 sm:$0xff]   ;;  %v8105_v2 = vld [vmem:[%s10161_s0 + $0x364] ss:$72 sps:$4 sm:$0xff]  }
  0x41   :  { %6042 = vmatprep.subr.bf16.mxu1 %v6953_v4  ;;  %v7033_v4 = vld [vmem:[%s10160_s1 + $0x2a4] ss:$12 sps:$4 sm:$0xff]  }
  0x42   :  { %3701 = vmatmul.mubr.bf16.vlgmr.msra.gmra.mrb[0].mxu0 %v7887_v5 }
  0x43   :  { %4555 = vmatmul.mubr.bf16.vlgmr.msra.gmra.mrb[0].mxu1 %v6944_v3  ;;  %3772 = vmatpush1.bf16.msra.mxu0 %v6950_v6  ;;  %v7024_v3 = vld [vmem:[%s10160_s1 + $0x288] ss:$12 sps:$4 sm:$0xff]   ;;  %v7031_v6 = vld [vmem:[%s10160_s1 + $0x2a0] ss:$12 sps:$4 sm:$0xff]  }
  0x44   :  { %6043 = vmatpush3.bf16.msra.mxu1 %v6954_v7  ;;  %3773 = vmatprep.subr.bf16.mxu0 %v6957_v8  ;;  %v7049_v7 = vld [vmem:[%s10160_s1 + $0x2a8] ss:$12 sps:$4 sm:$0xff]  }
  0x45   :  { %6044 = vmatprep.subr.bf16.mxu1 %v6958_v9  ;;  %4564 = vmatprep.mubr.bf16.mxu1 %v6960_v10  ;;  %v7037_v8 = vld [vmem:[%s10160_s1 + $0x2bc] ss:$12 sps:$4 sm:$0xff]  }
  0x46   :  { %3710 = vmatprep.mubr.bf16.mxu0 %v7910_v12  ;;  %v8132_v9 = vld [vmem:[%s10161_s0 + $0x360] ss:$72 sps:$4 sm:$0xff]  }
  0x47   :  { %3774 = vmatpush1.bf16.msra.mxu0 %v6955_v11  ;;  %v7050_v10 = vld [vmem:[%s10160_s1 + $0x1e8] ss:$12 sps:$4 sm:$0xff]  }
  0x48   :  { %6045 = vmatpush3.bf16.msra.mxu1 %v6959_v13  ;;  %3775 = vmatprep.subr.bf16.mxu0 %v6964_v14  ;;  %v8140_v11 = vld [vmem:[%s10161_s0 + $0xc] ss:$72 sps:$4 sm:$0xff]   ;;  %v7035_v13 = vld [vmem:[%s10160_s1 + $0x2b8] ss:$12 sps:$4 sm:$0xff]  }
  0x49   :  { %6046 = vmatprep.subr.bf16.mxu1 %v6966_v15  ;;  %v7044_v14 = vld [vmem:[%s10160_s1 + $0x2d4] ss:$12 sps:$4 sm:$0xff]  }
  0x4a   :  { %3711 = vmatmul.mubr.bf16.gmra.mrb[4].mxu0 %v7932_v18  ;;  %v7061_v15 = vld [vmem:[%s10160_s1 + $0x200] ss:$12 sps:$4 sm:$0xff]  }
  0x4b   :  { %4565 = vmatmul.mubr.bf16.gmra.mrb[4].mxu1 %v6965_v17  ;;  %3776 = vmatpush1.bf16.msra.mxu0 %v6962_v16  ;;  %v7065_v16 = vld [vmem:[%s10160_s1 + $0x2d8] ss:$12 sps:$4 sm:$0xff]   ;;  %v7042_v17 = vld [vmem:[%s10160_s1 + $0x2d0] ss:$12 sps:$4 sm:$0xff]  }
  0x4c   :  { %6047 = vmatpush3.bf16.msra.mxu1 %v6967_v19  ;;  %3777 = vmatprep.subr.bf16.mxu0 %v6970_v20  ;;  %v7066_v19 = vld [vmem:[%s10160_s1 + $0x218] ss:$12 sps:$4 sm:$0xff]   ;;  %v7076_v20 = vld [vmem:[%s10160_s1 + $0x2f0] ss:$12 sps:$4 sm:$0xff]  }
  0x4d   :  { %6048 = vmatprep.subr.bf16.mxu1 %v6971_v21  ;;  %4574 = vmatprep.mubr.bf16.mxu1 %v6973_v22  ;;  %v7046_v21 = vld [vmem:[%s10160_s1 + $0x2e8] ss:$12 sps:$4 sm:$0xff]   ;;  %v7056_v22 = vld [vmem:[%s10160_s1 + $0x304] ss:$12 sps:$4 sm:$0xff]  }
  0x4e   :  { %3720 = vmatprep.mubr.bf16.mxu0 %v7949_v23 }
  0x4f   :  { %3778 = vmatpush1.bf16.msra.mxu0 %v6968_v24  ;;  %v7077_v24 = vld [vmem:[%s10160_s1 + $0x230] ss:$12 sps:$4 sm:$0xff]  }
  0x50   :  { %6049 = vmatpush3.bf16.msra.mxu1 %v6972_v25  ;;  %3779 = vmatprep.subr.bf16.mxu0 %v6979_v26  ;;  %v7086_v25 = vld [vmem:[%s10160_s1 + $0x3c8] ss:$12 sps:$4 sm:$0xff]   ;;  %v7054_v26 = vld [vmem:[%s10160_s1 + $0x300] ss:$12 sps:$4 sm:$0xff]  }
  0x51   :  { %6050 = vmatprep.subr.bf16.mxu1 %v6981_v28  ;;  %v7070_v28 = vld [vmem:[%s10161_s0 + $0x9c] ss:$72 sps:$4 sm:$0xff]  }
  0x52   :  { %3721 = vmatmul.mubr.bf16.gmra.mrb[8].mxu0 %v7977_v31 }
  0x53   :  { %4575 = vmatmul.mubr.bf16.gmra.mrb[8].mxu1 %v6980_v27  ;;  %3780 = vmatpush1.bf16.msra.mxu0 %v6977_v29  ;;  %v7060_v27 = vld [vmem:[%s10160_s1 + $0x31c] ss:$12 sps:$4 sm:$0xff]   ;;  %v7058_v29 = vld [vmem:[%s10160_s1 + $0x318] ss:$12 sps:$4 sm:$0xff]  }
  0x54   :  { %6051 = vmatpush3.bf16.msra.mxu1 %v6983_v30  ;;  %3781 = vmatprep.subr.bf16.mxu0 %v6986_v32  ;;  %v7064_v30 = vld [vmem:[%s10160_s1 + $0x334] ss:$12 sps:$4 sm:$0xff]   ;;  %v7062_v32 = vld [vmem:[%s10160_s1 + $0x330] ss:$12 sps:$4 sm:$0xff]  }
  0x55   :  { %6052 = vmatprep.subr.bf16.mxu1 %v6987_v33  ;;  %4584 = vmatprep.mubr.bf16.mxu1 %v6989_v34  ;;  %v7069_v33 = vld [vmem:[%s10160_s1 + $0x34c] ss:$12 sps:$4 sm:$0xff]  }
  0x56   :  { %3730 = vmatprep.mubr.bf16.mxu0 %v7991_v35  ;;  %v7081_v34 = vld [vmem:[%s10161_s0 + $0x12c] ss:$72 sps:$4 sm:$0xff]  }
  0x57   :  { %3782 = vmatpush1.bf16.msra.mxu0 %v6984_v36  ;;  %v7074_v36 = vld [vmem:[%s10160_s1 + $0x364] ss:$12 sps:$4 sm:$0xff]  }
  0x58   :  { %6053 = vmatpush3.bf16.msra.mxu1 %v6988_v37  ;;  %3783 = vmatprep.subr.bf16.mxu0 %v6995_v38  ;;  %v7072_v37 = vld [vmem:[%s10160_s1 + $0x360] ss:$12 sps:$4 sm:$0xff]   ;;  %v8233_v38 = vld [vmem:[%s10161_s0 + $0x128] ss:$72 sps:$4 sm:$0xff]  }
  0x59   :  { %6054 = vmatprep.subr.bf16.mxu1 %v6997_v39  ;;  %v7080_v39 = vld [vmem:[%s10160_s1 + $0x37c] ss:$12 sps:$4 sm:$0xff]  }
  0x5a   :  { %3731 = vmatmul.mubr.bf16.gmra.mrb[12].mxu0 %v8019_v43 }
  0x5b   :  { %4585 = vmatmul.mubr.bf16.gmra.mrb[12].mxu1 %v6996_v41  ;;  %3784 = vmatpush1.bf16.msra.mxu0 %v6993_v40  ;;  %v8241_v40 = vld [vmem:[%s10161_s0 + $0x1bc] ss:$72 sps:$4 sm:$0xff]  }
  0x5c   :  { %6055 = vmatpush3.bf16.msra.mxu1 %v6999_v42  ;;  %3785 = vmatprep.subr.bf16.mxu0 %v7002_v44  ;;  %v7078_v41 = vld [vmem:[%s10160_s1 + $0x378] ss:$12 sps:$4 sm:$0xff]   ;;  %v7085_v42 = vld [vmem:[%s10160_s1 + $0x394] ss:$12 sps:$4 sm:$0xff]  }
  0x5d   :  { %6056 = vmatprep.subr.bf16.mxu1 %v7003_v45  ;;  %4627 = vmatprep.mubr.bf16.mxu1 %v7830_v51  ;;  %v7015_v51 = vld [vmem:[%s10160_s1 + $0x25c] ss:$12 sps:$4 sm:$0xff]   ;;  %v8259_v44 = vld [vmem:[%s10161_s0 + $0x1b8] ss:$72 sps:$4 sm:$0xff]  }
  0x5e   :  { %3740 = vmatprep.mubr.bf16.mxu0 %v8033_v47  ;;  %v7088_v45 = vld [vmem:[%s10160_s1 + $0x308] ss:$12 sps:$4 sm:$0xff]  }
  0x5f   :  { %3786 = vmatpush1.bf16.msra.mxu0 %v7000_v46  ;;  %v7091_v46 = vld [vmem:[%s10160_s1 + $0x3ac] ss:$12 sps:$4 sm:$0xff]  }
  0x60   :  { %6057 = vmatpush3.bf16.msra.mxu1 %v7004_v48  ;;  %3787 = vmatprep.subr.bf16.mxu0 %v7009_v49  ;;  %v8273_v48 = vld [vmem:[%s10161_s0 + $0x24c] ss:$72 sps:$4 sm:$0xff]  }
  0x61   :  { %6100 = vmatprep.subr.bf16.mxu1 %v7010_v50  ;;  %v7089_v49 = vld [vmem:[%s10160_s1 + $0x3a8] ss:$12 sps:$4 sm:$0xff]   ;;  %v7097_v50 = vld [vmem:[%s10160_s1 + $0x3c4] ss:$12 sps:$4 sm:$0xff]  }
  0x62   :  { %3741 = vmatmul.mubr.bf16.gmra.mrb[16].mxu0 %v8053_v53 }
  0x63   :  { %4628 = vmatmul.mubr.bf16.vlgmr.msra.gmra.mrb[16].mxu1 %v7887_v5  ;;  %3788 = vmatpush1.bf16.msra.mxu0 %v7007_v52  ;;  %v7039_v5 = vld [vmem:[%s10160_s1 + $0x1d0] ss:$12 sps:$4 sm:$0xff]   ;;  %v7098_v52 = vld [vmem:[%s10160_s1 + $0x320] ss:$12 sps:$4 sm:$0xff]  }
  0x64   :  { %6101 = vmatpush3.bf16.msra.mxu1 %v7012_v54  ;;  %3789 = vmatprep.subr.bf16.mxu0 %v7015_v51  ;;  %v7095_v54 = vld [vmem:[%s10160_s1 + $0x3c0] ss:$12 sps:$4 sm:$0xff]   ;;  %v8295_v51 = vld [vmem:[%s10161_s0 + $0x248] ss:$72 sps:$4 sm:$0xff]  }
  0x65   :  { %4635 = vmatprep.mubr.bf16.mxu1 %v7910_v12  ;;  %6102 = vmatprep.subr.bf16.mxu1 %v7016_v55  ;;  %v7057_v12 = vld [vmem:[%s10160_s1 + $0x2c0] ss:$12 sps:$4 sm:$0xff]   ;;  %v7102_v55 = vld [vmem:[%s10160_s1 + $0x3dc] ss:$12 sps:$4 sm:$0xff]  }
  0x66   :  { %3750 = vmatprep.mubr.bf16.mxu0 %v8067_v56 }
  0x67   :  { %3790 = vmatpush1.bf16.msra.mxu0 %v7013_v57  ;;  %v7114_v57 = vld [vmem:[%s10160_s1 + $0x410] ss:$12 sps:$4 sm:$0xff]  }
  0x68   :  { %6103 = vmatpush3.bf16.msra.mxu1 %v7022_v59  ;;  %3791 = vmatprep.subr.bf16.mxu0 %v7021_v58  ;;  %v8309_v58 = vld [vmem:[%s10161_s0 + $0x2dc] ss:$72 sps:$4 sm:$0xff]  }
  0x69   :  { %6104 = vmatprep.subr.bf16.mxu1 %v7027_v60  ;;  %v7100_v59 = vld [vmem:[%s10160_s1 + $0x3d8] ss:$12 sps:$4 sm:$0xff]   ;;  %v7109_v60 = vld [vmem:[%s10160_s1 + $0x3f4] ss:$12 sps:$4 sm:$0xff]  }
  0x6a   :  { %3751 = vmatmul.mubr.bf16.gmra.mrb[20].mxu0 %v8091_v62 }
  0x6b   :  { %4636 = vmatmul.mubr.bf16.gmra.mrb[20].mxu1 %v7932_v18  ;;  %3792 = vmatpush1.bf16.msra.mxu0 %v7019_v61  ;;  %v7048_v18 = vld [vmem:[%s10160_s1 + $0x2ec] ss:$12 sps:$4 sm:$0xff]   ;;  %v7115_v61 = vld [vmem:[%s10160_s1 + $0x350] ss:$12 sps:$4 sm:$0xff]  }
  0x6c   :  { %4643 = vmatprep.mubr.bf16.mxu1 %v7949_v23  ;;  %3793 = vmatprep.subr.bf16.mxu0 %v7026_v63  ;;  %v7051_v23 = vld [vmem:[%s10161_s0 + $0x8] ss:$72 sps:$4 sm:$0xff]  }
  0x6d   :  { %6105 = vmatpush3.bf16.msra.mxu1 %v7028_v0  ;;  %3760 = vmatprep.mubr.bf16.mxu0 %v8105_v2  ;;  %v7107_v63 = vld [vmem:[%s10160_s1 + $0x3f0] ss:$12 sps:$4 sm:$0xff]   ;;  %v7121_v0 = vld [vmem:[%s10161_s0 + $0x2d8] ss:$72 sps:$4 sm:$0xff]  }
  0x6e   :  { %6106 = vmatprep.subr.bf16.mxu1 %v7038_v1  ;;  %v7113_v1 = vld [vmem:[%s10160_s1 + $0x40c] ss:$12 sps:$4 sm:$0xff]  }
  0x6f   :  { %3794 = vmatpush1.bf16.msra.mxu0 %v7024_v3  ;;  %v7127_v3 = vld [vmem:[%s10161_s0 + $0x36c] ss:$72 sps:$4 sm:$0xff]  }
  0x70   :  { %3795 = vmatprep.subr.bf16.mxu0 %v7033_v4  ;;  %v7133_v4 = vld [vmem:[%s10160_s1 + $0x440] ss:$12 sps:$4 sm:$0xff]  }
  0x71   :  { %6107 = vmatpush3.bf16.msra.mxu1 %v7039_v5  ;;  %v7111_v5 = vld [vmem:[%s10160_s1 + $0x408] ss:$12 sps:$4 sm:$0xff]  }
  0x72   :  { %6108 = vmatprep.subr.bf16.mxu1 %v7049_v7  ;;  %3761 = vmatmul.mubr.bf16.gmra.mrb[24].mxu0 %v8132_v9  ;;  %v7137_v7 = vld [vmem:[%s10160_s1 + $0x380] ss:$12 sps:$4 sm:$0xff]  }
  0x73   :  { %4644 = vmatmul.mubr.bf16.gmra.mrb[24].mxu1 %v7977_v31  ;;  %3796 = vmatpush1.bf16.msra.mxu0 %v7031_v6  ;;  %v7075_v31 = vld [vmem:[%s10161_s0 + $0x98] ss:$72 sps:$4 sm:$0xff]   ;;  %v7120_v6 = vld [vmem:[%s10160_s1 + $0x424] ss:$12 sps:$4 sm:$0xff]  }
  0x74   :  { %4651 = vmatprep.mubr.bf16.mxu1 %v7991_v35  ;;  %3797 = vmatprep.subr.bf16.mxu0 %v7037_v8  ;;  %v7067_v35 = vld [vmem:[%s10160_s1 + $0x348] ss:$12 sps:$4 sm:$0xff]   ;;  %v7144_v8 = vld [vmem:[%s10160_s1 + $0x458] ss:$12 sps:$4 sm:$0xff]  }
  0x75   :  { %6109 = vmatpush3.bf16.msra.mxu1 %v7050_v10  ;;  %3803 = vmatprep.mubr.bf16.mxu0 %v8140_v11  ;;  %v7132_v10 = vld [vmem:[%s10161_s0 + $0x368] ss:$72 sps:$4 sm:$0xff]  }
  0x76   :  { %6110 = vmatprep.subr.bf16.mxu1 %v7057_v12  ;;  %v7140_v12 = vld [vmem:[%s10161_s0 + $0x14] ss:$72 sps:$4 sm:$0xff]  }
  0x77   :  { %3798 = vmatpush1.bf16.msra.mxu0 %v7035_v13  ;;  %v7145_v13 = vld [vmem:[%s10160_s1 + $0x398] ss:$12 sps:$4 sm:$0xff]  }
  0x78   :  { %3799 = vmatprep.subr.bf16.mxu0 %v7044_v14  ;;  %v7152_v14 = vld [vmem:[%s10160_s1 + $0x470] ss:$12 sps:$4 sm:$0xff]  }
  0x79   :  { %6111 = vmatpush3.bf16.msra.mxu1 %v7061_v15  ;;  %v7122_v15 = vld [vmem:[%s10160_s1 + $0x438] ss:$12 sps:$4 sm:$0xff]  }
  0x7a   :  { %6112 = vmatprep.subr.bf16.mxu1 %v7065_v16  ;;  %v7131_v16 = vld [vmem:[%s10160_s1 + $0x454] ss:$12 sps:$4 sm:$0xff]  }
  0x7b   :  { %4652 = vmatmul.mubr.bf16.gmra.mrb[28].mxu1 %v8019_v43  ;;  %3800 = vmatpush1.bf16.msra.mxu0 %v7042_v17  ;;  %v7083_v43 = vld [vmem:[%s10160_s1 + $0x390] ss:$12 sps:$4 sm:$0xff]  }
  0x7c   :  { %4659 = vmatprep.mubr.bf16.mxu1 %v8033_v47  ;;  %3801 = vmatprep.subr.bf16.mxu0 %v7048_v18  ;;  %v7092_v47 = vld [vmem:[%s10160_s1 + $0x3e0] ss:$12 sps:$4 sm:$0xff]   ;;  %v7153_v17 = vld [vmem:[%s10160_s1 + $0x3b0] ss:$12 sps:$4 sm:$0xff]   ;;  %v7162_v18 = vld [vmem:[%s10160_s1 + $0x548] ss:$12 sps:$4 sm:$0xff]  }
  0x7d   :  { %6113 = vmatpush3.bf16.msra.mxu1 %v7066_v19  ;;  %v7129_v19 = vld [vmem:[%s10160_s1 + $0x450] ss:$12 sps:$4 sm:$0xff]  }
  0x7e   :  { %6114 = vmatprep.subr.bf16.mxu1 %v7076_v20  ;;  %v7136_v20 = vld [vmem:[%s10160_s1 + $0x46c] ss:$12 sps:$4 sm:$0xff]  }
  0x7f   :  { %3802 = vmatpush1.bf16.msra.mxu0 %v7046_v21  ;;  %v7134_v21 = vld [vmem:[%s10160_s1 + $0x468] ss:$12 sps:$4 sm:$0xff]  }
  0x80   :  { %3874 = vmatprep.subr.bf16.mxu0 %v7056_v22  ;;  %v7143_v22 = vld [vmem:[%s10160_s1 + $0x484] ss:$12 sps:$4 sm:$0xff]  }
  0x81   :  { %6115 = vmatpush3.bf16.msra.mxu1 %v7077_v24  ;;  %v7141_v24 = vld [vmem:[%s10160_s1 + $0x480] ss:$12 sps:$4 sm:$0xff]  }
  0x82   :  { %6158 = vmatprep.subr.bf16.mxu1 %v7086_v25  ;;  %3804 = vmatmul.mubr.bf16.vlgmr.msra.gmra.mrb[0].mxu0 %v7051_v23  ;;  %v7148_v25 = vld [vmem:[%s10160_s1 + $0x49c] ss:$12 sps:$4 sm:$0xff]  }
  0x83   :  { %4660 = vmatmul.mubr.bf16.gmra.mrb[32].mxu1 %v8053_v53  ;;  %3875 = vmatpush1.bf16.msra.mxu0 %v7054_v26  ;;  %v7103_v53 = vld [vmem:[%s10160_s1 + $0x3f8] ss:$12 sps:$4 sm:$0xff]  }
  0x84   :  { %4667 = vmatprep.mubr.bf16.mxu1 %v8067_v56  ;;  %3876 = vmatprep.subr.bf16.mxu0 %v7060_v27  ;;  %v7104_v56 = vld [vmem:[%s10160_s1 + $0x338] ss:$12 sps:$4 sm:$0xff]  }
  0x85   :  { %3813 = vmatprep.mubr.bf16.mxu0 %v7070_v28  ;;  %v7157_v26 = vld [vmem:[%s10161_s0 + $0xa4] ss:$72 sps:$4 sm:$0xff]  }
  0x86   :  { %v7146_v27 = vld [vmem:[%s10160_s1 + $0x498] ss:$12 sps:$4 sm:$0xff]  }
  0x87   :  { %3877 = vmatpush1.bf16.msra.mxu0 %v7058_v29  ;;  %v7163_v29 = vld [vmem:[%s10161_s0 + $0xa0] ss:$72 sps:$4 sm:$0xff]  }
  0x88   :  { %3878 = vmatprep.subr.bf16.mxu0 %v7064_v30  ;;  %v7149_v30 = vld [vmem:[%s10160_s1 + $0x4b0] ss:$12 sps:$4 sm:$0xff]  }
  0x8a   :  { %3814 = vmatmul.mubr.bf16.gmra.mrb[4].mxu0 %v7075_v31 }
  0x8b   :  { %4668 = vmatmul.mubr.bf16.gmra.mrb[36].mxu1 %v8091_v62  ;;  %3879 = vmatpush1.bf16.msra.mxu0 %v7062_v32  ;;  %v7125_v62 = vld [vmem:[%s10160_s1 + $0x428] ss:$12 sps:$4 sm:$0xff]  }
  0x8c   :  { %4675 = vmatprep.mubr.bf16.mxu1 %v8105_v2  ;;  %3880 = vmatprep.subr.bf16.mxu0 %v7069_v33  ;;  %v7126_v2 = vld [vmem:[%s10160_s1 + $0x368] ss:$12 sps:$4 sm:$0xff]  }
  0x8d   :  { %3823 = vmatprep.mubr.bf16.mxu0 %v7081_v34  ;;  %v7169_v32 = vld [vmem:[%s10161_s0 + $0x134] ss:$72 sps:$4 sm:$0xff]  }
  0x8e   :  { %v7154_v33 = vld [vmem:[%s10160_s1 + $0x4c8] ss:$12 sps:$4 sm:$0xff]  }
  0x8f   :  { %3881 = vmatpush1.bf16.msra.mxu0 %v7067_v35  ;;  %v7159_v35 = vld [vmem:[%s10160_s1 + $0x4e0] ss:$12 sps:$4 sm:$0xff]  }
  0x90   :  { %3882 = vmatprep.subr.bf16.mxu0 %v7074_v36  ;;  %v7164_v36 = vld [vmem:[%s10160_s1 + $0x488] ss:$12 sps:$4 sm:$0xff]  }
  0x92   :  { %3824 = vmatmul.mubr.bf16.gmra.mrb[8].mxu0 %v8233_v38 }
  0x93   :  { %4676 = vmatmul.mubr.bf16.gmra.mrb[40].mxu1 %v8132_v9  ;;  %3883 = vmatpush1.bf16.msra.mxu0 %v7072_v37  ;;  %v7118_v9 = vld [vmem:[%s10160_s1 + $0x420] ss:$12 sps:$4 sm:$0xff]   ;;  %v7175_v37 = vld [vmem:[%s10161_s0 + $0x130] ss:$72 sps:$4 sm:$0xff]  }
  0x94   :  { %4716 = vmatprep.mubr.bf16.mxu1 %v8140_v11  ;;  %3884 = vmatprep.subr.bf16.mxu0 %v7080_v39  ;;  %v7124_v11 = vld [vmem:[%s10160_s1 + $0x43c] ss:$12 sps:$4 sm:$0xff]   ;;  %v7168_v39 = vld [vmem:[%s10160_s1 + $0x560] ss:$12 sps:$4 sm:$0xff]  }
  0x95   :  { %3833 = vmatprep.mubr.bf16.mxu0 %v8241_v40 }
  0x97   :  { %3885 = vmatpush1.bf16.msra.mxu0 %v7078_v41  ;;  %v7165_v41 = vld [vmem:[%s10160_s1 + $0x4f8] ss:$12 sps:$4 sm:$0xff]  }
  0x98   :  { %3886 = vmatprep.subr.bf16.mxu0 %v7085_v42  ;;  %v7173_v42 = vld [vmem:[%s10160_s1 + $0x514] ss:$12 sps:$4 sm:$0xff]  }
  0x9a   :  { %3834 = vmatmul.mubr.bf16.gmra.mrb[12].mxu0 %v8259_v44 }
  0x9b   :  { %4717 = vmatmul.mubr.bf16.vlgmr.msra.gmra.mrb[44].mxu1 %v7051_v23  ;;  %3887 = vmatpush1.bf16.msra.mxu0 %v7083_v43  ;;  %v7138_v23 = vld [vmem:[%s10161_s0 + $0x10] ss:$72 sps:$4 sm:$0xff]   ;;  %v7174_v43 = vld [vmem:[%s10160_s1 + $0x4a0] ss:$12 sps:$4 sm:$0xff]  }
  0x9c   :  { %6159 = vmatpush3.bf16.msra.mxu1 %v7088_v45  ;;  %3888 = vmatprep.subr.bf16.mxu0 %v7091_v46  ;;  %v7171_v45 = vld [vmem:[%s10160_s1 + $0x510] ss:$12 sps:$4 sm:$0xff]   ;;  %v7186_v46 = vld [vmem:[%s10161_s0 + $0x1c0] ss:$72 sps:$4 sm:$0xff]  }
  0x9d   :  { %4724 = vmatprep.mubr.bf16.mxu1 %v7070_v28  ;;  %6160 = vmatprep.subr.bf16.mxu1 %v7092_v47  ;;  %v7151_v28 = vld [vmem:[%s10160_s1 + $0x4b4] ss:$12 sps:$4 sm:$0xff]   ;;  %v7178_v47 = vld [vmem:[%s10160_s1 + $0x52c] ss:$12 sps:$4 sm:$0xff]  }
  0x9e   :  { %3843 = vmatprep.mubr.bf16.mxu0 %v8273_v48 }
  0x9f   :  { %3889 = vmatpush1.bf16.msra.mxu0 %v7089_v49  ;;  %v7190_v49 = vld [vmem:[%s10160_s1 + $0x590] ss:$12 sps:$4 sm:$0xff]  }
  0xa0   :  { %6161 = vmatpush3.bf16.msra.mxu1 %v7098_v52  ;;  %3890 = vmatprep.subr.bf16.mxu0 %v7097_v50  ;;  %v7192_v50 = vld [vmem:[%s10161_s0 + $0x254] ss:$72 sps:$4 sm:$0xff]  }
  0xa1   :  { %6162 = vmatprep.subr.bf16.mxu1 %v7103_v53  ;;  %v7176_v52 = vld [vmem:[%s10160_s1 + $0x528] ss:$12 sps:$4 sm:$0xff]   ;;  %v7185_v53 = vld [vmem:[%s10160_s1 + $0x544] ss:$12 sps:$4 sm:$0xff]  }
  0xa2   :  { %3844 = vmatmul.mubr.bf16.gmra.mrb[16].mxu0 %v8295_v51 }
  0xa3   :  { %4725 = vmatmul.mubr.bf16.gmra.mrb[48].mxu1 %v7075_v31  ;;  %3891 = vmatpush1.bf16.msra.mxu0 %v7095_v54  ;;  %v7156_v31 = vld [vmem:[%s10160_s1 + $0x4cc] ss:$12 sps:$4 sm:$0xff]   ;;  %v7191_v54 = vld [vmem:[%s10160_s1 + $0x4d0] ss:$12 sps:$4 sm:$0xff]  }
  0xa4   :  { %4732 = vmatprep.mubr.bf16.mxu1 %v7081_v34  ;;  %3892 = vmatprep.subr.bf16.mxu0 %v7102_v55  ;;  %v7161_v34 = vld [vmem:[%s10160_s1 + $0x4e4] ss:$12 sps:$4 sm:$0xff]   ;;  %v7201_v55 = vld [vmem:[%s10160_s1 + $0x5a8] ss:$12 sps:$4 sm:$0xff]  }
  0xa5   :  { %6163 = vmatpush3.bf16.msra.mxu1 %v7104_v56  ;;  %3853 = vmatprep.mubr.bf16.mxu0 %v8309_v58  ;;  %v7197_v56 = vld [vmem:[%s10161_s0 + $0x250] ss:$72 sps:$4 sm:$0xff]  }
  0xa6   :  { %6164 = vmatprep.subr.bf16.mxu1 %v7114_v57  ;;  %v7189_v57 = vld [vmem:[%s10160_s1 + $0x55c] ss:$12 sps:$4 sm:$0xff]  }
  0xa7   :  { %3893 = vmatpush1.bf16.msra.mxu0 %v7100_v59  ;;  %v7203_v59 = vld [vmem:[%s10161_s0 + $0x2e4] ss:$72 sps:$4 sm:$0xff]  }
  0xa8   :  { %3894 = vmatprep.subr.bf16.mxu0 %v7109_v60  ;;  %v7209_v60 = vld [vmem:[%s10160_s1 + $0x5c0] ss:$12 sps:$4 sm:$0xff]  }
  0xa9   :  { %6165 = vmatpush3.bf16.msra.mxu1 %v7115_v61  ;;  %v7187_v61 = vld [vmem:[%s10160_s1 + $0x558] ss:$12 sps:$4 sm:$0xff]  }
  0xaa   :  { %6166 = vmatprep.subr.bf16.mxu1 %v7125_v62  ;;  %3854 = vmatmul.mubr.bf16.gmra.mrb[20].mxu0 %v7121_v0  ;;  %v7196_v62 = vld [vmem:[%s10160_s1 + $0x574] ss:$12 sps:$4 sm:$0xff]  }
  0xab   :  { %4733 = vmatmul.mubr.bf16.gmra.mrb[52].mxu1 %v8233_v38  ;;  %3895 = vmatpush1.bf16.msra.mxu0 %v7107_v63  ;;  %v7167_v38 = vld [vmem:[%s10160_s1 + $0x4fc] ss:$12 sps:$4 sm:$0xff]   ;;  %v7213_v63 = vld [vmem:[%s10160_s1 + $0x500] ss:$12 sps:$4 sm:$0xff]  }
  0xac   :  { %4740 = vmatprep.mubr.bf16.mxu1 %v8241_v40  ;;  %3896 = vmatprep.subr.bf16.mxu0 %v7113_v1  ;;  %v7181_v40 = vld [vmem:[%s10161_s0 + $0x1c4] ss:$72 sps:$4 sm:$0xff]  }
  0xad   :  { %6167 = vmatpush3.bf16.msra.mxu1 %v7126_v2  ;;  %3863 = vmatprep.mubr.bf16.mxu0 %v7127_v3  ;;  %v7220_v1 = vld [vmem:[%s10160_s1 + $0x5d8] ss:$12 sps:$4 sm:$0xff]   ;;  %v7208_v2 = vld [vmem:[%s10161_s0 + $0x2e0] ss:$72 sps:$4 sm:$0xff]  }
  0xae   :  { %6168 = vmatprep.subr.bf16.mxu1 %v7133_v4  ;;  %v7214_v4 = vld [vmem:[%s10161_s0 + $0x374] ss:$72 sps:$4 sm:$0xff]  }
  0xaf   :  { %3897 = vmatpush1.bf16.msra.mxu0 %v7111_v5  ;;  %v7221_v5 = vld [vmem:[%s10160_s1 + $0x518] ss:$12 sps:$4 sm:$0xff]  }
  0xb0   :  { %3898 = vmatprep.subr.bf16.mxu0 %v7120_v6  ;;  %v7231_v6 = vld [vmem:[%s10160_s1 + $0x5f0] ss:$12 sps:$4 sm:$0xff]  }
  0xb1   :  { %6169 = vmatpush3.bf16.msra.mxu1 %v7137_v7  ;;  %v7198_v7 = vld [vmem:[%s10160_s1 + $0x588] ss:$12 sps:$4 sm:$0xff]  }
  0xb2   :  { %6170 = vmatprep.subr.bf16.mxu1 %v7144_v8  ;;  %3864 = vmatmul.mubr.bf16.gmra.mrb[24].mxu0 %v7132_v10  ;;  %v7207_v8 = vld [vmem:[%s10160_s1 + $0x5a4] ss:$12 sps:$4 sm:$0xff]  }
  0xb3   :  { %4741 = vmatmul.mubr.bf16.gmra.mrb[56].mxu1 %v8259_v44  ;;  %3899 = vmatpush1.bf16.msra.mxu0 %v7118_v9  ;;  %v7179_v44 = vld [vmem:[%s10160_s1 + $0x578] ss:$12 sps:$4 sm:$0xff]   ;;  %v7232_v9 = vld [vmem:[%s10160_s1 + $0x530] ss:$12 sps:$4 sm:$0xff]  }
  0xb4   :  { %4748 = vmatprep.mubr.bf16.mxu1 %v8273_v48  ;;  %3900 = vmatprep.subr.bf16.mxu0 %v7124_v11  ;;  %v7180_v48 = vld [vmem:[%s10160_s1 + $0x4b8] ss:$12 sps:$4 sm:$0xff]   ;;  %v7205_v11 = vld [vmem:[%s10160_s1 + $0x5a0] ss:$12 sps:$4 sm:$0xff]  }
  0xb5   :  { %3906 = vmatprep.mubr.bf16.mxu0 %v7140_v12  ;;  %6171 = vmatpush3.bf16.msra.mxu1 %v7145_v13  ;;  %v7227_v13 = vld [vmem:[%s10161_s0 + $0x1c] ss:$72 sps:$4 sm:$0xff]  }
  0xb6   :  { %6172 = vmatprep.subr.bf16.mxu1 %v7152_v14  ;;  %v7239_v14 = vld [vmem:[%s10160_s1 + $0x6c8] ss:$12 sps:$4 sm:$0xff]  }
  0xb7   :  { %3901 = vmatpush1.bf16.msra.mxu0 %v7122_v15  ;;  %v7210_v15 = vld [vmem:[%s10160_s1 + $0x5b8] ss:$12 sps:$4 sm:$0xff]  }
  0xb8   :  { %3902 = vmatprep.subr.bf16.mxu0 %v7131_v16  ;;  %v7218_v16 = vld [vmem:[%s10160_s1 + $0x5d4] ss:$12 sps:$4 sm:$0xff]  }
  0xb9   :  { %6173 = vmatpush3.bf16.msra.mxu1 %v7153_v17  ;;  %v7216_v17 = vld [vmem:[%s10160_s1 + $0x5d0] ss:$12 sps:$4 sm:$0xff]  }
  0xba   :  { %6216 = vmatprep.subr.bf16.mxu1 %v7162_v18  ;;  %v7224_v18 = vld [vmem:[%s10160_s1 + $0x5ec] ss:$12 sps:$4 sm:$0xff]  }
  0xbb   :  { %4749 = vmatmul.mubr.bf16.gmra.mrb[60].mxu1 %v8295_v51  ;;  %3903 = vmatpush1.bf16.msra.mxu0 %v7129_v19  ;;  %v7183_v51 = vld [vmem:[%s10160_s1 + $0x540] ss:$12 sps:$4 sm:$0xff]   ;;  %v7222_v19 = vld [vmem:[%s10160_s1 + $0x5e8] ss:$12 sps:$4 sm:$0xff]  }
  0xbc   :  { %4756 = vmatprep.mubr.bf16.mxu1 %v8309_v58  ;;  %3904 = vmatprep.subr.bf16.mxu0 %v7136_v20  ;;  %v7202_v58 = vld [vmem:[%s10160_s1 + $0x4e8] ss:$12 sps:$4 sm:$0xff]   ;;  %v7230_v20 = vld [vmem:[%s10160_s1 + $0x604] ss:$12 sps:$4 sm:$0xff]  }
  0xbf   :  { %3905 = vmatpush1.bf16.msra.mxu0 %v7134_v21  ;;  %v7225_v21 = vld [vmem:[%s10161_s0 + $0x18] ss:$72 sps:$4 sm:$0xff]  }
  0xc0   :  { %3977 = vmatprep.subr.bf16.mxu0 %v7143_v22  ;;  %v7228_v22 = vld [vmem:[%s10160_s1 + $0x600] ss:$12 sps:$4 sm:$0xff]  }
  0xc2   :  { %3907 = vmatmul.mubr.bf16.vlgmr.msra.gmra.mrb[0].mxu0 %v7138_v23 }
  0xc3   :  { %4757 = vmatmul.mubr.bf16.gmra.mrb[64].mxu1 %v7121_v0  ;;  %3978 = vmatpush1.bf16.msra.mxu0 %v7141_v24  ;;  %v7194_v0 = vld [vmem:[%s10160_s1 + $0x570] ss:$12 sps:$4 sm:$0xff]   ;;  %v7244_v24 = vld [vmem:[%s10161_s0 + $0xac] ss:$72 sps:$4 sm:$0xff]  }
  0xc4   :  { %4764 = vmatprep.mubr.bf16.mxu1 %v7127_v3  ;;  %3979 = vmatprep.subr.bf16.mxu0 %v7148_v25  ;;  %v7200_v3 = vld [vmem:[%s10160_s1 + $0x58c] ss:$12 sps:$4 sm:$0xff]  }
  0xc5   :  { %3916 = vmatprep.mubr.bf16.mxu0 %v7157_v26  ;;  %v7233_v25 = vld [vmem:[%s10160_s1 + $0x618] ss:$12 sps:$4 sm:$0xff]  }
  0xc7   :  { %3980 = vmatpush1.bf16.msra.mxu0 %v7146_v27  ;;  %v7236_v27 = vld [vmem:[%s10160_s1 + $0x630] ss:$12 sps:$4 sm:$0xff]  }
  0xc8   :  { %3981 = vmatprep.subr.bf16.mxu0 %v7151_v28  ;;  %v7240_v28 = vld [vmem:[%s10160_s1 + $0x608] ss:$12 sps:$4 sm:$0xff]  }
  0xca   :  { %3917 = vmatmul.mubr.bf16.gmra.mrb[4].mxu0 %v7163_v29 }
  0xcb   :  { %4765 = vmatmul.mubr.bf16.gmra.mrb[68].mxu1 %v7132_v10  ;;  %3982 = vmatpush1.bf16.msra.mxu0 %v7149_v30  ;;  %v7219_v10 = vld [vmem:[%s10161_s0 + $0x370] ss:$72 sps:$4 sm:$0xff]  }
  0xcc   :  { %4805 = vmatprep.mubr.bf16.mxu1 %v7140_v12  ;;  %3983 = vmatprep.subr.bf16.mxu0 %v7156_v31  ;;  %v7212_v12 = vld [vmem:[%s10160_s1 + $0x5bc] ss:$12 sps:$4 sm:$0xff]   ;;  %v7243_v30 = vld [vmem:[%s10160_s1 + $0x64c] ss:$12 sps:$4 sm:$0xff]  }
  0xcd   :  { %3926 = vmatprep.mubr.bf16.mxu0 %v7169_v32  ;;  %v7246_v31 = vld [vmem:[%s10160_s1 + $0x6e0] ss:$12 sps:$4 sm:$0xff]  }
  0xcf   :  { %3984 = vmatpush1.bf16.msra.mxu0 %v7154_v33  ;;  %v7241_v33 = vld [vmem:[%s10160_s1 + $0x648] ss:$12 sps:$4 sm:$0xff]  }
  0xd0   :  { %3985 = vmatprep.subr.bf16.mxu0 %v7161_v34  ;;  %v7249_v34 = vld [vmem:[%s10160_s1 + $0x664] ss:$12 sps:$4 sm:$0xff]  }
  0xd2   :  { %3927 = vmatmul.mubr.bf16.gmra.mrb[8].mxu0 %v7175_v37 }
  0xd3   :  { %4806 = vmatmul.mubr.bf16.vlgmr.msra.gmra.mrb[72].mxu1 %v7138_v23  ;;  %3986 = vmatpush1.bf16.msra.mxu0 %v7159_v35  ;;  %v7235_v23 = vld [vmem:[%s10160_s1 + $0x61c] ss:$12 sps:$4 sm:$0xff]   ;;  %v7251_v35 = vld [vmem:[%s10160_s1 + $0x620] ss:$12 sps:$4 sm:$0xff]  }
  0xd4   :  { %6217 = vmatpush3.bf16.msra.mxu1 %v7164_v36  ;;  %3987 = vmatprep.subr.bf16.mxu0 %v7167_v38  ;;  %v7255_v36 = vld [vmem:[%s10160_s1 + $0x6f8] ss:$12 sps:$4 sm:$0xff]   ;;  %v7247_v38 = vld [vmem:[%s10160_s1 + $0x660] ss:$12 sps:$4 sm:$0xff]  }
  0xd5   :  { %4813 = vmatprep.mubr.bf16.mxu1 %v7157_v26  ;;  %6218 = vmatprep.subr.bf16.mxu1 %v7168_v39  ;;  %v7238_v26 = vld [vmem:[%s10160_s1 + $0x634] ss:$12 sps:$4 sm:$0xff]   ;;  %v7254_v39 = vld [vmem:[%s10160_s1 + $0x67c] ss:$12 sps:$4 sm:$0xff]  }
  0xd6   :  { %3936 = vmatprep.mubr.bf16.mxu0 %v7181_v40 }
  0xd7   :  { %3988 = vmatpush1.bf16.msra.mxu0 %v7165_v41  ;;  %v7266_v41 = vld [vmem:[%s10160_s1 + $0x710] ss:$12 sps:$4 sm:$0xff]  }
  0xd8   :  { %6219 = vmatpush3.bf16.msra.mxu1 %v7174_v43  ;;  %3989 = vmatprep.subr.bf16.mxu0 %v7173_v42  ;;  %v7268_v42 = vld [vmem:[%s10161_s0 + $0x1cc] ss:$72 sps:$4 sm:$0xff]   ;;  %v7252_v43 = vld [vmem:[%s10160_s1 + $0x678] ss:$12 sps:$4 sm:$0xff]  }
  0xd9   :  { %6220 = vmatprep.subr.bf16.mxu1 %v7179_v44  ;;  %v7261_v44 = vld [vmem:[%s10160_s1 + $0x694] ss:$12 sps:$4 sm:$0xff]  }
  0xda   :  { %3937 = vmatmul.mubr.bf16.gmra.mrb[12].mxu0 %v7186_v46 }
  0xdb   :  { %4814 = vmatmul.mubr.bf16.gmra.mrb[76].mxu1 %v7163_v29  ;;  %3990 = vmatpush1.bf16.msra.mxu0 %v7171_v45  ;;  %v7250_v29 = vld [vmem:[%s10161_s0 + $0xa8] ss:$72 sps:$4 sm:$0xff]  }
  0xdc   :  { %4821 = vmatprep.mubr.bf16.mxu1 %v7169_v32  ;;  %3991 = vmatprep.subr.bf16.mxu0 %v7178_v47  ;;  %v7256_v32 = vld [vmem:[%s10161_s0 + $0x13c] ss:$72 sps:$4 sm:$0xff]  }
  0xdd   :  { %6221 = vmatpush3.bf16.msra.mxu1 %v7180_v48  ;;  %3946 = vmatprep.mubr.bf16.mxu0 %v7192_v50  ;;  %v7267_v45 = vld [vmem:[%s10160_s1 + $0x650] ss:$12 sps:$4 sm:$0xff]   ;;  %v7277_v48 = vld [vmem:[%s10160_s1 + $0x728] ss:$12 sps:$4 sm:$0xff]  }
  0xde   :  { %6222 = vmatprep.subr.bf16.mxu1 %v7190_v49  ;;  %v7259_v47 = vld [vmem:[%s10160_s1 + $0x690] ss:$12 sps:$4 sm:$0xff]  }
  0xdf   :  { %3992 = vmatpush1.bf16.msra.mxu0 %v7176_v52  ;;  %v7273_v52 = vld [vmem:[%s10161_s0 + $0x1c8] ss:$72 sps:$4 sm:$0xff]  }
  0xe0   :  { %3993 = vmatprep.subr.bf16.mxu0 %v7185_v53 }
  0xe1   :  { %6223 = vmatpush3.bf16.msra.mxu1 %v7191_v54 }
  0xe2   :  { %6224 = vmatprep.subr.bf16.mxu1 %v7201_v55  ;;  %3947 = vmatmul.mubr.bf16.gmra.mrb[16].mxu0 %v7197_v56  ;;  %v7279_v55 = vld [vmem:[%s10161_s0 + $0x25c] ss:$72 sps:$4 sm:$0xff]  }
  0xe3   :  { %4822 = vmatmul.mubr.bf16.gmra.mrb[80].mxu1 %v7175_v37  ;;  %3994 = vmatpush1.bf16.msra.mxu0 %v7183_v51  ;;  %v7262_v37 = vld [vmem:[%s10161_s0 + $0x138] ss:$72 sps:$4 sm:$0xff]   ;;  %v7278_v51 = vld [vmem:[%s10160_s1 + $0x668] ss:$12 sps:$4 sm:$0xff]  }
  0xe4   :  { %4829 = vmatprep.mubr.bf16.mxu1 %v7181_v40  ;;  %3995 = vmatprep.subr.bf16.mxu0 %v7189_v57  ;;  %v7258_v40 = vld [vmem:[%s10160_s1 + $0x638] ss:$12 sps:$4 sm:$0xff]   ;;  %v7263_v57 = vld [vmem:[%s10160_s1 + $0x6a8] ss:$12 sps:$4 sm:$0xff]  }
  0xe5   :  { %6225 = vmatpush3.bf16.msra.mxu1 %v7202_v58  ;;  %3956 = vmatprep.mubr.bf16.mxu0 %v7203_v59  ;;  %v7272_v58 = vld [vmem:[%s10160_s1 + $0x6c4] ss:$12 sps:$4 sm:$0xff]  }
  0xe6   :  { %6226 = vmatprep.subr.bf16.mxu1 %v7209_v60  ;;  %v7289_v60 = vld [vmem:[%s10160_s1 + $0x680] ss:$12 sps:$4 sm:$0xff]  }
  0xe7   :  { %3996 = vmatpush1.bf16.msra.mxu0 %v7187_v61 }
  0xe8   :  { %3997 = vmatprep.subr.bf16.mxu0 %v7196_v62  ;;  %v7296_v62 = vld [vmem:[%s10160_s1 + $0x758] ss:$12 sps:$4 sm:$0xff]  }
  0xe9   :  { %6227 = vmatpush3.bf16.msra.mxu1 %v7213_v63 }
  0xea   :  { %6228 = vmatprep.subr.bf16.mxu1 %v7220_v1  ;;  %3957 = vmatmul.mubr.bf16.gmra.mrb[20].mxu0 %v7208_v2  ;;  %v7270_v1 = vld [vmem:[%s10160_s1 + $0x6c0] ss:$12 sps:$4 sm:$0xff]  }
  0xeb   :  { %4830 = vmatmul.mubr.bf16.gmra.mrb[84].mxu1 %v7186_v46  ;;  %3998 = vmatpush1.bf16.msra.mxu0 %v7194_v0 }
  0xec   :  { %4837 = vmatprep.mubr.bf16.mxu1 %v7192_v50  ;;  %3999 = vmatprep.subr.bf16.mxu0 %v7200_v3  ;;  %v7265_v50 = vld [vmem:[%s10160_s1 + $0x6ac] ss:$12 sps:$4 sm:$0xff]   ;;  %v7276_v3 = vld [vmem:[%s10160_s1 + $0x6dc] ss:$12 sps:$4 sm:$0xff]  }
  0xed   :  { %3966 = vmatprep.mubr.bf16.mxu0 %v7214_v4  ;;  %6229 = vmatpush3.bf16.msra.mxu1 %v7221_v5  ;;  %v7297_v5 = vld [vmem:[%s10160_s1 + $0x698] ss:$12 sps:$4 sm:$0xff]  }
  0xee   :  { %6230 = vmatprep.subr.bf16.mxu1 %v7231_v6  ;;  %v7307_v6 = vld [vmem:[%s10160_s1 + $0x770] ss:$12 sps:$4 sm:$0xff]  }
  0xef   :  { %4000 = vmatpush1.bf16.msra.mxu0 %v7198_v7  ;;  %v7274_v7 = vld [vmem:[%s10160_s1 + $0x6d8] ss:$12 sps:$4 sm:$0xff]  }
  0xf0   :  { %4001 = vmatprep.subr.bf16.mxu0 %v7207_v8  ;;  %v7283_v8 = vld [vmem:[%s10160_s1 + $0x6f4] ss:$12 sps:$4 sm:$0xff]  }
  0xf1   :  { %6231 = vmatpush3.bf16.msra.mxu1 %v7232_v9 }
  0xf2   :  { %3967 = vmatmul.mubr.bf16.gmra.mrb[24].mxu0 %v7219_v10  ;;  %6274 = vmatprep.subr.bf16.mxu1 %v7239_v14  ;;  %v7281_v14 = vld [vmem:[%s10160_s1 + $0x6f0] ss:$12 sps:$4 sm:$0xff]  }
  0xf3   :  { %4838 = vmatmul.mubr.bf16.gmra.mrb[88].mxu1 %v7197_v56  ;;  %4002 = vmatpush1.bf16.msra.mxu0 %v7205_v11  ;;  %v7285_v56 = vld [vmem:[%s10160_s1 + $0x740] ss:$12 sps:$4 sm:$0xff]  }
  0xf4   :  { %4845 = vmatprep.mubr.bf16.mxu1 %v7203_v59  ;;  %4003 = vmatprep.subr.bf16.mxu0 %v7212_v12  ;;  %v7284_v59 = vld [vmem:[%s10161_s0 + $0x258] ss:$72 sps:$4 sm:$0xff]   ;;  %v7295_v12 = vld [vmem:[%s10161_s0 + $0x2e8] ss:$72 sps:$4 sm:$0xff]  }
  0xf5   :  { %4009 = vmatprep.mubr.bf16.mxu0 %v7227_v13 }
  0xf7   :  { %4004 = vmatpush1.bf16.msra.mxu0 %v7210_v15 }
  0xf8   :  { %4005 = vmatprep.subr.bf16.mxu0 %v7218_v16  ;;  %v7288_v16 = vld [vmem:[%s10160_s1 + $0x70c] ss:$12 sps:$4 sm:$0xff]  }
  0xfb   :  { %4846 = vmatmul.mubr.bf16.gmra.mrb[92].mxu1 %v7208_v2  ;;  %4006 = vmatpush1.bf16.msra.mxu0 %v7216_v17  ;;  %v7301_v17 = vld [vmem:[%s10161_s0 + $0x37c] ss:$72 sps:$4 sm:$0xff]  }
  0xfc   :  { %4853 = vmatprep.mubr.bf16.mxu1 %v7214_v4  ;;  %4007 = vmatprep.subr.bf16.mxu0 %v7224_v18  ;;  %v7290_v4 = vld [vmem:[%s10161_s0 + $0x2ec] ss:$72 sps:$4 sm:$0xff]  }
  0xfd   :  { %v7318_v18 = vld [vmem:[%s10160_s1 + $0x848] ss:$12 sps:$4 sm:$0xff]  }
  0xff   :  { %4008 = vmatpush1.bf16.msra.mxu0 %v7222_v19  ;;  %v7286_v19 = vld [vmem:[%s10160_s1 + $0x708] ss:$12 sps:$4 sm:$0xff]  }
 0x100   :  { %4080 = vmatprep.subr.bf16.mxu0 %v7230_v20  ;;  %v7294_v20 = vld [vmem:[%s10160_s1 + $0x724] ss:$12 sps:$4 sm:$0xff]  }
 0x102   :  { %4010 = vmatmul.mubr.bf16.vlgmr.msra.gmra.mrb[0].mxu0 %v7225_v21 }
 0x103   :  { %4854 = vmatmul.mubr.bf16.gmra.mrb[96].mxu1 %v7219_v10  ;;  %4081 = vmatpush1.bf16.msra.mxu0 %v7228_v22  ;;  %v7308_v10 = vld [vmem:[%s10160_s1 + $0x6b0] ss:$12 sps:$4 sm:$0xff]  }
 0x104   :  { %4894 = vmatprep.mubr.bf16.mxu1 %v7227_v13  ;;  %4082 = vmatprep.subr.bf16.mxu0 %v7235_v23  ;;  %v7292_v23 = vld [vmem:[%s10160_s1 + $0x720] ss:$12 sps:$4 sm:$0xff]  }
 0x105   :  { %4019 = vmatprep.mubr.bf16.mxu0 %v7244_v24 }
 0x107   :  { %4083 = vmatpush1.bf16.msra.mxu0 %v7233_v25 }
 0x108   :  { %4084 = vmatprep.subr.bf16.mxu0 %v7238_v26  ;;  %v7300_v26 = vld [vmem:[%s10160_s1 + $0x73c] ss:$12 sps:$4 sm:$0xff]  }
 0x10a   :  { %4020 = vmatmul.mubr.bf16.gmra.mrb[4].mxu0 %v7250_v29 }
 0x10b   :  { %4895 = vmatmul.mubr.bf16.vlgmr.msra.gmra.mrb[100].mxu1 %v7225_v21  ;;  %4085 = vmatpush1.bf16.msra.mxu0 %v7236_v27  ;;  %v7314_v27 = vld [vmem:[%s10161_s0 + $0x24] ss:$72 sps:$4 sm:$0xff]  }
 0x10c   :  { %6275 = vmatpush3.bf16.msra.mxu1 %v7240_v28  ;;  %4086 = vmatprep.subr.bf16.mxu0 %v7243_v30  ;;  %v7305_v30 = vld [vmem:[%s10160_s1 + $0x754] ss:$12 sps:$4 sm:$0xff]  }
 0x10d   :  { %4902 = vmatprep.mubr.bf16.mxu1 %v7244_v24  ;;  %6276 = vmatprep.subr.bf16.mxu1 %v7246_v31  ;;  %v7306_v24 = vld [vmem:[%s10161_s0 + $0x378] ss:$72 sps:$4 sm:$0xff]  }
 0x10e   :  { %4029 = vmatprep.mubr.bf16.mxu0 %v7256_v32 }
 0x10f   :  { %4087 = vmatpush1.bf16.msra.mxu0 %v7241_v33 }
 0x110   :  { %6277 = vmatpush3.bf16.msra.mxu1 %v7251_v35  ;;  %4088 = vmatprep.subr.bf16.mxu0 %v7249_v34  ;;  %v7303_v35 = vld [vmem:[%s10160_s1 + $0x750] ss:$12 sps:$4 sm:$0xff]  }
 0x111   :  { %6278 = vmatprep.subr.bf16.mxu1 %v7255_v36  ;;  %v7311_v36 = vld [vmem:[%s10160_s1 + $0x76c] ss:$12 sps:$4 sm:$0xff]  }
 0x112   :  { %4030 = vmatmul.mubr.bf16.gmra.mrb[8].mxu0 %v7262_v37 }
 0x113   :  { %4903 = vmatmul.mubr.bf16.gmra.mrb[104].mxu1 %v7250_v29  ;;  %4089 = vmatpush1.bf16.msra.mxu0 %v7247_v38  ;;  %v7298_v29 = vld [vmem:[%s10160_s1 + $0x738] ss:$12 sps:$4 sm:$0xff]  }
 0x114   :  { %4910 = vmatprep.mubr.bf16.mxu1 %v7256_v32  ;;  %4090 = vmatprep.subr.bf16.mxu0 %v7254_v39  ;;  %v7309_v39 = vld [vmem:[%s10160_s1 + $0x768] ss:$12 sps:$4 sm:$0xff]  }
 0x115   :  { %6279 = vmatpush3.bf16.msra.mxu1 %v7258_v40  ;;  %4039 = vmatprep.mubr.bf16.mxu0 %v7268_v42  ;;  %v7312_v40 = vld [vmem:[%s10161_s0 + $0x20] ss:$72 sps:$4 sm:$0xff]  }
 0x116   :  { %v8664_v46 = vpop.f32.mrb[0].mxu1  ;;  %6280 = vmatprep.subr.bf16.mxu1 %v7266_v41  ;;  %v7317_v41 = vld [vmem:[%s10160_s1 + $0x784] ss:$12 sps:$4 sm:$0xff]  }
 0x117   :  { %v8672_v49 = vpop.f32.mrb[1].mxu1  ;;  %4091 = vmatpush1.bf16.msra.mxu0 %v7252_v43  ;;  %v7315_v43 = vld [vmem:[%s10160_s1 + $0x780] ss:$12 sps:$4 sm:$0xff]  }
 0x118   :  { %v8680_v53 = vpop.f32.mrb[2].mxu1  ;;  %4092 = vmatprep.subr.bf16.mxu0 %v7261_v44  ;;  %v7319_v44 = vld [vmem:[%s10160_s1 + $0x788] ss:$12 sps:$4 sm:$0xff]  }
 0x119   :  { %v8682_v54 = vpop.f32.mrb[3].mxu1  ;;  %6281 = vmatpush3.bf16.msra.mxu1 %v7267_v45 }
 0x11a   :  { %6282 = vmatprep.subr.bf16.mxu1 %v7277_v48  ;;  %4040 = vmatmul.mubr.bf16.gmra.mrb[12].mxu0 %v7273_v52 }
 0x11b   :  { %4911 = vmatmul.mubr.bf16.gmra.mrb[108].mxu1 %v7262_v37  ;;  %4093 = vmatpush1.bf16.msra.mxu0 %v7259_v47 }
 0x11c   :  { %4918 = vmatprep.mubr.bf16.mxu1 %v7268_v42  ;;  %4094 = vmatprep.subr.bf16.mxu0 %v7265_v50  ;;  %v7322_v50 = vld [vmem:[%s10160_s1 + $0x79c] ss:$12 sps:$4 sm:$0xff]  }
 0x11d   :  { %6283 = vmatpush3.bf16.msra.mxu1 %v7278_v51  ;;  %4049 = vmatprep.mubr.bf16.mxu0 %v7279_v55  ;;  %v7323_v51 = vld [vmem:[%s10161_s0 + $0xb4] ss:$72 sps:$4 sm:$0xff]  }
 0x11e   :  { %v8705_v61 = vpop.f32.mrb[4].mxu1  ;;  %6284 = vmatprep.subr.bf16.mxu1 %v7285_v56  ;;  %v7325_v56 = vld [vmem:[%s10160_s1 + $0x860] ss:$12 sps:$4 sm:$0xff]  }
 0x11f   :  { %v8710_v63 = vpop.f32.mrb[5].mxu1  ;;  %4095 = vmatpush1.bf16.msra.mxu0 %v7263_v57  ;;  %v7320_v57 = vld [vmem:[%s10160_s1 + $0x798] ss:$12 sps:$4 sm:$0xff]  }
 0x120   :  { %v8712_v0 = vpop.f32.mrb[6].mxu1  ;;  %4096 = vmatprep.subr.bf16.mxu0 %v7272_v58  ;;  %v7330_v58 = vld [vmem:[%s10160_s1 + $0x7a0] ss:$12 sps:$4 sm:$0xff]  }
 0x121   :  { %v8717_v2 = vpop.f32.mrb[7].mxu1  ;;  %6285 = vmatpush3.bf16.msra.mxu1 %v7289_v60  ;;  %v7334_v60 = vld [vmem:[%s10160_s1 + $0x878] ss:$12 sps:$4 sm:$0xff]  }
 0x122   :  { %6286 = vmatprep.subr.bf16.mxu1 %v7296_v62  ;;  %4050 = vmatmul.mubr.bf16.gmra.mrb[16].mxu0 %v7284_v59 }
 0x123   :  { %4919 = vmatmul.mubr.bf16.gmra.mrb[112].mxu1 %v7273_v52  ;;  %4097 = vmatpush1.bf16.msra.mxu0 %v7270_v1 }
 0x124   :  { %4926 = vmatprep.mubr.bf16.mxu1 %v7279_v55  ;;  %4098 = vmatprep.subr.bf16.mxu0 %v7276_v3  ;;  %v7326_v3 = vld [vmem:[%s10160_s1 + $0x7b0] ss:$12 sps:$4 sm:$0xff]  }
 0x125   :  { %4059 = vmatprep.mubr.bf16.mxu0 %v7290_v4  ;;  %6287 = vmatpush3.bf16.msra.mxu1 %v7297_v5 }
 0x126   :  { %v8737_v9 = vpop.f32.mrb[8].mxu1  ;;  %6288 = vmatprep.subr.bf16.mxu1 %v7307_v6 }
 0x127   :  { %v8742_v11 = vpop.f32.mrb[9].mxu1  ;;  %4099 = vmatpush1.bf16.msra.mxu0 %v7274_v7  ;;  %v7335_v7 = vld [vmem:[%s10161_s0 + $0x144] ss:$72 sps:$4 sm:$0xff]  }
 0x128   :  { %v8747_v13 = vpop.f32.mrb[10].mxu1  ;;  %4100 = vmatprep.subr.bf16.mxu0 %v7283_v8 }
 0x129   :  { %v8752_v15 = vpop.f32.mrb[11].mxu1  ;;  %6289 = vmatpush3.bf16.msra.mxu1 %v7308_v10  ;;  %v7333_v10 = vld [vmem:[%s10160_s1 + $0x7cc] ss:$12 sps:$4 sm:$0xff]  }
 0x12a   :  { %4060 = vmatmul.mubr.bf16.gmra.mrb[20].mxu0 %v7295_v12  ;;  %6332 = vmatprep.subr.bf16.mxu1 %v7318_v18  ;;  %v7340_v18 = vld [vmem:[%s10160_s1 + $0x7e4] ss:$12 sps:$4 sm:$0xff]  }
 0x12b   :  { %4927 = vmatmul.mubr.bf16.gmra.mrb[116].mxu1 %v7284_v59  ;;  %4101 = vmatpush1.bf16.msra.mxu0 %v7281_v14  ;;  %v7328_v59 = vld [vmem:[%s10160_s1 + $0x7b4] ss:$12 sps:$4 sm:$0xff]  }
 0x12c   :  { %4934 = vmatprep.mubr.bf16.mxu1 %v7290_v4  ;;  %4102 = vmatprep.subr.bf16.mxu0 %v7288_v16  ;;  %v7329_v4 = vld [vmem:[%s10161_s0 + $0xb0] ss:$72 sps:$4 sm:$0xff]  }
 0x12d   :  { %4069 = vmatprep.mubr.bf16.mxu0 %v7301_v17  ;;  %v7345_v16 = vld [vmem:[%s10160_s1 + $0x890] ss:$12 sps:$4 sm:$0xff]  }
 0x12e   :  { %v8769_v21 = vpop.f32.mrb[12].mxu1 }
 0x12f   :  { %v8771_v22 = vpop.f32.mrb[13].mxu1  ;;  %4103 = vmatpush1.bf16.msra.mxu0 %v7286_v19  ;;  %v7341_v19 = vld [vmem:[%s10161_s0 + $0x140] ss:$72 sps:$4 sm:$0xff]  }
 0x130   :  { %v8779_v25 = vpop.f32.mrb[14].mxu1  ;;  %4104 = vmatprep.subr.bf16.mxu0 %v7294_v20  ;;  %v7346_v20 = vld [vmem:[%s10160_s1 + $0x7d0] ss:$12 sps:$4 sm:$0xff]  }
 0x131   :  { %v8787_v28 = vpop.f32.mrb[15].mxu1 }
 0x132   :  { %4070 = vmatmul.mubr.bf16.gmra.mrb[24].mxu0 %v7306_v24 }
 0x133   :  { %4935 = vmatmul.mubr.bf16.gmra.mrb[120].mxu1 %v7295_v12  ;;  %4105 = vmatpush1.bf16.msra.mxu0 %v7292_v23  ;;  %v7337_v12 = vld [vmem:[%s10160_s1 + $0x7b8] ss:$12 sps:$4 sm:$0xff]  }
 0x134   :  { %4942 = vmatprep.mubr.bf16.mxu1 %v7301_v17  ;;  %4106 = vmatprep.subr.bf16.mxu0 %v7300_v26  ;;  %v7331_v17 = vld [vmem:[%s10160_s1 + $0x7c8] ss:$12 sps:$4 sm:$0xff]  }
 0x135   :  { %4112 = vmatprep.mubr.bf16.mxu0 %v7314_v27  ;;  %v7356_v26 = vld [vmem:[%s10160_s1 + $0x8a8] ss:$12 sps:$4 sm:$0xff]  }
 0x136   :  { %v6058_v31 = vpop.f32.mrb[16].mxu1 }
 0x137   :  { %v6059_v32 = vpop.f32.mrb[17].mxu1  ;;  %4107 = vmatpush1.bf16.msra.mxu0 %v7298_v29  ;;  %v7344_v29 = vld [vmem:[%s10160_s1 + $0x7fc] ss:$12 sps:$4 sm:$0xff]  }
 0x138   :  { %v8795_v33 = vadd.f32 %v6059_v32, %v6058_v31  ;;  %v6061_v34 = vpop.f32.mrb[18].mxu1  ;;  %4108 = vmatprep.subr.bf16.mxu0 %v7305_v30  ;;  %v7347_v30 = vld [vmem:[%s10161_s0 + $0x1d4] ss:$72 sps:$4 sm:$0xff]  }
 0x139   :  { %v6062_v37 = vpop.f32.mrb[19].mxu1 }
 0x13a   :  { %v8803_v38 = vadd.f32 %v6062_v37, %v6061_v34  ;;  %v7364_v37 = vld [vmem:[%s10160_s1 + $0x8c0] ss:$12 sps:$4 sm:$0xff]  }
 0x13b   :  { %4943 = vmatmul.mubr.bf16.gmra.mrb[124].mxu1 %v7306_v24  ;;  %4109 = vmatpush1.bf16.msra.mxu0 %v7303_v35  ;;  %v7338_v24 = vld [vmem:[%s10160_s1 + $0x7e0] ss:$12 sps:$4 sm:$0xff]   ;;  %v7357_v35 = vld [vmem:[%s10160_s1 + $0x7e8] ss:$12 sps:$4 sm:$0xff]  }
 0x13c   :  { %4983 = vmatprep.mubr.bf16.mxu1 %v7314_v27  ;;  %4110 = vmatprep.subr.bf16.mxu0 %v7311_v36 }
 0x13e   :  { %v6064_v42 = vpop.f32.mrb[20].mxu1 }
 0x13f   :  { %v6065_v45 = vpop.f32.mrb[21].mxu1  ;;  %4111 = vmatpush1.bf16.msra.mxu0 %v7309_v39  ;;  %v7342_v39 = vld [vmem:[%s10160_s1 + $0x7f8] ss:$12 sps:$4 sm:$0xff]  }
 0x140   :  { %v8820_v47 = vadd.f32 %v6065_v45, %v6064_v42  ;;  %v6067_v48 = vpop.f32.mrb[22].mxu1  ;;  %4183 = vmatprep.subr.bf16.mxu0 %v7317_v41  ;;  %v7352_v41 = vld [vmem:[%s10161_s0 + $0x1d0] ss:$72 sps:$4 sm:$0xff]   ;;  %v7368_v42 = vld [vmem:[%s10160_s1 + $0x800] ss:$12 sps:$4 sm:$0xff]  }
 0x141   :  { %v6068_v52 = vpop.f32.mrb[23].mxu1 }
 0x142   :  { %v8828_v55 = vadd.f32 %v6068_v52, %v6067_v48  ;;  %4113 = vmatmul.mubr.bf16.vlgmr.msra.gmra.mrb[0].mxu0 %v7312_v40  ;;  %v7349_v52 = vld [vmem:[%s10160_s1 + $0x810] ss:$12 sps:$4 sm:$0xff]  }
 0x143   :  { %4984 = vmatmul.mubr.bf16.vlgmr.msra.gmra.mrb[128].mxu1 %v7312_v40  ;;  %4184 = vmatpush1.bf16.msra.mxu0 %v7315_v43  ;;  %v7351_v40 = vld [vmem:[%s10160_s1 + $0x814] ss:$12 sps:$4 sm:$0xff]  }
 0x144   :  { %6333 = vmatpush3.bf16.msra.mxu1 %v7319_v44  ;;  %4185 = vmatprep.subr.bf16.mxu0 %v7322_v50  ;;  %v7375_v44 = vld [vmem:[%s10160_s1 + $0x8d8] ss:$12 sps:$4 sm:$0xff]  }
 0x145   :  { %4991 = vmatprep.mubr.bf16.mxu1 %v7323_v51  ;;  %6334 = vmatprep.subr.bf16.mxu1 %v7325_v56 }
 0x146   :  { %v6070_v62 = vpop.f32.mrb[24].mxu1  ;;  %4122 = vmatprep.mubr.bf16.mxu0 %v7323_v51  ;;  %v7358_v51 = vld [vmem:[%s10161_s0 + $0x264] ss:$72 sps:$4 sm:$0xff]  }
 0x147   :  { %v6071_v1 = vpop.f32.mrb[25].mxu1  ;;  %4186 = vmatpush1.bf16.msra.mxu0 %v7320_v57  ;;  %v7355_v57 = vld [vmem:[%s10160_s1 + $0x82c] ss:$12 sps:$4 sm:$0xff]  }
 0x148   :  { %v8851_v5 = vadd.f32 %v6071_v1, %v6070_v62  ;;  %v6073_v6 = vpop.f32.mrb[26].mxu1  ;;  %6335 = vmatpush3.bf16.msra.mxu1 %v7330_v58  ;;  %4187 = vmatprep.subr.bf16.mxu0 %v7328_v59  ;;  %v7376_v59 = vld [vmem:[%s10160_s1 + $0x818] ss:$12 sps:$4 sm:$0xff]   ;;  %v7353_v62 = vld [vmem:[%s10160_s1 + $0x828] ss:$12 sps:$4 sm:$0xff]  }
 0x149   :  { %v6074_v8 = vpop.f32.mrb[27].mxu1  ;;  %6336 = vmatprep.subr.bf16.mxu1 %v7334_v60  ;;  %v7386_v60 = vld [vmem:[%s10160_s1 + $0x8f0] ss:$12 sps:$4 sm:$0xff]  }
 0x14a   :  { %v8862_v14 = vadd.f32 %v6074_v8, %v6073_v6  ;;  %4123 = vmatmul.mubr.bf16.gmra.mrb[4].mxu0 %v7329_v4  ;;  %v7362_v1 = vld [vmem:[%s10160_s1 + $0x844] ss:$12 sps:$4 sm:$0xff]   ;;  %v7363_v6 = vld [vmem:[%s10161_s0 + $0x260] ss:$72 sps:$4 sm:$0xff]  }
 0x14b   :  { %4992 = vmatmul.mubr.bf16.gmra.mrb[132].mxu1 %v7329_v4  ;;  %4188 = vmatpush1.bf16.msra.mxu0 %v7326_v3  ;;  %v7360_v4 = vld [vmem:[%s10160_s1 + $0x840] ss:$12 sps:$4 sm:$0xff]  }
 0x14c   :  { %4999 = vmatprep.mubr.bf16.mxu1 %v7335_v7  ;;  %4189 = vmatprep.subr.bf16.mxu0 %v7333_v10  ;;  %v719_v10 = vlaneseq }
 0x14d   :  { %6337 = vmatpush3.bf16.msra.mxu1 %v7337_v12  ;;  %4132 = vmatprep.mubr.bf16.mxu0 %v7335_v7  ;;  %v7387_v7 = vld [vmem:[%s10160_s1 + $0x830] ss:$12 sps:$4 sm:$0xff]  }
 0x14e   :  { %v6076_v23 = vpop.f32.mrb[28].mxu1  ;;  %6338 = vmatprep.subr.bf16.mxu1 %v7345_v16 }
 0x14f   :  { %v6077_v27 = vpop.f32.mrb[29].mxu1  ;;  %4190 = vmatpush1.bf16.msra.mxu0 %v7331_v17  ;;  %v7367_v17 = vld [vmem:[%s10160_s1 + $0x85c] ss:$12 sps:$4 sm:$0xff]  }
 0x150   :  { %v8891_v31 = vadd.f32 %v6077_v27, %v6076_v23  ;;  %v6079_v32 = vpop.f32.mrb[30].mxu1  ;;  %4191 = vmatprep.subr.bf16.mxu0 %v7340_v18  ;;  %v7369_v18 = vld [vmem:[%s10161_s0 + $0x2f4] ss:$72 sps:$4 sm:$0xff]  }
 0x151   :  { %v6080_v34 = vpop.f32.mrb[31].mxu1  ;;  %6339 = vmatpush3.bf16.msra.mxu1 %v7346_v20  ;;  %v7397_v23 = vld [vmem:[%s10160_s1 + $0x9c8] ss:$12 sps:$4 sm:$0xff]  }
 0x152   :  { %v8896_v36 = vadd.f32 %v6080_v34, %v6079_v32  ;;  %6340 = vmatprep.subr.bf16.mxu1 %v7356_v26  ;;  %4133 = vmatmul.mubr.bf16.gmra.mrb[8].mxu0 %v7341_v19  ;;  %v7365_v26 = vld [vmem:[%s10160_s1 + $0x858] ss:$12 sps:$4 sm:$0xff]   ;;  %v7373_v27 = vld [vmem:[%s10160_s1 + $0x874] ss:$12 sps:$4 sm:$0xff]   ;;  %v7371_v32 = vld [vmem:[%s10160_s1 + $0x870] ss:$12 sps:$4 sm:$0xff]  }
 0x153   :  { %5000 = vmatmul.mubr.bf16.gmra.mrb[136].mxu1 %v7341_v19  ;;  %4192 = vmatpush1.bf16.msra.mxu0 %v7338_v24  ;;  %v8963_v24 = vshrl.u32 %v719_v10, 7  ;;  %v7374_v34 = vld [vmem:[%s10161_s0 + $0x2f0] ss:$72 sps:$4 sm:$0xff]  }
 0x154   :  { %5007 = vmatprep.mubr.bf16.mxu1 %v7347_v30  ;;  %4193 = vmatprep.subr.bf16.mxu0 %v7344_v29 }
 0x155   :  { %6341 = vmatpush3.bf16.msra.mxu1 %v7357_v35  ;;  %4142 = vmatprep.mubr.bf16.mxu0 %v7347_v30  ;;  %v729_v35 = vsub.s32 2, %v8963_v24 }
 0x156   :  { %v6082_v43 = vpop.f32.mrb[32].mxu1  ;;  %6342 = vmatprep.subr.bf16.mxu1 %v7364_v37 }
 0x157   :  { %v6083_v45 = vpop.f32.mrb[33].mxu1  ;;  %4194 = vmatpush1.bf16.msra.mxu0 %v7342_v39 }
 0x158   :  { %v8916_v48 = vadd.f32 %v6083_v45, %v6082_v43  ;;  %v6085_v50 = vpop.f32.mrb[34].mxu1  ;;  %4195 = vmatprep.subr.bf16.mxu0 %v7351_v40  ;;  %v7380_v40 = vld [vmem:[%s10161_s0 + $0x384] ss:$72 sps:$4 sm:$0xff]  }
 0x159   :  { %v6086_v56 = vpop.f32.mrb[35].mxu1  ;;  %6343 = vmatpush3.bf16.msra.mxu1 %v7368_v42  ;;  %v7379_v43 = vld [vmem:[%s10160_s1 + $0x88c] ss:$12 sps:$4 sm:$0xff]  }
 0x15a   :  { %v8927_v58 = vadd.f32 %v6086_v56, %v6085_v50  ;;  %6344 = vmatprep.subr.bf16.mxu1 %v7375_v44  ;;  %4143 = vmatmul.mubr.bf16.gmra.mrb[12].mxu0 %v7352_v41  ;;  %v7377_v50 = vld [vmem:[%s10160_s1 + $0x888] ss:$12 sps:$4 sm:$0xff]   ;;  %v7382_v56 = vld [vmem:[%s10160_s1 + $0x8a0] ss:$12 sps:$4 sm:$0xff]  }
 0x15b   :  { %5008 = vmatmul.mubr.bf16.gmra.mrb[140].mxu1 %v7352_v41  ;;  %4196 = vmatpush1.bf16.msra.mxu0 %v7349_v52  ;;  %v717_v41 = vld [vmem:[%s10162_s2] sm:$0x7]  ;;  %v7384_v52 = vld [vmem:[%s10160_s1 + $0x8a4] ss:$12 sps:$4 sm:$0xff]  }
 0x15c   :  { %5015 = vmatprep.mubr.bf16.mxu1 %v7358_v51  ;;  %4197 = vmatprep.subr.bf16.mxu0 %v7355_v57  ;;  %v8991_v45 = vrot.slane %v717_v41, %v729_v35  ;;  %v7404_v41 = vld [vmem:[%s10160_s1 + $0x9e0] ss:$12 sps:$4 sm:$0xff]  }
 0x15d   :  { %4152 = vmatprep.mubr.bf16.mxu0 %v7358_v51  ;;  %6345 = vmatpush3.bf16.msra.mxu1 %v7376_v59  ;;  %v7385_v59 = vld [vmem:[%s10161_s0 + $0x380] ss:$72 sps:$4 sm:$0xff]  }
 0x15e   :  { %v6088_v3 = vpop.f32.mrb[36].mxu1  ;;  %6346 = vmatprep.subr.bf16.mxu1 %v7386_v60  ;;  %v7393_v60 = vld [vmem:[%s10161_s0 + $0x2c] ss:$72 sps:$4 sm:$0xff]   ;;  %v4641_v35 = vadd.f32 %v8828_v55, %v8991_v45 }
 0x15f   :  { %v6089_v8 = vpop.f32.mrb[37].mxu1  ;;  %4198 = vmatpush1.bf16.msra.mxu0 %v7353_v62  ;;  %v4630_v62 = vadd.f32 %v8795_v33, %v8991_v45  ;;  %v7388_v33 = vld [vmem:[%s10160_s1 + $0x8b8] ss:$12 sps:$4 sm:$0xff]   ;;  %v7409_v55 = vld [vmem:[%s10160_s1 + $0x920] ss:$12 sps:$4 sm:$0xff]  }
 0x160   :  { %v8950_v12 = vadd.f32 %v6089_v8, %v6088_v3  ;;  %v6091_v16 = vpop.f32.mrb[38].mxu1  ;;  %4199 = vmatprep.subr.bf16.mxu0 %v7362_v1 }
 0x161   :  { %v6092_v19 = vpop.f32.mrb[39].mxu1  ;;  %6347 = vmatpush3.bf16.msra.mxu1 %v7387_v7  ;;  %v4633_v7 = vadd.f32 %v8803_v38, %v8991_v45 }
 0x162   :  { %v8958_v20 = vadd.f32 %v6092_v19, %v6091_v16  ;;  %4153 = vmatmul.mubr.bf16.gmra.mrb[16].mxu0 %v7363_v6  ;;  %6390 = vmatprep.subr.bf16.mxu1 %v7397_v23  ;;  %v4638_v23 = vadd.f32 %v8820_v47, %v8991_v45  ;;  %v7402_v47 = vld [vmem:[%s10161_s0 + $0xbc] ss:$72 sps:$4 sm:$0xff]  }
 0x163   :  { %5016 = vmatmul.mubr.bf16.gmra.mrb[144].mxu1 %v7363_v6  ;;  %4200 = vmatpush1.bf16.msra.mxu0 %v7360_v4  ;;  %v7390_v6 = vld [vmem:[%s10160_s1 + $0x8bc] ss:$12 sps:$4 sm:$0xff]  }
 0x164   :  { %5023 = vmatprep.mubr.bf16.mxu1 %v7369_v18  ;;  %4201 = vmatprep.subr.bf16.mxu0 %v7367_v17  ;;  %v7396_v17 = vld [vmem:[%s10160_s1 + $0x8d4] ss:$12 sps:$4 sm:$0xff]  }
 0x165   :  { %4162 = vmatprep.mubr.bf16.mxu0 %v7369_v18  ;;  %v7391_v18 = vld [vmem:[%s10161_s0 + $0x28] ss:$72 sps:$4 sm:$0xff]  }
 0x166   :  { %v6094_v29 = vpop.f32.mrb[40].mxu1 }
 0x167   :  { %v6095_v30 = vpop.f32.mrb[41].mxu1  ;;  %4202 = vmatpush1.bf16.msra.mxu0 %v7365_v26 }
 0x168   :  { %v8978_v37 = vadd.f32 %v6095_v30, %v6094_v29  ;;  %v6097_v39 = vpop.f32.mrb[42].mxu1  ;;  %4203 = vmatprep.subr.bf16.mxu0 %v7373_v27  ;;  %v7394_v29 = vld [vmem:[%s10160_s1 + $0x8d0] ss:$12 sps:$4 sm:$0xff]   ;;  %v7398_v30 = vld [vmem:[%s10160_s1 + $0x908] ss:$12 sps:$4 sm:$0xff]  }
 0x169   :  { %v6098_v42 = vpop.f32.mrb[43].mxu1 }
 0x16a   :  { %v8989_v44 = vadd.f32 %v6098_v42, %v6097_v39  ;;  %4163 = vmatmul.mubr.bf16.gmra.mrb[20].mxu0 %v7374_v34  ;;  %v7399_v42 = vld [vmem:[%s10160_s1 + $0x8e8] ss:$12 sps:$4 sm:$0xff]  }
 0x16b   :  { %5024 = vmatmul.mubr.bf16.gmra.mrb[148].mxu1 %v7374_v34  ;;  %4204 = vmatpush1.bf16.msra.mxu0 %v7371_v32  ;;  %v7401_v34 = vld [vmem:[%s10160_s1 + $0x8ec] ss:$12 sps:$4 sm:$0xff]  }
 0x16c   :  { %5031 = vmatprep.mubr.bf16.mxu1 %v7380_v40  ;;  %4205 = vmatprep.subr.bf16.mxu0 %v7379_v43  ;;  %v7407_v43 = vld [vmem:[%s10160_s1 + $0x904] ss:$12 sps:$4 sm:$0xff]  }
 0x16d   :  { %4172 = vmatprep.mubr.bf16.mxu0 %v7380_v40 }
 0x16e   :  { %v6116_v51 = vpop.f32.mrb[44].mxu1 }
 0x16f   :  { %v6117_v57 = vpop.f32.mrb[45].mxu1  ;;  %4206 = vmatpush1.bf16.msra.mxu0 %v7377_v50 }
 0x170   :  { %v6118_v1 = vadd.f32 %v6117_v57, %v6116_v51  ;;  %v6119_v3 = vpop.f32.mrb[46].mxu1  ;;  %4207 = vmatprep.subr.bf16.mxu0 %v7384_v52  ;;  %v7413_v52 = vld [vmem:[%s10160_s1 + $0x9f8] ss:$12 sps:$4 sm:$0xff]  }
 0x171   :  { %v6120_v4 = vpop.f32.mrb[47].mxu1 }
 0x172   :  { %v9015_v8 = vadd.f32 %v6118_v1, %v4630_v62  ;;  %v6121_v10 = vadd.f32 %v6120_v4, %v6119_v3  ;;  %4173 = vmatmul.mubr.bf16.gmra.mrb[24].mxu0 %v7385_v59  ;;  %v7414_v3 = vld [vmem:[%s10161_s0 + $0x14c] ss:$72 sps:$4 sm:$0xff]  }
 0x173   :  { %5032 = vmatmul.mubr.bf16.gmra.mrb[152].mxu1 %v7385_v59  ;;  %4208 = vmatpush1.bf16.msra.mxu0 %v7382_v56  ;;  %v7405_v56 = vld [vmem:[%s10160_s1 + $0x900] ss:$12 sps:$4 sm:$0xff]  }
 0x174   :  { %v9017_v16 = vadd.f32 %v6121_v10, %v4633_v7  ;;  %5072 = vmatprep.mubr.bf16.mxu1 %v7393_v60  ;;  %4209 = vmatprep.subr.bf16.mxu0 %v7390_v6  ;;  %v7408_v59 = vld [vmem:[%s10161_s0 + $0xb8] ss:$72 sps:$4 sm:$0xff]   ;;  %v7412_v6 = vld [vmem:[%s10160_s1 + $0x91c] ss:$12 sps:$4 sm:$0xff]  }
 0x175   :  { %4215 = vmatprep.mubr.bf16.mxu0 %v7393_v60  ;;  %v4646_v60 = vadd.f32 %v8851_v5, %v8991_v45  ;;  %v7416_v7 = vld [vmem:[%s10160_s1 + $0x938] ss:$12 sps:$4 sm:$0xff]   ;;  %v4649_v5 = vadd.f32 %v8862_v14, %v8991_v45  ;;  %v7419_v14 = vld [vmem:[%s10160_s1 + $0x934] ss:$12 sps:$4 sm:$0xff]  }
 0x176   :  { %v6122_v38 = vpop.f32.mrb[48].mxu1 }
 0x177   :  { %v6123_v19 = vpop.f32.mrb[49].mxu1  ;;  %4210 = vmatpush1.bf16.msra.mxu0 %v7388_v33 }
 0x178   :  { %v6124_v26 = vadd.f32 %v6123_v19, %v6122_v38  ;;  %v6125_v27 = vpop.f32.mrb[50].mxu1  ;;  %4211 = vmatprep.subr.bf16.mxu0 %v7396_v17  ;;  %v7424_v17 = vld [vmem:[%s10160_s1 + $0xa10] ss:$12 sps:$4 sm:$0xff]   ;;  %v7410_v38 = vld [vmem:[%s10160_s1 + $0x918] ss:$12 sps:$4 sm:$0xff]  }
 0x179   :  { %v6126_v32 = vpop.f32.mrb[51].mxu1 }
 0x17a   :  { %v9044_v39 = vadd.f32 %v6124_v26, %v4638_v23  ;;  %v6127_v40 = vadd.f32 %v6126_v32, %v6125_v27  ;;  %v7425_v23 = vld [vmem:[%s10160_s1 + $0x950] ss:$12 sps:$4 sm:$0xff]   ;;  %v7423_v32 = vld [vmem:[%s10160_s1 + $0x94c] ss:$12 sps:$4 sm:$0xff]  }
 0x17b   :  { %5073 = vmatmul.mubr.bf16.vlgmr.msra.gmra.mrb[156].mxu1 %v7391_v18  ;;  %4212 = vmatpush1.bf16.msra.mxu0 %v7394_v29  ;;  %v7417_v27 = vld [vmem:[%s10160_s1 + $0x930] ss:$12 sps:$4 sm:$0xff]  }
 0x17c   :  { %v9055_v50 = vadd.f32 %v6127_v40, %v4641_v35  ;;  %6391 = vmatpush3.bf16.msra.mxu1 %v7398_v30  ;;  %4213 = vmatprep.subr.bf16.mxu0 %v7401_v34  ;;  %v7420_v30 = vld [vmem:[%s10161_s0 + $0x148] ss:$72 sps:$4 sm:$0xff]   ;;  %v4654_v34 = vadd.f32 %v8891_v31, %v8991_v45 }
 0x17d   :  { %5080 = vmatprep.mubr.bf16.mxu1 %v7402_v47  ;;  %6392 = vmatprep.subr.bf16.mxu1 %v7404_v41  ;;  %v7426_v41 = vld [vmem:[%s10161_s0 + $0x1dc] ss:$72 sps:$4 sm:$0xff]  }
 0x17e   :  { %v6128_v51 = vpop.f32.mrb[52].mxu1 }
 0x17f   :  { %v6129_v57 = vpop.f32.mrb[53].mxu1  ;;  %4214 = vmatpush1.bf16.msra.mxu0 %v7399_v42 }
 0x180   :  { %v6130_v62 = vadd.f32 %v6129_v57, %v6128_v51  ;;  %v6131_v1 = vpop.f32.mrb[54].mxu1  ;;  %6393 = vmatpush3.bf16.msra.mxu1 %v7409_v55  ;;  %4286 = vmatprep.subr.bf16.mxu0 %v7407_v43  ;;  %v4657_v43 = vadd.f32 %v8896_v36, %v8991_v45  ;;  %v7421_v51 = vld [vmem:[%s10160_s1 + $0x948] ss:$12 sps:$4 sm:$0xff]   ;;  %v7430_v36 = vld [vmem:[%s10160_s1 + $0x964] ss:$12 sps:$4 sm:$0xff]  }
 0x181   :  { %v6132_v4 = vpop.f32.mrb[55].mxu1  ;;  %6394 = vmatprep.subr.bf16.mxu1 %v7413_v52  ;;  %v7443_v52 = vld [vmem:[%s10160_s1 + $0xa40] ss:$12 sps:$4 sm:$0xff]  }
 0x182   :  { %v9082_v10 = vadd.f32 %v6130_v62, %v4646_v60  ;;  %v6133_v33 = vadd.f32 %v6132_v4, %v6131_v1  ;;  %4216 = vmatmul.mubr.bf16.vlgmr.msra.gmra.mrb[0].mxu0 %v7391_v18  ;;  %v7435_v18 = vld [vmem:[%s10160_s1 + $0xa28] ss:$12 sps:$4 sm:$0xff]   ;;  %v7447_v57 = vld [vmem:[%s10160_s1 + $0x980] ss:$12 sps:$4 sm:$0xff]  }
 0x183   :  { %5081 = vmatmul.mubr.bf16.gmra.mrb[160].mxu1 %v7408_v59  ;;  %4287 = vmatpush1.bf16.msra.mxu0 %v7405_v56  ;;  %v7428_v1 = vld [vmem:[%s10160_s1 + $0x960] ss:$12 sps:$4 sm:$0xff]  }
 0x184   :  { %v9090_v19 = vadd.f32 %v6133_v33, %v4649_v5  ;;  %5088 = vmatprep.mubr.bf16.mxu1 %v7414_v3  ;;  %4288 = vmatprep.subr.bf16.mxu0 %v7412_v6  ;;  %v7431_v4 = vld [vmem:[%s10161_s0 + $0x1d8] ss:$72 sps:$4 sm:$0xff]   ;;  %v4662_v6 = vadd.f32 %v8916_v48, %v8991_v45  ;;  %v7434_v5 = vld [vmem:[%s10160_s1 + $0x97c] ss:$12 sps:$4 sm:$0xff]   ;;  %v7437_v33 = vld [vmem:[%s10161_s0 + $0x26c] ss:$72 sps:$4 sm:$0xff]  }
 0x185   :  { %6395 = vmatpush3.bf16.msra.mxu1 %v7416_v7  ;;  %4225 = vmatprep.mubr.bf16.mxu0 %v7402_v47  ;;  %v7436_v47 = vld [vmem:[%s10160_s1 + $0x968] ss:$12 sps:$4 sm:$0xff]  }
 0x186   :  { %v6134_v26 = vpop.f32.mrb[56].mxu1  ;;  %6396 = vmatprep.subr.bf16.mxu1 %v7424_v17 }
 0x187   :  { %v6135_v29 = vpop.f32.mrb[57].mxu1  ;;  %4289 = vmatpush1.bf16.msra.mxu0 %v7410_v38  ;;  %v4665_v38 = vadd.f32 %v8927_v58, %v8991_v45  ;;  %v7432_v58 = vld [vmem:[%s10160_s1 + $0x978] ss:$12 sps:$4 sm:$0xff]  }
 0x188   :  { %v6136_v35 = vadd.f32 %v6135_v29, %v6134_v26  ;;  %v6137_v40 = vpop.f32.mrb[58].mxu1  ;;  %4290 = vmatprep.subr.bf16.mxu0 %v7419_v14 }
 0x189   :  { %v6138_v42 = vpop.f32.mrb[59].mxu1  ;;  %6397 = vmatpush3.bf16.msra.mxu1 %v7425_v23  ;;  %v7455_v23 = vld [vmem:[%s10160_s1 + $0x998] ss:$12 sps:$4 sm:$0xff]  }
 0x18a   :  { %v9120_v55 = vadd.f32 %v6136_v35, %v4654_v34  ;;  %v6139_v31 = vadd.f32 %v6138_v42, %v6137_v40  ;;  %6398 = vmatprep.subr.bf16.mxu1 %v7435_v18  ;;  %4226 = vmatmul.mubr.bf16.gmra.mrb[4].mxu0 %v7408_v59  ;;  %v7454_v59 = vld [vmem:[%s10160_s1 + $0xa58] ss:$12 sps:$4 sm:$0xff]   ;;  %v7465_v18 = vld [vmem:[%s10160_s1 + $0xa70] ss:$12 sps:$4 sm:$0xff]  }
 0x18b   :  { %5089 = vmatmul.mubr.bf16.gmra.mrb[164].mxu1 %v7420_v30  ;;  %4291 = vmatpush1.bf16.msra.mxu0 %v7417_v27  ;;  %v7441_v27 = vld [vmem:[%s10160_s1 + $0x994] ss:$12 sps:$4 sm:$0xff]   ;;  %v7442_v35 = vld [vmem:[%s10161_s0 + $0x268] ss:$72 sps:$4 sm:$0xff]   ;;  %v7448_v40 = vld [vmem:[%s10161_s0 + $0x2fc] ss:$72 sps:$4 sm:$0xff]  }
 0x18c   :  { %v9128_v56 = vadd.f32 %v6139_v31, %v4657_v43  ;;  %5096 = vmatprep.mubr.bf16.mxu1 %v7426_v41  ;;  %4292 = vmatprep.subr.bf16.mxu0 %v7423_v32  ;;  %v7466_v32 = vld [vmem:[%s10160_s1 + $0x9b0] ss:$12 sps:$4 sm:$0xff]   ;;  %v7446_v31 = vld [vmem:[%s10160_s1 + $0x9ac] ss:$12 sps:$4 sm:$0xff]  }
 0x18d   :  { %6399 = vmatpush3.bf16.msra.mxu1 %v7436_v47  ;;  %4235 = vmatprep.mubr.bf16.mxu0 %v7414_v3 }
 0x18e   :  { %v6140_v60 = vpop.f32.mrb[60].mxu1  ;;  %6400 = vmatprep.subr.bf16.mxu1 %v7443_v52  ;;  %v4673_v52 = vadd.f32 %v8958_v20, %v8991_v45  ;;  %v7452_v20 = vld [vmem:[%s10160_s1 + $0x9c4] ss:$12 sps:$4 sm:$0xff]  }
 0x18f   :  { %v6141_v62 = vpop.f32.mrb[61].mxu1  ;;  %4293 = vmatpush1.bf16.msra.mxu0 %v7421_v51 }
 0x190   :  { %v6142_v7 = vadd.f32 %v6141_v62, %v6140_v60  ;;  %v6143_v3 = vpop.f32.mrb[62].mxu1  ;;  %4294 = vmatprep.subr.bf16.mxu0 %v7430_v36  ;;  %v7444_v60 = vld [vmem:[%s10160_s1 + $0x9a8] ss:$12 sps:$4 sm:$0xff]   ;;  %v7450_v62 = vld [vmem:[%s10160_s1 + $0x9c0] ss:$12 sps:$4 sm:$0xff]  }
 0x191   :  { %v6144_v17 = vpop.f32.mrb[63].mxu1  ;;  %6401 = vmatpush3.bf16.msra.mxu1 %v7447_v57 }
 0x192   :  { %v9155_v14 = vadd.f32 %v6142_v7, %v4662_v6  ;;  %v6145_v48 = vadd.f32 %v6144_v17, %v6143_v3  ;;  %6402 = vmatprep.subr.bf16.mxu1 %v7454_v59  ;;  %4236 = vmatmul.mubr.bf16.gmra.mrb[8].mxu0 %v7420_v30  ;;  %v7439_v30 = vld [vmem:[%s10160_s1 + $0x990] ss:$12 sps:$4 sm:$0xff]   ;;  %v7459_v6 = vld [vmem:[%s10161_s0 + $0x38c] ss:$72 sps:$4 sm:$0xff]   ;;  %v4678_v7 = vadd.f32 %v8978_v37, %v8991_v45  ;;  %v7456_v37 = vld [vmem:[%s10160_s1 + $0x9d8] ss:$12 sps:$4 sm:$0xff]  }
 0x193   :  { %5097 = vmatmul.mubr.bf16.gmra.mrb[168].mxu1 %v7431_v4  ;;  %4295 = vmatpush1.bf16.msra.mxu0 %v7428_v1  ;;  %v7453_v1 = vld [vmem:[%s10161_s0 + $0x2f8] ss:$72 sps:$4 sm:$0xff]   ;;  %v7458_v17 = vld [vmem:[%s10160_s1 + $0x9dc] ss:$12 sps:$4 sm:$0xff]  }
 0x194   :  { %v9163_v26 = vadd.f32 %v6145_v48, %v4665_v38  ;;  %5104 = vmatprep.mubr.bf16.mxu1 %v7437_v33  ;;  %4296 = vmatprep.subr.bf16.mxu0 %v7434_v5  ;;  %v4681_v38 = vadd.f32 %v8989_v44, %v8991_v45 }
 0x195   :  { %4245 = vmatprep.mubr.bf16.mxu0 %v7426_v41  ;;  %6403 = vmatpush3.bf16.msra.mxu1 %v7455_v23  ;;  %v4670_v41 = vadd.f32 %v8950_v12, %v8991_v45  ;;  %v7476_v12 = vld [vmem:[%s10160_s1 + $0xb48] ss:$12 sps:$4 sm:$0xff]  }
 0x196   :  { %v6146_v29 = vpop.f32.mrb[64].mxu1  ;;  %6404 = vmatprep.subr.bf16.mxu1 %v7465_v18 }
 0x197   :  { %v6147_v34 = vpop.f32.mrb[65].mxu1  ;;  %4297 = vmatpush1.bf16.msra.mxu0 %v7432_v58  ;;  %v7463_v58 = vld [vmem:[%s10160_s1 + $0x9f4] ss:$12 sps:$4 sm:$0xff]  }
 0x198   :  { %v6148_v47 = vadd.f32 %v6147_v34, %v6146_v29  ;;  %v6149_v42 = vpop.f32.mrb[66].mxu1  ;;  %4298 = vmatprep.subr.bf16.mxu0 %v7441_v27  ;;  %v7464_v27 = vld [vmem:[%s10161_s0 + $0x388] ss:$72 sps:$4 sm:$0xff]   ;;  %v7472_v34 = vld [vmem:[%s10161_s0 + $0x34] ss:$72 sps:$4 sm:$0xff]  }
 0x199   :  { %v6150_v43 = vpop.f32.mrb[67].mxu1  ;;  %6405 = vmatpush3.bf16.msra.mxu1 %v7466_v32  ;;  %v7461_v32 = vld [vmem:[%s10160_s1 + $0x9f0] ss:$12 sps:$4 sm:$0xff]  }
 0x19a   :  { %v9190_v51 = vadd.f32 %v6148_v47, %v4670_v41  ;;  %v6151_v36 = vadd.f32 %v6150_v43, %v6149_v42  ;;  %4246 = vmatmul.mubr.bf16.gmra.mrb[12].mxu0 %v7431_v4  ;;  %6448 = vmatprep.subr.bf16.mxu1 %v7476_v12  ;;  %v7467_v43 = vld [vmem:[%s10160_s1 + $0xa08] ss:$12 sps:$4 sm:$0xff]  }
 0x19b   :  { %5105 = vmatmul.mubr.bf16.gmra.mrb[172].mxu1 %v7442_v35  ;;  %4299 = vmatpush1.bf16.msra.mxu0 %v7439_v30 }
 0x19c   :  { %v9195_v57 = vadd.f32 %v6151_v36, %v4673_v52  ;;  %5112 = vmatprep.mubr.bf16.mxu1 %v7448_v40  ;;  %4300 = vmatprep.subr.bf16.mxu0 %v7446_v31  ;;  %v7475_v31 = vld [vmem:[%s10160_s1 + $0xa24] ss:$12 sps:$4 sm:$0xff]  }
 0x19d   :  { %4255 = vmatprep.mubr.bf16.mxu0 %v7437_v33  ;;  %v9256_v36 = vld [vmem:[%s10161_s0 + $0x30] ss:$72 sps:$4 sm:$0xff]  }
 0x19e   :  { %v6152_v59 = vpop.f32.mrb[68].mxu1 }
 0x19f   :  { %v6153_v4 = vpop.f32.mrb[69].mxu1  ;;  %4301 = vmatpush1.bf16.msra.mxu0 %v7444_v60  ;;  %v7473_v60 = vld [vmem:[%s10160_s1 + $0xa20] ss:$12 sps:$4 sm:$0xff]  }
 0x1a0   :  { %v6154_v3 = vadd.f32 %v6153_v4, %v6152_v59  ;;  %v6155_v5 = vpop.f32.mrb[70].mxu1  ;;  %4302 = vmatprep.subr.bf16.mxu0 %v7452_v20  ;;  %v7477_v20 = vld [vmem:[%s10160_s1 + $0xa88] ss:$12 sps:$4 sm:$0xff]  }
 0x1a1   :  { %v6156_v33 = vpop.f32.mrb[71].mxu1 }
 0x1a2   :  { %v9219_v48 = vadd.f32 %v6154_v3, %v4678_v7  ;;  %v6157_v23 = vadd.f32 %v6156_v33, %v6155_v5  ;;  %4256 = vmatmul.mubr.bf16.gmra.mrb[16].mxu0 %v7442_v35  ;;  %v7483_v7 = vld [vmem:[%s10160_s1 + $0xb60] ss:$12 sps:$4 sm:$0xff]   ;;  %v7478_v5 = vld [vmem:[%s10160_s1 + $0xa38] ss:$12 sps:$4 sm:$0xff]  }
 0x1a3   :  { %5113 = vmatmul.mubr.bf16.gmra.mrb[176].mxu1 %v7453_v1  ;;  %4303 = vmatpush1.bf16.msra.mxu0 %v7450_v62  ;;  %v7480_v62 = vld [vmem:[%s10160_s1 + $0xa3c] ss:$12 sps:$4 sm:$0xff]   ;;  %v7486_v33 = vld [vmem:[%s10160_s1 + $0xa54] ss:$12 sps:$4 sm:$0xff]  }
 0x1a4   :  { %v9221_v18 = vadd.f32 %v6157_v23, %v4681_v38  ;;  %5120 = vmatprep.mubr.bf16.mxu1 %v7459_v6  ;;  %4304 = vmatprep.subr.bf16.mxu0 %v7458_v17  ;;  %v9298_v23 = vld [vmem:[%s10161_s0 + $0xc0] ss:$72 sps:$4 sm:$0xff]  }
 0x1a5   :  { %4265 = vmatprep.mubr.bf16.mxu0 %v7448_v40  ;;  %v7469_v40 = vld [vmem:[%s10160_s1 + $0xa0c] ss:$12 sps:$4 sm:$0xff]  }
 0x1a6   :  { %v6174_v44 = vpop.f32.mrb[72].mxu1 }
 0x1a7   :  { %v6175_v45 = vpop.f32.mrb[73].mxu1  ;;  %4305 = vmatpush1.bf16.msra.mxu0 %v7456_v37 }
 0x1a8   :  { %v6176_v29 = vadd.f32 %v6175_v45, %v6174_v44  ;;  %v6177_v30 = vpop.f32.mrb[74].mxu1  ;;  %4306 = vmatprep.subr.bf16.mxu0 %v7463_v58  ;;  %v7484_v44 = vld [vmem:[%s10160_s1 + $0xa50] ss:$12 sps:$4 sm:$0xff]  }
 0x1a9   :  { %v6178_v35 = vpop.f32.mrb[75].mxu1  ;;  %v9306_v45 = vld [vmem:[%s10161_s0 + $0x154] ss:$72 sps:$4 sm:$0xff]  }
 0x1aa   :  { %v9242_v41 = vadd.f32 %v6176_v29, %v9015_v8  ;;  %v6179_v47 = vadd.f32 %v6178_v35, %v6177_v30  ;;  %4266 = vmatmul.mubr.bf16.gmra.mrb[20].mxu0 %v7453_v1  ;;  %v9270_v1 = vld [vmem:[%s10161_s0 + $0xc4] ss:$72 sps:$4 sm:$0xff]   ;;  %v7503_v35 = vld [vmem:[%s10160_s1 + $0xb90] ss:$12 sps:$4 sm:$0xff]  }
 0x1ab   :  { %5121 = vmatmul.mubr.bf16.gmra.mrb[180].mxu1 %v7464_v27  ;;  %4307 = vmatpush1.bf16.msra.mxu0 %v7461_v32  ;;  %v7491_v29 = vld [vmem:[%s10160_s1 + $0xa6c] ss:$12 sps:$4 sm:$0xff]  }
 0x1ac   :  { %v9245_v42 = vadd.f32 %v6179_v47, %v9017_v16  ;;  %5161 = vmatprep.mubr.bf16.mxu1 %v7472_v34  ;;  %4308 = vmatprep.subr.bf16.mxu0 %v7469_v40  ;;  %v7495_v30 = vld [vmem:[%s10160_s1 + $0xab8] ss:$12 sps:$4 sm:$0xff]   ;;  %v7489_v47 = vld [vmem:[%s10160_s1 + $0xa68] ss:$12 sps:$4 sm:$0xff]  }
 0x1ad   :  { %4275 = vmatprep.mubr.bf16.mxu0 %v7459_v6 }
 0x1ae   :  { %v6180_v8 = vpop.f32.mrb[76].mxu1 }
 0x1af   :  { %v6181_v52 = vpop.f32.mrb[77].mxu1  ;;  %4309 = vmatpush1.bf16.msra.mxu0 %v7467_v43  ;;  %v7504_v43 = vld [vmem:[%s10160_s1 + $0xad0] ss:$12 sps:$4 sm:$0xff]  }
 0x1b0   :  { %v6182_v16 = vadd.f32 %v6181_v52, %v6180_v8  ;;  %v6183_v12 = vpop.f32.mrb[78].mxu1  ;;  %4310 = vmatprep.subr.bf16.mxu0 %v7475_v31  ;;  %v9340_v52 = vld [vmem:[%s10161_s0 + $0x150] ss:$72 sps:$4 sm:$0xff]  }
 0x1b1   :  { %v6184_v59 = vpop.f32.mrb[79].mxu1 }
 0x1b2   :  { %v9273_v4 = vadd.f32 %v6182_v16, %v9044_v39  ;;  %v6185_v6 = vadd.f32 %v6184_v59, %v6183_v12  ;;  %4276 = vmatmul.mubr.bf16.gmra.mrb[24].mxu0 %v7464_v27  ;;  %v7488_v39 = vld [vmem:[%s10160_s1 + $0xaa0] ss:$12 sps:$4 sm:$0xff]  }
 0x1b3   :  { %5162 = vmatmul.mubr.bf16.vlgmr.msra.gmra.mrb[184].mxu1 %v9256_v36  ;;  %4311 = vmatpush1.bf16.msra.mxu0 %v7473_v60  ;;  %v7496_v60 = vld [vmem:[%s10160_s1 + $0xa80] ss:$12 sps:$4 sm:$0xff]  }
 0x1b4   :  { %v9280_v3 = vadd.f32 %v6185_v6, %v9055_v50  ;;  %6449 = vmatpush3.bf16.msra.mxu1 %v7477_v20  ;;  %4312 = vmatprep.subr.bf16.mxu0 %v7480_v62  ;;  %v7492_v50 = vld [vmem:[%s10160_s1 + $0xb78] ss:$12 sps:$4 sm:$0xff]   ;;  %v7502_v62 = vld [vmem:[%s10160_s1 + $0xa9c] ss:$12 sps:$4 sm:$0xff]  }
 0x1b5   :  { %5169 = vmatprep.mubr.bf16.mxu1 %v9270_v1  ;;  %6450 = vmatprep.subr.bf16.mxu1 %v7483_v7  ;;  %v9348_v20 = vld [vmem:[%s10161_s0 + $0x1e4] ss:$72 sps:$4 sm:$0xff]   ;;  %v7515_v6 = vld [vmem:[%s10160_s1 + $0xae8] ss:$12 sps:$4 sm:$0xff]  }
 0x1b6   :  { %v6186_v17 = vpop.f32.mrb[80].mxu1  ;;  %4318 = vmatprep.mubr.bf16.mxu0 %v7472_v34 }
 0x1b7   :  { %v6187_v38 = vpop.f32.mrb[81].mxu1  ;;  %4313 = vmatpush1.bf16.msra.mxu0 %v7478_v5 }
 0x1b8   :  { %v6188_v37 = vadd.f32 %v6187_v38, %v6186_v17  ;;  %v6189_v58 = vpop.f32.mrb[82].mxu1  ;;  %6451 = vmatpush3.bf16.msra.mxu1 %v7488_v39  ;;  %4314 = vmatprep.subr.bf16.mxu0 %v7486_v33  ;;  %v7522_v39 = vld [vmem:[%s10160_s1 + $0xbc0] ss:$12 sps:$4 sm:$0xff]  }
 0x1b9   :  { %v6190_v27 = vpop.f32.mrb[83].mxu1  ;;  %6452 = vmatprep.subr.bf16.mxu1 %v7492_v50  ;;  %v7500_v50 = vld [vmem:[%s10160_s1 + $0xa98] ss:$12 sps:$4 sm:$0xff]  }
 0x1ba   :  { %v9315_v32 = vadd.f32 %v6188_v37, %v9082_v10  ;;  %v6191_v34 = vadd.f32 %v6190_v27, %v6189_v58  ;;  %v7498_v10 = vld [vmem:[%s10160_s1 + $0xa84] ss:$12 sps:$4 sm:$0xff]   ;;  %v9384_v37 = vld [vmem:[%s10161_s0 + $0x1e0] ss:$72 sps:$4 sm:$0xff]  }
 0x1bb   :  { %5170 = vmatmul.mubr.bf16.gmra.mrb[188].mxu1 %v9298_v23  ;;  %4315 = vmatpush1.bf16.msra.mxu0 %v7484_v44  ;;  %v7507_v27 = vld [vmem:[%s10160_s1 + $0xab0] ss:$12 sps:$4 sm:$0xff]  }
 0x1bc   :  { %v9322_v40 = vadd.f32 %v6191_v34, %v9090_v19  ;;  %5177 = vmatprep.mubr.bf16.mxu1 %v9306_v45  ;;  %4316 = vmatprep.subr.bf16.mxu0 %v7491_v29  ;;  %v7514_v19 = vld [vmem:[%s10160_s1 + $0xba8] ss:$12 sps:$4 sm:$0xff]  }
 0x1bd   :  { %6453 = vmatpush3.bf16.msra.mxu1 %v7495_v30  ;;  %v7513_v30 = vld [vmem:[%s10160_s1 + $0xacc] ss:$12 sps:$4 sm:$0xff]  }
 0x1be   :  { %v6192_v31 = vpop.f32.mrb[84].mxu1  ;;  %6454 = vmatprep.subr.bf16.mxu1 %v7503_v35 }
 0x1bf   :  { %v6193_v8 = vpop.f32.mrb[85].mxu1  ;;  %4317 = vmatpush1.bf16.msra.mxu0 %v7489_v47  ;;  %v7534_v47 = vld [vmem:[%s10160_s1 + $0xb18] ss:$12 sps:$4 sm:$0xff]  }
 0x1c0   :  { %v6194_v16 = vadd.f32 %v6193_v8, %v6192_v31  ;;  %v6195_v12 = vpop.f32.mrb[86].mxu1  ;;  %4389 = vmatprep.subr.bf16.mxu0 %v7498_v10  ;;  %v7544_v10 = vld [vmem:[%s10160_s1 + $0xbf0] ss:$12 sps:$4 sm:$0xff]  }
 0x1c1   :  { %v6196_v59 = vpop.f32.mrb[87].mxu1  ;;  %6455 = vmatpush3.bf16.msra.mxu1 %v7504_v43  ;;  %v7520_v31 = vld [vmem:[%s10160_s1 + $0xae4] ss:$12 sps:$4 sm:$0xff]  }
 0x1c2   :  { %v9357_v7 = vadd.f32 %v6194_v16, %v9120_v55  ;;  %v6197_v5 = vadd.f32 %v6196_v59, %v6195_v12  ;;  %6456 = vmatprep.subr.bf16.mxu1 %v7514_v19  ;;  %4319 = vmatmul.mubr.bf16.vlgmr.msra.gmra.mrb[0].mxu0 %v9256_v36  ;;  %v7509_v55 = vld [vmem:[%s10160_s1 + $0xab4] ss:$12 sps:$4 sm:$0xff]   ;;  %v7521_v8 = vld [vmem:[%s10161_s0 + $0x270] ss:$72 sps:$4 sm:$0xff]  }
 0x1c3   :  { %5178 = vmatmul.mubr.bf16.gmra.mrb[192].mxu1 %v9340_v52  ;;  %4390 = vmatpush1.bf16.msra.mxu0 %v7496_v60  ;;  %v7526_v36 = vld [vmem:[%s10160_s1 + $0xb00] ss:$12 sps:$4 sm:$0xff]  }
 0x1c4   :  { %v9365_v33 = vadd.f32 %v6197_v5, %v9128_v56  ;;  %5185 = vmatprep.mubr.bf16.mxu1 %v9348_v20  ;;  %4391 = vmatprep.subr.bf16.mxu0 %v7502_v62  ;;  %v7533_v56 = vld [vmem:[%s10160_s1 + $0xbd8] ss:$12 sps:$4 sm:$0xff]   ;;  %v7518_v60 = vld [vmem:[%s10160_s1 + $0xae0] ss:$12 sps:$4 sm:$0xff]   ;;  %v7525_v62 = vld [vmem:[%s10160_s1 + $0xafc] ss:$12 sps:$4 sm:$0xff]  }
 0x1c5   :  { %6457 = vmatpush3.bf16.msra.mxu1 %v7515_v6  ;;  %4328 = vmatprep.mubr.bf16.mxu0 %v9270_v1  ;;  %v9392_v1 = vld [vmem:[%s10161_s0 + $0x274] ss:$72 sps:$4 sm:$0xff]  }
 0x1c6   :  { %v6198_v17 = vpop.f32.mrb[88].mxu1  ;;  %6458 = vmatprep.subr.bf16.mxu1 %v7522_v39  ;;  %v7555_v39 = vld [vmem:[%s10160_s1 + $0xcc8] ss:$12 sps:$4 sm:$0xff]  }
 0x1c7   :  { %v6199_v38 = vpop.f32.mrb[89].mxu1  ;;  %4392 = vmatpush1.bf16.msra.mxu0 %v7500_v50 }
 0x1c8   :  { %v6200_v58 = vadd.f32 %v6199_v38, %v6198_v17  ;;  %v6201_v44 = vpop.f32.mrb[90].mxu1  ;;  %4393 = vmatprep.subr.bf16.mxu0 %v7509_v55  ;;  %v7523_v55 = vld [vmem:[%s10160_s1 + $0xaf8] ss:$12 sps:$4 sm:$0xff]   ;;  %v7529_v38 = vld [vmem:[%s10160_s1 + $0xb10] ss:$12 sps:$4 sm:$0xff]  }
 0x1c9   :  { %v6202_v29 = vpop.f32.mrb[91].mxu1  ;;  %6459 = vmatpush3.bf16.msra.mxu1 %v7526_v36 }
 0x1ca   :  { %v9398_v34 = vadd.f32 %v6200_v58, %v9155_v14  ;;  %v6203_v35 = vadd.f32 %v6202_v29, %v6201_v44  ;;  %6460 = vmatprep.subr.bf16.mxu1 %v7533_v56  ;;  %4329 = vmatmul.mubr.bf16.gmra.mrb[4].mxu0 %v9298_v23  ;;  %v7511_v14 = vld [vmem:[%s10160_s1 + $0xac8] ss:$12 sps:$4 sm:$0xff]   ;;  %v7537_v44 = vld [vmem:[%s10160_s1 + $0xb2c] ss:$12 sps:$4 sm:$0xff]  }
 0x1cb   :  { %5186 = vmatmul.mubr.bf16.gmra.mrb[196].mxu1 %v9384_v37  ;;  %4394 = vmatpush1.bf16.msra.mxu0 %v7507_v27  ;;  %v9460_v58 = vld [vmem:[%s10161_s0 + $0x394] ss:$72 sps:$4 sm:$0xff]  }
 0x1cc   :  { %v9409_v43 = vadd.f32 %v6203_v35, %v9163_v26  ;;  %5193 = vmatprep.mubr.bf16.mxu1 %v9392_v1  ;;  %4395 = vmatprep.subr.bf16.mxu0 %v7513_v30  ;;  %v7545_v26 = vld [vmem:[%s10160_s1 + $0xb30] ss:$12 sps:$4 sm:$0xff]   ;;  %v7535_v35 = vld [vmem:[%s10160_s1 + $0xb28] ss:$12 sps:$4 sm:$0xff]  }
 0x1cd   :  { %4338 = vmatprep.mubr.bf16.mxu0 %v9306_v45  ;;  %6461 = vmatpush3.bf16.msra.mxu1 %v7534_v47  ;;  %v7527_v45 = vld [vmem:[%s10161_s0 + $0x304] ss:$72 sps:$4 sm:$0xff]  }
 0x1ce   :  { %v6204_v23 = vpop.f32.mrb[92].mxu1  ;;  %6462 = vmatprep.subr.bf16.mxu1 %v7544_v10 }
 0x1cf   :  { %v6205_v19 = vpop.f32.mrb[93].mxu1  ;;  %4396 = vmatpush1.bf16.msra.mxu0 %v7511_v14 }
 0x1d0   :  { %v6206_v16 = vadd.f32 %v6205_v19, %v6204_v23  ;;  %v6207_v12 = vpop.f32.mrb[94].mxu1  ;;  %4397 = vmatprep.subr.bf16.mxu0 %v7520_v31  ;;  %v7540_v31 = vld [vmem:[%s10160_s1 + $0xb40] ss:$12 sps:$4 sm:$0xff]   ;;  %v9491_v23 = vld [vmem:[%s10161_s0 + $0x3c] ss:$72 sps:$4 sm:$0xff]  }
 0x1d1   :  { %v6208_v59 = vpop.f32.mrb[95].mxu1  ;;  %6463 = vmatpush3.bf16.msra.mxu1 %v7545_v26  ;;  %v7548_v26 = vld [vmem:[%s10160_s1 + $0xb5c] ss:$12 sps:$4 sm:$0xff]  }
 0x1d2   :  { %v9435_v6 = vadd.f32 %v6206_v16, %v9190_v51  ;;  %v6209_v5 = vadd.f32 %v6208_v59, %v6207_v12  ;;  %4339 = vmatmul.mubr.bf16.gmra.mrb[8].mxu0 %v9340_v52  ;;  %v7531_v51 = vld [vmem:[%s10160_s1 + $0xb14] ss:$12 sps:$4 sm:$0xff]   ;;  %6506 = vmatprep.subr.bf16.mxu1 %v7555_v39  ;;  %v7552_v39 = vld [vmem:[%s10160_s1 + $0xb70] ss:$12 sps:$4 sm:$0xff]  }
 0x1d3   :  { %5194 = vmatmul.mubr.bf16.gmra.mrb[200].mxu1 %v7521_v8  ;;  %4398 = vmatpush1.bf16.msra.mxu0 %v7518_v60  ;;  %v7546_v60 = vld [vmem:[%s10160_s1 + $0xb58] ss:$12 sps:$4 sm:$0xff]  }
 0x1d4   :  { %v9442_v50 = vadd.f32 %v6209_v5, %v9195_v57  ;;  %5201 = vmatprep.mubr.bf16.mxu1 %v7527_v45  ;;  %4399 = vmatprep.subr.bf16.mxu0 %v7525_v62  ;;  %v7532_v57 = vld [vmem:[%s10161_s0 + $0x300] ss:$72 sps:$4 sm:$0xff]  }
 0x1d5   :  { %4348 = vmatprep.mubr.bf16.mxu0 %v9348_v20 }
 0x1d6   :  { %v6210_v36 = vpop.f32.mrb[96].mxu1 }
 0x1d7   :  { %v6211_v17 = vpop.f32.mrb[97].mxu1  ;;  %4400 = vmatpush1.bf16.msra.mxu0 %v7523_v55  ;;  %v7556_v55 = vld [vmem:[%s10160_s1 + $0xc08] ss:$12 sps:$4 sm:$0xff]  }
 0x1d8   :  { %v6212_v52 = vadd.f32 %v6211_v17, %v6210_v36  ;;  %v6213_v56 = vpop.f32.mrb[98].mxu1  ;;  %4401 = vmatprep.subr.bf16.mxu0 %v7531_v51  ;;  %v9527_v36 = vld [vmem:[%s10161_s0 + $0xcc] ss:$72 sps:$4 sm:$0xff]  }
 0x1d9   :  { %v6214_v20 = vpop.f32.mrb[99].mxu1 }
 0x1da   :  { %v9466_v27 = vadd.f32 %v6212_v52, %v9219_v48  ;;  %v6215_v29 = vadd.f32 %v6214_v20, %v6213_v56  ;;  %4349 = vmatmul.mubr.bf16.gmra.mrb[12].mxu0 %v9384_v37  ;;  %v7542_v48 = vld [vmem:[%s10160_s1 + $0xb44] ss:$12 sps:$4 sm:$0xff]   ;;  %v7562_v56 = vld [vmem:[%s10160_s1 + $0xce0] ss:$12 sps:$4 sm:$0xff]   ;;  %v7557_v20 = vld [vmem:[%s10160_s1 + $0xb88] ss:$12 sps:$4 sm:$0xff]  }
 0x1db   :  { %5202 = vmatmul.mubr.bf16.gmra.mrb[204].mxu1 %v7532_v57  ;;  %4402 = vmatpush1.bf16.msra.mxu0 %v7529_v38 }
 0x1dc   :  { %v9470_v30 = vadd.f32 %v6215_v29, %v9221_v18  ;;  %5209 = vmatprep.mubr.bf16.mxu1 %v9460_v58  ;;  %4403 = vmatprep.subr.bf16.mxu0 %v7537_v44  ;;  %v9483_v18 = vld [vmem:[%s10161_s0 + $0x390] ss:$72 sps:$4 sm:$0xff]  }
 0x1dd   :  { %4358 = vmatprep.mubr.bf16.mxu0 %v9392_v1 }
 0x1de   :  { %v6232_v47 = vpop.f32.mrb[100].mxu1 }
 0x1df   :  { %v6233_v10 = vpop.f32.mrb[101].mxu1  ;;  %4404 = vmatpush1.bf16.msra.mxu0 %v7535_v35  ;;  %v9556_v35 = vld [vmem:[%s10161_s0 + $0xc8] ss:$72 sps:$4 sm:$0xff]  }
 0x1e0   :  { %v6234_v37 = vadd.f32 %v6233_v10, %v6232_v47  ;;  %v6235_v14 = vpop.f32.mrb[102].mxu1  ;;  %4405 = vmatprep.subr.bf16.mxu0 %v7542_v48  ;;  %v7563_v10 = vld [vmem:[%s10160_s1 + $0xba0] ss:$12 sps:$4 sm:$0xff]  }
 0x1e1   :  { %v6236_v1 = vpop.f32.mrb[103].mxu1 }
 0x1e2   :  { %v9497_v19 = vadd.f32 %v6234_v37, %v9242_v41  ;;  %v6237_v16 = vadd.f32 %v6236_v1, %v6235_v14  ;;  %4359 = vmatmul.mubr.bf16.gmra.mrb[16].mxu0 %v7521_v8  ;;  %v7554_v41 = vld [vmem:[%s10160_s1 + $0xb74] ss:$12 sps:$4 sm:$0xff]   ;;  %v9564_v37 = vld [vmem:[%s10161_s0 + $0x15c] ss:$72 sps:$4 sm:$0xff]  }
 0x1e3   :  { %5210 = vmatmul.mubr.bf16.gmra.mrb[208].mxu1 %v9483_v18  ;;  %4406 = vmatpush1.bf16.msra.mxu0 %v7540_v31  ;;  %v7570_v14 = vld [vmem:[%s10160_s1 + $0xbbc] ss:$12 sps:$4 sm:$0xff]   ;;  %v7574_v31 = vld [vmem:[%s10160_s1 + $0xc38] ss:$12 sps:$4 sm:$0xff]  }
 0x1e4   :  { %v9501_v12 = vadd.f32 %v6237_v16, %v9245_v42  ;;  %5250 = vmatprep.mubr.bf16.mxu1 %v9491_v23  ;;  %4407 = vmatprep.subr.bf16.mxu0 %v7548_v26  ;;  %v9513_v42 = vld [vmem:[%s10161_s0 + $0x38] ss:$72 sps:$4 sm:$0xff]   ;;  %v7582_v16 = vld [vmem:[%s10160_s1 + $0xd10] ss:$12 sps:$4 sm:$0xff]  }
 0x1e5   :  { %4368 = vmatprep.mubr.bf16.mxu0 %v7527_v45  ;;  %v7559_v45 = vld [vmem:[%s10160_s1 + $0xb8c] ss:$12 sps:$4 sm:$0xff]  }
 0x1e6   :  { %v6238_v59 = vpop.f32.mrb[104].mxu1 }
 0x1e7   :  { %v6239_v62 = vpop.f32.mrb[105].mxu1  ;;  %4408 = vmatpush1.bf16.msra.mxu0 %v7546_v60 }
 0x1e8   :  { %v6240_v8 = vadd.f32 %v6239_v62, %v6238_v59  ;;  %v6241_v5 = vpop.f32.mrb[106].mxu1  ;;  %4409 = vmatprep.subr.bf16.mxu0 %v7554_v41  ;;  %v7568_v41 = vld [vmem:[%s10160_s1 + $0xbb8] ss:$12 sps:$4 sm:$0xff]  }
 0x1e9   :  { %v6242_v51 = vpop.f32.mrb[107].mxu1 }
 0x1ea   :  { %v9530_v17 = vadd.f32 %v6240_v8, %v9273_v4  ;;  %v6243_v52 = vadd.f32 %v6242_v51, %v6241_v5  ;;  %4369 = vmatmul.mubr.bf16.gmra.mrb[20].mxu0 %v7532_v57  ;;  %v7567_v4 = vld [vmem:[%s10160_s1 + $0xc20] ss:$12 sps:$4 sm:$0xff]   ;;  %v7565_v57 = vld [vmem:[%s10160_s1 + $0xba4] ss:$12 sps:$4 sm:$0xff]  }
 0x1eb   :  { %5251 = vmatmul.mubr.bf16.vlgmr.msra.gmra.mrb[212].mxu1 %v9513_v42  ;;  %4410 = vmatpush1.bf16.msra.mxu0 %v7552_v39  ;;  %v9600_v8 = vld [vmem:[%s10161_s0 + $0x158] ss:$72 sps:$4 sm:$0xff]  }
 0x1ec   :  { %v9537_v38 = vadd.f32 %v6243_v52, %v9280_v3  ;;  %6507 = vmatpush3.bf16.msra.mxu1 %v7556_v55  ;;  %4411 = vmatprep.subr.bf16.mxu0 %v7559_v45  ;;  %v7571_v3 = vld [vmem:[%s10160_s1 + $0xcf8] ss:$12 sps:$4 sm:$0xff]   ;;  %v7575_v55 = vld [vmem:[%s10160_s1 + $0xbd0] ss:$12 sps:$4 sm:$0xff]   ;;  %v7588_v52 = vld [vmem:[%s10160_s1 + $0xc68] ss:$12 sps:$4 sm:$0xff]  }
 0x1ed   :  { %5258 = vmatprep.mubr.bf16.mxu1 %v9527_v36  ;;  %6508 = vmatprep.subr.bf16.mxu1 %v7562_v56  ;;  %v7581_v45 = vld [vmem:[%s10160_s1 + $0xbec] ss:$12 sps:$4 sm:$0xff]  }
 0x1ee   :  { %v6244_v44 = vpop.f32.mrb[108].mxu1  ;;  %4378 = vmatprep.mubr.bf16.mxu0 %v9460_v58 }
 0x1ef   :  { %v6245_v29 = vpop.f32.mrb[109].mxu1  ;;  %4412 = vmatpush1.bf16.msra.mxu0 %v7557_v20 }
 0x1f0   :  { %v6246_v48 = vadd.f32 %v6245_v29, %v6244_v44  ;;  %v6247_v47 = vpop.f32.mrb[110].mxu1  ;;  %6509 = vmatpush3.bf16.msra.mxu1 %v7567_v4  ;;  %4413 = vmatprep.subr.bf16.mxu0 %v7565_v57  ;;  %v7592_v4 = vld [vmem:[%s10160_s1 + $0xd40] ss:$12 sps:$4 sm:$0xff]  }
 0x1f1   :  { %v6248_v58 = vpop.f32.mrb[111].mxu1  ;;  %6510 = vmatprep.subr.bf16.mxu1 %v7571_v3  ;;  %v7579_v3 = vld [vmem:[%s10160_s1 + $0xbe8] ss:$12 sps:$4 sm:$0xff]  }
 0x1f2   :  { %v9573_v1 = vadd.f32 %v6246_v48, %v9315_v32  ;;  %v6249_v26 = vadd.f32 %v6248_v58, %v6247_v47  ;;  %4379 = vmatmul.mubr.bf16.gmra.mrb[24].mxu0 %v9483_v18  ;;  %v7577_v32 = vld [vmem:[%s10160_s1 + $0xbd4] ss:$12 sps:$4 sm:$0xff]   ;;  %v7583_v18 = vld [vmem:[%s10160_s1 + $0xc50] ss:$12 sps:$4 sm:$0xff]  }
 0x1f3   :  { %5259 = vmatmul.mubr.bf16.gmra.mrb[216].mxu1 %v9556_v35  ;;  %4414 = vmatpush1.bf16.msra.mxu0 %v7563_v10  ;;  %v9639_v48 = vld [vmem:[%s10161_s0 + $0x1e8] ss:$72 sps:$4 sm:$0xff]  }
 0x1f4   :  { %v9581_v60 = vadd.f32 %v6249_v26, %v9322_v40  ;;  %5266 = vmatprep.mubr.bf16.mxu1 %v9564_v37  ;;  %4415 = vmatprep.subr.bf16.mxu0 %v7570_v14  ;;  %v7587_v40 = vld [vmem:[%s10160_s1 + $0xd28] ss:$12 sps:$4 sm:$0xff]   ;;  %v7613_v14 = vld [vmem:[%s10160_s1 + $0xc04] ss:$12 sps:$4 sm:$0xff]  }
 0x1f5   :  { %6511 = vmatpush3.bf16.msra.mxu1 %v7574_v31  ;;  %4421 = vmatprep.mubr.bf16.mxu0 %v9491_v23  ;;  %v9608_v23 = vld [vmem:[%s10161_s0 + $0x1ec] ss:$72 sps:$4 sm:$0xff]   ;;  %v9647_v31 = vld [vmem:[%s10161_s0 + $0x27c] ss:$72 sps:$4 sm:$0xff]  }
 0x1f6   :  { %v6250_v59 = vpop.f32.mrb[112].mxu1  ;;  %6512 = vmatprep.subr.bf16.mxu1 %v7582_v16 }
 0x1f7   :  { %v6251_v62 = vpop.f32.mrb[113].mxu1  ;;  %4416 = vmatpush1.bf16.msra.mxu0 %v7568_v41  ;;  %v7598_v41 = vld [vmem:[%s10160_s1 + $0xc98] ss:$12 sps:$4 sm:$0xff]  }
 0x1f8   :  { %v6252_v5 = vadd.f32 %v6251_v62, %v6250_v59  ;;  %v6253_v39 = vpop.f32.mrb[114].mxu1  ;;  %4417 = vmatprep.subr.bf16.mxu0 %v7577_v32  ;;  %v7602_v32 = vld [vmem:[%s10160_s1 + $0xd70] ss:$12 sps:$4 sm:$0xff]   ;;  %v9677_v62 = vld [vmem:[%s10161_s0 + $0x278] ss:$72 sps:$4 sm:$0xff]  }
 0x1f9   :  { %v6254_v51 = vpop.f32.mrb[115].mxu1  ;;  %6513 = vmatpush3.bf16.msra.mxu1 %v7583_v18 }
 0x1fa   :  { %v9617_v56 = vadd.f32 %v6252_v5, %v9357_v7  ;;  %v6255_v20 = vadd.f32 %v6254_v51, %v6253_v39  ;;  %6514 = vmatprep.subr.bf16.mxu1 %v7587_v40  ;;  %v7593_v7 = vld [vmem:[%s10160_s1 + $0xc80] ss:$12 sps:$4 sm:$0xff]   ;;  %v7616_v5 = vld [vmem:[%s10160_s1 + $0xc18] ss:$12 sps:$4 sm:$0xff]  }
 0x1fb   :  { %5267 = vmatmul.mubr.bf16.gmra.mrb[220].mxu1 %v9600_v8  ;;  %4418 = vmatpush1.bf16.msra.mxu0 %v7575_v55  ;;  %v7617_v51 = vld [vmem:[%s10160_s1 + $0xc34] ss:$12 sps:$4 sm:$0xff]  }
 0x1fc   :  { %v9624_v57 = vadd.f32 %v6255_v20, %v9365_v33  ;;  %5274 = vmatprep.mubr.bf16.mxu1 %v9608_v23  ;;  %4419 = vmatprep.subr.bf16.mxu0 %v7581_v45  ;;  %v7597_v33 = vld [vmem:[%s10160_s1 + $0xd58] ss:$12 sps:$4 sm:$0xff]   ;;  %v9688_v45 = vld [vmem:[%s10161_s0 + $0x30c] ss:$72 sps:$4 sm:$0xff]  }
 0x1fd   :  { %6515 = vmatpush3.bf16.msra.mxu1 %v7588_v52 }
 0x1fe   :  { %v6256_v44 = vpop.f32.mrb[116].mxu1  ;;  %6516 = vmatprep.subr.bf16.mxu1 %v7592_v4 }
 0x1ff   :  { %v6257_v29 = vpop.f32.mrb[117].mxu1  ;;  %4420 = vmatpush1.bf16.msra.mxu0 %v7579_v3  ;;  %v7618_v3 = vld [vmem:[%s10160_s1 + $0xc30] ss:$12 sps:$4 sm:$0xff]  }
 0x200   :  { %v6258_v47 = vadd.f32 %v6257_v29, %v6256_v44  ;;  %v6259_v10 = vpop.f32.mrb[118].mxu1  ;;  %4492 = vmatprep.subr.bf16.mxu0 %v7613_v14 }
 0x201   :  { %v6260_v58 = vpop.f32.mrb[119].mxu1  ;;  %6517 = vmatpush3.bf16.msra.mxu1 %v7593_v7 }
 0x202   :  { %v9650_v26 = vadd.f32 %v6258_v47, %v9398_v34  ;;  %v6261_v16 = vadd.f32 %v6260_v58, %v6259_v10  ;;  %6518 = vmatprep.subr.bf16.mxu1 %v7597_v33  ;;  %4422 = vmatmul.mubr.bf16.vlgmr.msra.gmra.mrb[0].mxu0 %v9513_v42  ;;  %v7614_v34 = vld [vmem:[%s10160_s1 + $0xc00] ss:$12 sps:$4 sm:$0xff]   ;;  %v7615_v42 = vld [vmem:[%s10160_s1 + $0xc1c] ss:$12 sps:$4 sm:$0xff]   ;;  %v7621_v47 = vld [vmem:[%s10160_s1 + $0xc64] ss:$12 sps:$4 sm:$0xff]  }
 0x203   :  { %5275 = vmatmul.mubr.bf16.gmra.mrb[224].mxu1 %v9639_v48  ;;  %4493 = vmatpush1.bf16.msra.mxu0 %v7614_v34  ;;  %v7620_v33 = vld [vmem:[%s10160_s1 + $0xc48] ss:$12 sps:$4 sm:$0xff]   ;;  %v9720_v10 = vld [vmem:[%s10161_s0 + $0x39c] ss:$72 sps:$4 sm:$0xff]  }
 0x204   :  { %v9661_v18 = vadd.f32 %v6261_v16, %v9409_v43  ;;  %4431 = vmatprep.mubr.bf16.mxu0 %v9527_v36  ;;  %4494 = vmatprep.subr.bf16.mxu0 %v7615_v42  ;;  %v7603_v43 = vld [vmem:[%s10160_s1 + $0xcb0] ss:$12 sps:$4 sm:$0xff]   ;;  %v7624_v42 = vld [vmem:[%s10160_s1 + $0xc78] ss:$12 sps:$4 sm:$0xff]  }
 0x205   :  { %5282 = vmatprep.mubr.bf16.mxu1 %v9647_v31  ;;  %6519 = vmatpush3.bf16.msra.mxu1 %v7598_v41  ;;  %v7622_v41 = vld [vmem:[%s10160_s1 + $0xc60] ss:$12 sps:$4 sm:$0xff]  }
 0x206   :  { %v6262_v59 = vpop.f32.mrb[120].mxu1  ;;  %6520 = vmatprep.subr.bf16.mxu1 %v7602_v32 }
 0x207   :  { %v6263_v40 = vpop.f32.mrb[121].mxu1  ;;  %4495 = vmatpush1.bf16.msra.mxu0 %v7616_v5 }
 0x208   :  { %v6264_v36 = vadd.f32 %v6263_v40, %v6262_v59  ;;  %v6265_v39 = vpop.f32.mrb[122].mxu1  ;;  %4496 = vmatprep.subr.bf16.mxu0 %v7617_v51  ;;  %v9752_v40 = vld [vmem:[%s10161_s0 + $0x44] ss:$72 sps:$4 sm:$0xff]  }
 0x209   :  { %v6266_v55 = vpop.f32.mrb[123].mxu1  ;;  %6521 = vmatpush3.bf16.msra.mxu1 %v7603_v43  ;;  %v7625_v43 = vld [vmem:[%s10160_s1 + $0xc94] ss:$12 sps:$4 sm:$0xff]  }
 0x20a   :  { %v9691_v52 = vadd.f32 %v6264_v36, %v9435_v6  ;;  %v6267_v20 = vadd.f32 %v6266_v55, %v6265_v39  ;;  %4432 = vmatmul.mubr.bf16.gmra.mrb[4].mxu0 %v9556_v35  ;;  %v7619_v6 = vld [vmem:[%s10160_s1 + $0xc4c] ss:$12 sps:$4 sm:$0xff]   ;;  %v7626_v55 = vld [vmem:[%s10160_s1 + $0xc90] ss:$12 sps:$4 sm:$0xff]  }
 0x20b   :  { %5283 = vmatmul.mubr.bf16.gmra.mrb[228].mxu1 %v9677_v62  ;;  %4497 = vmatpush1.bf16.msra.mxu0 %v7618_v3  ;;  %v7628_v3 = vld [vmem:[%s10160_s1 + $0xca8] ss:$12 sps:$4 sm:$0xff]  }
 0x20c   :  { %v9696_v4 = vadd.f32 %v6267_v20, %v9442_v50  ;;  %4441 = vmatprep.mubr.bf16.mxu0 %v9564_v37  ;;  %4498 = vmatprep.subr.bf16.mxu0 %v7619_v6  ;;  %v9709_v50 = vld [vmem:[%s10161_s0 + $0x308] ss:$72 sps:$4 sm:$0xff]  }
 0x20d   :  { %5290 = vmatprep.mubr.bf16.mxu1 %v9688_v45 }
 0x20e   :  { %v6268_v35 = vpop.f32.mrb[124].mxu1 }
 0x20f   :  { %v6269_v7 = vpop.f32.mrb[125].mxu1  ;;  %4499 = vmatpush1.bf16.msra.mxu0 %v7620_v33 }
 0x210   :  { %v6270_v44 = vadd.f32 %v6269_v7, %v6268_v35  ;;  %v6271_v37 = vpop.f32.mrb[126].mxu1  ;;  %4500 = vmatprep.subr.bf16.mxu0 %v7621_v47  ;;  %v7629_v35 = vld [vmem:[%s10160_s1 + $0xcc4] ss:$12 sps:$4 sm:$0xff]   ;;  %v9784_v7 = vld [vmem:[%s10161_s0 + $0xd4] ss:$72 sps:$4 sm:$0xff]  }
 0x211   :  { %v6272_v29 = vpop.f32.mrb[127].mxu1 }
 0x212   :  { %v9723_v58 = vadd.f32 %v6270_v44, %v9466_v27  ;;  %v6273_v14 = vadd.f32 %v6272_v29, %v6271_v37  ;;  %4442 = vmatmul.mubr.bf16.gmra.mrb[8].mxu0 %v9600_v8  ;;  %v7623_v27 = vld [vmem:[%s10160_s1 + $0xc7c] ss:$12 sps:$4 sm:$0xff]   ;;  %v7630_v29 = vld [vmem:[%s10160_s1 + $0xcc0] ss:$12 sps:$4 sm:$0xff]  }
 0x213   :  { %5291 = vmatmul.mubr.bf16.gmra.mrb[232].mxu1 %v9709_v50  ;;  %4501 = vmatpush1.bf16.msra.mxu0 %v7622_v41  ;;  %v7632_v41 = vld [vmem:[%s10160_s1 + $0xcd8] ss:$12 sps:$4 sm:$0xff]  }
 0x214   :  { %v9728_v16 = vadd.f32 %v6273_v14, %v9470_v30  ;;  %4451 = vmatprep.mubr.bf16.mxu0 %v9608_v23  ;;  %4502 = vmatprep.subr.bf16.mxu0 %v7623_v27  ;;  %v9741_v30 = vld [vmem:[%s10161_s0 + $0x398] ss:$72 sps:$4 sm:$0xff]  }
 0x215   :  { %5298 = vmatprep.mubr.bf16.mxu1 %v9720_v10 }
 0x216   :  { %v6290_v8 = vpop.f32.mrb[128].mxu1 }
 0x217   :  { %v6291_v32 = vpop.f32.mrb[129].mxu1  ;;  %4503 = vmatpush1.bf16.msra.mxu0 %v7624_v42 }
 0x218   :  { %v6292_v34 = vadd.f32 %v6291_v32, %v6290_v8  ;;  %v6293_v23 = vpop.f32.mrb[130].mxu1  ;;  %4504 = vmatprep.subr.bf16.mxu0 %v7625_v43  ;;  %v7633_v8 = vld [vmem:[%s10160_s1 + $0xcf4] ss:$12 sps:$4 sm:$0xff]   ;;  %v9816_v32 = vld [vmem:[%s10161_s0 + $0x164] ss:$72 sps:$4 sm:$0xff]  }
 0x219   :  { %v6294_v59 = vpop.f32.mrb[131].mxu1 }
 0x21a   :  { %v9755_v36 = vadd.f32 %v6292_v34, %v9497_v19  ;;  %v6295_v5 = vadd.f32 %v6294_v59, %v6293_v23  ;;  %4452 = vmatmul.mubr.bf16.gmra.mrb[12].mxu0 %v9639_v48  ;;  %v7627_v19 = vld [vmem:[%s10160_s1 + $0xcac] ss:$12 sps:$4 sm:$0xff]   ;;  %v7634_v59 = vld [vmem:[%s10160_s1 + $0xcf0] ss:$12 sps:$4 sm:$0xff]  }
 0x21b   :  { %5299 = vmatmul.mubr.bf16.gmra.mrb[236].mxu1 %v9741_v30  ;;  %4505 = vmatpush1.bf16.msra.mxu0 %v7626_v55  ;;  %v7636_v55 = vld [vmem:[%s10160_s1 + $0xd08] ss:$12 sps:$4 sm:$0xff]  }
 0x21c   :  { %v9760_v39 = vadd.f32 %v6295_v5, %v9501_v12  ;;  %4461 = vmatprep.mubr.bf16.mxu0 %v9647_v31  ;;  %4506 = vmatprep.subr.bf16.mxu0 %v7627_v19  ;;  %v9773_v12 = vld [vmem:[%s10161_s0 + $0x40] ss:$72 sps:$4 sm:$0xff]  }
 0x21d   :  { %5339 = vmatprep.mubr.bf16.mxu1 %v9752_v40 }
 0x21e   :  { %v6296_v48 = vpop.f32.mrb[132].mxu1 }
 0x21f   :  { %v6297_v51 = vpop.f32.mrb[133].mxu1  ;;  %4507 = vmatpush1.bf16.msra.mxu0 %v7628_v3 }
 0x220   :  { %v6298_v20 = vadd.f32 %v6297_v51, %v6296_v48  ;;  %v6299_v31 = vpop.f32.mrb[134].mxu1  ;;  %4508 = vmatprep.subr.bf16.mxu0 %v7629_v35  ;;  %v7637_v48 = vld [vmem:[%s10160_s1 + $0xd24] ss:$12 sps:$4 sm:$0xff]  }
 0x221   :  { %v6300_v6 = vpop.f32.mrb[135].mxu1 }
 0x222   :  { %v9787_v44 = vadd.f32 %v6298_v20, %v9530_v17  ;;  %v6301_v33 = vadd.f32 %v6300_v6, %v6299_v31  ;;  %4462 = vmatmul.mubr.bf16.gmra.mrb[16].mxu0 %v9677_v62  ;;  %v7631_v17 = vld [vmem:[%s10160_s1 + $0xcdc] ss:$12 sps:$4 sm:$0xff]   ;;  %v7638_v31 = vld [vmem:[%s10160_s1 + $0xd20] ss:$12 sps:$4 sm:$0xff]  }
 0x223   :  { %5340 = vmatmul.mubr.bf16.vlgmr.msra.gmra.mrb[240].mxu1 %v9773_v12  ;;  %4509 = vmatpush1.bf16.msra.mxu0 %v7630_v29  ;;  %v7639_v6 = vld [vmem:[%s10161_s0 + $0x1f4] ss:$72 sps:$4 sm:$0xff]  }
 0x224   :  { %v9792_v37 = vadd.f32 %v6301_v33, %v9537_v38  ;;  %4471 = vmatprep.mubr.bf16.mxu0 %v9688_v45  ;;  %4510 = vmatprep.subr.bf16.mxu0 %v7631_v17  ;;  %v9805_v38 = vld [vmem:[%s10161_s0 + $0xd0] ss:$72 sps:$4 sm:$0xff]  }
 0x225   :  { %5347 = vmatprep.mubr.bf16.mxu1 %v9784_v7  ;;  %v7641_v33 = vld [vmem:[%s10160_s1 + $0xd38] ss:$12 sps:$4 sm:$0xff]  }
 0x226   :  { %v6302_v62 = vpop.f32.mrb[136].mxu1 }
 0x227   :  { %v6303_v47 = vpop.f32.mrb[137].mxu1  ;;  %4511 = vmatpush1.bf16.msra.mxu0 %v7632_v41 }
 0x228   :  { %v6304_v14 = vadd.f32 %v6303_v47, %v6302_v62  ;;  %v6305_v45 = vpop.f32.mrb[138].mxu1  ;;  %4512 = vmatprep.subr.bf16.mxu0 %v7633_v8  ;;  %v7642_v62 = vld [vmem:[%s10160_s1 + $0xd54] ss:$12 sps:$4 sm:$0xff]  }
 0x229   :  { %v6306_v27 = vpop.f32.mrb[139].mxu1 }
 0x22a   :  { %v9819_v34 = vadd.f32 %v6304_v14, %v9573_v1  ;;  %v6307_v42 = vadd.f32 %v6306_v27, %v6305_v45  ;;  %4472 = vmatmul.mubr.bf16.gmra.mrb[20].mxu0 %v9709_v50  ;;  %v7635_v1 = vld [vmem:[%s10160_s1 + $0xd0c] ss:$12 sps:$4 sm:$0xff]   ;;  %v7644_v45 = vld [vmem:[%s10160_s1 + $0xd50] ss:$12 sps:$4 sm:$0xff]  }
 0x22b   :  { %5348 = vmatmul.mubr.bf16.gmra.mrb[244].mxu1 %v9805_v38  ;;  %4513 = vmatpush1.bf16.msra.mxu0 %v7634_v59  ;;  %v7645_v27 = vld [vmem:[%s10161_s0 + $0x284] ss:$72 sps:$4 sm:$0xff]  }
 0x22c   :  { %v9824_v23 = vadd.f32 %v6307_v42, %v9581_v60  ;;  %4481 = vmatprep.mubr.bf16.mxu0 %v9720_v10  ;;  %4514 = vmatprep.subr.bf16.mxu0 %v7635_v1  ;;  %v9837_v60 = vld [vmem:[%s10161_s0 + $0x160] ss:$72 sps:$4 sm:$0xff]  }
 0x22d   :  { %5355 = vmatprep.mubr.bf16.mxu1 %v9816_v32 }
 0x22e   :  { %v6308_v50 = vpop.f32.mrb[140].mxu1 }
 0x22f   :  { %v6309_v43 = vpop.f32.mrb[141].mxu1  ;;  %4515 = vmatpush1.bf16.msra.mxu0 %v7636_v55  ;;  %v7648_v55 = vld [vmem:[%s10161_s0 + $0x280] ss:$72 sps:$4 sm:$0xff]  }
 0x230   :  { %v6310_v5 = vadd.f32 %v6309_v43, %v6308_v50  ;;  %v6311_v10 = vpop.f32.mrb[142].mxu1  ;;  %4516 = vmatprep.subr.bf16.mxu0 %v7637_v48 }
 0x231   :  { %v6312_v19 = vpop.f32.mrb[143].mxu1 }
 0x232   :  { %v9846_v51 = vadd.f32 %v6310_v5, %v9617_v56  ;;  %v6313_v20 = vadd.f32 %v6312_v19, %v6311_v10  ;;  %4482 = vmatmul.mubr.bf16.gmra.mrb[24].mxu0 %v9741_v30  ;;  %v7640_v56 = vld [vmem:[%s10160_s1 + $0xd3c] ss:$12 sps:$4 sm:$0xff]  }
 0x233   :  { %5356 = vmatmul.mubr.bf16.gmra.mrb[248].mxu1 %v9837_v60  ;;  %4517 = vmatpush1.bf16.msra.mxu0 %v7638_v31  ;;  %v7649_v19 = vld [vmem:[%s10161_s0 + $0x314] ss:$72 sps:$4 sm:$0xff]  }
 0x234   :  { %v9851_v3 = vadd.f32 %v6313_v20, %v9624_v57  ;;  %5363 = vmatprep.mubr.bf16.mxu1 %v7639_v6  ;;  %4518 = vmatprep.subr.bf16.mxu0 %v7640_v56 }
 0x235   :  { %4524 = vmatprep.mubr.bf16.mxu0 %v9752_v40  ;;  %v7643_v40 = vld [vmem:[%s10161_s0 + $0x1f0] ss:$72 sps:$4 sm:$0xff]  }
 0x236   :  { %v6314_v30 = vpop.f32.mrb[144].mxu1 }
 0x237   :  { %v6315_v57 = vpop.f32.mrb[145].mxu1  ;;  %4519 = vmatpush1.bf16.msra.mxu0 %v7641_v33 }
 0x238   :  { %v6316_v35 = vadd.f32 %v6315_v57, %v6314_v30  ;;  %v6317_v29 = vpop.f32.mrb[146].mxu1  ;;  %4520 = vmatprep.subr.bf16.mxu0 %v7642_v62  ;;  %v7651_v30 = vld [vmem:[%s10161_s0 + $0x3a4] ss:$72 sps:$4 sm:$0xff]  }
 0x239   :  { %v6318_v17 = vpop.f32.mrb[147].mxu1 }
 0x23a   :  { %v9870_v47 = vadd.f32 %v6316_v35, %v9650_v26  ;;  %v6319_v14 = vadd.f32 %v6318_v17, %v6317_v29  ;;  %v7646_v26 = vld [vmem:[%s10160_s1 + $0xd6c] ss:$12 sps:$4 sm:$0xff]  }
 0x23b   :  { %5364 = vmatmul.mubr.bf16.gmra.mrb[252].mxu1 %v7643_v40  ;;  %4521 = vmatpush1.bf16.msra.mxu0 %v7644_v45 }
 0x23c   :  { %v9876_v41 = vadd.f32 %v6319_v14, %v9661_v18  ;;  %5371 = vmatprep.mubr.bf16.mxu1 %v7645_v27  ;;  %4522 = vmatprep.subr.bf16.mxu0 %v7646_v26  ;;  %v7647_v18 = vld [vmem:[%s10160_s1 + $0xd68] ss:$12 sps:$4 sm:$0xff]  }
 0x23e   :  { %v6320_v8 = vpop.f32.mrb[148].mxu1 }
 0x23f   :  { %v6321_v42 = vpop.f32.mrb[149].mxu1  ;;  %4523 = vmatpush1.bf16.msra.mxu0 %v7647_v18 }
 0x240   :  { %v6322_v59 = vadd.f32 %v6321_v42, %v6320_v8  ;;  %v6323_v1 = vpop.f32.mrb[150].mxu1 }
 0x241   :  { %v6324_v50 = vpop.f32.mrb[151].mxu1 }
 0x242   :  { %v9891_v43 = vadd.f32 %v6322_v59, %v9691_v52  ;;  %v6325_v5 = vadd.f32 %v6324_v50, %v6323_v1  ;;  %4525 = vmatmul.mubr.bf16.vlgmr.msra.gmra.mrb[0].mxu0 %v9773_v12 }
 0x243   :  { %5372 = vmatmul.mubr.bf16.gmra.mrb[0].mxu1 %v7648_v55  ;;  %4534 = vmatprep.mubr.bf16.mxu0 %v9784_v7 }
 0x244   :  { %v9898_v10 = vadd.f32 %v6325_v5, %v9696_v4  ;;  %5379 = vmatprep.mubr.bf16.mxu1 %v7649_v19  ;;  %v7650_v4 = vld [vmem:[%s10161_s0 + $0x310] ss:$72 sps:$4 sm:$0xff]  }
 0x246   :  { %v6326_v52 = vpop.f32.mrb[152].mxu1 }
 0x247   :  { %v6327_v48 = vpop.f32.mrb[153].mxu1 }
 0x248   :  { %v6328_v20 = vadd.f32 %v6327_v48, %v6326_v52  ;;  %v6329_v31 = vpop.f32.mrb[154].mxu1 }
 0x249   :  { %v6330_v12 = vpop.f32.mrb[155].mxu1 }
 0x24a   :  { %v9905_v6 = vadd.f32 %v6328_v20, %v9723_v58  ;;  %v6331_v56 = vadd.f32 %v6330_v12, %v6329_v31  ;;  %4535 = vmatmul.mubr.bf16.gmra.mrb[4].mxu0 %v9805_v38 }
 0x24b   :  { %5380 = vmatmul.mubr.bf16.gmra.mrb[4].mxu1 %v7650_v4  ;;  %4544 = vmatprep.mubr.bf16.mxu0 %v9816_v32 }
 0x24c   :  { %v5037_v7 = vadd.f32 %v6331_v56, %v9728_v16  ;;  %5387 = vmatprep.mubr.bf16.mxu1 %v7651_v30  ;;  %v7652_v16 = vld [vmem:[%s10161_s0 + $0x3a0] ss:$72 sps:$4 sm:$0xff]  }
 0x24e   :  { %v6348_v57 = vpop.f32.mrb[156].mxu1 }
 0x24f   :  { %v6349_v58 = vpop.f32.mrb[157].mxu1 }
 0x250   :  { %v6350_v35 = vadd.f32 %v6349_v58, %v6348_v57  ;;  %v6351_v33 = vpop.f32.mrb[158].mxu1 }
 0x251   :  { %v6352_v29 = vpop.f32.mrb[159].mxu1 }
 0x252   :  { %v5075_v38 = vadd.f32 %v6350_v35, %v9755_v36  ;;  %v6353_v17 = vadd.f32 %v6352_v29, %v6351_v33  ;;  %4545 = vmatmul.mubr.bf16.gmra.mrb[8].mxu0 %v9837_v60 }
 0x253   :  { %5388 = vmatmul.mubr.bf16.gmra.mrb[8].mxu1 %v7652_v16 }
 0x254   :  { %v5078_v32 = vadd.f32 %v6353_v17, %v9760_v39 }
 0x256   :  { %v6354_v62 = vpop.f32.mrb[160].mxu1 }
 0x257   :  { %v6355_v14 = vpop.f32.mrb[161].mxu1 }
 0x258   :  { %v6356_v40 = vadd.f32 %v6355_v14, %v6354_v62  ;;  %v6357_v45 = vpop.f32.mrb[162].mxu1 }
 0x259   :  { %v6358_v27 = vpop.f32.mrb[163].mxu1 }
 0x25a   :  { %v5083_v26 = vadd.f32 %v6356_v40, %v9787_v44  ;;  %v6359_v8 = vadd.f32 %v6358_v27, %v6357_v45 }
 0x25c   :  { %v5086_v36 = vadd.f32 %v6359_v8, %v9792_v37 }
 0x25e   :  { %v6360_v42 = vpop.f32.mrb[164].mxu1 }
 0x25f   :  { %v6361_v59 = vpop.f32.mrb[165].mxu1 }
 0x260   :  { %v6362_v60 = vadd.f32 %v6361_v59, %v6360_v42  ;;  %v6363_v18 = vpop.f32.mrb[166].mxu1 }
 0x261   :  { %v6364_v1 = vpop.f32.mrb[167].mxu1 }
 0x262   :  { %v5091_v50 = vadd.f32 %v6362_v60, %v9819_v34  ;;  %v6365_v5 = vadd.f32 %v6364_v1, %v6363_v18 }
 0x264   :  { %v5094_v39 = vadd.f32 %v6365_v5, %v9824_v23 }
 0x266   :  { %v6366_v55 = vpop.f32.mrb[168].mxu1 }
 0x267   :  { %v6367_v19 = vpop.f32.mrb[169].mxu1 }
 0x268   :  { %v6368_v52 = vadd.f32 %v6367_v19, %v6366_v55  ;;  %v6369_v48 = vpop.f32.mrb[170].mxu1 }
 0x269   :  { %v6370_v20 = vpop.f32.mrb[171].mxu1 }
 0x26a   :  { %v5099_v44 = vadd.f32 %v6368_v52, %v9846_v51  ;;  %v6371_v31 = vadd.f32 %v6370_v20, %v6369_v48 }
 0x26c   :  { %v5102_v37 = vadd.f32 %v6371_v31, %v9851_v3 }
 0x26e   :  { %v6372_v12 = vpop.f32.mrb[172].mxu1 }
 0x26f   :  { %v6373_v56 = vpop.f32.mrb[173].mxu1 }
 0x270   :  { %v6374_v4 = vadd.f32 %v6373_v56, %v6372_v12  ;;  %v6375_v30 = vpop.f32.mrb[174].mxu1 }
 0x271   :  { %v6376_v57 = vpop.f32.mrb[175].mxu1 }
 0x272   :  { %v5107_v34 = vadd.f32 %v6374_v4, %v9870_v47  ;;  %v6377_v58 = vadd.f32 %v6376_v57, %v6375_v30 }
 0x274   :  { %v5110_v23 = vadd.f32 %v6377_v58, %v9876_v41 }
 0x276   :  { %v6378_v35 = vpop.f32.mrb[176].mxu1 }
 0x277   :  { %v6379_v33 = vpop.f32.mrb[177].mxu1 }
 0x278   :  { %v6380_v29 = vadd.f32 %v6379_v33, %v6378_v35  ;;  %v6381_v17 = vpop.f32.mrb[178].mxu1 }
 0x279   :  { %v6382_v16 = vpop.f32.mrb[179].mxu1 }
 0x27a   :  { %v5115_v51 = vadd.f32 %v6380_v29, %v9891_v43  ;;  %v6383_v62 = vadd.f32 %v6382_v16, %v6381_v17 }
 0x27c   :  { %v5118_v3 = vadd.f32 %v6383_v62, %v9898_v10 }
 0x27e   :  { %v6384_v14 = vpop.f32.mrb[180].mxu1 }
 0x27f   :  { %v6385_v40 = vpop.f32.mrb[181].mxu1 }
 0x280   :  { %v6386_v45 = vadd.f32 %v6385_v40, %v6384_v14  ;;  %v6387_v27 = vpop.f32.mrb[182].mxu1 }
 0x281   :  { %v6388_v8 = vpop.f32.mrb[183].mxu1 }
 0x282   :  { %v5123_v47 = vadd.f32 %v6386_v45, %v9905_v6  ;;  %v6389_v42 = vadd.f32 %v6388_v8, %v6387_v27 }
 0x284   :  { %v5126_v59 = vadd.f32 %v6389_v42, %v5037_v7 }
 0x286   :  { %v6406_v41 = vpop.f32.mrb[184].mxu1 }
 0x287   :  { %v6407_v60 = vpop.f32.mrb[185].mxu1 }
 0x288   :  { %v6408_v18 = vadd.f32 %v6407_v60, %v6406_v41  ;;  %v6409_v1 = vpop.f32.mrb[186].mxu1 }
 0x289   :  { %v6410_v5 = vpop.f32.mrb[187].mxu1 }
 0x28a   :  { %v5164_v55 = vadd.f32 %v6408_v18, %v5075_v38  ;;  %v6411_v19 = vadd.f32 %v6410_v5, %v6409_v1 }
 0x28c   :  { %v5167_v43 = vadd.f32 %v6411_v19, %v5078_v32 }
 0x28e   :  { %v6412_v52 = vpop.f32.mrb[188].mxu1 }
 0x28f   :  { %v6413_v48 = vpop.f32.mrb[189].mxu1 }
 0x290   :  { %v6414_v10 = vadd.f32 %v6413_v48, %v6412_v52  ;;  %v6415_v20 = vpop.f32.mrb[190].mxu1 }
 0x291   :  { %v6416_v31 = vpop.f32.mrb[191].mxu1 }
 0x292   :  { %v5172_v12 = vadd.f32 %v6414_v10, %v5083_v26  ;;  %v6417_v56 = vadd.f32 %v6416_v31, %v6415_v20 }
 0x294   :  { %v5175_v4 = vadd.f32 %v6417_v56, %v5086_v36 }
 0x296   :  { %v6418_v30 = vpop.f32.mrb[192].mxu1 }
 0x297   :  { %v6419_v6 = vpop.f32.mrb[193].mxu1 }
 0x298   :  { %v6420_v57 = vadd.f32 %v6419_v6, %v6418_v30  ;;  %v6421_v7 = vpop.f32.mrb[194].mxu1 }
 0x299   :  { %v6422_v58 = vpop.f32.mrb[195].mxu1 }
 0x29a   :  { %v5180_v35 = vadd.f32 %v6420_v57, %v5091_v50  ;;  %v6423_v33 = vadd.f32 %v6422_v58, %v6421_v7 }
 0x29c   :  { %v5183_v29 = vadd.f32 %v6423_v33, %v5094_v39 }
 0x29e   :  { %v6424_v17 = vpop.f32.mrb[196].mxu1 }
 0x29f   :  { %v6425_v38 = vpop.f32.mrb[197].mxu1 }
 0x2a0   :  { %v6426_v16 = vadd.f32 %v6425_v38, %v6424_v17  ;;  %v6427_v32 = vpop.f32.mrb[198].mxu1 }
 0x2a1   :  { %v6428_v62 = vpop.f32.mrb[199].mxu1 }
 0x2a2   :  { %v5188_v14 = vadd.f32 %v6426_v16, %v5099_v44  ;;  %v6429_v40 = vadd.f32 %v6428_v62, %v6427_v32 }
 0x2a4   :  { %v5191_v45 = vadd.f32 %v6429_v40, %v5102_v37 }
 0x2a6   :  { %v6430_v27 = vpop.f32.mrb[200].mxu1 }
 0x2a7   :  { %v6431_v26 = vpop.f32.mrb[201].mxu1 }
 0x2a8   :  { %v6432_v8 = vadd.f32 %v6431_v26, %v6430_v27  ;;  %v6433_v36 = vpop.f32.mrb[202].mxu1 }
 0x2a9   :  { %v6434_v42 = vpop.f32.mrb[203].mxu1 }
 0x2aa   :  { %v5196_v41 = vadd.f32 %v6432_v8, %v5107_v34  ;;  %v6435_v60 = vadd.f32 %v6434_v42, %v6433_v36 }
 0x2ac   :  { %v5199_v18 = vadd.f32 %v6435_v60, %v5110_v23 }
 0x2ae   :  { %v6436_v1 = vpop.f32.mrb[204].mxu1 }
 0x2af   :  { %v6437_v50 = vpop.f32.mrb[205].mxu1 }
 0x2b0   :  { %v6438_v5 = vadd.f32 %v6437_v50, %v6436_v1  ;;  %v6439_v39 = vpop.f32.mrb[206].mxu1 }
 0x2b1   :  { %v6440_v19 = vpop.f32.mrb[207].mxu1 }
 0x2b2   :  { %v5204_v52 = vadd.f32 %v6438_v5, %v5115_v51  ;;  %v6441_v48 = vadd.f32 %v6440_v19, %v6439_v39 }
 0x2b4   :  { %v5207_v10 = vadd.f32 %v6441_v48, %v5118_v3 }
 0x2b6   :  { %v6442_v20 = vpop.f32.mrb[208].mxu1 }
 0x2b7   :  { %v6443_v44 = vpop.f32.mrb[209].mxu1 }
 0x2b8   :  { %v6444_v31 = vadd.f32 %v6443_v44, %v6442_v20  ;;  %v6445_v37 = vpop.f32.mrb[210].mxu1 }
 0x2b9   :  { %v6446_v56 = vpop.f32.mrb[211].mxu1 }
 0x2ba   :  { %v9933_v30 = vadd.f32 %v6444_v31, %v5123_v47  ;;  %v6447_v6 = vadd.f32 %v6446_v56, %v6445_v37 }
 0x2bc   :  { %v9935_v57 = vadd.f32 %v6447_v6, %v5126_v59 }
 0x2be   :  { %v6464_v34 = vpop.f32.mrb[212].mxu1 }
 0x2bf   :  { %v6465_v23 = vpop.f32.mrb[213].mxu1 }
 0x2c0   :  { %v6466_v7 = vadd.f32 %v6465_v23, %v6464_v34  ;;  %v6467_v58 = vpop.f32.mrb[214].mxu1 }
 0x2c1   :  { %v6468_v33 = vpop.f32.mrb[215].mxu1 }
 0x2c2   :  { %v9937_v17 = vadd.f32 %v6466_v7, %v5164_v55  ;;  %v6469_v51 = vadd.f32 %v6468_v33, %v6467_v58  ;;  %v721_v58 = vsub.s32 0, %v8963_v24 }
 0x2c4   :  { %v9939_v38 = vadd.f32 %v6469_v51, %v5167_v43  ;;  %v725_v51 = vsub.s32 1, %v8963_v24 }
 0x2c6   :  { %v6470_v3 = vpop.f32.mrb[216].mxu1 }
 0x2c7   :  { %v6471_v16 = vpop.f32.mrb[217].mxu1 }
 0x2c8   :  { %v6472_v32 = vadd.f32 %v6471_v16, %v6470_v3  ;;  %v6473_v62 = vpop.f32.mrb[218].mxu1 }
 0x2c9   :  { %v6474_v40 = vpop.f32.mrb[219].mxu1 }
 0x2ca   :  { %v9941_v47 = vadd.f32 %v6472_v32, %v5172_v12  ;;  %v6475_v27 = vadd.f32 %v6474_v40, %v6473_v62 }
 0x2cc   :  { %v9943_v59 = vadd.f32 %v6475_v27, %v5175_v4 }
 0x2ce   :  { %v6476_v26 = vpop.f32.mrb[220].mxu1 }
 0x2cf   :  { %v6477_v8 = vpop.f32.mrb[221].mxu1 }
 0x2d0   :  { %v6478_v36 = vadd.f32 %v6477_v8, %v6476_v26  ;;  %v6479_v42 = vpop.f32.mrb[222].mxu1 }
 0x2d1   :  { %v6480_v60 = vpop.f32.mrb[223].mxu1 }
 0x2d2   :  { %v9945_v55 = vadd.f32 %v6478_v36, %v5180_v35  ;;  %v6481_v1 = vadd.f32 %v6480_v60, %v6479_v42 }
 0x2d4   :  { %v9947_v43 = vadd.f32 %v6481_v1, %v5183_v29 }
 0x2d6   :  { %v6482_v50 = vpop.f32.mrb[224].mxu1 }
 0x2d7   :  { %v6483_v5 = vpop.f32.mrb[225].mxu1 }
 0x2d8   :  { %v6484_v39 = vadd.f32 %v6483_v5, %v6482_v50  ;;  %v6485_v19 = vpop.f32.mrb[226].mxu1 }
 0x2d9   :  { %v6486_v48 = vpop.f32.mrb[227].mxu1 }
 0x2da   :  { %v9949_v12 = vadd.f32 %v6484_v39, %v5188_v14  ;;  %v6487_v20 = vadd.f32 %v6486_v48, %v6485_v19 }
 0x2dc   :  { %v9951_v4 = vadd.f32 %v6487_v20, %v5191_v45 }
 0x2de   :  { %v6488_v44 = vpop.f32.mrb[228].mxu1 }
 0x2df   :  { %v6489_v31 = vpop.f32.mrb[229].mxu1 }
 0x2e0   :  { %v6490_v37 = vadd.f32 %v6489_v31, %v6488_v44  ;;  %v6491_v56 = vpop.f32.mrb[230].mxu1 }
 0x2e1   :  { %v6492_v6 = vpop.f32.mrb[231].mxu1 }
 0x2e2   :  { %v9953_v35 = vadd.f32 %v6490_v37, %v5196_v41  ;;  %v6493_v34 = vadd.f32 %v6492_v6, %v6491_v56  ;;  %v7653_v41 = vld [vmem:[%s10162_s2] sm:$0x7] }
 0x2e3   :  { %v9964_v32 = vrot.slane %v7653_v41, %v721_v58  ;;  %v9968_v62 = vrot.slane %v7653_v41, %v725_v51 }
 0x2e4   :  { %v9955_v29 = vadd.f32 %v6493_v34, %v5199_v18 }
 0x2e6   :  { %v6494_v23 = vpop.f32.mrb[232].mxu1 }
 0x2e7   :  { %v6495_v7 = vpop.f32.mrb[233].mxu1 }
 0x2e8   :  { %v6496_v33 = vadd.f32 %v6495_v7, %v6494_v23  ;;  %v6497_v14 = vpop.f32.mrb[234].mxu1 }
 0x2e9   :  { %v6498_v45 = vpop.f32.mrb[235].mxu1 }
 0x2ea   :  { %v9959_v3 = vadd.f32 %v6496_v33, %v5204_v52  ;;  %v6499_v16 = vadd.f32 %v6498_v45, %v6497_v14 }
 0x2ec   :  { %v9966_v18 = vadd.f32 %v6499_v16, %v5207_v10 }
 0x2ed   :  { %v4453_v40 = vpop.f32.mrb[12].mxu0 }
 0x2ee   :  { %v6500_v27 = vpop.f32.mrb[236].mxu1  ;;  %v6608_v26 = vadd.f32 %v4453_v40, %v9964_v32  ;;  %v4455_v8 = vpop.f32.mrb[13].mxu0 }
 0x2ef   :  { %v6501_v24 = vpop.f32.mrb[237].mxu1  ;;  %v6610_v52 = vadd.f32 %v4455_v8, %v9968_v62  ;;  %v4457_v42 = vpop.f32.mrb[14].mxu0 }
 0x2f0   :  { %v6502_v36 = vadd.f32 %v6501_v24, %v6500_v27  ;;  %v6503_v60 = vpop.f32.mrb[238].mxu1  ;;  %v6609_v1 = vadd.f32 %v6608_v26, %v8664_v46  ;;  %v6612_v50 = vadd.f32 %v4457_v42, %v9964_v32  ;;  %v4459_v5 = vpop.f32.mrb[15].mxu0 }
 0x2f1   :  { %v6504_v10 = vpop.f32.mrb[239].mxu1  ;;  %v6611_v39 = vadd.f32 %v6610_v52, %v8672_v49  ;;  %v6614_v48 = vadd.f32 %v4459_v5, %v9968_v62 }
 0x2f2   :  { %v9976_v19 = vadd.f32 %v6502_v36, %v9933_v30  ;;  %v6505_v20 = vadd.f32 %v6504_v10, %v6503_v60  ;;  %v5414_v44 = vmax.f32 %v6609_v1, 0.0  ;;  %v6613_v31 = vadd.f32 %v6612_v50, %v8680_v53 }
 0x2f3   :  { %v5415_v37 = vmax.f32 %v6611_v39, 0.0  ;;  %v6615_v56 = vadd.f32 %v6614_v48, %v8682_v54 }
 0x2f4   :  { %v9982_v46 = vadd.f32 %v6505_v20, %v9935_v57  ;;  %5456 = vst [vmem:[%s10163_s3 + $0x90] sm:$0xff] %v5414_v44  ;;  %v5417_v49 = vmax.f32 %v6613_v31, 0.0 }
 0x2f5   :  { %5457 = vst [vmem:[%s10163_s3 + $0x98] sm:$0xff] %v5415_v37  ;;  %v5418_v30 = vmax.f32 %v6615_v56, 0.0  ;;  %v4463_v6 = vpop.f32.mrb[16].mxu0 }
 0x2f6   :  { %v6522_v34 = vpop.f32.mrb[240].mxu1  ;;  %5459 = vst [vmem:[%s10163_s3 + $0xa8] sm:$0xff] %v5417_v49  ;;  %v6616_v53 = vadd.f32 %v4463_v6, %v9964_v32  ;;  %v4465_v54 = vpop.f32.mrb[17].mxu0 }
 0x2f7   :  { %v6523_v57 = vpop.f32.mrb[241].mxu1  ;;  %5460 = vst [vmem:[%s10163_s3 + $0xb0] sm:$0xff] %v5418_v30  ;;  %v6618_v23 = vadd.f32 %v4465_v54, %v9968_v62  ;;  %v4467_v58 = vpop.f32.mrb[18].mxu0 }
 0x2f8   :  { %v6524_v7 = vadd.f32 %v6523_v57, %v6522_v34  ;;  %v6525_v33 = vpop.f32.mrb[242].mxu1  ;;  %v6617_v14 = vadd.f32 %v6616_v53, %v8705_v61  ;;  %v6620_v51 = vadd.f32 %v4467_v58, %v9964_v32  ;;  %v4469_v45 = vpop.f32.mrb[19].mxu0 }
 0x2f9   :  { %v6526_v16 = vpop.f32.mrb[243].mxu1  ;;  %v6619_v41 = vadd.f32 %v6618_v23, %v8710_v63  ;;  %v6622_v27 = vadd.f32 %v4469_v45, %v9968_v62 }
 0x2fa   :  { %v5342_v40 = vadd.f32 %v6524_v7, %v9937_v17  ;;  %v6527_v26 = vadd.f32 %v6526_v16, %v6525_v33  ;;  %v5420_v8 = vmax.f32 %v6617_v14, 0.0  ;;  %v6621_v24 = vadd.f32 %v6620_v51, %v8712_v0 }
 0x2fb   :  { %v5421_v52 = vmax.f32 %v6619_v41, 0.0  ;;  %v6623_v42 = vadd.f32 %v6622_v27, %v8717_v2 }
 0x2fc   :  { %v5398_v36 = vmax.f32 %v5342_v40, 0.0  ;;  %v5345_v61 = vadd.f32 %v6527_v26, %v9939_v38  ;;  %5462 = vst [vmem:[%s10163_s3 + $0xc0] sm:$0xff] %v5420_v8  ;;  %v5423_v60 = vmax.f32 %v6621_v24, 0.0 }
 0x2fd   :  { %5463 = vst [vmem:[%s10163_s3 + $0xc8] sm:$0xff] %v5421_v52  ;;  %v5424_v63 = vmax.f32 %v6623_v42, 0.0  ;;  %v4473_v17 = vpop.f32.mrb[20].mxu0 }
 0x2fe   :  { %5440 = vst [vmem:[%s10163_s3 + $0x10] sm:$0xff] %v5398_v36  ;;  %v5401_v0 = vmax.f32 %v5345_v61, 0.0  ;;  %v6528_v1 = vpop.f32.mrb[244].mxu1  ;;  %5465 = vst [vmem:[%s10163_s3 + $0xd8] sm:$0xff] %v5423_v60  ;;  %v6624_v2 = vadd.f32 %v4473_v17, %v9964_v32  ;;  %v4475_v38 = vpop.f32.mrb[21].mxu0 }
 0x2ff   :  { %v6529_v50 = vpop.f32.mrb[245].mxu1  ;;  %5466 = vst [vmem:[%s10163_s3 + $0xe0] sm:$0xff] %v5424_v63  ;;  %v6626_v5 = vadd.f32 %v4475_v38, %v9968_v62  ;;  %v4477_v39 = vpop.f32.mrb[22].mxu0 }
 0x300   :  { %5443 = vst [vmem:[%s10163_s3 + $0x28] sm:$0xff] %v5401_v0  ;;  %v6530_v10 = vadd.f32 %v6529_v50, %v6528_v1  ;;  %v6531_v48 = vpop.f32.mrb[246].mxu1  ;;  %v6625_v20 = vadd.f32 %v6624_v2, %v8737_v9  ;;  %v6628_v44 = vadd.f32 %v4477_v39, %v9964_v32  ;;  %v4479_v31 = vpop.f32.mrb[23].mxu0 }
 0x301   :  { %v6532_v37 = vpop.f32.mrb[247].mxu1  ;;  %v6627_v56 = vadd.f32 %v6626_v5, %v8742_v11  ;;  %v6630_v30 = vadd.f32 %v4479_v31, %v9968_v62 }
 0x302   :  { %v5350_v49 = vadd.f32 %v6530_v10, %v9941_v47  ;;  %v6533_v6 = vadd.f32 %v6532_v37, %v6531_v48  ;;  %v5426_v34 = vmax.f32 %v6625_v20, 0.0  ;;  %v6629_v53 = vadd.f32 %v6628_v44, %v8747_v13 }
 0x303   :  { %v5427_v54 = vmax.f32 %v6627_v56, 0.0  ;;  %v6631_v23 = vadd.f32 %v6630_v30, %v8752_v15 }
 0x304   :  { %v5404_v57 = vmax.f32 %v5350_v49, 0.0  ;;  %v5353_v9 = vadd.f32 %v6533_v6, %v9943_v59  ;;  %5468 = vst [vmem:[%s10163_s3 + $0xf0] sm:$0xff] %v5426_v34  ;;  %v5429_v7 = vmax.f32 %v6629_v53, 0.0 }
 0x305   :  { %5469 = vst [vmem:[%s10163_s3 + $0xf8] sm:$0xff] %v5427_v54  ;;  %v5430_v11 = vmax.f32 %v6631_v23, 0.0  ;;  %v4483_v47 = vpop.f32.mrb[24].mxu0 }
 0x306   :  { %5446 = vst [vmem:[%s10163_s3 + $0x40] sm:$0xff] %v5404_v57  ;;  %v5407_v13 = vmax.f32 %v5353_v9, 0.0  ;;  %v6534_v58 = vpop.f32.mrb[248].mxu1  ;;  %5471 = vst [vmem:[%s10163_s3 + $0x108] sm:$0xff] %v5429_v7  ;;  %v6632_v15 = vadd.f32 %v4483_v47, %v9964_v32  ;;  %v4485_v59 = vpop.f32.mrb[25].mxu0 }
 0x307   :  { %v6535_v33 = vpop.f32.mrb[249].mxu1  ;;  %5472 = vst [vmem:[%s10163_s3 + $0x110] sm:$0xff] %v5430_v11  ;;  %v6634_v14 = vadd.f32 %v4485_v59, %v9968_v62  ;;  %v4487_v45 = vpop.f32.mrb[26].mxu0 }
 0x308   :  { %5449 = vst [vmem:[%s10163_s3 + $0x58] sm:$0xff] %v5407_v13  ;;  %v6536_v51 = vadd.f32 %v6535_v33, %v6534_v58  ;;  %v6537_v16 = vpop.f32.mrb[250].mxu1  ;;  %v6633_v41 = vadd.f32 %v6632_v15, %v8769_v21  ;;  %v6636_v40 = vadd.f32 %v4487_v45, %v9964_v32  ;;  %v4489_v27 = vpop.f32.mrb[27].mxu0 }
 0x309   :  { %v6538_v26 = vpop.f32.mrb[251].mxu1  ;;  %v6635_v8 = vadd.f32 %v6634_v14, %v8771_v22  ;;  %v6638_v52 = vadd.f32 %v4489_v27, %v9968_v62 }
 0x30a   :  { %v5358_v24 = vadd.f32 %v6536_v51, %v9945_v55  ;;  %v6539_v36 = vadd.f32 %v6538_v26, %v6537_v16  ;;  %v5432_v42 = vmax.f32 %v6633_v41, 0.0  ;;  %v6637_v61 = vadd.f32 %v6636_v40, %v8779_v25 }
 0x30b   :  { %v5433_v60 = vmax.f32 %v6635_v8, 0.0  ;;  %v6639_v0 = vadd.f32 %v6638_v52, %v8787_v28 }
 0x30c   :  { %v5410_v63 = vmax.f32 %v5358_v24, 0.0  ;;  %v5361_v21 = vadd.f32 %v6539_v36, %v9947_v43  ;;  %5474 = vst [vmem:[%s10163_s3 + $0x120] sm:$0xff] %v5432_v42  ;;  %v5435_v17 = vmax.f32 %v6637_v61, 0.0 }
 0x30d   :  { %5475 = vst [vmem:[%s10163_s3 + $0x128] sm:$0xff] %v5433_v60  ;;  %v5436_v22 = vmax.f32 %v6639_v0, 0.0 }
 0x30e   :  { %5452 = vst [vmem:[%s10163_s3 + $0x70] sm:$0xff] %v5410_v63  ;;  %v5413_v25 = vmax.f32 %v5361_v21, 0.0  ;;  %v6540_v55 = vpop.f32.mrb[252].mxu1  ;;  %5477 = vst [vmem:[%s10163_s3 + $0x138] sm:$0xff] %v5435_v17 }
 0x30f   :  { %v6541_v28 = vpop.f32.mrb[253].mxu1  ;;  %5478 = vst [vmem:[%s10163_s3 + $0x140] sm:$0xff] %v5436_v22 }
 0x310   :  { %5455 = vst [vmem:[%s10163_s3 + $0x88] sm:$0xff] %v5413_v25  ;;  %v6542_v43 = vadd.f32 %v6541_v28, %v6540_v55  ;;  %v6543_v1 = vpop.f32.mrb[254].mxu1 }
 0x311   :  { %v6544_v2 = vpop.f32.mrb[255].mxu1 }
 0x312   :  { %v5366_v38 = vadd.f32 %v6542_v43, %v9949_v12  ;;  %v6545_v50 = vadd.f32 %v6544_v2, %v6543_v1 }
 0x314   :  { %v5416_v5 = vmax.f32 %v5366_v38, 0.0  ;;  %v5369_v10 = vadd.f32 %v6545_v50, %v9951_v4 }
 0x315   :  { %v4526_v48 = vpop.f32.mrb[0].mxu0 }
 0x316   :  { %5458 = vst [vmem:[%s10163_s3 + $0xa0] sm:$0xff] %v5416_v5  ;;  %v5419_v39 = vmax.f32 %v5369_v10, 0.0  ;;  %v6546_v20 = vpop.f32.mrb[0].mxu1  ;;  %v6596_v44 = vadd.f32 %v4526_v48, %v9964_v32  ;;  %v4528_v31 = vpop.f32.mrb[1].mxu0 }
 0x317   :  { %v6547_v37 = vpop.f32.mrb[1].mxu1  ;;  %v6597_v12 = vadd.f32 %v4528_v31, %v9968_v62  ;;  %v4530_v49 = vpop.f32.mrb[2].mxu0 }
 0x318   :  { %5461 = vst [vmem:[%s10163_s3 + $0xb8] sm:$0xff] %v5419_v39  ;;  %v6548_v56 = vadd.f32 %v6547_v37, %v6546_v20  ;;  %v6549_v4 = vpop.f32.mrb[2].mxu1  ;;  %v5396_v30 = vmax.f32 %v6596_v44, 0.0  ;;  %v6598_v6 = vadd.f32 %v4530_v49, %v9964_v32  ;;  %v4532_v34 = vpop.f32.mrb[3].mxu0 }
 0x319   :  { %v6550_v53 = vpop.f32.mrb[3].mxu1  ;;  %v5397_v54 = vmax.f32 %v6597_v12, 0.0  ;;  %v6599_v23 = vadd.f32 %v4532_v34, %v9968_v62 }
 0x31a   :  { %v5374_v57 = vadd.f32 %v6548_v56, %v9953_v35  ;;  %v6551_v9 = vadd.f32 %v6550_v53, %v6549_v4  ;;  %5438 = vst [vmem:[%s10163_s3] sm:$0xff] %v5396_v30  ;;  %v5399_v7 = vmax.f32 %v6598_v6, 0.0 }
 0x31b   :  { %5439 = vst [vmem:[%s10163_s3 + $0x8] sm:$0xff] %v5397_v54  ;;  %v5400_v13 = vmax.f32 %v6599_v23, 0.0 }
 0x31c   :  { %v5422_v11 = vmax.f32 %v5374_v57, 0.0  ;;  %v5377_v47 = vadd.f32 %v6551_v9, %v9955_v29  ;;  %5441 = vst [vmem:[%s10163_s3 + $0x18] sm:$0xff] %v5399_v7 }
 0x31d   :  { %5442 = vst [vmem:[%s10163_s3 + $0x20] sm:$0xff] %v5400_v13  ;;  %v4536_v58 = vpop.f32.mrb[4].mxu0 }
 0x31e   :  { %5464 = vst [vmem:[%s10163_s3 + $0xd0] sm:$0xff] %v5422_v11  ;;  %v5425_v35 = vmax.f32 %v5377_v47, 0.0  ;;  %v6552_v15 = vpop.f32.mrb[4].mxu1  ;;  %v6600_v59 = vadd.f32 %v4536_v58, %v9964_v32  ;;  %v4538_v33 = vpop.f32.mrb[5].mxu0 }
 0x31f   :  { %v6553_v14 = vpop.f32.mrb[5].mxu1  ;;  %v6601_v29 = vadd.f32 %v4538_v33, %v9968_v62  ;;  %v4540_v45 = vpop.f32.mrb[6].mxu0 }
 0x320   :  { %5467 = vst [vmem:[%s10163_s3 + $0xe8] sm:$0xff] %v5425_v35  ;;  %v6554_v51 = vadd.f32 %v6553_v14, %v6552_v15  ;;  %v6555_v16 = vpop.f32.mrb[6].mxu1  ;;  %v5402_v41 = vmax.f32 %v6600_v59, 0.0  ;;  %v6602_v40 = vadd.f32 %v4540_v45, %v9964_v32  ;;  %v4542_v27 = vpop.f32.mrb[7].mxu0 }
 0x321   :  { %v6556_v26 = vpop.f32.mrb[7].mxu1  ;;  %v5403_v8 = vmax.f32 %v6601_v29, 0.0  ;;  %v6603_v52 = vadd.f32 %v4542_v27, %v9968_v62 }
 0x322   :  { %v5382_v24 = vadd.f32 %v6554_v51, %v9959_v3  ;;  %v6557_v36 = vadd.f32 %v6556_v26, %v6555_v16  ;;  %5444 = vst [vmem:[%s10163_s3 + $0x30] sm:$0xff] %v5402_v41  ;;  %v5405_v42 = vmax.f32 %v6602_v40, 0.0 }
 0x323   :  { %5445 = vst [vmem:[%s10163_s3 + $0x38] sm:$0xff] %v5403_v8  ;;  %v5406_v60 = vmax.f32 %v6603_v52, 0.0 }
 0x324   :  { %v5428_v61 = vmax.f32 %v5382_v24, 0.0  ;;  %v5385_v63 = vadd.f32 %v6557_v36, %v9966_v18  ;;  %5447 = vst [vmem:[%s10163_s3 + $0x48] sm:$0xff] %v5405_v42 }
 0x325   :  { %5448 = vst [vmem:[%s10163_s3 + $0x50] sm:$0xff] %v5406_v60  ;;  %v4546_v0 = vpop.f32.mrb[8].mxu0 }
 0x326   :  { %5470 = vst [vmem:[%s10163_s3 + $0x100] sm:$0xff] %v5428_v61  ;;  %v5431_v3 = vmax.f32 %v5385_v63, 0.0  ;;  %v6558_v21 = vpop.f32.mrb[8].mxu1  ;;  %v6604_v17 = vadd.f32 %v4546_v0, %v9964_v32  ;;  %v4548_v22 = vpop.f32.mrb[9].mxu0 }
 0x327   :  { %v6559_v25 = vpop.f32.mrb[9].mxu1  ;;  %v6605_v18 = vadd.f32 %v4548_v22, %v9968_v62  ;;  %v4550_v28 = vpop.f32.mrb[10].mxu0 }
 0x328   :  { %5473 = vst [vmem:[%s10163_s3 + $0x118] sm:$0xff] %v5431_v3  ;;  %v6560_v55 = vadd.f32 %v6559_v25, %v6558_v21  ;;  %v6561_v43 = vpop.f32.mrb[10].mxu1  ;;  %v5408_v1 = vmax.f32 %v6604_v17, 0.0  ;;  %v6606_v2 = vadd.f32 %v4550_v28, %v9964_v32  ;;  %v4552_v38 = vpop.f32.mrb[11].mxu0 }
 0x329   :  { %v6562_v50 = vpop.f32.mrb[11].mxu1  ;;  %v5409_v5 = vmax.f32 %v6605_v18, 0.0  ;;  %v6607_v39 = vadd.f32 %v4552_v38, %v9968_v62 }
 0x32a   :  { %v5390_v10 = vadd.f32 %v6560_v55, %v9976_v19  ;;  %v6563_v48 = vadd.f32 %v6562_v50, %v6561_v43  ;;  %5450 = vst [vmem:[%s10163_s3 + $0x60] sm:$0xff] %v5408_v1  ;;  %v5411_v20 = vmax.f32 %v6606_v2, 0.0 }
 0x32b   :  { %5451 = vst [vmem:[%s10163_s3 + $0x68] sm:$0xff] %v5409_v5  ;;  %v5412_v31 = vmax.f32 %v6607_v39, 0.0 }
 0x32c   :  { %v5434_v44 = vmax.f32 %v5390_v10, 0.0  ;;  %v5393_v32 = vadd.f32 %v6563_v48, %v9982_v46  ;;  %5453 = vst [vmem:[%s10163_s3 + $0x78] sm:$0xff] %v5411_v20 }
 0x32d   :  { %5454 = vst [vmem:[%s10163_s3 + $0x80] sm:$0xff] %v5412_v31 }
 0x32e   :  { %5476 = vst [vmem:[%s10163_s3 + $0x130] sm:$0xff] %v5434_v44  ;;  %v5437_v62 = vmax.f32 %v5393_v32, 0.0 }
 0x330   :  { %5479 = vst [vmem:[%s10163_s3 + $0x148] sm:$0xff] %v5437_v62 }

</bundles_post_ra>
